<compile_context>
chip_gen: v6e
topology: v6e:2x2x1
jax: 0.10.0
libtpu: 0.0.40
codegen_flags: <defaults>
</compile_context>

<pallas_src>
import functools

import jax
import jax.numpy as jnp
from jax.experimental import pallas as pl
from jax.experimental.pallas import tpu as pltpu

HID1 = 1024
HID2 = 512
OUT_PAD = 128  # final Linear(512, 1) padded to a full lane width; column 0 is the result


def net_reg_kernel(a_ref, b_ref, w1_ref, b1_ref, w2_ref, b2_ref,
                   w3a_ref, w3b_ref, b3_ref, w4_ref, b4_ref,
                   w5_ref, b5_ref, o_ref):
    f32, bf16 = jnp.float32, jnp.bfloat16
    a = a_ref[...].astype(bf16)
    b = b_ref[...].astype(bf16)
    # reg1 / reg2
    ha = jnp.maximum(
        jnp.dot(a, w1_ref[...], preferred_element_type=f32) + b1_ref[...], 0.0)
    hb = jnp.maximum(
        jnp.dot(b, w2_ref[...], preferred_element_type=f32) + b2_ref[...], 0.0)
    # concat([ha, hb], 1) @ W3  ==  ha @ W3[:F3] + hb @ W3[F3:]  (concat folded away)
    h1 = jnp.maximum(
        jnp.dot(ha.astype(bf16), w3a_ref[...], preferred_element_type=f32)
        + jnp.dot(hb.astype(bf16), w3b_ref[...], preferred_element_type=f32)
        + b3_ref[...], 0.0)
    # Dropout(0.1): identity in eval mode
    h2 = jnp.maximum(
        jnp.dot(h1.astype(bf16), w4_ref[...], preferred_element_type=f32)
        + b4_ref[...], 0.0)
    y = (jnp.dot(h2.astype(bf16), w5_ref[...], preferred_element_type=f32)
         + b5_ref[...])                              # (tb, OUT_PAD) f32
    # Lane-dense writeback: transpose through the idle XLU and keep column 0 as a
    # dense (1, tb) row -> unmasked lane-dense store, ~128x less output HBM traffic.
    o_ref[...] = y.T[:1, :]


def make_net_reg(padded_batch, f3, tb):
    grid = (padded_batch // tb,)

    def act(shape):  # batch-blocked activation tiles
        return pl.BlockSpec(shape, lambda i: (i, 0))

    def resident(shape):  # full block, constant index -> stays VMEM-resident
        return pl.BlockSpec(shape, lambda i: (0, 0))

    weight_shapes = [
        (f3, f3), (1, f3),                     # W1, b1
        (f3, f3), (1, f3),                     # W2, b2
        (f3, HID1), (f3, HID1), (1, HID1),     # W3[:F3], W3[F3:], b3
        (HID1, HID2), (1, HID2),               # W4, b4
        (HID2, OUT_PAD), (1, OUT_PAD),         # W5 (lane-padded), b5 (lane-padded)
    ]

    flops = 2 * padded_batch * (2 * f3 * f3 + 2 * f3 * HID1
                                + HID1 * HID2 + HID2 * OUT_PAD)
    bytes_accessed = (
        2 * (2 * f3 * f3 + 2 * f3 * HID1 + HID1 * HID2 + HID2 * OUT_PAD)  # bf16 weights
        + 4 * (2 * f3 + HID1 + HID2 + OUT_PAD)                            # f32 biases
        + 4 * padded_batch * 2 * f3                                       # f32 A, B
        + 4 * padded_batch)                                               # f32 out row

    return pl.pallas_call(
        net_reg_kernel,
        out_shape=jax.ShapeDtypeStruct((1, padded_batch), jnp.float32),
        grid=grid,
        in_specs=[act((tb, f3)), act((tb, f3))]
                 + [resident(s) for s in weight_shapes],
        out_specs=pl.BlockSpec((1, tb), lambda i: (0, i)),
        compiler_params=pltpu.CompilerParams(
            dimension_semantics=("parallel",),
            vmem_limit_bytes=(32 << 20) if tb > 512 else (16 << 20)),
        cost_estimate=pl.CostEstimate(
            flops=flops, transcendentals=0, bytes_accessed=bytes_accessed),
    )


def _round_up(x, m):
    return ((x + m - 1) // m) * m


def net_reg_forward(A, B, params, tb=None, num_cores=1):
    """A, B: (batch, 3*num_filters) f32.  Returns (batch, 1) f32.

    tb: rows per grid step.  Default picks the largest tile (<= 1024) that still
    yields `num_cores` grid steps: use num_cores=2 on v7x so the 'parallel' axis
    splits across both TensorCores, num_cores=1 on v5e/v6e (single step for small
    batches amortizes the ~0.35us per-grid-step overhead best).
    """
    batch, f3 = A.shape
    assert B.shape == (batch, f3)
    if tb is None:
        padded0 = _round_up(batch, 128 * num_cores)
        tb = min(1024, padded0 // num_cores)
    tb = max(128, _round_up(tb, 128))
    padded = _round_up(batch, tb)
    if padded != batch:
        pad = ((0, padded - batch), (0, 0))
        A = jnp.pad(A, pad)
        B = jnp.pad(B, pad)
    out = make_net_reg(padded, f3, tb)(A, B, *params)   # (1, padded) f32
    return out[0, :batch][:, None]


def init_raw_params(key, num_filters):
    """PyTorch nn.Linear default init U(-1/sqrt(fan_in), +1/sqrt(fan_in)), all f32."""
    F3 = 3 * num_filters
    F6 = 6 * num_filters

    def linear(key, fan_in, fan_out):
        kw, kb = jax.random.split(key)
        bound = 1.0 / jnp.sqrt(float(fan_in))
        w = jax.random.uniform(kw, (fan_in, fan_out), jnp.float32, -bound, bound)
        b = jax.random.uniform(kb, (1, fan_out), jnp.float32, -bound, bound)
        return w, b

    ks = jax.random.split(key, 5)
    w1, b1 = linear(ks[0], F3, F3)       # reg1
    w2, b2 = linear(ks[1], F3, F3)       # reg2
    w3, b3 = linear(ks[2], F6, HID1)     # reg[0]
    w4, b4 = linear(ks[3], HID1, HID2)   # reg[3]
    w5, b5 = linear(ks[4], HID2, 1)      # reg[6]
    return dict(w1=w1, b1=b1, w2=w2, b2=b2, w3=w3, b3=b3,
                w4=w4, b4=b4, w5=w5, b5=b5, F3=F3)


def pack_params(raw):
    """Kernel layout: bf16 weights (MXU), f32 biases, W3 split at F3, W5 lane-padded."""
    bf16, f32 = jnp.bfloat16, jnp.float32
    F3 = raw["F3"]
    w5p = jnp.zeros((HID2, OUT_PAD), f32).at[:, :1].set(raw["w5"])
    b5p = jnp.zeros((1, OUT_PAD), f32).at[:, :1].set(raw["b5"])
    return (raw["w1"].astype(bf16), raw["b1"].astype(f32),
            raw["w2"].astype(bf16), raw["b2"].astype(f32),
            raw["w3"][:F3].astype(bf16), raw["w3"][F3:].astype(bf16),
            raw["b3"].astype(f32),
            raw["w4"].astype(bf16), raw["b4"].astype(f32),
            w5p.astype(bf16), b5p.astype(f32))


def reference_forward_f32(A, B, raw):
    """Exact PyTorch-module math in f32 (eval mode)."""
    ha = jnp.maximum(A @ raw["w1"] + raw["b1"], 0.0)
    hb = jnp.maximum(B @ raw["w2"] + raw["b2"], 0.0)
    x = jnp.concatenate([ha, hb], axis=1)
    h1 = jnp.maximum(x @ raw["w3"] + raw["b3"], 0.0)
    h2 = jnp.maximum(h1 @ raw["w4"] + raw["b4"], 0.0)
    return h2 @ raw["w5"] + raw["b5"]


def reference_forward_bf16(A, B, raw):
    """Pure-JAX reference mirroring the kernel numerics (bf16 operands, f32 acc)."""
    bf16, f32 = jnp.bfloat16, jnp.float32
    F3 = raw["F3"]
    dot = functools.partial(jnp.dot, preferred_element_type=f32)
    ha = jnp.maximum(dot(A.astype(bf16), raw["w1"].astype(bf16)) + raw["b1"], 0.0)
    hb = jnp.maximum(dot(B.astype(bf16), raw["w2"].astype(bf16)) + raw["b2"], 0.0)
    h1 = jnp.maximum(dot(ha.astype(bf16), raw["w3"][:F3].astype(bf16))
                     + dot(hb.astype(bf16), raw["w3"][F3:].astype(bf16))
                     + raw["b3"], 0.0)
    h2 = jnp.maximum(dot(h1.astype(bf16), raw["w4"].astype(bf16)) + raw["b4"], 0.0)
    return dot(h2.astype(bf16), raw["w5"].astype(bf16)) + raw["b5"]


if __name__ == "__main__":
    batch = 256
    num_filters = 8  # -> A, B have 3*8 = 24 features each

    key = jax.random.PRNGKey(0)
    k_a, k_b, k_p = jax.random.split(key, 3)
    A = jax.random.normal(k_a, (batch, 3 * num_filters), jnp.float32)
    B = jax.random.normal(k_b, (batch, 3 * num_filters), jnp.float32)
    raw = init_raw_params(k_p, num_filters)
    params = pack_params(raw)

    # v5e/v6e-style single-step grid, and v7x-style 2-step grid (megacore split).
    out1 = jax.block_until_ready(net_reg_forward(A, B, params, num_cores=1))
    out2 = jax.block_until_ready(net_reg_forward(A, B, params, num_cores=2))

    ref_bf16 = reference_forward_bf16(A, B, raw)
    ref_f32 = reference_forward_f32(A, B, raw)

    assert out1.shape == (batch, 1), out1.shape
    assert out2.shape == (batch, 1), out2.shape
    assert jnp.allclose(out1, ref_bf16, atol=5e-3, rtol=5e-3), "mismatch vs bf16 reference"
    assert jnp.allclose(out2, ref_bf16, atol=5e-3, rtol=5e-3), "mismatch vs bf16 reference (2-step grid)"
    # bf16 weight storage vs the original f32 module: loose-tolerance sanity check
    assert jnp.allclose(out1, ref_f32, atol=5e-2, rtol=5e-2), "mismatch vs f32 reference"

    print("KERNEL_OK")
</pallas_src>

<mosaic_0001>
module attributes {stable_mosaic.version = 11 : i64} {
  func.func @net_reg_kernel(%arg0: i32, %arg1: memref<256x24xf32, #tpu.memory_space<vmem>>, %arg2: memref<256x24xf32, #tpu.memory_space<vmem>>, %arg3: memref<24x24xbf16, #tpu.memory_space<vmem>>, %arg4: memref<1x24xf32, #tpu.memory_space<vmem>>, %arg5: memref<24x24xbf16, #tpu.memory_space<vmem>>, %arg6: memref<1x24xf32, #tpu.memory_space<vmem>>, %arg7: memref<24x1024xbf16, #tpu.memory_space<vmem>>, %arg8: memref<24x1024xbf16, #tpu.memory_space<vmem>>, %arg9: memref<1x1024xf32, #tpu.memory_space<vmem>>, %arg10: memref<1024x512xbf16, #tpu.memory_space<vmem>>, %arg11: memref<1x512xf32, #tpu.memory_space<vmem>>, %arg12: memref<512x128xbf16, #tpu.memory_space<vmem>>, %arg13: memref<1x128xf32, #tpu.memory_space<vmem>>, %arg14: memref<1x256xf32, #tpu.memory_space<vmem>>) attributes {dimension_semantics = [#tpu.dimension_semantics<parallel>], iteration_bounds = array<i64: 1>, scalar_prefetch = 0 : i64, scratch_operands = 0 : i64, tpu.core_type = #tpu.core_type<tc>, window_params = [{transform_indices = @transform_0, window_bounds = array<i64: 256, 24>}, {transform_indices = @transform_1, window_bounds = array<i64: 256, 24>}, {pipeline_mode = #tpu.pipeline_mode<synchronous>, transform_indices = @transform_2, window_bounds = array<i64: 24, 24>}, {pipeline_mode = #tpu.pipeline_mode<synchronous>, transform_indices = @transform_3, window_bounds = array<i64: 1, 24>}, {pipeline_mode = #tpu.pipeline_mode<synchronous>, transform_indices = @transform_4, window_bounds = array<i64: 24, 24>}, {pipeline_mode = #tpu.pipeline_mode<synchronous>, transform_indices = @transform_5, window_bounds = array<i64: 1, 24>}, {pipeline_mode = #tpu.pipeline_mode<synchronous>, transform_indices = @transform_6, window_bounds = array<i64: 24, 1024>}, {pipeline_mode = #tpu.pipeline_mode<synchronous>, transform_indices = @transform_7, window_bounds = array<i64: 24, 1024>}, {pipeline_mode = #tpu.pipeline_mode<synchronous>, transform_indices = @transform_8, window_bounds = array<i64: 1, 1024>}, {pipeline_mode = #tpu.pipeline_mode<synchronous>, transform_indices = @transform_9, window_bounds = array<i64: 1024, 512>}, {pipeline_mode = #tpu.pipeline_mode<synchronous>, transform_indices = @transform_10, window_bounds = array<i64: 1, 512>}, {pipeline_mode = #tpu.pipeline_mode<synchronous>, transform_indices = @transform_11, window_bounds = array<i64: 512, 128>}, {pipeline_mode = #tpu.pipeline_mode<synchronous>, transform_indices = @transform_12, window_bounds = array<i64: 1, 128>}, {transform_indices = @transform_13, window_bounds = array<i64: 1, 256>}]} {
    %c0 = arith.constant 0 : index
    %c0_0 = arith.constant 0 : index
    %0 = vector.load %arg1[%c0, %c0_0] : memref<256x24xf32, #tpu.memory_space<vmem>>, vector<256x24xf32>
    %1 = arith.truncf %0 : vector<256x24xf32> to vector<256x24xbf16>
    %c0_1 = arith.constant 0 : index
    %c0_2 = arith.constant 0 : index
    %2 = vector.load %arg2[%c0_1, %c0_2] : memref<256x24xf32, #tpu.memory_space<vmem>>, vector<256x24xf32>
    %3 = arith.truncf %2 : vector<256x24xf32> to vector<256x24xbf16>
    %c0_3 = arith.constant 0 : index
    %c0_4 = arith.constant 0 : index
    %4 = vector.load %arg3[%c0_3, %c0_4] : memref<24x24xbf16, #tpu.memory_space<vmem>>, vector<24x24xbf16>
    %cst = arith.constant dense<0.000000e+00> : vector<256x24xf32>
    %5 = tpu.matmul %1, %4, %cst {dimension_numbers = #tpu.dot_dimension_numbers<[1], [0], [0], [1], [0, 0, 1, 1], [], []>} : vector<256x24xbf16>, vector<24x24xbf16>, vector<256x24xf32> -> vector<256x24xf32>
    %c0_5 = arith.constant 0 : index
    %c0_6 = arith.constant 0 : index
    %6 = vector.load %arg4[%c0_5, %c0_6] : memref<1x24xf32, #tpu.memory_space<vmem>>, vector<1x24xf32>
    %7 = vector.broadcast %6 : vector<1x24xf32> to vector<256x24xf32>
    %8 = arith.addf %5, %7 : vector<256x24xf32>
    %cst_7 = arith.constant 0.000000e+00 : f32
    %9 = vector.broadcast %cst_7 : f32 to vector<256x24xf32>
    %10 = arith.maximumf %8, %9 : vector<256x24xf32>
    %c0_8 = arith.constant 0 : index
    %c0_9 = arith.constant 0 : index
    %11 = vector.load %arg5[%c0_8, %c0_9] : memref<24x24xbf16, #tpu.memory_space<vmem>>, vector<24x24xbf16>
    %cst_10 = arith.constant dense<0.000000e+00> : vector<256x24xf32>
    %12 = tpu.matmul %3, %11, %cst_10 {dimension_numbers = #tpu.dot_dimension_numbers<[1], [0], [0], [1], [0, 0, 1, 1], [], []>} : vector<256x24xbf16>, vector<24x24xbf16>, vector<256x24xf32> -> vector<256x24xf32>
    %c0_11 = arith.constant 0 : index
    %c0_12 = arith.constant 0 : index
    %13 = vector.load %arg6[%c0_11, %c0_12] : memref<1x24xf32, #tpu.memory_space<vmem>>, vector<1x24xf32>
    %14 = vector.broadcast %13 : vector<1x24xf32> to vector<256x24xf32>
    %15 = arith.addf %12, %14 : vector<256x24xf32>
    %cst_13 = arith.constant 0.000000e+00 : f32
    %16 = vector.broadcast %cst_13 : f32 to vector<256x24xf32>
    %17 = arith.maximumf %15, %16 : vector<256x24xf32>
    %18 = arith.truncf %10 : vector<256x24xf32> to vector<256x24xbf16>
    %c0_14 = arith.constant 0 : index
    %c0_15 = arith.constant 0 : index
    %19 = vector.load %arg7[%c0_14, %c0_15] : memref<24x1024xbf16, #tpu.memory_space<vmem>>, vector<24x1024xbf16>
    %cst_16 = arith.constant dense<0.000000e+00> : vector<256x1024xf32>
    %20 = tpu.matmul %18, %19, %cst_16 {dimension_numbers = #tpu.dot_dimension_numbers<[1], [0], [0], [1], [0, 0, 1, 1], [], []>} : vector<256x24xbf16>, vector<24x1024xbf16>, vector<256x1024xf32> -> vector<256x1024xf32>
    %21 = arith.truncf %17 : vector<256x24xf32> to vector<256x24xbf16>
    %c0_17 = arith.constant 0 : index
    %c0_18 = arith.constant 0 : index
    %22 = vector.load %arg8[%c0_17, %c0_18] : memref<24x1024xbf16, #tpu.memory_space<vmem>>, vector<24x1024xbf16>
    %cst_19 = arith.constant dense<0.000000e+00> : vector<256x1024xf32>
    %23 = tpu.matmul %21, %22, %cst_19 {dimension_numbers = #tpu.dot_dimension_numbers<[1], [0], [0], [1], [0, 0, 1, 1], [], []>} : vector<256x24xbf16>, vector<24x1024xbf16>, vector<256x1024xf32> -> vector<256x1024xf32>
    %24 = arith.addf %20, %23 : vector<256x1024xf32>
    %c0_20 = arith.constant 0 : index
    %c0_21 = arith.constant 0 : index
    %25 = vector.load %arg9[%c0_20, %c0_21] : memref<1x1024xf32, #tpu.memory_space<vmem>>, vector<1x1024xf32>
    %26 = vector.broadcast %25 : vector<1x1024xf32> to vector<256x1024xf32>
    %27 = arith.addf %24, %26 : vector<256x1024xf32>
    %cst_22 = arith.constant 0.000000e+00 : f32
    %28 = vector.broadcast %cst_22 : f32 to vector<256x1024xf32>
    %29 = arith.maximumf %27, %28 : vector<256x1024xf32>
    %30 = arith.truncf %29 : vector<256x1024xf32> to vector<256x1024xbf16>
    %c0_23 = arith.constant 0 : index
    %c0_24 = arith.constant 0 : index
    %31 = vector.load %arg10[%c0_23, %c0_24] : memref<1024x512xbf16, #tpu.memory_space<vmem>>, vector<1024x512xbf16>
    %cst_25 = arith.constant dense<0.000000e+00> : vector<256x512xf32>
    %32 = tpu.matmul %30, %31, %cst_25 {dimension_numbers = #tpu.dot_dimension_numbers<[1], [0], [0], [1], [0, 0, 1, 1], [], []>} : vector<256x1024xbf16>, vector<1024x512xbf16>, vector<256x512xf32> -> vector<256x512xf32>
    %c0_26 = arith.constant 0 : index
    %c0_27 = arith.constant 0 : index
    %33 = vector.load %arg11[%c0_26, %c0_27] : memref<1x512xf32, #tpu.memory_space<vmem>>, vector<1x512xf32>
    %34 = vector.broadcast %33 : vector<1x512xf32> to vector<256x512xf32>
    %35 = arith.addf %32, %34 : vector<256x512xf32>
    %cst_28 = arith.constant 0.000000e+00 : f32
    %36 = vector.broadcast %cst_28 : f32 to vector<256x512xf32>
    %37 = arith.maximumf %35, %36 : vector<256x512xf32>
    %38 = arith.truncf %37 : vector<256x512xf32> to vector<256x512xbf16>
    %c0_29 = arith.constant 0 : index
    %c0_30 = arith.constant 0 : index
    %39 = vector.load %arg12[%c0_29, %c0_30] : memref<512x128xbf16, #tpu.memory_space<vmem>>, vector<512x128xbf16>
    %cst_31 = arith.constant dense<0.000000e+00> : vector<256x128xf32>
    %40 = tpu.matmul %38, %39, %cst_31 {dimension_numbers = #tpu.dot_dimension_numbers<[1], [0], [0], [1], [0, 0, 1, 1], [], []>} : vector<256x512xbf16>, vector<512x128xbf16>, vector<256x128xf32> -> vector<256x128xf32>
    %c0_32 = arith.constant 0 : index
    %c0_33 = arith.constant 0 : index
    %41 = vector.load %arg13[%c0_32, %c0_33] : memref<1x128xf32, #tpu.memory_space<vmem>>, vector<1x128xf32>
    %42 = vector.broadcast %41 : vector<1x128xf32> to vector<256x128xf32>
    %43 = arith.addf %40, %42 : vector<256x128xf32>
    %44 = tpu.transpose %43, [1, 0] : vector<256x128xf32> -> vector<128x256xf32>
    %45 = vector.extract_strided_slice %44 {offsets = [0, 0], sizes = [1, 256], strides = [1, 1]} : vector<128x256xf32> to vector<1x256xf32>
    %c0_34 = arith.constant 0 : index
    %c0_35 = arith.constant 0 : index
    %46 = vector.load %arg14[%c0_34, %c0_35] : memref<1x256xf32, #tpu.memory_space<vmem>>, vector<1x256xf32>
    tpu.vector_store %arg14[%c0_34, %c0_35], %45 {strides = array<i32>} : memref<1x256xf32, #tpu.memory_space<vmem>>, vector<1x256xf32>,
    return
  }
  func.func @transform_0(%arg0: i32) -> (i32, i32) {
    %c0_i32 = arith.constant 0 : i32
    %c0_i32_0 = arith.constant 0 : i32
    return %arg0, %c0_i32 : i32, i32
  }
  func.func @transform_1(%arg0: i32) -> (i32, i32) {
    %c0_i32 = arith.constant 0 : i32
    %c0_i32_0 = arith.constant 0 : i32
    return %arg0, %c0_i32 : i32, i32
  }
  func.func @transform_2(%arg0: i32) -> (i32, i32) {
    %c0_i32 = arith.constant 0 : i32
    %c0_i32_0 = arith.constant 0 : i32
    %c0_i32_1 = arith.constant 0 : i32
    return %c0_i32, %c0_i32_0 : i32, i32
  }
  func.func @transform_3(%arg0: i32) -> (i32, i32) {
    %c0_i32 = arith.constant 0 : i32
    %c0_i32_0 = arith.constant 0 : i32
    %c0_i32_1 = arith.constant 0 : i32
    return %c0_i32, %c0_i32_0 : i32, i32
  }
  func.func @transform_4(%arg0: i32) -> (i32, i32) {
    %c0_i32 = arith.constant 0 : i32
    %c0_i32_0 = arith.constant 0 : i32
    %c0_i32_1 = arith.constant 0 : i32
    return %c0_i32, %c0_i32_0 : i32, i32
  }
  func.func @transform_5(%arg0: i32) -> (i32, i32) {
    %c0_i32 = arith.constant 0 : i32
    %c0_i32_0 = arith.constant 0 : i32
    %c0_i32_1 = arith.constant 0 : i32
    return %c0_i32, %c0_i32_0 : i32, i32
  }
  func.func @transform_6(%arg0: i32) -> (i32, i32) {
    %c0_i32 = arith.constant 0 : i32
    %c0_i32_0 = arith.constant 0 : i32
    %c0_i32_1 = arith.constant 0 : i32
    return %c0_i32, %c0_i32_0 : i32, i32
  }
  func.func @transform_7(%arg0: i32) -> (i32, i32) {
    %c0_i32 = arith.constant 0 : i32
    %c0_i32_0 = arith.constant 0 : i32
    %c0_i32_1 = arith.constant 0 : i32
    return %c0_i32, %c0_i32_0 : i32, i32
  }
  func.func @transform_8(%arg0: i32) -> (i32, i32) {
    %c0_i32 = arith.constant 0 : i32
    %c0_i32_0 = arith.constant 0 : i32
    %c0_i32_1 = arith.constant 0 : i32
    return %c0_i32, %c0_i32_0 : i32, i32
  }
  func.func @transform_9(%arg0: i32) -> (i32, i32) {
    %c0_i32 = arith.constant 0 : i32
    %c0_i32_0 = arith.constant 0 : i32
    %c0_i32_1 = arith.constant 0 : i32
    return %c0_i32, %c0_i32_0 : i32, i32
  }
  func.func @transform_10(%arg0: i32) -> (i32, i32) {
    %c0_i32 = arith.constant 0 : i32
    %c0_i32_0 = arith.constant 0 : i32
    %c0_i32_1 = arith.constant 0 : i32
    return %c0_i32, %c0_i32_0 : i32, i32
  }
  func.func @transform_11(%arg0: i32) -> (i32, i32) {
    %c0_i32 = arith.constant 0 : i32
    %c0_i32_0 = arith.constant 0 : i32
    %c0_i32_1 = arith.constant 0 : i32
    return %c0_i32, %c0_i32_0 : i32, i32
  }
  func.func @transform_12(%arg0: i32) -> (i32, i32) {
    %c0_i32 = arith.constant 0 : i32
    %c0_i32_0 = arith.constant 0 : i32
    %c0_i32_1 = arith.constant 0 : i32
    return %c0_i32, %c0_i32_0 : i32, i32
  }
  func.func @transform_13(%arg0: i32) -> (i32, i32) {
    %c0_i32 = arith.constant 0 : i32
    %c0_i32_0 = arith.constant 0 : i32
    return %c0_i32, %arg0 : i32, i32
  }
}

</mosaic_0001>

<bundles_post_ra>
// kernel: tpu_custom_call.1
= control target key start
LH: loop header
LB: loop body
LE: loop exit
PB: predicated region body
PF: predicated region fallthrough
CT: control target
= control target key end

     0   :  { %18 = vsyncpa [#allocation3], 0  ;;  %s12807_s0 = inlined_call_operand.vmem [shape: f32[256,24], index: 0, kind: input, shape index: {}]   ;;  %s12808_s1 = inlined_call_operand.vmem [shape: f32[256,24], index: 1, kind: input, shape index: {}]   ;;  %s12809_s2 = inlined_call_operand.vmem [shape: bf16[24,24], index: 2, kind: input, shape index: {}]   ;;  %s12810_s3 = inlined_call_operand.vmem [shape: f32[1,24], index: 3, kind: input, shape index: {}]   ;;  %s12811_s4 = inlined_call_operand.vmem [shape: bf16[24,24], index: 4, kind: input, shape index: {}]   ;;  %s12812_s5 = inlined_call_operand.vmem [shape: f32[1,24], index: 5, kind: input, shape index: {}]   ;;  %s12813_s6 = inlined_call_operand.vmem [shape: bf16[24,1024], index: 6, kind: input, shape index: {}]   ;;  %s12814_s7 = inlined_call_operand.vmem [shape: bf16[24,1024], index: 7, kind: input, shape index: {}]   ;;  %s12815_s8 = inlined_call_operand.vmem [shape: f32[1,1024], index: 8, kind: input, shape index: {}]   ;;  %s12816_s9 = inlined_call_operand.hbm [shape: bf16[1024,512], index: 9, kind: input, shape index: {}]   ;;  %s12817_s10 = inlined_call_operand.vmem [shape: f32[1,512], index: 10, kind: input, shape index: {}]   ;;  %s12818_s11 = inlined_call_operand.vmem [shape: bf16[512,128], index: 11, kind: input, shape index: {}]   ;;  %s12819_s12 = inlined_call_operand.vmem [shape: f32[1,128], index: 12, kind: input, shape index: {}]   ;;  %s12820_s13 = inlined_call_operand.hbm [shape: f32[1,256], index: 13, kind: output, shape index: {}]  }
   0x1   :  { %19 = vsyncpa [#allocation4], 0  ;;  %s8529_s25 = smov [#allocation2]  }
   0x2   :  { %s43_s26 = sshll.u32 %s8529_s25, 4  ;;  %s44_s26 = int_to_ptr.vmem [resolvable:$true] %s43_s26 }
   0x3   :  { %s8493_s27 = scalar_lea.vmem %s44_s26, 32768  ;;  %p8498_p1 = scmp.lt.s32.totalorder %s44_s26, %s44_s26 }
   0x4   :  { %p8494_p0 = scmp.ne.s32.totalorder %s44_s26, %s8493_s27  ;;  %p8499_p2 = scmp.lt.s32.totalorder %s8493_s27, %s8493_s27 }
   0x6   :  { %p8500_p3 = por %p8499_p2, %p8498_p1 }
   0x8   :  { %p8501_p4 = pnand %p8500_p3, %p8494_p0 }
   0xa   :  { %8504 = shalt.err (!%p8501_p4)
}
   0xb   :  { %s8530_s28 = smov 256   ;;  %s8531_s29 = smov 16  }
   0xc   :  { %49 = dma.hbm_to_vmem [thread:$0]  %s12816_s9, 32768, %s44_s26, [#allocation3], %s8530_s28, %s8530_s28, %s8531_s29  }
   0xd   :  { %8525 = dma.done.wait [#allocation3], 32768  }
   0xe   :  { %8526 = vsyncadd [#allocation3], 4294934528  ;;  %vm224_vm0 = vcmask 1043456   ;;  %v8046_v0 = vld [vmem:[%s12811_s4 + $0x8] ss:$0 sps:$4 sm:$0xff]   ;;  %v8047_v1 = vld [vmem:[%s12811_s4] sm:$0xff]  }
   0xf   :  { %v108_v2 = vld [vmem:[%s12808_s1] sm:$0xff]  ;;  %8039 = vmatprep.subr.msk.bf16.mxu1 %vm224_vm0, %v8046_v0  ;;  %v489_v3 = vsel %vm224_vm0, %v8046_v0, 0  ;;  %v109_v4 = vld [vmem:[%s12808_s1 + $0x8] sm:$0xff]  ;;  %vm175_vm1 = vcmask 195584   ;;  %v110_v6 = vld [vmem:[%s12808_s1 + $0x10] sm:$0xff] }
  0x10   :  { %8003 = vmatpush3.bf16.msra.mxu1 %v489_v3  ;;  %v140_v5 = vpack.c.bf16 %v109_v4, %v108_v2  ;;  %v111_v7 = vld [vmem:[%s12808_s1 + $0x18] sm:$0xff]  ;;  %v112_v8 = vld [vmem:[%s12808_s1 + $0x20] sm:$0xff]  ;;  %v113_v9 = vld [vmem:[%s12808_s1 + $0x28] sm:$0xff] }
  0x11   :  { %8004 = vmatprep.subr.bf16.mxu1 %v8047_v1  ;;  %v141_v10 = vpack.c.bf16 %v111_v7, %v110_v6  ;;  %v142_v11 = vpack.c.bf16 %v113_v9, %v112_v8  ;;  %v114_v12 = vld [vmem:[%s12808_s1 + $0x30] sm:$0xff]  ;;  %v115_v13 = vld [vmem:[%s12808_s1 + $0x38] sm:$0xff]  ;;  %v116_v14 = vld [vmem:[%s12808_s1 + $0x40] sm:$0xff] }
  0x12   :  { %8006 = vmatprep.mubr.msk.bf16.mxu1 %vm175_vm1, %v140_v5  ;;  %v117_v15 = vld [vmem:[%s12808_s1 + $0x48] sm:$0xff]  ;;  %v8049_v17 = vld [vmem:[%s12809_s2] sm:$0xff]   ;;  %v143_v18 = vpack.c.bf16 %v115_v13, %v114_v12  ;;  %v62_v24 = vld [vmem:[%s12807_s0 + $0x10] sm:$0xff] }
  0x13   :  { %v8048_v16 = vld [vmem:[%s12809_s2 + $0x8] ss:$0 sps:$4 sm:$0xff]   ;;  %v60_v20 = vld [vmem:[%s12807_s0] sm:$0xff]  ;;  %v144_v22 = vpack.c.bf16 %v117_v15, %v116_v14  ;;  %v63_v25 = vld [vmem:[%s12807_s0 + $0x18] sm:$0xff] }
  0x14   :  { %8005 = vmatpush3.bf16.msra.mxu1 %v8047_v1  ;;  %8038 = vmatprep.subr.msk.bf16.mxu0 %vm224_vm0, %v8048_v16  ;;  %v226_v19 = vsel %vm224_vm0, %v8048_v16, 0  ;;  %v61_v21 = vld [vmem:[%s12807_s0 + $0x8] sm:$0xff]  ;;  %v736_v26 = vld [vmem:[%s12814_s7 + $0x40] sm:$0xff]  ;;  %v93_v34 = vpack.c.bf16 %v63_v25, %v62_v24  ;;  %v118_v35 = vld [vmem:[%s12808_s1 + $0x50] sm:$0xff] }
  0x15   :  { %7967 = vmatpush3.bf16.msra.mxu0 %v226_v19  ;;  %v92_v23 = vpack.c.bf16 %v61_v21, %v60_v20  ;;  %v7258_v27 = vcombine.high %v736_v26, %v736_v26  ;;  %v7257_v28 = vcombine.low %v736_v26, %v736_v26  ;;  %v64_v29 = vld [vmem:[%s12807_s0 + $0x20] sm:$0xff]  ;;  %v65_v30 = vld [vmem:[%s12807_s0 + $0x28] sm:$0xff]  ;;  %v119_v36 = vld [vmem:[%s12808_s1 + $0x58] sm:$0xff] }
  0x16   :  { %7968 = vmatprep.subr.bf16.mxu0 %v8049_v17  ;;  %v737_v31 = vld [vmem:[%s12814_s7 + $0x48] sm:$0xff]  ;;  %v94_v37 = vpack.c.bf16 %v65_v30, %v64_v29  ;;  %v120_v39 = vld [vmem:[%s12808_s1 + $0x60] sm:$0xff]  ;;  %v145_v44 = vpack.c.bf16 %v119_v36, %v118_v35  ;;  %v66_v48 = vld [vmem:[%s12807_s0 + $0x30] sm:$0xff] }
  0x17   :  { %8007 = vmatmul.mubr.msk.bf16.vlgmr.msra.gmra.mxu1 %vm175_vm1, %v141_v10  ;;  %7970 = vmatprep.mubr.msk.bf16.mxu0 %vm175_vm1, %v92_v23  ;;  %v7260_v32 = vcombine.high %v737_v31, %v737_v31  ;;  %v7259_v33 = vcombine.low %v737_v31, %v737_v31  ;;  %v121_v40 = vld [vmem:[%s12808_s1 + $0x68] sm:$0xff]  ;;  %v849_v41 = vsel %vm224_vm0, %v7257_v28, 0  ;;  %v728_v42 = vld [vmem:[%s12814_s7] sm:$0xff]  ;;  %v67_v49 = vld [vmem:[%s12807_s0 + $0x38] sm:$0xff] }
  0x18   :  { %8010 = vmatprep.mubr.msk.bf16.mxu1 %vm175_vm1, %v142_v11  ;;  %v732_v43 = vld [vmem:[%s12814_s7 + $0x20] sm:$0xff]  ;;  %v729_v46 = vld [vmem:[%s12814_s7 + $0x8] sm:$0xff]  ;;  %v146_v47 = vpack.c.bf16 %v121_v40, %v120_v39  ;;  %v122_v56 = vld [vmem:[%s12808_s1 + $0x70] sm:$0xff]  ;;  %v95_v60 = vpack.c.bf16 %v67_v49, %v66_v48 }
  0x19   :  { %7969 = vmatpush3.bf16.msra.mxu0 %v8049_v17  ;;  %v855_v38 = vsel %vm224_vm0, %v7259_v33, 0  ;;  %7282 = vmatprep.subr.msk.bf16.mxu1 %vm224_vm0, %v7260_v32  ;;  %v7250_v45 = vcombine.high %v728_v42, %v732_v43  ;;  %v7249_v50 = vcombine.low %v728_v42, %v732_v43  ;;  %v733_v51 = vld [vmem:[%s12814_s7 + $0x28] sm:$0xff]  ;;  %v68_v52 = vld [vmem:[%s12807_s0 + $0x40] sm:$0xff]  ;;  %v123_v57 = vld [vmem:[%s12808_s1 + $0x78] sm:$0xff] }
  0x1a   :  { %7265 = vmatprep.subr.msk.bf16.mxu0 %vm224_vm0, %v7258_v27  ;;  %1078 = vmatpush1.bf16.msra.mxu1 %v855_v38  ;;  %v69_v53 = vld [vmem:[%s12807_s0 + $0x48] sm:$0xff]  ;;  %v7251_v54 = vcombine.low %v729_v46, %v733_v51  ;;  %v7252_v55 = vcombine.high %v729_v46, %v733_v51  ;;  %v124_v58 = vld [vmem:[%s12808_s1 + $0x80] sm:$0xff]  ;;  %v70_v62 = vld [vmem:[%s12807_s0 + $0x50] sm:$0xff]  ;;  %v147_v0 = vpack.c.bf16 %v123_v57, %v122_v56 }
  0x1b   :  { %v125_v59 = vld [vmem:[%s12808_s1 + $0x88] sm:$0xff]  ;;  %v96_v61 = vpack.c.bf16 %v69_v53, %v68_v52  ;;  %v71_v63 = vld [vmem:[%s12807_s0 + $0x58] sm:$0xff]  ;;  %v72_v1 = vld [vmem:[%s12807_s0 + $0x60] sm:$0xff] }
  0x1c   :  { %7971 = vmatmul.mubr.msk.bf16.vlgmr.msra.gmra.mxu0 %vm175_vm1, %v93_v34  ;;  %1079 = vmatprep.subr.bf16.mxu1 %v7252_v55  ;;  %v73_v2 = vld [vmem:[%s12807_s0 + $0x68] sm:$0xff]  ;;  %v148_v3 = vpack.c.bf16 %v125_v59, %v124_v58  ;;  %v126_v4 = vld [vmem:[%s12808_s1 + $0x90] sm:$0xff]  ;;  %v127_v5 = vld [vmem:[%s12808_s1 + $0x98] sm:$0xff]  ;;  %v97_v8 = vpack.c.bf16 %v71_v63, %v70_v62 }
  0x1d   :  { %885 = vmatpush1.bf16.msra.mxu0 %v849_v41  ;;  %7974 = vmatprep.mubr.msk.bf16.mxu0 %vm175_vm1, %v94_v37  ;;  %v128_v6 = vld [vmem:[%s12808_s1 + $0xa0] sm:$0xff]  ;;  %v129_v7 = vld [vmem:[%s12808_s1 + $0xa8] sm:$0xff]  ;;  %v98_v9 = vpack.c.bf16 %v73_v2, %v72_v1  ;;  %v74_v10 = vld [vmem:[%s12807_s0 + $0x70] sm:$0xff]  ;;  %v149_v12 = vpack.c.bf16 %v127_v5, %v126_v4 }
  0x1e   :  { %886 = vmatprep.subr.bf16.mxu0 %v7250_v45  ;;  %1080 = vmatpush1.bf16.msra.mxu1 %v7251_v54  ;;  %v75_v11 = vld [vmem:[%s12807_s0 + $0x78] sm:$0xff]  ;;  %v76_v13 = vld [vmem:[%s12807_s0 + $0x80] sm:$0xff]  ;;  %v77_v14 = vld [vmem:[%s12807_s0 + $0x88] sm:$0xff]  ;;  %v150_v15 = vpack.c.bf16 %v129_v7, %v128_v6  ;;  %v12821_v54 = vmov 0  }
  0x1f   :  { %8011 = vmatmul.mubr.msk.bf16.gmra.mxu1 %vm175_vm1, %v143_v18  ;;  %v130_v16 = vld [vmem:[%s12808_s1 + $0xb0] sm:$0xff]  ;;  %v131_v17 = vld [vmem:[%s12808_s1 + $0xb8] sm:$0xff]  ;;  %v132_v18 = vld [vmem:[%s12808_s1 + $0xc0] sm:$0xff]  ;;  %v99_v20 = vpack.c.bf16 %v75_v11, %v74_v10  ;;  %v100_v21 = vpack.c.bf16 %v77_v14, %v76_v13 }
  0x20   :  { %8014 = vmatprep.mubr.msk.bf16.mxu1 %vm175_vm1, %v144_v22  ;;  %v133_v19 = vld [vmem:[%s12808_s1 + $0xc8] sm:$0xff]  ;;  %v78_v22 = vld [vmem:[%s12807_s0 + $0x90] sm:$0xff]  ;;  %v79_v23 = vld [vmem:[%s12807_s0 + $0x98] sm:$0xff]  ;;  %v151_v24 = vpack.c.bf16 %v131_v17, %v130_v16 }
  0x21   :  { %887 = vmatpush1.bf16.msra.mxu0 %v7249_v50  ;;  %v80_v25 = vld [vmem:[%s12807_s0 + $0xa0] sm:$0xff]  ;;  %v81_v26 = vld [vmem:[%s12807_s0 + $0xa8] sm:$0xff]  ;;  %v152_v27 = vpack.c.bf16 %v133_v19, %v132_v18  ;;  %v134_v28 = vld [vmem:[%s12808_s1 + $0xd0] sm:$0xff]  ;;  %v101_v32 = vpack.c.bf16 %v79_v23, %v78_v22 }
  0x22   :  { %v135_v29 = vld [vmem:[%s12808_s1 + $0xd8] sm:$0xff]  ;;  %v136_v30 = vld [vmem:[%s12808_s1 + $0xe0] sm:$0xff]  ;;  %v137_v31 = vld [vmem:[%s12808_s1 + $0xe8] sm:$0xff]  ;;  %v102_v33 = vpack.c.bf16 %v81_v26, %v80_v25 }
  0x23   :  { %v82_v34 = vld [vmem:[%s12807_s0 + $0xb0] sm:$0xff]  ;;  %v83_v35 = vld [vmem:[%s12807_s0 + $0xb8] sm:$0xff]  ;;  %v153_v36 = vpack.c.bf16 %v135_v29, %v134_v28  ;;  %v84_v37 = vld [vmem:[%s12807_s0 + $0xc0] sm:$0xff]  ;;  %v154_v39 = vpack.c.bf16 %v137_v31, %v136_v30 }
  0x24   :  { %7975 = vmatmul.mubr.msk.bf16.gmra.mxu0 %vm175_vm1, %v95_v60  ;;  %v85_v38 = vld [vmem:[%s12807_s0 + $0xc8] sm:$0xff]  ;;  %v138_v40 = vld [vmem:[%s12808_s1 + $0xf0] sm:$0xff]  ;;  %v139_v41 = vld [vmem:[%s12808_s1 + $0xf8] sm:$0xff]  ;;  %v103_v42 = vpack.c.bf16 %v83_v35, %v82_v34 }
  0x25   :  { %7978 = vmatprep.mubr.msk.bf16.mxu0 %vm175_vm1, %v96_v61  ;;  %v104_v43 = vpack.c.bf16 %v85_v38, %v84_v37  ;;  %v87_v45 = vld [vmem:[%s12807_s0 + $0xd8] sm:$0xff]  ;;  %v155_v46 = vpack.c.bf16 %v139_v41, %v138_v40  ;;  %v89_v48 = vld [vmem:[%s12807_s0 + $0xe8] sm:$0xff]  ;;  %v90_v51 = vld [vmem:[%s12807_s0 + $0xf0] sm:$0xff] }
  0x26   :  { %v91_v52 = vld [vmem:[%s12807_s0 + $0xf8] sm:$0xff]  ;;  %v738_v55 = vld [vmem:[%s12814_s7 + $0x50] sm:$0xff]  ;;  %v8883_v61 = vld [vmem:[%s12812_s5] ss:$0 sm:$0xff] }
  0x27   :  { %8015 = vmatmul.mubr.msk.bf16.gmra.mxu1 %vm175_vm1, %v145_v44  ;;  %v86_v44 = vld [vmem:[%s12807_s0 + $0xd0] sm:$0xff]  ;;  %v107_v53 = vpack.c.bf16 %v91_v52, %v90_v51  ;;  %v7262_v56 = vcombine.high %v738_v55, %v738_v55  ;;  %v739_v57 = vld [vmem:[%s12814_s7 + $0x58] sm:$0xff]  ;;  %v7261_v2 = vcombine.low %v738_v55, %v738_v55  ;;  %v8909_v16 = vld [vmem:[%s12810_s3] ss:$0 sm:$0xff] }
  0x28   :  { %8018 = vmatprep.mubr.msk.bf16.mxu1 %vm175_vm1, %v146_v47  ;;  %v88_v47 = vld [vmem:[%s12807_s0 + $0xe0] sm:$0xff]  ;;  %v105_v49 = vpack.c.bf16 %v87_v45, %v86_v44  ;;  %v7264_v58 = vcombine.high %v739_v57, %v739_v57  ;;  %v730_v5 = vld [vmem:[%s12814_s7 + $0x10] sm:$0xff]  ;;  %v735_v10 = vld [vmem:[%s12814_s7 + $0x38] sm:$0xff] }
  0x29   :  { %v106_v50 = vpack.c.bf16 %v89_v48, %v88_v47  ;;  %7299 = vmatprep.subr.msk.bf16.mxu0 %vm224_vm0, %v7262_v56  ;;  %v861_v14 = vsel %vm224_vm0, %v7261_v2, 0 }
  0x2a   :  { %7316 = vmatprep.subr.msk.bf16.mxu1 %vm224_vm0, %v7264_v58 }
  0x2c   :  { %7979 = vmatmul.mubr.msk.bf16.gmra.mxu0 %vm175_vm1, %v97_v8  ;;  %v734_v8 = vld [vmem:[%s12814_s7 + $0x30] sm:$0xff] }
  0x2d   :  { %7982 = vmatprep.mubr.msk.bf16.mxu0 %vm175_vm1, %v98_v9  ;;  %v731_v9 = vld [vmem:[%s12814_s7 + $0x18] sm:$0xff]  ;;  %v7254_v18 = vcombine.high %v730_v5, %v734_v8  ;;  %v7253_v23 = vcombine.low %v730_v5, %v734_v8 }
  0x2e   :  { %v7256_v19 = vcombine.high %v731_v9, %v735_v10 }
  0x2f   :  { %8019 = vmatmul.mubr.msk.bf16.gmra.mxu1 %vm175_vm1, %v147_v0 }
  0x30   :  { %8022 = vmatprep.mubr.msk.bf16.mxu1 %vm175_vm1, %v148_v3  ;;  %v7263_v3 = vcombine.low %v739_v57, %v739_v57 }
  0x34   :  { %7983 = vmatmul.mubr.msk.bf16.gmra.mxu0 %vm175_vm1, %v99_v20 }
  0x35   :  { %7986 = vmatprep.mubr.msk.bf16.mxu0 %vm175_vm1, %v100_v21  ;;  %v8914_v21 = vld [vmem:[%s12813_s6 + $0x40] sm:$0xff] }
  0x36   :  { %v7342_v29 = vcombine.high %v8914_v21, %v8914_v21 }
  0x37   :  { %8023 = vmatmul.mubr.msk.bf16.gmra.mxu1 %vm175_vm1, %v149_v12 }
  0x38   :  { %8026 = vmatprep.mubr.msk.bf16.mxu1 %vm175_vm1, %v150_v15  ;;  %v867_v15 = vsel %vm224_vm0, %v7263_v3, 0 }
  0x3c   :  { %7987 = vmatmul.mubr.msk.bf16.gmra.mxu0 %vm175_vm1, %v101_v32 }
  0x3d   :  { %7990 = vmatprep.mubr.msk.bf16.mxu0 %vm175_vm1, %v102_v33 }
  0x3f   :  { %8027 = vmatmul.mubr.msk.bf16.gmra.mxu1 %vm175_vm1, %v151_v24  ;;  %v7255_v24 = vcombine.low %v731_v9, %v735_v10 }
  0x40   :  { %8030 = vmatprep.mubr.msk.bf16.mxu1 %vm175_vm1, %v152_v27  ;;  %v8927_v27 = vld [vmem:[%s12813_s6 + $0x48] sm:$0xff] }
  0x41   :  { %v7344_v32 = vcombine.high %v8927_v27, %v8927_v27 }
  0x44   :  { %7991 = vmatmul.mubr.msk.bf16.gmra.mxu0 %vm175_vm1, %v103_v42 }
  0x45   :  { %7994 = vmatprep.mubr.msk.bf16.mxu0 %vm175_vm1, %v104_v43 }
  0x47   :  { %8031 = vmatmul.mubr.msk.bf16.gmra.mxu1 %vm175_vm1, %v153_v36 }
  0x48   :  { %8034 = vmatprep.mubr.msk.bf16.mxu1 %vm175_vm1, %v154_v39 }
  0x4c   :  { %7995 = vmatmul.mubr.msk.bf16.gmra.mxu0 %vm175_vm1, %v105_v49 }
  0x4d   :  { %7998 = vmatprep.mubr.msk.bf16.mxu0 %vm175_vm1, %v106_v50 }
  0x4f   :  { %8035 = vmatmul.mubr.msk.bf16.gmra.mxu1 %vm175_vm1, %v155_v46 }
  0x50   :  { %1097 = vmatprep.mubr.bf16.mxu1 %v12821_v54 }
  0x54   :  { %7999 = vmatmul.mubr.msk.bf16.gmra.mxu0 %vm175_vm1, %v107_v53 }
  0x55   :  { %904 = vmatprep.mubr.bf16.mxu0 %v12821_v54 }
  0xd7   :  { %v8008_v59 = vpop.f32.mrf.mxu1 }
  0xd8   :  { %v534_v22 = vadd.f32 %v8008_v59, %v8883_v61 }
  0xd9   :  { %v525_v60 = vpop.f32.mrf.mxu1 }
  0xda   :  { %v526_v63 = vadd.f32 %v8883_v61, %v525_v60  ;;  %v654_v33 = vmax.f32 %v534_v22, 0.0 }
  0xdb   :  { %v8009_v62 = vpop.f32.mrf.mxu1 }
  0xdc   :  { %v652_v6 = vmax.f32 %v526_v63, 0.0  ;;  %v537_v12 = vadd.f32 %v8009_v62, %v8883_v61  ;;  %v7972_v20 = vpop.f32.mrf.mxu0 }
  0xdd   :  { %v528_v0 = vpop.f32.mrf.mxu1  ;;  %v271_v25 = vadd.f32 %v7972_v20, %v8909_v16 }
  0xde   :  { %v529_v1 = vadd.f32 %v8883_v61, %v528_v0  ;;  %v8922_v26 = vpop.f32.mrf.mxu0  ;;  %v655_v28 = vmax.f32 %v537_v12, 0.0 }
  0xdf   :  { %v8887_v4 = vpop.f32.mrf.mxu1  ;;  %v391_v34 = vmax.f32 %v271_v25, 0.0 }
  0xe0   :  { %v653_v7 = vmax.f32 %v529_v1, 0.0  ;;  %v7973_v31 = vpop.f32.mrf.mxu0  ;;  %v8938_v37 = vpack.c.bf16 %v655_v28, %v654_v33  ;;  %v550_v53 = vadd.f32 %v8887_v4, %v8883_v61 }
  0xe1   :  { %v541_v11 = vpop.f32.mrf.mxu1  ;;  %v274_v35 = vadd.f32 %v7973_v31, %v8909_v16 }
  0xe2   :  { %v8902_v13 = vpack.c.bf16 %v653_v7, %v652_v6  ;;  %v8936_v36 = vpop.f32.mrf.mxu0  ;;  %v542_v38 = vadd.f32 %v8883_v61, %v541_v11  ;;  %v658_v0 = vmax.f32 %v550_v53, 0.0 }
  0xe3   :  { %v8013_v17 = vpop.f32.mrf.mxu1  ;;  %v392_v41 = vmax.f32 %v274_v35, 0.0 }
  0xe4   :  { %7266 = vmatmul.mubr.msk.bf16.vlgmr.msra.gmra.mxu0 %vm175_vm1, %v8902_v13  ;;  %7283 = vmatmul.mubr.msk.bf16.vlgmr.msra.gmra.mxu1 %vm175_vm1, %v8902_v13  ;;  %v7976_v42 = vpop.f32.mrf.mxu0  ;;  %v656_v46 = vmax.f32 %v542_v38, 0.0  ;;  %v553_v55 = vadd.f32 %v8013_v17, %v8883_v61 }
  0xe5   :  { %1271 = vmatpush1.bf16.msra.mxu0 %v861_v14  ;;  %1464 = vmatpush1.bf16.msra.mxu1 %v867_v15  ;;  %v544_v30 = vpop.f32.mrf.mxu1  ;;  %v287_v43 = vadd.f32 %v7976_v42, %v8909_v16  ;;  %v8951_v44 = vpack.c.bf16 %v392_v41, %v391_v34 }
  0xe6   :  { %914 = vmatprep.mubr.bf16.mxu0 %v12821_v54  ;;  %1107 = vmatprep.mubr.bf16.mxu1 %v12821_v54  ;;  %v545_v39 = vadd.f32 %v8883_v61, %v544_v30  ;;  %v8953_v45 = vpop.f32.mrf.mxu0  ;;  %v659_v1 = vmax.f32 %v553_v55, 0.0 }
  0xe7   :  { %1272 = vmatprep.subr.bf16.mxu0 %v7254_v18  ;;  %1465 = vmatprep.subr.bf16.mxu1 %v7256_v19  ;;  %v8016_v40 = vpop.f32.mrf.mxu1  ;;  %v395_v50 = vmax.f32 %v287_v43, 0.0 }
  0xe8   :  { %v657_v47 = vmax.f32 %v545_v39, 0.0  ;;  %v7977_v49 = vpop.f32.mrf.mxu0  ;;  %v8977_v7 = vpack.c.bf16 %v659_v1, %v658_v0  ;;  %v566_v25 = vadd.f32 %v8016_v40, %v8883_v61 }
  0xe9   :  { %1273 = vmatpush1.bf16.msra.mxu0 %v7253_v23  ;;  %1466 = vmatpush1.bf16.msra.mxu1 %v7255_v24  ;;  %v557_v48 = vpop.f32.mrf.mxu1  ;;  %v290_v51 = vadd.f32 %v7977_v49, %v8909_v16 }
  0xea   :  { %7349 = vmatprep.subr.msk.bf16.mxu0 %vm224_vm0, %v7342_v29  ;;  %7366 = vmatprep.subr.msk.bf16.mxu1 %vm224_vm0, %v7344_v32  ;;  %v8956_v52 = vpop.f32.mrf.mxu0  ;;  %v8961_v56 = vpack.c.bf16 %v657_v47, %v656_v46  ;;  %v558_v8 = vadd.f32 %v8883_v61, %v557_v48  ;;  %v662_v38 = vmax.f32 %v566_v25, 0.0 }
  0xeb   :  { %v396_v57 = vmax.f32 %v290_v51, 0.0  ;;  %v8017_v58 = vpop.f32.mrf.mxu1 }
  0xec   :  { %7267 = vmatmul.mubr.msk.bf16.gmra.mxu0 %vm175_vm1, %v8938_v37  ;;  %7284 = vmatmul.mubr.msk.bf16.gmra.mxu1 %vm175_vm1, %v8938_v37  ;;  %v7980_v59 = vpop.f32.mrf.mxu0  ;;  %v660_v18 = vmax.f32 %v558_v8, 0.0  ;;  %v569_v28 = vadd.f32 %v8017_v58, %v8883_v61 }
  0xed   :  { %924 = vmatprep.mubr.bf16.mxu0 %v12821_v54  ;;  %1117 = vmatprep.mubr.bf16.mxu1 %v12821_v54  ;;  %v8967_v60 = vpack.c.bf16 %v396_v57, %v395_v50  ;;  %v303_v62 = vadd.f32 %v7980_v59, %v8909_v16  ;;  %v560_v2 = vpop.f32.mrf.mxu1 }
  0xee   :  { %v8972_v63 = vpop.f32.mrf.mxu0  ;;  %v561_v9 = vadd.f32 %v8883_v61, %v560_v2  ;;  %v663_v39 = vmax.f32 %v569_v28, 0.0 }
  0xef   :  { %v399_v4 = vmax.f32 %v303_v62, 0.0  ;;  %v8020_v10 = vpop.f32.mrf.mxu1 }
  0xf0   :  { %v7981_v3 = vpop.f32.mrf.mxu0  ;;  %v661_v19 = vmax.f32 %v561_v9, 0.0  ;;  %v9009_v46 = vpack.c.bf16 %v663_v39, %v662_v38 }
  0xf1   :  { %v306_v5 = vadd.f32 %v7981_v3, %v8909_v16  ;;  %v573_v20 = vpop.f32.mrf.mxu1 }
  0xf2   :  { %v8975_v6 = vpop.f32.mrf.mxu0  ;;  %v8997_v30 = vpack.c.bf16 %v661_v19, %v660_v18  ;;  %v574_v50 = vadd.f32 %v8883_v61, %v573_v20  ;;  %v582_v18 = vadd.f32 %v8020_v10, %v8883_v61 }
  0xf3   :  { %v400_v11 = vmax.f32 %v306_v5, 0.0  ;;  %v8021_v32 = vpop.f32.mrf.mxu1 }
  0xf4   :  { %7268 = vmatmul.mubr.msk.bf16.gmra.mxu0 %vm175_vm1, %v8961_v56  ;;  %7285 = vmatmul.mubr.msk.bf16.gmra.mxu1 %vm175_vm1, %v8961_v56  ;;  %v7984_v12 = vpop.f32.mrf.mxu0  ;;  %v664_v3 = vmax.f32 %v574_v50, 0.0  ;;  %v585_v19 = vadd.f32 %v8021_v32, %v8883_v61  ;;  %v666_v32 = vmax.f32 %v582_v18, 0.0 }
  0xf5   :  { %934 = vmatprep.mubr.bf16.mxu0 %v12821_v54  ;;  %1127 = vmatprep.mubr.bf16.mxu1 %v12821_v54  ;;  %v319_v14 = vadd.f32 %v7984_v12, %v8909_v16  ;;  %v8988_v15 = vpack.c.bf16 %v400_v11, %v399_v4  ;;  %v576_v42 = vpop.f32.mrf.mxu1 }
  0xf6   :  { %v8990_v17 = vpop.f32.mrf.mxu0  ;;  %v577_v51 = vadd.f32 %v8883_v61, %v576_v42 }
  0xf7   :  { %v403_v23 = vmax.f32 %v319_v14, 0.0  ;;  %v9015_v57 = vpop.f32.mrf.mxu1 }
  0xf8   :  { %v7985_v22 = vpop.f32.mrf.mxu0  ;;  %v665_v4 = vmax.f32 %v577_v51, 0.0 }
  0xf9   :  { %v322_v24 = vadd.f32 %v7985_v22, %v8909_v16  ;;  %v589_v8 = vpop.f32.mrf.mxu1 }
  0xfa   :  { %v8995_v29 = vpop.f32.mrf.mxu0  ;;  %v9032_v22 = vpack.c.bf16 %v665_v4, %v664_v3  ;;  %v590_v50 = vadd.f32 %v8883_v61, %v589_v8 }
  0xfb   :  { %v404_v31 = vmax.f32 %v322_v24, 0.0  ;;  %v8025_v24 = vpop.f32.mrf.mxu1 }
  0xfc   :  { %7269 = vmatmul.mubr.msk.bf16.gmra.mxu0 %vm175_vm1, %v8977_v7  ;;  %7286 = vmatmul.mubr.msk.bf16.gmra.mxu1 %vm175_vm1, %v8977_v7  ;;  %v7988_v33 = vpop.f32.mrf.mxu0 }
  0xfd   :  { %944 = vmatprep.mubr.bf16.mxu0 %v12821_v54  ;;  %1137 = vmatprep.mubr.bf16.mxu1 %v12821_v54  ;;  %v9003_v34 = vpack.c.bf16 %v404_v31, %v403_v23  ;;  %v335_v35 = vadd.f32 %v7988_v33, %v8909_v16 }
  0xfe   :  { %v326_v40 = vpop.f32.mrf.mxu0 }
  0xff   :  { %v327_v41 = vadd.f32 %v8909_v16, %v326_v40  ;;  %v407_v47 = vmax.f32 %v335_v35, 0.0  ;;  %v667_v35 = vmax.f32 %v585_v19, 0.0 }
 0x100   :  { %v7989_v43 = vpop.f32.mrf.mxu0 }
 0x101   :  { %v338_v48 = vadd.f32 %v7989_v43, %v8909_v16  ;;  %v405_v53 = vmax.f32 %v327_v41, 0.0  ;;  %v592_v41 = vpop.f32.mrf.mxu1 }
 0x102   :  { %v329_v49 = vpop.f32.mrf.mxu0 }
 0x103   :  { %v330_v55 = vadd.f32 %v8909_v16, %v329_v49  ;;  %v408_v58 = vmax.f32 %v338_v48, 0.0  ;;  %v9048_v49 = vpack.c.bf16 %v667_v35, %v666_v32 }
 0x104   :  { %7270 = vmatmul.mubr.msk.bf16.gmra.mxu0 %vm175_vm1, %v8997_v30  ;;  %7287 = vmatmul.mubr.msk.bf16.gmra.mxu1 %vm175_vm1, %v8997_v30  ;;  %v7992_v59 = vpop.f32.mrf.mxu0 }
 0x105   :  { %954 = vmatprep.mubr.bf16.mxu0 %v12821_v54  ;;  %1147 = vmatprep.mubr.bf16.mxu1 %v12821_v54  ;;  %v406_v62 = vmax.f32 %v330_v55, 0.0  ;;  %v351_v0 = vadd.f32 %v7992_v59, %v8909_v16  ;;  %v9024_v1 = vpack.c.bf16 %v408_v58, %v407_v47 }
 0x106   :  { %v342_v2 = vpop.f32.mrf.mxu0 }
 0x107   :  { %v9026_v5 = vpack.c.bf16 %v406_v62, %v405_v53  ;;  %v343_v9 = vadd.f32 %v8909_v16, %v342_v2  ;;  %v411_v12 = vmax.f32 %v351_v0, 0.0  ;;  %v593_v53 = vadd.f32 %v8883_v61, %v592_v41  ;;  %v8028_v62 = vpop.f32.mrf.mxu1 }
 0x108   :  { %v7993_v11 = vpop.f32.mrf.mxu0 }
 0x109   :  { %v354_v14 = vadd.f32 %v7993_v11, %v8909_v16  ;;  %v409_v25 = vmax.f32 %v343_v9, 0.0  ;;  %v668_v9 = vmax.f32 %v590_v50, 0.0  ;;  %v669_v11 = vmax.f32 %v593_v53, 0.0  ;;  %v605_v18 = vpop.f32.mrf.mxu1 }
 0x10a   :  { %v345_v20 = vpop.f32.mrf.mxu0  ;;  %v606_v50 = vadd.f32 %v8883_v61, %v605_v18 }
 0x10b   :  { %v412_v23 = vmax.f32 %v354_v14, 0.0  ;;  %v346_v28 = vadd.f32 %v8909_v16, %v345_v20 }
 0x10c   :  { %7271 = vmatmul.mubr.msk.bf16.gmra.mxu0 %vm175_vm1, %v9009_v46  ;;  %7288 = vmatmul.mubr.msk.bf16.gmra.mxu1 %vm175_vm1, %v9009_v46  ;;  %v7996_v31 = vpop.f32.mrf.mxu0 }
 0x10d   :  { %964 = vmatprep.mubr.bf16.mxu0 %v12821_v54  ;;  %1157 = vmatprep.mubr.bf16.mxu1 %v12821_v54  ;;  %v9039_v33 = vpack.c.bf16 %v412_v23, %v411_v12  ;;  %v367_v10 = vadd.f32 %v7996_v31, %v8909_v16  ;;  %v410_v38 = vmax.f32 %v346_v28, 0.0  ;;  %v601_v28 = vadd.f32 %v8025_v24, %v8883_v61 }
 0x10e   :  { %v358_v39 = vpop.f32.mrf.mxu0 }
 0x10f   :  { %v359_v40 = vadd.f32 %v8909_v16, %v358_v39  ;;  %v9045_v42 = vpack.c.bf16 %v410_v38, %v409_v25  ;;  %v415_v47 = vmax.f32 %v367_v10, 0.0  ;;  %v598_v25 = vadd.f32 %v9015_v57, %v8883_v61  ;;  %v8029_v39 = vpop.f32.mrf.mxu1 }
 0x110   :  { %v7997_v43 = vpop.f32.mrf.mxu0  ;;  %v9069_v10 = vpack.c.bf16 %v669_v11, %v668_v9  ;;  %v671_v24 = vmax.f32 %v601_v28, 0.0 }
 0x111   :  { %v370_v48 = vadd.f32 %v7997_v43, %v8909_v16  ;;  %v413_v55 = vmax.f32 %v359_v40, 0.0  ;;  %v670_v57 = vmax.f32 %v598_v25, 0.0 }
 0x112   :  { %v361_v51 = vpop.f32.mrf.mxu0 }
 0x113   :  { %v416_v58 = vmax.f32 %v370_v48, 0.0  ;;  %v362_v59 = vadd.f32 %v8909_v16, %v361_v51  ;;  %v9082_v48 = vpack.c.bf16 %v671_v24, %v670_v57 }
 0x114   :  { %7272 = vmatmul.mubr.msk.bf16.gmra.mxu0 %vm175_vm1, %v9032_v22  ;;  %7289 = vmatmul.mubr.msk.bf16.gmra.mxu1 %vm175_vm1, %v9032_v22  ;;  %v8000_v0 = vpop.f32.mrf.mxu0 }
 0x115   :  { %974 = vmatprep.mubr.bf16.mxu0 %v12821_v54  ;;  %1167 = vmatprep.mubr.bf16.mxu1 %v12821_v54  ;;  %v9057_v2 = vpack.c.bf16 %v416_v58, %v415_v47  ;;  %v414_v3 = vmax.f32 %v362_v59, 0.0  ;;  %v383_v4 = vadd.f32 %v8000_v0, %v8909_v16  ;;  %v608_v47 = vpop.f32.mrf.mxu1  ;;  %v614_v0 = vadd.f32 %v8028_v62, %v8883_v61 }
 0x116   :  { %v374_v8 = vpop.f32.mrf.mxu0  ;;  %v609_v51 = vadd.f32 %v8883_v61, %v608_v47 }
 0x117   :  { %v9062_v12 = vpack.c.bf16 %v414_v3, %v413_v55  ;;  %v375_v14 = vadd.f32 %v8909_v16, %v374_v8  ;;  %v419_v20 = vmax.f32 %v383_v4, 0.0  ;;  %v8032_v53 = vpop.f32.mrf.mxu1  ;;  %v672_v55 = vmax.f32 %v606_v50, 0.0 }
 0x118   :  { %v8001_v19 = vpop.f32.mrf.mxu0  ;;  %v673_v58 = vmax.f32 %v609_v51, 0.0  ;;  %v617_v3 = vadd.f32 %v8029_v39, %v8883_v61  ;;  %v674_v9 = vmax.f32 %v614_v0, 0.0 }
 0x119   :  { %v386_v23 = vadd.f32 %v8001_v19, %v8909_v16  ;;  %v417_v32 = vmax.f32 %v375_v14, 0.0  ;;  %v621_v59 = vpop.f32.mrf.mxu1 }
 0x11a   :  { %v377_v31 = vpop.f32.mrf.mxu0  ;;  %v9094_v4 = vpack.c.bf16 %v673_v58, %v672_v55  ;;  %v675_v11 = vmax.f32 %v617_v3, 0.0  ;;  %v622_v62 = vadd.f32 %v8883_v61, %v621_v59 }
 0x11b   :  { %v420_v35 = vmax.f32 %v386_v23, 0.0  ;;  %v378_v38 = vadd.f32 %v8909_v16, %v377_v31  ;;  %v8033_v8 = vpop.f32.mrf.mxu1  ;;  %v630_v31 = vadd.f32 %v8032_v53, %v8883_v61 }
 0x11c   :  { %7273 = vmatmul.mubr.msk.bf16.gmra.mxu0 %vm175_vm1, %v9048_v49  ;;  %7290 = vmatmul.mubr.msk.bf16.gmra.mxu1 %vm175_vm1, %v9048_v49  ;;  %v9102_v18 = vpack.c.bf16 %v675_v11, %v674_v9  ;;  %v676_v23 = vmax.f32 %v622_v62, 0.0  ;;  %v7343_v9 = vcombine.low %v8927_v27, %v8927_v27  ;;  %v700_v11 = vld [vmem:[%s12813_s6] sm:$0xff]  ;;  %v701_v62 = vld [vmem:[%s12813_s6 + $0x8] sm:$0xff] }
 0x11d   :  { %984 = vmatprep.mubr.bf16.mxu0 %v12821_v54  ;;  %1177 = vmatprep.mubr.bf16.mxu1 %v12821_v54  ;;  %v9076_v40 = vpack.c.bf16 %v420_v35, %v419_v20  ;;  %v418_v41 = vmax.f32 %v378_v38, 0.0  ;;  %v624_v14 = vpop.f32.mrf.mxu1  ;;  %v678_v39 = vmax.f32 %v630_v31, 0.0 }
 0x11e   :  { %v625_v19 = vadd.f32 %v8883_v61, %v624_v14  ;;  %v704_v14 = vld [vmem:[%s12813_s6 + $0x20] sm:$0xff]  ;;  %v1759_v27 = vsel %vm224_vm0, %v7343_v9, 0 }
 0x11f   :  { %v9080_v43 = vpack.c.bf16 %v418_v41, %v417_v32  ;;  %v8036_v20 = vpop.f32.mrf.mxu1  ;;  %v633_v32 = vadd.f32 %v8033_v8, %v8883_v61 }
 0x120   :  { %v677_v25 = vmax.f32 %v625_v19, 0.0  ;;  %v646_v55 = vadd.f32 %v8036_v20, %v8883_v61  ;;  %v705_v19 = vld [vmem:[%s12813_s6 + $0x28] sm:$0xff]  ;;  %v7334_v20 = vcombine.high %v700_v11, %v704_v14 }
 0x121   :  { %v637_v28 = vpop.f32.mrf.mxu1  ;;  %v679_v41 = vmax.f32 %v633_v32, 0.0  ;;  %v7335_v31 = vcombine.low %v701_v62, %v705_v19  ;;  %v9180_v32 = vld [vmem:[%s12813_s6 + $0x58] sm:$0xff] }
 0x122   :  { %v9114_v35 = vpack.c.bf16 %v677_v25, %v676_v23  ;;  %v638_v47 = vadd.f32 %v8883_v61, %v637_v28  ;;  %v682_v0 = vmax.f32 %v646_v55, 0.0  ;;  %v7336_v23 = vcombine.high %v701_v62, %v705_v19  ;;  %v9171_v25 = vld [vmem:[%s12813_s6 + $0x50] sm:$0xff] }
 0x123   :  { %v8037_v38 = vpop.f32.mrf.mxu1  ;;  %v9122_v24 = vpack.c.bf16 %v679_v41, %v678_v39  ;;  %v7333_v28 = vcombine.low %v700_v11, %v704_v14  ;;  %v7348_v39 = vcombine.high %v9180_v32, %v9180_v32 }
 0x124   :  { %7274 = vmatmul.mubr.msk.bf16.gmra.mxu0 %vm175_vm1, %v9069_v10  ;;  %7291 = vmatmul.mubr.msk.bf16.gmra.mxu1 %vm175_vm1, %v9069_v10  ;;  %v680_v51 = vmax.f32 %v638_v47, 0.0  ;;  %v649_v58 = vadd.f32 %v8037_v38, %v8883_v61  ;;  %v7346_v38 = vcombine.high %v9171_v25, %v9171_v25 }
 0x125   :  { %994 = vmatprep.mubr.bf16.mxu0 %v12821_v54  ;;  %1187 = vmatprep.mubr.bf16.mxu1 %v12821_v54  ;;  %v640_v57 = vpop.f32.mrf.mxu1 }
 0x126   :  { %v641_v50 = vadd.f32 %v8883_v61, %v640_v57  ;;  %v683_v3 = vmax.f32 %v649_v58, 0.0  ;;  %v7341_v61 = vcombine.low %v8914_v21, %v8914_v21 }
 0x128   :  { %v681_v53 = vmax.f32 %v641_v50, 0.0  ;;  %v9142_v8 = vpack.c.bf16 %v683_v3, %v682_v0  ;;  %v1753_v21 = vsel %vm224_vm0, %v7341_v61, 0 }
 0x12a   :  { %v9134_v59 = vpack.c.bf16 %v681_v53, %v680_v51 }
 0x12c   :  { %7275 = vmatmul.mubr.msk.bf16.gmra.mxu0 %vm175_vm1, %v9082_v48  ;;  %7292 = vmatmul.mubr.msk.bf16.gmra.mxu1 %vm175_vm1, %v9082_v48 }
 0x12d   :  { %1004 = vmatprep.mubr.bf16.mxu0 %v12821_v54  ;;  %1197 = vmatprep.mubr.bf16.mxu1 %v12821_v54 }
 0x134   :  { %7276 = vmatmul.mubr.msk.bf16.gmra.mxu0 %vm175_vm1, %v9094_v4  ;;  %7293 = vmatmul.mubr.msk.bf16.gmra.mxu1 %vm175_vm1, %v9094_v4 }
 0x135   :  { %1014 = vmatprep.mubr.bf16.mxu0 %v12821_v54  ;;  %1207 = vmatprep.mubr.bf16.mxu1 %v12821_v54 }
 0x13c   :  { %7277 = vmatmul.mubr.msk.bf16.gmra.mxu0 %vm175_vm1, %v9102_v18  ;;  %7294 = vmatmul.mubr.msk.bf16.gmra.mxu1 %vm175_vm1, %v9102_v18 }
 0x13d   :  { %1024 = vmatprep.mubr.bf16.mxu0 %v12821_v54  ;;  %1217 = vmatprep.mubr.bf16.mxu1 %v12821_v54 }
 0x144   :  { %7278 = vmatmul.mubr.msk.bf16.gmra.mxu0 %vm175_vm1, %v9114_v35  ;;  %7295 = vmatmul.mubr.msk.bf16.gmra.mxu1 %vm175_vm1, %v9114_v35 }
 0x145   :  { %1034 = vmatprep.mubr.bf16.mxu0 %v12821_v54  ;;  %1227 = vmatprep.mubr.bf16.mxu1 %v12821_v54 }
 0x14c   :  { %7279 = vmatmul.mubr.msk.bf16.gmra.mxu0 %vm175_vm1, %v9122_v24  ;;  %7296 = vmatmul.mubr.msk.bf16.gmra.mxu1 %vm175_vm1, %v9122_v24 }
 0x14d   :  { %1044 = vmatprep.mubr.bf16.mxu0 %v12821_v54  ;;  %1237 = vmatprep.mubr.bf16.mxu1 %v12821_v54 }
 0x154   :  { %7280 = vmatmul.mubr.msk.bf16.gmra.mxu0 %vm175_vm1, %v9134_v59  ;;  %7297 = vmatmul.mubr.msk.bf16.gmra.mxu1 %vm175_vm1, %v9134_v59 }
 0x155   :  { %1054 = vmatprep.mubr.bf16.mxu0 %v12821_v54  ;;  %1247 = vmatprep.mubr.bf16.mxu1 %v12821_v54 }
 0x15c   :  { %7281 = vmatmul.mubr.msk.bf16.gmra.mxu0 %vm175_vm1, %v9142_v8  ;;  %7298 = vmatmul.mubr.msk.bf16.gmra.mxu1 %vm175_vm1, %v9142_v8 }
 0x15d   :  { %1290 = vmatprep.mubr.bf16.mxu0 %v12821_v54  ;;  %1483 = vmatprep.mubr.bf16.mxu1 %v12821_v54 }
 0x164   :  { %7300 = vmatmul.mubr.msk.bf16.vlgmr.msra.gmra.mxu0 %vm175_vm1, %v8902_v13  ;;  %7317 = vmatmul.mubr.msk.bf16.vlgmr.msra.gmra.mxu1 %vm175_vm1, %v8902_v13 }
 0x165   :  { %1789 = vmatpush1.bf16.msra.mxu0 %v1753_v21  ;;  %1982 = vmatpush1.bf16.msra.mxu1 %v1759_v27 }
 0x166   :  { %1300 = vmatprep.mubr.bf16.mxu0 %v12821_v54  ;;  %1493 = vmatprep.mubr.bf16.mxu1 %v12821_v54 }
 0x167   :  { %1790 = vmatprep.subr.bf16.mxu0 %v7334_v20  ;;  %1983 = vmatprep.subr.bf16.mxu1 %v7336_v23 }
 0x169   :  { %1791 = vmatpush1.bf16.msra.mxu0 %v7333_v28  ;;  %1984 = vmatpush1.bf16.msra.mxu1 %v7335_v31 }
 0x16a   :  { %7383 = vmatprep.subr.msk.bf16.mxu0 %vm224_vm0, %v7346_v38  ;;  %7400 = vmatprep.subr.msk.bf16.mxu1 %vm224_vm0, %v7348_v39 }
 0x16c   :  { %7301 = vmatmul.mubr.msk.bf16.gmra.mxu0 %vm175_vm1, %v8938_v37  ;;  %7318 = vmatmul.mubr.msk.bf16.gmra.mxu1 %vm175_vm1, %v8938_v37 }
 0x16d   :  { %1310 = vmatprep.mubr.bf16.mxu0 %v12821_v54  ;;  %1503 = vmatprep.mubr.bf16.mxu1 %v12821_v54 }
 0x174   :  { %7302 = vmatmul.mubr.msk.bf16.gmra.mxu0 %vm175_vm1, %v8961_v56  ;;  %7319 = vmatmul.mubr.msk.bf16.gmra.mxu1 %vm175_vm1, %v8961_v56 }
 0x175   :  { %1320 = vmatprep.mubr.bf16.mxu0 %v12821_v54  ;;  %1513 = vmatprep.mubr.bf16.mxu1 %v12821_v54 }
 0x17c   :  { %7303 = vmatmul.mubr.msk.bf16.gmra.mxu0 %vm175_vm1, %v8977_v7  ;;  %7320 = vmatmul.mubr.msk.bf16.gmra.mxu1 %vm175_vm1, %v8977_v7 }
 0x17d   :  { %1330 = vmatprep.mubr.bf16.mxu0 %v12821_v54  ;;  %1523 = vmatprep.mubr.bf16.mxu1 %v12821_v54 }
 0x184   :  { %7304 = vmatmul.mubr.msk.bf16.gmra.mxu0 %vm175_vm1, %v8997_v30  ;;  %7321 = vmatmul.mubr.msk.bf16.gmra.mxu1 %vm175_vm1, %v8997_v30 }
 0x185   :  { %1340 = vmatprep.mubr.bf16.mxu0 %v12821_v54  ;;  %1533 = vmatprep.mubr.bf16.mxu1 %v12821_v54 }
 0x18c   :  { %7305 = vmatmul.mubr.msk.bf16.gmra.mxu0 %vm175_vm1, %v9009_v46  ;;  %7322 = vmatmul.mubr.msk.bf16.gmra.mxu1 %vm175_vm1, %v9009_v46 }
 0x18d   :  { %1350 = vmatprep.mubr.bf16.mxu0 %v12821_v54  ;;  %1543 = vmatprep.mubr.bf16.mxu1 %v12821_v54 }
 0x194   :  { %7306 = vmatmul.mubr.msk.bf16.gmra.mxu0 %vm175_vm1, %v9032_v22  ;;  %7323 = vmatmul.mubr.msk.bf16.gmra.mxu1 %vm175_vm1, %v9032_v22 }
 0x195   :  { %1360 = vmatprep.mubr.bf16.mxu0 %v12821_v54  ;;  %1553 = vmatprep.mubr.bf16.mxu1 %v12821_v54 }
 0x19c   :  { %7307 = vmatmul.mubr.msk.bf16.gmra.mxu0 %vm175_vm1, %v9048_v49  ;;  %7324 = vmatmul.mubr.msk.bf16.gmra.mxu1 %vm175_vm1, %v9048_v49 }
 0x19d   :  { %1370 = vmatprep.mubr.bf16.mxu0 %v12821_v54  ;;  %1563 = vmatprep.mubr.bf16.mxu1 %v12821_v54 }
 0x1a4   :  { %v9232_v13 = vpop.f32.mrf.mxu0  ;;  %v9234_v37 = vpop.f32.mrf.mxu1  ;;  %7308 = vmatmul.mubr.msk.bf16.gmra.mxu0 %vm175_vm1, %v9069_v10  ;;  %7325 = vmatmul.mubr.msk.bf16.gmra.mxu1 %vm175_vm1, %v9069_v10 }
 0x1a5   :  { %1380 = vmatprep.mubr.bf16.mxu0 %v12821_v54  ;;  %1573 = vmatprep.mubr.bf16.mxu1 %v12821_v54 }
 0x1a6   :  { %v9242_v56 = vpop.f32.mrf.mxu0  ;;  %v9244_v7 = vpop.f32.mrf.mxu1 }
 0x1a8   :  { %v9246_v30 = vpop.f32.mrf.mxu0  ;;  %v9248_v46 = vpop.f32.mrf.mxu1 }
 0x1aa   :  { %v9250_v22 = vpop.f32.mrf.mxu0  ;;  %v9252_v49 = vpop.f32.mrf.mxu1 }
 0x1ac   :  { %v9254_v41 = vpop.f32.mrf.mxu0  ;;  %v9256_v57 = vpop.f32.mrf.mxu1  ;;  %7309 = vmatmul.mubr.msk.bf16.gmra.mxu0 %vm175_vm1, %v9082_v48  ;;  %7326 = vmatmul.mubr.msk.bf16.gmra.mxu1 %vm175_vm1, %v9082_v48 }
 0x1ad   :  { %1390 = vmatprep.mubr.bf16.mxu0 %v12821_v54  ;;  %1583 = vmatprep.mubr.bf16.mxu1 %v12821_v54 }
 0x1ae   :  { %v9264_v10 = vpop.f32.mrf.mxu0  ;;  %v9266_v47 = vpop.f32.mrf.mxu1 }
 0x1b0   :  { %v9268_v50 = vpop.f32.mrf.mxu0  ;;  %v9270_v51 = vpop.f32.mrf.mxu1 }
 0x1b2   :  { %v9272_v53 = vpop.f32.mrf.mxu0  ;;  %v9274_v55 = vpop.f32.mrf.mxu1 }
 0x1b4   :  { %v9276_v58 = vpop.f32.mrf.mxu0  ;;  %v9278_v0 = vpop.f32.mrf.mxu1  ;;  %7310 = vmatmul.mubr.msk.bf16.gmra.mxu0 %vm175_vm1, %v9094_v4  ;;  %7327 = vmatmul.mubr.msk.bf16.gmra.mxu1 %vm175_vm1, %v9094_v4 }
 0x1b5   :  { %1400 = vmatprep.mubr.bf16.mxu0 %v12821_v54  ;;  %1593 = vmatprep.mubr.bf16.mxu1 %v12821_v54 }
 0x1b6   :  { %v9286_v48 = vpop.f32.mrf.mxu0  ;;  %v9288_v3 = vpop.f32.mrf.mxu1 }
 0x1b8   :  { %v9290_v61 = vpop.f32.mrf.mxu0  ;;  %v9292_v9 = vpop.f32.mrf.mxu1 }
 0x1ba   :  { %v9294_v11 = vpop.f32.mrf.mxu0  ;;  %v9296_v14 = vpop.f32.mrf.mxu1 }
 0x1bc   :  { %v9298_v62 = vpop.f32.mrf.mxu0  ;;  %v9300_v19 = vpop.f32.mrf.mxu1  ;;  %7311 = vmatmul.mubr.msk.bf16.gmra.mxu0 %vm175_vm1, %v9102_v18  ;;  %7328 = vmatmul.mubr.msk.bf16.gmra.mxu1 %vm175_vm1, %v9102_v18 }
 0x1bd   :  { %12959 = vst [vmem:[#allocation8_spill] sm:$0xff] %v9298_v62  ;;  %12960 = vst [vmem:[#allocation9_spill] sm:$0xff] %v9300_v19  ;;  %1410 = vmatprep.mubr.bf16.mxu0 %v12821_v54  ;;  %1603 = vmatprep.mubr.bf16.mxu1 %v12821_v54 }
 0x1be   :  { %v9308_v4 = vpop.f32.mrf.mxu0  ;;  %v9310_v21 = vpop.f32.mrf.mxu1 }
 0x1bf   :  { %12961 = vst [vmem:[#allocation10_spill] sm:$0xff] %v9308_v4  ;;  %12962 = vst [vmem:[#allocation11_spill] sm:$0xff] %v9310_v21 }
 0x1c0   :  { %v9312_v27 = vpop.f32.mrf.mxu0  ;;  %v9314_v20 = vpop.f32.mrf.mxu1 }
 0x1c1   :  { %12963 = vst [vmem:[#allocation12_spill] sm:$0xff] %v9312_v27  ;;  %12964 = vst [vmem:[#allocation13_spill] sm:$0xff] %v9314_v20 }
 0x1c2   :  { %v9316_v23 = vpop.f32.mrf.mxu0  ;;  %v9318_v28 = vpop.f32.mrf.mxu1 }
 0x1c3   :  { %12965 = vst [vmem:[#allocation14_spill] sm:$0xff] %v9318_v28 }
 0x1c4   :  { %v9320_v31 = vpop.f32.mrf.mxu0  ;;  %v9322_v38 = vpop.f32.mrf.mxu1  ;;  %7312 = vmatmul.mubr.msk.bf16.gmra.mxu0 %vm175_vm1, %v9114_v35  ;;  %7329 = vmatmul.mubr.msk.bf16.gmra.mxu1 %vm175_vm1, %v9114_v35 }
 0x1c5   :  { %12966 = vst [vmem:[#allocation15_spill] sm:$0xff] %v9320_v31  ;;  %12967 = vst [vmem:[#allocation16_spill] sm:$0xff] %v9322_v38  ;;  %1420 = vmatprep.mubr.bf16.mxu0 %v12821_v54  ;;  %1613 = vmatprep.mubr.bf16.mxu1 %v12821_v54 }
 0x1c6   :  { %v9330_v18 = vpop.f32.mrf.mxu0  ;;  %v9332_v39 = vpop.f32.mrf.mxu1 }
 0x1c7   :  { %12968 = vst [vmem:[#allocation17_spill] sm:$0xff] %v9330_v18  ;;  %12969 = vst [vmem:[#allocation18_spill] sm:$0xff] %v9332_v39 }
 0x1c8   :  { %v9334_v19 = vpop.f32.mrf.mxu0  ;;  %v9336_v20 = vpop.f32.mrf.mxu1 }
 0x1c9   :  { %12970 = vst [vmem:[#allocation19_spill] sm:$0xff] %v9334_v19  ;;  %12971 = vst [vmem:[#allocation20_spill] sm:$0xff] %v9336_v20 }
 0x1ca   :  { %v9338_v31 = vpop.f32.mrf.mxu0  ;;  %v9340_v38 = vpop.f32.mrf.mxu1 }
 0x1cb   :  { %12972 = vst [vmem:[#allocation21_spill] sm:$0xff] %v9338_v31  ;;  %12973 = vst [vmem:[#allocation22_spill] sm:$0xff] %v9340_v38 }
 0x1cc   :  { %v9342_v27 = vpop.f32.mrf.mxu0  ;;  %v9344_v62 = vpop.f32.mrf.mxu1  ;;  %7313 = vmatmul.mubr.msk.bf16.gmra.mxu0 %vm175_vm1, %v9122_v24  ;;  %7330 = vmatmul.mubr.msk.bf16.gmra.mxu1 %vm175_vm1, %v9122_v24 }
 0x1cd   :  { %12974 = vst [vmem:[#allocation23_spill] sm:$0xff] %v9342_v27  ;;  %12975 = vst [vmem:[#allocation24_spill] sm:$0xff] %v9344_v62  ;;  %1430 = vmatprep.mubr.bf16.mxu0 %v12821_v54  ;;  %1623 = vmatprep.mubr.bf16.mxu1 %v12821_v54 }
 0x1ce   :  { %v9352_v35 = vpop.f32.mrf.mxu0  ;;  %v9354_v20 = vpop.f32.mrf.mxu1 }
 0x1cf   :  { %12976 = vst [vmem:[#allocation25_spill] sm:$0xff] %v9352_v35  ;;  %12977 = vst [vmem:[#allocation26_spill] sm:$0xff] %v9354_v20 }
 0x1d0   :  { %v9356_v19 = vpop.f32.mrf.mxu0  ;;  %v9358_v39 = vpop.f32.mrf.mxu1 }
 0x1d1   :  { %12978 = vst [vmem:[#allocation27_spill] sm:$0xff] %v9356_v19  ;;  %12979 = vst [vmem:[#allocation28_spill] sm:$0xff] %v9358_v39 }
 0x1d2   :  { %v9360_v27 = vpop.f32.mrf.mxu0  ;;  %v9362_v62 = vpop.f32.mrf.mxu1 }
 0x1d3   :  { %12980 = vst [vmem:[#allocation29_spill] sm:$0xff] %v9360_v27  ;;  %12981 = vst [vmem:[#allocation30_spill] sm:$0xff] %v9362_v62 }
 0x1d4   :  { %v9364_v18 = vpop.f32.mrf.mxu0  ;;  %v9366_v38 = vpop.f32.mrf.mxu1  ;;  %7314 = vmatmul.mubr.msk.bf16.gmra.mxu0 %vm175_vm1, %v9134_v59  ;;  %7331 = vmatmul.mubr.msk.bf16.gmra.mxu1 %vm175_vm1, %v9134_v59 }
 0x1d5   :  { %12982 = vst [vmem:[#allocation31_spill] sm:$0xff] %v9364_v18  ;;  %12983 = vst [vmem:[#allocation32_spill] sm:$0xff] %v9366_v38  ;;  %1440 = vmatprep.mubr.bf16.mxu0 %v12821_v54  ;;  %1633 = vmatprep.mubr.bf16.mxu1 %v12821_v54  ;;  %v263_v38 = vadd.f32 %v8909_v16, %v8922_v26  ;;  %v266_v18 = vadd.f32 %v8909_v16, %v8936_v36 }
 0x1d6   :  { %v9374_v24 = vpop.f32.mrf.mxu0  ;;  %v9376_v39 = vpop.f32.mrf.mxu1 }
 0x1d7   :  { %12984 = vst [vmem:[#allocation33_spill] sm:$0xff] %v9374_v24  ;;  %12985 = vst [vmem:[#allocation34_spill] sm:$0xff] %v9376_v39  ;;  %v389_v26 = vmax.f32 %v263_v38, 0.0  ;;  %v390_v36 = vmax.f32 %v266_v18, 0.0  ;;  %v706_v38 = vld [vmem:[%s12813_s6 + $0x30] sm:$0xff]  ;;  %v703_v18 = vld [vmem:[%s12813_s6 + $0x18] sm:$0xff] }
 0x1d8   :  { %v9378_v19 = vpop.f32.mrf.mxu0  ;;  %v9380_v20 = vpop.f32.mrf.mxu1 }
 0x1d9   :  { %12986 = vst [vmem:[#allocation35_spill] sm:$0xff] %v9378_v19  ;;  %12987 = vst [vmem:[#allocation36_spill] sm:$0xff] %v9380_v20  ;;  %v12992_v20 = vmov 0  }
 0x1da   :  { %v9386_v35 = vpop.f32.mrf.mxu0  ;;  %v9388_v59 = vpop.f32.mrf.mxu1 }
 0x1db   :  { %12988 = vst [vmem:[#allocation37_spill] sm:$0xff] %v9386_v35  ;;  %12989 = vst [vmem:[#allocation38_spill] sm:$0xff] %v9388_v59 }
 0x1dc   :  { %v9390_v62 = vpop.f32.mrf.mxu0  ;;  %v9392_v54 = vpop.f32.mrf.mxu1  ;;  %7315 = vmatmul.mubr.msk.bf16.gmra.mxu0 %vm175_vm1, %v9142_v8  ;;  %7332 = vmatmul.mubr.msk.bf16.gmra.mxu1 %vm175_vm1, %v9142_v8  ;;  %v702_v8 = vld [vmem:[%s12813_s6 + $0x10] sm:$0xff] }
 0x1dd   :  { %12990 = vst [vmem:[#allocation39_spill] sm:$0xff] %v9390_v62  ;;  %12991 = vst [vmem:[#allocation40_spill] sm:$0xff] %v9392_v54  ;;  %1808 = vmatprep.mubr.bf16.mxu0 %v12992_v20  ;;  %2001 = vmatprep.mubr.bf16.mxu1 %v12992_v20  ;;  %v7345_v62 = vcombine.low %v9171_v25, %v9171_v25  ;;  %v7347_v54 = vcombine.low %v9180_v32, %v9180_v32  ;;  %v707_v25 = vld [vmem:[%s12813_s6 + $0x38] sm:$0xff] }
 0x1de   :  { %v9400_v19 = vpop.f32.mrf.mxu0  ;;  %v9402_v39 = vpop.f32.mrf.mxu1  ;;  %v9424_v32 = vpack.c.bf16 %v390_v36, %v389_v26  ;;  %v7338_v35 = vcombine.high %v702_v8, %v706_v38  ;;  %v7340_v27 = vcombine.high %v703_v18, %v707_v25  ;;  %v7337_v26 = vcombine.low %v702_v8, %v706_v38 }
 0x1df   :  { %12993 = vst [vmem:[#allocation41_spill] sm:$0xff] %v9400_v19  ;;  %12994 = vst [vmem:[#allocation42_spill] sm:$0xff] %v9402_v39  ;;  %v7339_v36 = vcombine.low %v703_v18, %v707_v25 }
 0x1e0   :  { %v9411_v24 = vpop.f32.mrf.mxu0  ;;  %v9413_v59 = vpop.f32.mrf.mxu1 }
 0x1e1   :  { %12995 = vst [vmem:[#allocation43_spill] sm:$0xff] %v9411_v24  ;;  %12996 = vst [vmem:[#allocation44_spill] sm:$0xff] %v9413_v59  ;;  %v1765_v59 = vsel %vm224_vm0, %v7345_v62, 0  ;;  %v1771_v24 = vsel %vm224_vm0, %v7347_v54, 0  ;;  %v8068_v54 = vld [vmem:[#allocation2 + $0xe4] ss:$16 sps:$4 sm:$0xff]  }
 0x1e2   :  { %v9426_v39 = vpop.f32.mrf.mxu0  ;;  %v9428_v19 = vpop.f32.mrf.mxu1 }
 0x1e3   :  { %12997 = vst [vmem:[#allocation45_spill] sm:$0xff] %v9426_v39  ;;  %12998 = vst [vmem:[#allocation46_spill] sm:$0xff] %v9428_v19 }
 0x1e4   :  { %v9432_v31 = vpop.f32.mrf.mxu0  ;;  %v9434_v21 = vpop.f32.mrf.mxu1  ;;  %7350 = vmatmul.mubr.msk.bf16.vlgmr.msra.gmra.mxu0 %vm175_vm1, %v9424_v32  ;;  %7367 = vmatmul.mubr.msk.bf16.vlgmr.msra.gmra.mxu1 %vm175_vm1, %v9424_v32 }
 0x1e5   :  { %12999 = vst [vmem:[#allocation47_spill] sm:$0xff] %v9432_v31  ;;  %13000 = vst [vmem:[#allocation48_spill] sm:$0xff] %v9434_v21  ;;  %2175 = vmatpush1.bf16.msra.mxu0 %v1765_v59  ;;  %2368 = vmatpush1.bf16.msra.mxu1 %v1771_v24  ;;  %v8071_v21 = vld [vmem:[#allocation2 + $0x2e4] ss:$16 sps:$4 sm:$0xff]   ;;  %v279_v24 = vadd.f32 %v8909_v16, %v8953_v45  ;;  %v282_v59 = vadd.f32 %v8909_v16, %v8956_v52 }
 0x1e6   :  { %v9440_v19 = vpop.f32.mrf.mxu0  ;;  %v9442_v62 = vpop.f32.mrf.mxu1  ;;  %1818 = vmatprep.mubr.bf16.mxu0 %v12992_v20  ;;  %2011 = vmatprep.mubr.bf16.mxu1 %v12992_v20 }
 0x1e7   :  { %13001 = vst [vmem:[#allocation49_spill] sm:$0xff] %v9440_v19  ;;  %13002 = vst [vmem:[#allocation50_spill] sm:$0xff] %v9442_v62  ;;  %2176 = vmatprep.subr.bf16.mxu0 %v7338_v35  ;;  %2369 = vmatprep.subr.bf16.mxu1 %v7340_v27  ;;  %v393_v45 = vmax.f32 %v279_v24, 0.0  ;;  %v394_v52 = vmax.f32 %v282_v59, 0.0 }
 0x1e8   :  { %v9446_v31 = vpop.f32.mrf.mxu0  ;;  %v9448_v39 = vpop.f32.mrf.mxu1 }
 0x1e9   :  { %13003 = vst [vmem:[#allocation51_spill] sm:$0xff] %v9446_v31  ;;  %13004 = vst [vmem:[#allocation52_spill] sm:$0xff] %v9448_v39  ;;  %2177 = vmatpush1.bf16.msra.mxu0 %v7337_v26  ;;  %2370 = vmatpush1.bf16.msra.mxu1 %v7339_v36  ;;  %v9476_v36 = vpack.c.bf16 %v394_v52, %v393_v45 }
 0x1ea   :  { %v9454_v8 = vpop.f32.mrf.mxu0  ;;  %v9456_v38 = vpop.f32.mrf.mxu1  ;;  %4788 = vmatprep.subr.bf16.mxu0 %v8068_v54  ;;  %4981 = vmatprep.subr.bf16.mxu1 %v8071_v21 }
 0x1eb   :  { %13005 = vst [vmem:[#allocation53_spill] sm:$0xff] %v9454_v8  ;;  %13006 = vst [vmem:[#allocation54_spill] sm:$0xff] %v9456_v38 }
 0x1ec   :  { %v9458_v35 = vpop.f32.mrf.mxu0  ;;  %v9460_v27 = vpop.f32.mrf.mxu1  ;;  %7351 = vmatmul.mubr.msk.bf16.gmra.mxu0 %vm175_vm1, %v8951_v44  ;;  %7368 = vmatmul.mubr.msk.bf16.gmra.mxu1 %vm175_vm1, %v8951_v44 }
 0x1ed   :  { %13007 = vst [vmem:[#allocation55_spill] sm:$0xff] %v9458_v35  ;;  %13008 = vst [vmem:[#allocation56_spill] sm:$0xff] %v9460_v27  ;;  %1828 = vmatprep.mubr.bf16.mxu0 %v12992_v20  ;;  %2021 = vmatprep.mubr.bf16.mxu1 %v12992_v20 }
 0x1ee   :  { %v9468_v18 = vpop.f32.mrf.mxu0  ;;  %v9470_v25 = vpop.f32.mrf.mxu1 }
 0x1ef   :  { %13009 = vst [vmem:[#allocation57_spill] sm:$0xff] %v9468_v18  ;;  %13010 = vst [vmem:[#allocation58_spill] sm:$0xff] %v9470_v25 }
 0x1f0   :  { %v9472_v21 = vpop.f32.mrf.mxu0  ;;  %v9474_v26 = vpop.f32.mrf.mxu1 }
 0x1f1   :  { %13011 = vst [vmem:[#allocation59_spill] sm:$0xff] %v9472_v21  ;;  %13012 = vst [vmem:[#allocation60_spill] sm:$0xff] %v9474_v26 }
 0x1f2   :  { %v9478_v54 = vpop.f32.mrf.mxu0  ;;  %v9480_v27 = vpop.f32.mrf.mxu1 }
 0x1f3   :  { %13013 = vst [vmem:[#allocation61_spill] sm:$0xff] %v9478_v54  ;;  %13014 = vst [vmem:[#allocation62_spill] sm:$0xff] %v9480_v27 }
 0x1f4   :  { %v9482_v35 = vpop.f32.mrf.mxu0  ;;  %v9484_v39 = vpop.f32.mrf.mxu1  ;;  %7352 = vmatmul.mubr.msk.bf16.gmra.mxu0 %vm175_vm1, %v9476_v36  ;;  %7369 = vmatmul.mubr.msk.bf16.gmra.mxu1 %vm175_vm1, %v9476_v36 }
 0x1f5   :  { %13015 = vst [vmem:[#allocation63_spill] sm:$0xff] %v9482_v35  ;;  %13016 = vst [vmem:[#allocation64_spill] sm:$0xff] %v9484_v39  ;;  %1838 = vmatprep.mubr.bf16.mxu0 %v12992_v20  ;;  %2031 = vmatprep.mubr.bf16.mxu1 %v12992_v20  ;;  %v295_v39 = vadd.f32 %v8909_v16, %v8972_v63  ;;  %v298_v35 = vadd.f32 %v8909_v16, %v8975_v6 }
 0x1f6   :  { %v9492_v24 = vpop.f32.mrf.mxu0  ;;  %v9494_v59 = vpop.f32.mrf.mxu1 }
 0x1f7   :  { %13017 = vst [vmem:[#allocation65_spill] sm:$0xff] %v9492_v24  ;;  %13018 = vst [vmem:[#allocation66_spill] sm:$0xff] %v9494_v59  ;;  %v397_v63 = vmax.f32 %v295_v39, 0.0  ;;  %v398_v16 = vmax.f32 %v298_v35, 0.0 }
 0x1f8   :  { %v9496_v45 = vpop.f32.mrf.mxu0  ;;  %v9498_v52 = vpop.f32.mrf.mxu1 }
 0x1f9   :  { %13019 = vst [vmem:[#allocation67_spill] sm:$0xff] %v9496_v45  ;;  %13020 = vst [vmem:[#allocation68_spill] sm:$0xff] %v9498_v52 }
 0x1fa   :  { %v9504_v26 = vpop.f32.mrf.mxu0  ;;  %v9506_v21 = vpop.f32.mrf.mxu1 }
 0x1fb   :  { %13021 = vst [vmem:[#allocation69_spill] sm:$0xff] %v9504_v26  ;;  %13022 = vst [vmem:[#allocation70_spill] sm:$0xff] %v9506_v21 }
 0x1fc   :  { %v9508_v25 = vpop.f32.mrf.mxu0  ;;  %v9510_v18 = vpop.f32.mrf.mxu1  ;;  %7353 = vmatmul.mubr.msk.bf16.gmra.mxu0 %vm175_vm1, %v8967_v60  ;;  %7370 = vmatmul.mubr.msk.bf16.gmra.mxu1 %vm175_vm1, %v8967_v60 }
 0x1fd   :  { %13023 = vst [vmem:[#allocation71_spill] sm:$0xff] %v9508_v25  ;;  %13024 = vst [vmem:[#allocation72_spill] sm:$0xff] %v9510_v18  ;;  %1848 = vmatprep.mubr.bf16.mxu0 %v12992_v20  ;;  %2041 = vmatprep.mubr.bf16.mxu1 %v12992_v20  ;;  %v9526_v18 = vpack.c.bf16 %v398_v16, %v397_v63 }
 0x1fe   :  { %v9518_v6 = vpop.f32.mrf.mxu0  ;;  %v9520_v52 = vpop.f32.mrf.mxu1 }
 0x1ff   :  { %13025 = vst [vmem:[#allocation73_spill] sm:$0xff] %v9518_v6  ;;  %13026 = vst [vmem:[#allocation74_spill] sm:$0xff] %v9520_v52 }
 0x200   :  { %v9522_v45 = vpop.f32.mrf.mxu0  ;;  %v9524_v25 = vpop.f32.mrf.mxu1 }
 0x201   :  { %13027 = vst [vmem:[#allocation75_spill] sm:$0xff] %v9522_v45  ;;  %13028 = vst [vmem:[#allocation76_spill] sm:$0xff] %v9524_v25 }
 0x202   :  { %v9528_v59 = vpop.f32.mrf.mxu0  ;;  %v9530_v24 = vpop.f32.mrf.mxu1 }
 0x203   :  { %13029 = vst [vmem:[#allocation77_spill] sm:$0xff] %v9528_v59  ;;  %13030 = vst [vmem:[#allocation78_spill] sm:$0xff] %v9530_v24  ;;  %v8089_v59 = vld [vmem:[#allocation2 + $0x284] ss:$16 sps:$4 sm:$0xff]  }
 0x204   :  { %v9532_v21 = vpop.f32.mrf.mxu0  ;;  %v9534_v26 = vpop.f32.mrf.mxu1  ;;  %7354 = vmatmul.mubr.msk.bf16.gmra.mxu0 %vm175_vm1, %v9526_v18  ;;  %7371 = vmatmul.mubr.msk.bf16.gmra.mxu1 %vm175_vm1, %v9526_v18 }
 0x205   :  { %13031 = vst [vmem:[#allocation79_spill] sm:$0xff] %v9532_v21  ;;  %13032 = vst [vmem:[#allocation80_spill] sm:$0xff] %v9534_v26  ;;  %1858 = vmatprep.mubr.bf16.mxu0 %v12992_v20  ;;  %2051 = vmatprep.mubr.bf16.mxu1 %v12992_v20  ;;  %v8482_v26 = vld [vmem:[%s12810_s3] ss:$0 sm:$0xff] }
 0x206   :  { %v9542_v39 = vpop.f32.mrf.mxu0  ;;  %v9544_v35 = vpop.f32.mrf.mxu1  ;;  %v311_v21 = vadd.f32 %v8482_v26, %v8990_v17  ;;  %v314_v25 = vadd.f32 %v8482_v26, %v8995_v29 }
 0x207   :  { %13033 = vst [vmem:[#allocation81_spill] sm:$0xff] %v9542_v39  ;;  %13034 = vst [vmem:[#allocation82_spill] sm:$0xff] %v9544_v35 }
 0x208   :  { %v9546_v63 = vpop.f32.mrf.mxu0  ;;  %v9548_v16 = vpop.f32.mrf.mxu1  ;;  %v401_v17 = vmax.f32 %v311_v21, 0.0  ;;  %v402_v29 = vmax.f32 %v314_v25, 0.0 }
 0x209   :  { %13035 = vst [vmem:[#allocation83_spill] sm:$0xff] %v9546_v63  ;;  %13036 = vst [vmem:[#allocation84_spill] sm:$0xff] %v9548_v16 }
 0x20a   :  { %v9555_v45 = vpop.f32.mrf.mxu0  ;;  %v9557_v52 = vpop.f32.mrf.mxu1 }
 0x20b   :  { %13037 = vst [vmem:[#allocation85_spill] sm:$0xff] %v9555_v45  ;;  %13038 = vst [vmem:[#allocation86_spill] sm:$0xff] %v9557_v52 }
 0x20c   :  { %v9559_v6 = vpop.f32.mrf.mxu0  ;;  %v9561_v39 = vpop.f32.mrf.mxu1  ;;  %7355 = vmatmul.mubr.msk.bf16.gmra.mxu0 %vm175_vm1, %v8988_v15  ;;  %7372 = vmatmul.mubr.msk.bf16.gmra.mxu1 %vm175_vm1, %v8988_v15 }
 0x20d   :  { %13039 = vst [vmem:[#allocation87_spill] sm:$0xff] %v9559_v6  ;;  %13040 = vst [vmem:[#allocation88_spill] sm:$0xff] %v9561_v39  ;;  %1868 = vmatprep.mubr.bf16.mxu0 %v12992_v20  ;;  %2061 = vmatprep.mubr.bf16.mxu1 %v12992_v20  ;;  %v9577_v39 = vpack.c.bf16 %v402_v29, %v401_v17 }
 0x20e   :  { %v9569_v26 = vpop.f32.mrf.mxu0  ;;  %v9571_v16 = vpop.f32.mrf.mxu1 }
 0x20f   :  { %13041 = vst [vmem:[#allocation89_spill] sm:$0xff] %v9569_v26  ;;  %13042 = vst [vmem:[#allocation90_spill] sm:$0xff] %v9571_v16  ;;  %v8074_v16 = vld [vmem:[#allocation2 + $0xc4] ss:$16 sps:$4 sm:$0xff]  }
 0x210   :  { %v9573_v63 = vpop.f32.mrf.mxu0  ;;  %v9575_v6 = vpop.f32.mrf.mxu1  ;;  %v8077_v26 = vld [vmem:[#allocation2 + $0x2c4] ss:$16 sps:$4 sm:$0xff]  }
 0x211   :  { %13043 = vst [vmem:[#allocation91_spill] sm:$0xff] %v9573_v63  ;;  %13044 = vst [vmem:[#allocation92_spill] sm:$0xff] %v9575_v6 }
 0x212   :  { %v9579_v35 = vpop.f32.mrf.mxu0  ;;  %v9581_v52 = vpop.f32.mrf.mxu1 }
 0x213   :  { %13045 = vst [vmem:[#allocation93_spill] sm:$0xff] %v9579_v35  ;;  %13046 = vst [vmem:[#allocation94_spill] sm:$0xff] %v9581_v52 }
 0x214   :  { %v9583_v45 = vpop.f32.mrf.mxu0  ;;  %v9585_v24 = vpop.f32.mrf.mxu1  ;;  %7356 = vmatmul.mubr.msk.bf16.gmra.mxu0 %vm175_vm1, %v9577_v39  ;;  %7373 = vmatmul.mubr.msk.bf16.gmra.mxu1 %vm175_vm1, %v9577_v39 }
 0x215   :  { %13047 = vst [vmem:[#allocation95_spill] sm:$0xff] %v9583_v45  ;;  %13048 = vst [vmem:[#allocation96_spill] sm:$0xff] %v9585_v24  ;;  %1878 = vmatprep.mubr.bf16.mxu0 %v12992_v20  ;;  %2071 = vmatprep.mubr.bf16.mxu1 %v12992_v20 }
 0x216   :  { %v9593_v25 = vpop.f32.mrf.mxu0  ;;  %v9595_v21 = vpop.f32.mrf.mxu1 }
 0x217   :  { %13049 = vst [vmem:[#allocation97_spill] sm:$0xff] %v9593_v25  ;;  %13050 = vst [vmem:[#allocation98_spill] sm:$0xff] %v9595_v21 }
 0x218   :  { %v9597_v17 = vpop.f32.mrf.mxu0  ;;  %v9599_v29 = vpop.f32.mrf.mxu1 }
 0x219   :  { %13051 = vst [vmem:[#allocation99_spill] sm:$0xff] %v9597_v17  ;;  %13052 = vst [vmem:[#allocation100_spill] sm:$0xff] %v9599_v29 }
 0x21a   :  { %v9601_v45 = vpop.f32.mrf.mxu0  ;;  %v9603_v24 = vpop.f32.mrf.mxu1 }
 0x21b   :  { %13053 = vst [vmem:[#allocation101_spill] sm:$0xff] %v9601_v45  ;;  %13054 = vst [vmem:[#allocation102_spill] sm:$0xff] %v9603_v24 }
 0x21c   :  { %v9605_v6 = vpop.f32.mrf.mxu0  ;;  %v9607_v63 = vpop.f32.mrf.mxu1  ;;  %7357 = vmatmul.mubr.msk.bf16.gmra.mxu0 %vm175_vm1, %v9003_v34  ;;  %7374 = vmatmul.mubr.msk.bf16.gmra.mxu1 %vm175_vm1, %v9003_v34 }
 0x21d   :  { %13055 = vst [vmem:[#allocation103_spill] sm:$0xff] %v9605_v6  ;;  %13056 = vst [vmem:[#allocation104_spill] sm:$0xff] %v9607_v63  ;;  %1888 = vmatprep.mubr.bf16.mxu0 %v12992_v20  ;;  %2081 = vmatprep.mubr.bf16.mxu1 %v12992_v20 }
 0x21e   :  { %v9615_v17 = vpop.f32.mrf.mxu0  ;;  %v9617_v29 = vpop.f32.mrf.mxu1 }
 0x21f   :  { %13057 = vst [vmem:[#allocation105_spill] sm:$0xff] %v9615_v17  ;;  %13058 = vst [vmem:[#allocation106_spill] sm:$0xff] %v9617_v29 }
 0x220   :  { %v9619_v21 = vpop.f32.mrf.mxu0  ;;  %v9621_v25 = vpop.f32.mrf.mxu1 }
 0x221   :  { %13059 = vst [vmem:[#allocation107_spill] sm:$0xff] %v9619_v21  ;;  %13060 = vst [vmem:[#allocation108_spill] sm:$0xff] %v9621_v25 }
 0x222   :  { %v9623_v6 = vpop.f32.mrf.mxu0  ;;  %v9625_v63 = vpop.f32.mrf.mxu1 }
 0x223   :  { %13061 = vst [vmem:[#allocation109_spill] sm:$0xff] %v9623_v6  ;;  %13062 = vst [vmem:[#allocation110_spill] sm:$0xff] %v9625_v63 }
 0x224   :  { %v9627_v24 = vpop.f32.mrf.mxu0  ;;  %v9629_v45 = vpop.f32.mrf.mxu1  ;;  %7358 = vmatmul.mubr.msk.bf16.gmra.mxu0 %vm175_vm1, %v9026_v5  ;;  %7375 = vmatmul.mubr.msk.bf16.gmra.mxu1 %vm175_vm1, %v9026_v5 }
 0x225   :  { %13063 = vst [vmem:[#allocation111_spill] sm:$0xff] %v9627_v24  ;;  %13064 = vst [vmem:[#allocation112_spill] sm:$0xff] %v9629_v45  ;;  %1898 = vmatprep.mubr.bf16.mxu0 %v12992_v20  ;;  %2091 = vmatprep.mubr.bf16.mxu1 %v12992_v20 }
 0x226   :  { %v9637_v21 = vpop.f32.mrf.mxu0  ;;  %v9639_v25 = vpop.f32.mrf.mxu1 }
 0x227   :  { %13065 = vst [vmem:[#allocation113_spill] sm:$0xff] %v9637_v21  ;;  %13066 = vst [vmem:[#allocation114_spill] sm:$0xff] %v9639_v25 }
 0x228   :  { %v9641_v29 = vpop.f32.mrf.mxu0  ;;  %v9643_v17 = vpop.f32.mrf.mxu1 }
 0x229   :  { %13067 = vst [vmem:[#allocation115_spill] sm:$0xff] %v9641_v29  ;;  %13068 = vst [vmem:[#allocation116_spill] sm:$0xff] %v9643_v17 }
 0x22a   :  { %v9645_v24 = vpop.f32.mrf.mxu0  ;;  %v9647_v45 = vpop.f32.mrf.mxu1 }
 0x22b   :  { %13069 = vst [vmem:[#allocation117_spill] sm:$0xff] %v9645_v24  ;;  %13070 = vst [vmem:[#allocation118_spill] sm:$0xff] %v9647_v45 }
 0x22c   :  { %v9649_v63 = vpop.f32.mrf.mxu0  ;;  %v9651_v6 = vpop.f32.mrf.mxu1  ;;  %7359 = vmatmul.mubr.msk.bf16.gmra.mxu0 %vm175_vm1, %v9024_v1  ;;  %7376 = vmatmul.mubr.msk.bf16.gmra.mxu1 %vm175_vm1, %v9024_v1 }
 0x22d   :  { %13071 = vst [vmem:[#allocation119_spill] sm:$0xff] %v9649_v63  ;;  %13072 = vst [vmem:[#allocation120_spill] sm:$0xff] %v9651_v6  ;;  %1908 = vmatprep.mubr.bf16.mxu0 %v12992_v20  ;;  %2101 = vmatprep.mubr.bf16.mxu1 %v12992_v20 }
 0x22e   :  { %v9659_v29 = vpop.f32.mrf.mxu0  ;;  %v9661_v17 = vpop.f32.mrf.mxu1 }
 0x22f   :  { %13073 = vst [vmem:[#allocation121_spill] sm:$0xff] %v9659_v29  ;;  %13074 = vst [vmem:[#allocation122_spill] sm:$0xff] %v9661_v17 }
 0x230   :  { %v9663_v25 = vpop.f32.mrf.mxu0  ;;  %v9665_v21 = vpop.f32.mrf.mxu1 }
 0x231   :  { %13075 = vst [vmem:[#allocation123_spill] sm:$0xff] %v9663_v25  ;;  %13076 = vst [vmem:[#allocation124_spill] sm:$0xff] %v9665_v21 }
 0x232   :  { %v9667_v63 = vpop.f32.mrf.mxu0  ;;  %v9669_v6 = vpop.f32.mrf.mxu1 }
 0x233   :  { %13077 = vst [vmem:[#allocation125_spill] sm:$0xff] %v9667_v63  ;;  %13078 = vst [vmem:[#allocation126_spill] sm:$0xff] %v9669_v6 }
 0x234   :  { %v9671_v45 = vpop.f32.mrf.mxu0  ;;  %v9673_v24 = vpop.f32.mrf.mxu1  ;;  %7360 = vmatmul.mubr.msk.bf16.gmra.mxu0 %vm175_vm1, %v9045_v42  ;;  %7377 = vmatmul.mubr.msk.bf16.gmra.mxu1 %vm175_vm1, %v9045_v42 }
 0x235   :  { %13079 = vst [vmem:[#allocation127_spill] sm:$0xff] %v9671_v45  ;;  %13080 = vst [vmem:[#allocation128_spill] sm:$0xff] %v9673_v24  ;;  %1918 = vmatprep.mubr.bf16.mxu0 %v12992_v20  ;;  %2111 = vmatprep.mubr.bf16.mxu1 %v12992_v20 }
 0x236   :  { %v9681_v25 = vpop.f32.mrf.mxu0  ;;  %v9683_v21 = vpop.f32.mrf.mxu1 }
 0x237   :  { %13081 = vst [vmem:[#allocation129_spill] sm:$0xff] %v9681_v25  ;;  %13082 = vst [vmem:[#allocation130_spill] sm:$0xff] %v9683_v21 }
 0x238   :  { %v9685_v17 = vpop.f32.mrf.mxu0  ;;  %v9687_v29 = vpop.f32.mrf.mxu1 }
 0x239   :  { %13083 = vst [vmem:[#allocation131_spill] sm:$0xff] %v9685_v17  ;;  %13084 = vst [vmem:[#allocation132_spill] sm:$0xff] %v9687_v29 }
 0x23a   :  { %v9689_v45 = vpop.f32.mrf.mxu0  ;;  %v9691_v24 = vpop.f32.mrf.mxu1 }
 0x23b   :  { %13085 = vst [vmem:[#allocation133_spill] sm:$0xff] %v9689_v45  ;;  %13086 = vst [vmem:[#allocation134_spill] sm:$0xff] %v9691_v24 }
 0x23c   :  { %v9693_v6 = vpop.f32.mrf.mxu0  ;;  %v9695_v63 = vpop.f32.mrf.mxu1  ;;  %7361 = vmatmul.mubr.msk.bf16.gmra.mxu0 %vm175_vm1, %v9039_v33  ;;  %7378 = vmatmul.mubr.msk.bf16.gmra.mxu1 %vm175_vm1, %v9039_v33 }
 0x23d   :  { %13087 = vst [vmem:[#allocation135_spill] sm:$0xff] %v9693_v6  ;;  %13088 = vst [vmem:[#allocation136_spill] sm:$0xff] %v9695_v63  ;;  %1928 = vmatprep.mubr.bf16.mxu0 %v12992_v20  ;;  %2121 = vmatprep.mubr.bf16.mxu1 %v12992_v20 }
 0x23e   :  { %v9703_v17 = vpop.f32.mrf.mxu0  ;;  %v9705_v29 = vpop.f32.mrf.mxu1 }
 0x23f   :  { %13089 = vst [vmem:[#allocation137_spill] sm:$0xff] %v9703_v17  ;;  %13090 = vst [vmem:[#allocation138_spill] sm:$0xff] %v9705_v29 }
 0x240   :  { %v9707_v21 = vpop.f32.mrf.mxu0  ;;  %v9709_v25 = vpop.f32.mrf.mxu1 }
 0x241   :  { %13091 = vst [vmem:[#allocation139_spill] sm:$0xff] %v9707_v21  ;;  %13092 = vst [vmem:[#allocation140_spill] sm:$0xff] %v9709_v25 }
 0x242   :  { %v9711_v6 = vpop.f32.mrf.mxu0  ;;  %v9713_v63 = vpop.f32.mrf.mxu1 }
 0x243   :  { %13093 = vst [vmem:[#allocation141_spill] sm:$0xff] %v9711_v6  ;;  %13094 = vst [vmem:[#allocation142_spill] sm:$0xff] %v9713_v63 }
 0x244   :  { %v9715_v24 = vpop.f32.mrf.mxu0  ;;  %v9717_v45 = vpop.f32.mrf.mxu1  ;;  %7362 = vmatmul.mubr.msk.bf16.gmra.mxu0 %vm175_vm1, %v9062_v12  ;;  %7379 = vmatmul.mubr.msk.bf16.gmra.mxu1 %vm175_vm1, %v9062_v12 }
 0x245   :  { %13095 = vst [vmem:[#allocation143_spill] sm:$0xff] %v9715_v24  ;;  %13096 = vst [vmem:[#allocation144_spill] sm:$0xff] %v9717_v45  ;;  %1938 = vmatprep.mubr.bf16.mxu0 %v12992_v20  ;;  %2131 = vmatprep.mubr.bf16.mxu1 %v12992_v20 }
 0x246   :  { %v9725_v21 = vpop.f32.mrf.mxu0  ;;  %v9727_v25 = vpop.f32.mrf.mxu1 }
 0x247   :  { %13097 = vst [vmem:[#allocation145_spill] sm:$0xff] %v9725_v21  ;;  %13098 = vst [vmem:[#allocation146_spill] sm:$0xff] %v9727_v25 }
 0x248   :  { %v9729_v29 = vpop.f32.mrf.mxu0  ;;  %v9731_v17 = vpop.f32.mrf.mxu1 }
 0x249   :  { %13099 = vst [vmem:[#allocation147_spill] sm:$0xff] %v9729_v29  ;;  %13100 = vst [vmem:[#allocation148_spill] sm:$0xff] %v9731_v17 }
 0x24a   :  { %v9733_v24 = vpop.f32.mrf.mxu0  ;;  %v9735_v45 = vpop.f32.mrf.mxu1 }
 0x24b   :  { %13101 = vst [vmem:[#allocation149_spill] sm:$0xff] %v9733_v24  ;;  %13102 = vst [vmem:[#allocation150_spill] sm:$0xff] %v9735_v45 }
 0x24c   :  { %v9737_v63 = vpop.f32.mrf.mxu0  ;;  %v9739_v6 = vpop.f32.mrf.mxu1  ;;  %7363 = vmatmul.mubr.msk.bf16.gmra.mxu0 %vm175_vm1, %v9057_v2  ;;  %7380 = vmatmul.mubr.msk.bf16.gmra.mxu1 %vm175_vm1, %v9057_v2 }
 0x24d   :  { %13103 = vst [vmem:[#allocation151_spill] sm:$0xff] %v9737_v63  ;;  %13104 = vst [vmem:[#allocation152_spill] sm:$0xff] %v9739_v6  ;;  %1948 = vmatprep.mubr.bf16.mxu0 %v12992_v20  ;;  %2141 = vmatprep.mubr.bf16.mxu1 %v12992_v20 }
 0x24e   :  { %v9747_v29 = vpop.f32.mrf.mxu0  ;;  %v9749_v17 = vpop.f32.mrf.mxu1 }
 0x24f   :  { %13105 = vst [vmem:[#allocation153_spill] sm:$0xff] %v9747_v29  ;;  %13106 = vst [vmem:[#allocation154_spill] sm:$0xff] %v9749_v17 }
 0x250   :  { %v9751_v25 = vpop.f32.mrf.mxu0  ;;  %v9753_v21 = vpop.f32.mrf.mxu1 }
 0x251   :  { %13107 = vst [vmem:[#allocation155_spill] sm:$0xff] %v9751_v25  ;;  %13108 = vst [vmem:[#allocation156_spill] sm:$0xff] %v9753_v21 }
 0x252   :  { %v9755_v63 = vpop.f32.mrf.mxu0  ;;  %v9757_v6 = vpop.f32.mrf.mxu1 }
 0x253   :  { %13109 = vst [vmem:[#allocation157_spill] sm:$0xff] %v9755_v63  ;;  %13110 = vst [vmem:[#allocation158_spill] sm:$0xff] %v9757_v6 }
 0x254   :  { %v9759_v45 = vpop.f32.mrf.mxu0  ;;  %v9761_v24 = vpop.f32.mrf.mxu1  ;;  %7364 = vmatmul.mubr.msk.bf16.gmra.mxu0 %vm175_vm1, %v9080_v43  ;;  %7381 = vmatmul.mubr.msk.bf16.gmra.mxu1 %vm175_vm1, %v9080_v43 }
 0x255   :  { %13111 = vst [vmem:[#allocation159_spill] sm:$0xff] %v9759_v45  ;;  %13112 = vst [vmem:[#allocation160_spill] sm:$0xff] %v9761_v24  ;;  %1958 = vmatprep.mubr.bf16.mxu0 %v12992_v20  ;;  %2151 = vmatprep.mubr.bf16.mxu1 %v12992_v20 }
 0x256   :  { %v9769_v25 = vpop.f32.mrf.mxu0  ;;  %v9771_v21 = vpop.f32.mrf.mxu1 }
 0x257   :  { %13113 = vst [vmem:[#allocation161_spill] sm:$0xff] %v9769_v25  ;;  %13114 = vst [vmem:[#allocation162_spill] sm:$0xff] %v9771_v21 }
 0x258   :  { %v9773_v17 = vpop.f32.mrf.mxu0  ;;  %v9775_v29 = vpop.f32.mrf.mxu1 }
 0x259   :  { %13115 = vst [vmem:[#allocation163_spill] sm:$0xff] %v9773_v17  ;;  %13116 = vst [vmem:[#allocation164_spill] sm:$0xff] %v9775_v29 }
 0x25a   :  { %v9777_v45 = vpop.f32.mrf.mxu0  ;;  %v9779_v24 = vpop.f32.mrf.mxu1 }
 0x25b   :  { %13117 = vst [vmem:[#allocation165_spill] sm:$0xff] %v9777_v45  ;;  %13118 = vst [vmem:[#allocation166_spill] sm:$0xff] %v9779_v24 }
 0x25c   :  { %v9781_v6 = vpop.f32.mrf.mxu0  ;;  %v9783_v63 = vpop.f32.mrf.mxu1  ;;  %7365 = vmatmul.mubr.msk.bf16.gmra.mxu0 %vm175_vm1, %v9076_v40  ;;  %7382 = vmatmul.mubr.msk.bf16.gmra.mxu1 %vm175_vm1, %v9076_v40 }
 0x25d   :  { %13119 = vst [vmem:[#allocation167_spill] sm:$0xff] %v9781_v6  ;;  %13120 = vst [vmem:[#allocation168_spill] sm:$0xff] %v9783_v63  ;;  %2194 = vmatprep.mubr.bf16.mxu0 %v12992_v20  ;;  %2387 = vmatprep.mubr.bf16.mxu1 %v12992_v20  ;;  %v8066_v6 = vld [vmem:[#allocation2 + $0xe0] ss:$16 sps:$4 sm:$0xff]  }
 0x25e   :  { %v9791_v21 = vpop.f32.mrf.mxu0  ;;  %v9793_v29 = vpop.f32.mrf.mxu1  ;;  %v8069_v63 = vld [vmem:[#allocation2 + $0x2e0] ss:$16 sps:$4 sm:$0xff]  }
 0x25f   :  { %13121 = vst [vmem:[#allocation169_spill] sm:$0xff] %v9791_v21  ;;  %13122 = vst [vmem:[#allocation170_spill] sm:$0xff] %v9793_v29  ;;  %v8072_v29 = vld [vmem:[#allocation2 + $0xc0] ss:$16 sps:$4 sm:$0xff]  }
 0x260   :  { %v9795_v25 = vpop.f32.mrf.mxu0  ;;  %v9797_v24 = vpop.f32.mrf.mxu1 }
 0x261   :  { %13123 = vst [vmem:[#allocation171_spill] sm:$0xff] %v9795_v25  ;;  %13124 = vst [vmem:[#allocation172_spill] sm:$0xff] %v9797_v24  ;;  %v8075_v24 = vld [vmem:[#allocation2 + $0x2c0] ss:$16 sps:$4 sm:$0xff]  }
 0x262   :  { %v9799_v45 = vpop.f32.mrf.mxu0  ;;  %v9801_v17 = vpop.f32.mrf.mxu1 }
 0x263   :  { %13125 = vst [vmem:[#allocation173_spill] sm:$0xff] %v9799_v45  ;;  %13126 = vst [vmem:[#allocation174_spill] sm:$0xff] %v9801_v17 }
 0x264   :  { %v9803_v52 = vpop.f32.mrf.mxu0  ;;  %v9805_v35 = vpop.f32.mrf.mxu1  ;;  %7384 = vmatmul.mubr.msk.bf16.vlgmr.msra.gmra.mxu0 %vm175_vm1, %v9424_v32  ;;  %7401 = vmatmul.mubr.msk.bf16.vlgmr.msra.gmra.mxu1 %vm175_vm1, %v9424_v32 }
 0x265   :  { %13127 = vst [vmem:[#allocation175_spill] sm:$0xff] %v9803_v52  ;;  %13128 = vst [vmem:[#allocation176_spill] sm:$0xff] %v9805_v35  ;;  %4789 = vmatpush1.bf16.msra.mxu0 %v8066_v6  ;;  %4982 = vmatpush1.bf16.msra.mxu1 %v8069_v63  ;;  %v8080_v52 = vld [vmem:[#allocation2 + $0xa4] ss:$16 sps:$4 sm:$0xff]   ;;  %v8078_v63 = vld [vmem:[#allocation2 + $0xa0] ss:$16 sps:$4 sm:$0xff]  }
 0x266   :  { %v9811_v21 = vpop.f32.mrf.mxu0  ;;  %v9813_v45 = vpop.f32.mrf.mxu1  ;;  %2204 = vmatprep.mubr.bf16.mxu0 %v12992_v20  ;;  %2397 = vmatprep.mubr.bf16.mxu1 %v12992_v20  ;;  %v8083_v35 = vld [vmem:[#allocation2 + $0x2a4] ss:$16 sps:$4 sm:$0xff]  }
 0x267   :  { %13129 = vst [vmem:[#allocation177_spill] sm:$0xff] %v9811_v21  ;;  %13130 = vst [vmem:[#allocation178_spill] sm:$0xff] %v9813_v45  ;;  %4790 = vmatprep.subr.bf16.mxu0 %v8074_v16  ;;  %4983 = vmatprep.subr.bf16.mxu1 %v8077_v26  ;;  %v8081_v45 = vld [vmem:[#allocation2 + $0x2a0] ss:$16 sps:$4 sm:$0xff]   ;;  %v8086_v21 = vld [vmem:[#allocation2 + $0x84] ss:$16 sps:$4 sm:$0xff]  }
 0x268   :  { %v9817_v17 = vpop.f32.mrf.mxu0  ;;  %v9819_v25 = vpop.f32.mrf.mxu1  ;;  %v8087_v26 = vld [vmem:[#allocation2 + $0x280] ss:$16 sps:$4 sm:$0xff]  }
 0x269   :  { %13131 = vst [vmem:[#allocation179_spill] sm:$0xff] %v9817_v17  ;;  %13132 = vst [vmem:[#allocation180_spill] sm:$0xff] %v9819_v25  ;;  %4791 = vmatpush1.bf16.msra.mxu0 %v8072_v29  ;;  %4984 = vmatpush1.bf16.msra.mxu1 %v8075_v24  ;;  %v8092_v29 = vld [vmem:[#allocation2 + $0x64] ss:$16 sps:$4 sm:$0xff]  }
 0x26a   :  { %v9821_v32 = vpop.f32.mrf.mxu0  ;;  %v9823_v6 = vpop.f32.mrf.mxu1  ;;  %4792 = vmatprep.subr.bf16.mxu0 %v8080_v52  ;;  %4985 = vmatprep.subr.bf16.mxu1 %v8083_v35  ;;  %v8084_v35 = vld [vmem:[#allocation2 + $0x80] ss:$16 sps:$4 sm:$0xff]  }
 0x26b   :  { %13133 = vst [vmem:[#allocation181_spill] sm:$0xff] %v9821_v32  ;;  %13134 = vst [vmem:[#allocation182_spill] sm:$0xff] %v9823_v6 }
 0x26c   :  { %v9825_v27 = vpop.f32.mrf.mxu0  ;;  %v9827_v16 = vpop.f32.mrf.mxu1  ;;  %7385 = vmatmul.mubr.msk.bf16.gmra.mxu0 %vm175_vm1, %v8951_v44  ;;  %7402 = vmatmul.mubr.msk.bf16.gmra.mxu1 %vm175_vm1, %v8951_v44 }
 0x26d   :  { %13135 = vst [vmem:[#allocation183_spill] sm:$0xff] %v9825_v27  ;;  %13136 = vst [vmem:[#allocation184_spill] sm:$0xff] %v9827_v16  ;;  %2214 = vmatprep.mubr.bf16.mxu0 %v12992_v20  ;;  %2407 = vmatprep.mubr.bf16.mxu1 %v12992_v20  ;;  %v8095_v16 = vld [vmem:[#allocation2 + $0x264] ss:$16 sps:$4 sm:$0xff]  }
 0x26e   :  { %v9835_v24 = vpop.f32.mrf.mxu0  ;;  %v9837_v52 = vpop.f32.mrf.mxu1  ;;  %4793 = vmatpush1.bf16.msra.mxu0 %v8078_v63  ;;  %4986 = vmatpush1.bf16.msra.mxu1 %v8081_v45  ;;  %v8098_v45 = vld [vmem:[#allocation2 + $0x44] ss:$16 sps:$4 sm:$0xff]  }
 0x26f   :  { %13137 = vst [vmem:[#allocation185_spill] sm:$0xff] %v9835_v24  ;;  %13138 = vst [vmem:[#allocation186_spill] sm:$0xff] %v9837_v52  ;;  %4794 = vmatprep.subr.bf16.mxu0 %v8086_v21  ;;  %4987 = vmatprep.subr.bf16.mxu1 %v8089_v59  ;;  %v8090_v24 = vld [vmem:[#allocation2 + $0x60] ss:$16 sps:$4 sm:$0xff]   ;;  %v8101_v63 = vld [vmem:[#allocation2 + $0x244] ss:$16 sps:$4 sm:$0xff]  }
 0x270   :  { %v9839_v27 = vpop.f32.mrf.mxu0  ;;  %v9841_v6 = vpop.f32.mrf.mxu1  ;;  %v8093_v52 = vld [vmem:[#allocation2 + $0x260] ss:$16 sps:$4 sm:$0xff]  }
 0x271   :  { %13139 = vst [vmem:[#allocation187_spill] sm:$0xff] %v9839_v27  ;;  %13140 = vst [vmem:[#allocation188_spill] sm:$0xff] %v9841_v6 }
 0x272   :  { %v9843_v44 = vpop.f32.mrf.mxu0  ;;  %v9845_v32 = vpop.f32.mrf.mxu1  ;;  %4795 = vmatpush1.bf16.msra.mxu0 %v8084_v35  ;;  %4988 = vmatpush1.bf16.msra.mxu1 %v8087_v26 }
 0x273   :  { %13141 = vst [vmem:[#allocation189_spill] sm:$0xff] %v9843_v44  ;;  %13142 = vst [vmem:[#allocation190_spill] sm:$0xff] %v9845_v32  ;;  %4796 = vmatprep.subr.bf16.mxu0 %v8092_v29  ;;  %4989 = vmatprep.subr.bf16.mxu1 %v8095_v16  ;;  %v8096_v16 = vld [vmem:[#allocation2 + $0x40] ss:$16 sps:$4 sm:$0xff]  }
 0x274   :  { %v9847_v21 = vpop.f32.mrf.mxu0  ;;  %v9849_v59 = vpop.f32.mrf.mxu1  ;;  %7386 = vmatmul.mubr.msk.bf16.gmra.mxu0 %vm175_vm1, %v9476_v36  ;;  %7403 = vmatmul.mubr.msk.bf16.gmra.mxu1 %vm175_vm1, %v9476_v36  ;;  %v8099_v29 = vld [vmem:[#allocation2 + $0x240] ss:$16 sps:$4 sm:$0xff]  }
 0x275   :  { %13143 = vst [vmem:[#allocation191_spill] sm:$0xff] %v9847_v21  ;;  %13144 = vst [vmem:[#allocation192_spill] sm:$0xff] %v9849_v59  ;;  %2224 = vmatprep.mubr.bf16.mxu0 %v12992_v20  ;;  %2417 = vmatprep.mubr.bf16.mxu1 %v12992_v20  ;;  %v8104_v59 = vld [vmem:[#allocation2 + $0x24] ss:$16 sps:$4 sm:$0xff]  }
 0x276   :  { %v9857_v35 = vpop.f32.mrf.mxu0  ;;  %v9859_v26 = vpop.f32.mrf.mxu1  ;;  %4797 = vmatpush1.bf16.msra.mxu0 %v8090_v24  ;;  %4990 = vmatpush1.bf16.msra.mxu1 %v8093_v52  ;;  %v8107_v21 = vld [vmem:[#allocation2 + $0x224] ss:$16 sps:$4 sm:$0xff]  }
 0x277   :  { %13145 = vst [vmem:[#allocation193_spill] sm:$0xff] %v9857_v35  ;;  %13146 = vst [vmem:[#allocation194_spill] sm:$0xff] %v9859_v26  ;;  %4798 = vmatprep.subr.bf16.mxu0 %v8098_v45  ;;  %4991 = vmatprep.subr.bf16.mxu1 %v8101_v63  ;;  %v8102_v35 = vld [vmem:[#allocation2 + $0x20] ss:$16 sps:$4 sm:$0xff]   ;;  %v8110_v24 = vld [vmem:[#allocation2 + $0x4] ss:$16 sps:$4 sm:$0xff]  }
 0x278   :  { %v9861_v32 = vpop.f32.mrf.mxu0  ;;  %v9863_v44 = vpop.f32.mrf.mxu1  ;;  %v8105_v26 = vld [vmem:[#allocation2 + $0x220] ss:$16 sps:$4 sm:$0xff]   ;;  %v8113_v52 = vld [vmem:[#allocation2 + $0x204] ss:$16 sps:$4 sm:$0xff]  }
 0x279   :  { %13147 = vst [vmem:[#allocation195_spill] sm:$0xff] %v9861_v32  ;;  %13148 = vst [vmem:[#allocation196_spill] sm:$0xff] %v9863_v44 }
 0x27a   :  { %v9865_v36 = vpop.f32.mrf.mxu0  ;;  %v9867_v6 = vpop.f32.mrf.mxu1  ;;  %4799 = vmatpush1.bf16.msra.mxu0 %v8096_v16  ;;  %4992 = vmatpush1.bf16.msra.mxu1 %v8099_v29  ;;  %v8111_v29 = vld [vmem:[#allocation2 + $0x200] ss:$16 sps:$4 sm:$0xff]  }
 0x27b   :  { %13149 = vst [vmem:[#allocation197_spill] sm:$0xff] %v9865_v36  ;;  %13150 = vst [vmem:[#allocation198_spill] sm:$0xff] %v9867_v6  ;;  %4800 = vmatprep.subr.bf16.mxu0 %v8104_v59  ;;  %4993 = vmatprep.subr.bf16.mxu1 %v8107_v21  ;;  %v8108_v21 = vld [vmem:[#allocation2] ss:$16 sps:$4 sm:$0xff]  }
 0x27c   :  { %v9869_v45 = vpop.f32.mrf.mxu0  ;;  %v9871_v63 = vpop.f32.mrf.mxu1  ;;  %7387 = vmatmul.mubr.msk.bf16.gmra.mxu0 %vm175_vm1, %v8967_v60  ;;  %7404 = vmatmul.mubr.msk.bf16.gmra.mxu1 %vm175_vm1, %v8967_v60 }
 0x27d   :  { %13151 = vst [vmem:[#allocation199_spill] sm:$0xff] %v9869_v45  ;;  %13152 = vst [vmem:[#allocation200_spill] sm:$0xff] %v9871_v63  ;;  %2234 = vmatprep.mubr.bf16.mxu0 %v12992_v20  ;;  %2427 = vmatprep.mubr.bf16.mxu1 %v12992_v20  ;;  %v8116_v63 = vld [vmem:[#allocation2 + $0x1e4] ss:$16 sps:$4 sm:$0xff]  }
 0x27e   :  { %v9879_v16 = vpop.f32.mrf.mxu0  ;;  %v9881_v59 = vpop.f32.mrf.mxu1  ;;  %4801 = vmatpush1.bf16.msra.mxu0 %v8102_v35  ;;  %4994 = vmatpush1.bf16.msra.mxu1 %v8105_v26  ;;  %v8119_v45 = vld [vmem:[#allocation2 + $0x3e4] ss:$16 sps:$4 sm:$0xff]  }
 0x27f   :  { %13153 = vst [vmem:[#allocation201_spill] sm:$0xff] %v9879_v16  ;;  %13154 = vst [vmem:[#allocation202_spill] sm:$0xff] %v9881_v59  ;;  %4802 = vmatprep.subr.bf16.mxu0 %v8110_v24  ;;  %4995 = vmatprep.subr.bf16.mxu1 %v8113_v52  ;;  %v8114_v16 = vld [vmem:[#allocation2 + $0x1e0] ss:$16 sps:$4 sm:$0xff]   ;;  %v8122_v35 = vld [vmem:[#allocation2 + $0x1c4] ss:$16 sps:$4 sm:$0xff]  }
 0x280   :  { %v9883_v6 = vpop.f32.mrf.mxu0  ;;  %v9885_v36 = vpop.f32.mrf.mxu1  ;;  %v8117_v59 = vld [vmem:[#allocation2 + $0x3e0] ss:$16 sps:$4 sm:$0xff]   ;;  %v8125_v26 = vld [vmem:[#allocation2 + $0x3c4] ss:$16 sps:$4 sm:$0xff]  }
 0x281   :  { %13155 = vst [vmem:[#allocation203_spill] sm:$0xff] %v9883_v6  ;;  %13156 = vst [vmem:[#allocation204_spill] sm:$0xff] %v9885_v36 }
 0x282   :  { %v9887_v60 = vpop.f32.mrf.mxu0  ;;  %v9889_v44 = vpop.f32.mrf.mxu1  ;;  %4803 = vmatpush1.bf16.msra.mxu0 %v8108_v21  ;;  %4996 = vmatpush1.bf16.msra.mxu1 %v8111_v29  ;;  %v8123_v29 = vld [vmem:[#allocation2 + $0x3c0] ss:$16 sps:$4 sm:$0xff]  }
 0x283   :  { %13157 = vst [vmem:[#allocation205_spill] sm:$0xff] %v9887_v60  ;;  %13158 = vst [vmem:[#allocation206_spill] sm:$0xff] %v9889_v44  ;;  %4804 = vmatprep.subr.bf16.mxu0 %v8116_v63  ;;  %4997 = vmatprep.subr.bf16.mxu1 %v8119_v45  ;;  %v8120_v45 = vld [vmem:[#allocation2 + $0x1c0] ss:$16 sps:$4 sm:$0xff]  }
 0x284   :  { %v9891_v24 = vpop.f32.mrf.mxu0  ;;  %v9893_v52 = vpop.f32.mrf.mxu1  ;;  %7388 = vmatmul.mubr.msk.bf16.gmra.mxu0 %vm175_vm1, %v9526_v18  ;;  %7405 = vmatmul.mubr.msk.bf16.gmra.mxu1 %vm175_vm1, %v9526_v18 }
 0x285   :  { %13159 = vst [vmem:[#allocation207_spill] sm:$0xff] %v9891_v24  ;;  %13160 = vst [vmem:[#allocation208_spill] sm:$0xff] %v9893_v52  ;;  %2244 = vmatprep.mubr.bf16.mxu0 %v12992_v20  ;;  %2437 = vmatprep.mubr.bf16.mxu1 %v12992_v20  ;;  %v8128_v52 = vld [vmem:[#allocation2 + $0x1a4] ss:$16 sps:$4 sm:$0xff]  }
 0x286   :  { %v9901_v21 = vpop.f32.mrf.mxu0  ;;  %v9903_v63 = vpop.f32.mrf.mxu1  ;;  %4805 = vmatpush2.bf16.msra.mxu0 %v8114_v16  ;;  %4998 = vmatpush2.bf16.msra.mxu1 %v8117_v59  ;;  %v8131_v24 = vld [vmem:[#allocation2 + $0x3a4] ss:$16 sps:$4 sm:$0xff]  }
 0x287   :  { %13161 = vst [vmem:[#allocation209_spill] sm:$0xff] %v9901_v21  ;;  %13162 = vst [vmem:[#allocation210_spill] sm:$0xff] %v9903_v63  ;;  %4806 = vmatprep.subr.bf16.mxu0 %v8122_v35  ;;  %4999 = vmatprep.subr.bf16.mxu1 %v8125_v26  ;;  %v8126_v21 = vld [vmem:[#allocation2 + $0x1a0] ss:$16 sps:$4 sm:$0xff]   ;;  %v8134_v16 = vld [vmem:[#allocation2 + $0x184] ss:$16 sps:$4 sm:$0xff]  }
 0x288   :  { %v9905_v44 = vpop.f32.mrf.mxu0  ;;  %v9907_v60 = vpop.f32.mrf.mxu1  ;;  %v8129_v63 = vld [vmem:[#allocation2 + $0x3a0] ss:$16 sps:$4 sm:$0xff]   ;;  %v8137_v59 = vld [vmem:[#allocation2 + $0x384] ss:$16 sps:$4 sm:$0xff]  }
 0x289   :  { %13163 = vst [vmem:[#allocation211_spill] sm:$0xff] %v9905_v44  ;;  %13164 = vst [vmem:[#allocation212_spill] sm:$0xff] %v9907_v60 }
 0x28a   :  { %v9909_v18 = vpop.f32.mrf.mxu0  ;;  %v9911_v36 = vpop.f32.mrf.mxu1  ;;  %4807 = vmatpush2.bf16.msra.mxu0 %v8120_v45  ;;  %5000 = vmatpush2.bf16.msra.mxu1 %v8123_v29  ;;  %v8135_v29 = vld [vmem:[#allocation2 + $0x380] ss:$16 sps:$4 sm:$0xff]  }
 0x28b   :  { %13165 = vst [vmem:[#allocation213_spill] sm:$0xff] %v9909_v18  ;;  %13166 = vst [vmem:[#allocation214_spill] sm:$0xff] %v9911_v36  ;;  %4808 = vmatprep.subr.bf16.mxu0 %v8128_v52  ;;  %5001 = vmatprep.subr.bf16.mxu1 %v8131_v24  ;;  %v8132_v24 = vld [vmem:[#allocation2 + $0x180] ss:$16 sps:$4 sm:$0xff]  }
 0x28c   :  { %v9913_v35 = vpop.f32.mrf.mxu0  ;;  %v9915_v26 = vpop.f32.mrf.mxu1  ;;  %7389 = vmatmul.mubr.msk.bf16.gmra.mxu0 %vm175_vm1, %v8988_v15  ;;  %7406 = vmatmul.mubr.msk.bf16.gmra.mxu1 %vm175_vm1, %v8988_v15 }
 0x28d   :  { %13167 = vst [vmem:[#allocation215_spill] sm:$0xff] %v9913_v35  ;;  %13168 = vst [vmem:[#allocation216_spill] sm:$0xff] %v9915_v26  ;;  %2254 = vmatprep.mubr.bf16.mxu0 %v12992_v20  ;;  %2447 = vmatprep.mubr.bf16.mxu1 %v12992_v20  ;;  %v8140_v26 = vld [vmem:[#allocation2 + $0x164] ss:$16 sps:$4 sm:$0xff]  }
 0x28e   :  { %v9923_v45 = vpop.f32.mrf.mxu0  ;;  %v9925_v52 = vpop.f32.mrf.mxu1  ;;  %4809 = vmatpush2.bf16.msra.mxu0 %v8126_v21  ;;  %5002 = vmatpush2.bf16.msra.mxu1 %v8129_v63  ;;  %v8143_v35 = vld [vmem:[#allocation2 + $0x364] ss:$16 sps:$4 sm:$0xff]  }
 0x28f   :  { %13169 = vst [vmem:[#allocation217_spill] sm:$0xff] %v9923_v45  ;;  %13170 = vst [vmem:[#allocation218_spill] sm:$0xff] %v9925_v52  ;;  %4810 = vmatprep.subr.bf16.mxu0 %v8134_v16  ;;  %5003 = vmatprep.subr.bf16.mxu1 %v8137_v59  ;;  %v8138_v45 = vld [vmem:[#allocation2 + $0x160] ss:$16 sps:$4 sm:$0xff]   ;;  %v8146_v21 = vld [vmem:[#allocation2 + $0x144] ss:$16 sps:$4 sm:$0xff]  }
 0x290   :  { %v9927_v36 = vpop.f32.mrf.mxu0  ;;  %v9929_v18 = vpop.f32.mrf.mxu1  ;;  %v8141_v52 = vld [vmem:[#allocation2 + $0x360] ss:$16 sps:$4 sm:$0xff]   ;;  %v8149_v63 = vld [vmem:[#allocation2 + $0x344] ss:$16 sps:$4 sm:$0xff]  }
 0x291   :  { %13171 = vst [vmem:[#allocation219_spill] sm:$0xff] %v9927_v36  ;;  %13172 = vst [vmem:[#allocation220_spill] sm:$0xff] %v9929_v18 }
 0x292   :  { %v9931_v15 = vpop.f32.mrf.mxu0  ;;  %v9933_v60 = vpop.f32.mrf.mxu1  ;;  %4811 = vmatpush2.bf16.msra.mxu0 %v8132_v24  ;;  %5004 = vmatpush2.bf16.msra.mxu1 %v8135_v29  ;;  %v8147_v29 = vld [vmem:[#allocation2 + $0x340] ss:$16 sps:$4 sm:$0xff]  }
 0x293   :  { %13173 = vst [vmem:[#allocation221_spill] sm:$0xff] %v9931_v15  ;;  %13174 = vst [vmem:[#allocation222_spill] sm:$0xff] %v9933_v60  ;;  %4812 = vmatprep.subr.bf16.mxu0 %v8140_v26  ;;  %5005 = vmatprep.subr.bf16.mxu1 %v8143_v35  ;;  %v8144_v35 = vld [vmem:[#allocation2 + $0x140] ss:$16 sps:$4 sm:$0xff]  }
 0x294   :  { %v9935_v16 = vpop.f32.mrf.mxu0  ;;  %v9937_v59 = vpop.f32.mrf.mxu1  ;;  %7390 = vmatmul.mubr.msk.bf16.gmra.mxu0 %vm175_vm1, %v9577_v39  ;;  %7407 = vmatmul.mubr.msk.bf16.gmra.mxu1 %vm175_vm1, %v9577_v39 }
 0x295   :  { %13175 = vst [vmem:[#allocation223_spill] sm:$0xff] %v9935_v16  ;;  %13176 = vst [vmem:[#allocation224_spill] sm:$0xff] %v9937_v59  ;;  %2264 = vmatprep.mubr.bf16.mxu0 %v12992_v20  ;;  %2457 = vmatprep.mubr.bf16.mxu1 %v12992_v20  ;;  %v8152_v59 = vld [vmem:[#allocation2 + $0x124] ss:$16 sps:$4 sm:$0xff]  }
 0x296   :  { %v9945_v24 = vpop.f32.mrf.mxu0  ;;  %v9947_v26 = vpop.f32.mrf.mxu1  ;;  %4813 = vmatpush2.bf16.msra.mxu0 %v8138_v45  ;;  %5006 = vmatpush2.bf16.msra.mxu1 %v8141_v52  ;;  %v8155_v16 = vld [vmem:[#allocation2 + $0x324] ss:$16 sps:$4 sm:$0xff]  }
 0x297   :  { %13177 = vst [vmem:[#allocation225_spill] sm:$0xff] %v9945_v24  ;;  %13178 = vst [vmem:[#allocation226_spill] sm:$0xff] %v9947_v26  ;;  %4814 = vmatprep.subr.bf16.mxu0 %v8146_v21  ;;  %5007 = vmatprep.subr.bf16.mxu1 %v8149_v63  ;;  %v8150_v24 = vld [vmem:[#allocation2 + $0x120] ss:$16 sps:$4 sm:$0xff]   ;;  %v8158_v45 = vld [vmem:[#allocation2 + $0x104] ss:$16 sps:$4 sm:$0xff]  }
 0x298   :  { %v9949_v18 = vpop.f32.mrf.mxu0  ;;  %v9951_v36 = vpop.f32.mrf.mxu1  ;;  %v8153_v26 = vld [vmem:[#allocation2 + $0x320] ss:$16 sps:$4 sm:$0xff]   ;;  %v8161_v52 = vld [vmem:[#allocation2 + $0x304] ss:$16 sps:$4 sm:$0xff]  }
 0x299   :  { %13179 = vst [vmem:[#allocation227_spill] sm:$0xff] %v9949_v18  ;;  %13180 = vst [vmem:[#allocation228_spill] sm:$0xff] %v9951_v36 }
 0x29a   :  { %v9953_v39 = vpop.f32.mrf.mxu0  ;;  %v9955_v60 = vpop.f32.mrf.mxu1  ;;  %4815 = vmatpush2.bf16.msra.mxu0 %v8144_v35  ;;  %5008 = vmatpush2.bf16.msra.mxu1 %v8147_v29  ;;  %v8159_v29 = vld [vmem:[#allocation2 + $0x300] ss:$16 sps:$4 sm:$0xff]  }
 0x29b   :  { %13181 = vst [vmem:[#allocation229_spill] sm:$0xff] %v9953_v39  ;;  %13182 = vst [vmem:[#allocation230_spill] sm:$0xff] %v9955_v60  ;;  %4816 = vmatprep.subr.bf16.mxu0 %v8152_v59  ;;  %5009 = vmatprep.subr.bf16.mxu1 %v8155_v16  ;;  %v8156_v16 = vld [vmem:[#allocation2 + $0x100] ss:$16 sps:$4 sm:$0xff]  }
 0x29c   :  { %v9957_v21 = vpop.f32.mrf.mxu0  ;;  %v9959_v63 = vpop.f32.mrf.mxu1  ;;  %7391 = vmatmul.mubr.msk.bf16.gmra.mxu0 %vm175_vm1, %v9003_v34  ;;  %7408 = vmatmul.mubr.msk.bf16.gmra.mxu1 %vm175_vm1, %v9003_v34 }
 0x29d   :  { %13183 = vst [vmem:[#allocation231_spill] sm:$0xff] %v9957_v21  ;;  %13184 = vst [vmem:[#allocation232_spill] sm:$0xff] %v9959_v63  ;;  %2274 = vmatprep.mubr.bf16.mxu0 %v12992_v20  ;;  %2467 = vmatprep.mubr.bf16.mxu1 %v12992_v20  ;;  %v8164_v63 = vld [vmem:[#allocation2 + $0x4e4] ss:$16 sps:$4 sm:$0xff]  }
 0x29e   :  { %v9967_v35 = vpop.f32.mrf.mxu0  ;;  %v9969_v59 = vpop.f32.mrf.mxu1  ;;  %4817 = vmatpush2.bf16.msra.mxu0 %v8150_v24  ;;  %5010 = vmatpush2.bf16.msra.mxu1 %v8153_v26  ;;  %v8167_v21 = vld [vmem:[#allocation2 + $0x6e4] ss:$16 sps:$4 sm:$0xff]  }
 0x29f   :  { %13185 = vst [vmem:[#allocation233_spill] sm:$0xff] %v9967_v35  ;;  %13186 = vst [vmem:[#allocation234_spill] sm:$0xff] %v9969_v59  ;;  %4818 = vmatprep.subr.bf16.mxu0 %v8158_v45  ;;  %5011 = vmatprep.subr.bf16.mxu1 %v8161_v52 }
 0x2a0   :  { %v9971_v36 = vpop.f32.mrf.mxu0  ;;  %v9973_v18 = vpop.f32.mrf.mxu1 }
 0x2a1   :  { %13187 = vst [vmem:[#allocation235_spill] sm:$0xff] %v9971_v36  ;;  %13188 = vst [vmem:[#allocation236_spill] sm:$0xff] %v9973_v18 }
 0x2a2   :  { %v9975_v34 = vpop.f32.mrf.mxu0  ;;  %v9977_v60 = vpop.f32.mrf.mxu1  ;;  %4819 = vmatpush2.bf16.msra.mxu0 %v8156_v16  ;;  %5012 = vmatpush2.bf16.msra.mxu1 %v8159_v29 }
 0x2a3   :  { %13189 = vst [vmem:[#allocation237_spill] sm:$0xff] %v9975_v34  ;;  %13190 = vst [vmem:[#allocation238_spill] sm:$0xff] %v9977_v60  ;;  %5174 = vmatprep.subr.bf16.mxu0 %v8164_v63  ;;  %5367 = vmatprep.subr.bf16.mxu1 %v8167_v21 }
 0x2a4   :  { %v9979_v24 = vpop.f32.mrf.mxu0  ;;  %v9981_v26 = vpop.f32.mrf.mxu1  ;;  %7392 = vmatmul.mubr.msk.bf16.gmra.mxu0 %vm175_vm1, %v9026_v5  ;;  %7409 = vmatmul.mubr.msk.bf16.gmra.mxu1 %vm175_vm1, %v9026_v5 }
 0x2a5   :  { %2284 = vmatprep.mubr.bf16.mxu0 %v12992_v20  ;;  %2477 = vmatprep.mubr.bf16.mxu1 %v12992_v20 }
 0x2a6   :  { %v9989_v45 = vpop.f32.mrf.mxu0  ;;  %v9991_v52 = vpop.f32.mrf.mxu1 }
 0x2a8   :  { %v9993_v63 = vpop.f32.mrf.mxu0  ;;  %v9995_v21 = vpop.f32.mrf.mxu1 }
 0x2aa   :  { %v1816_v16 = vpop.f32.mrf.mxu0  ;;  %v2009_v29 = vpop.f32.mrf.mxu1 }
 0x2ac   :  { %v9997_v18 = vpop.f32.mrf.mxu0  ;;  %v9999_v36 = vpop.f32.mrf.mxu1  ;;  %7393 = vmatmul.mubr.msk.bf16.gmra.mxu0 %vm175_vm1, %v9024_v1  ;;  %7410 = vmatmul.mubr.msk.bf16.gmra.mxu1 %vm175_vm1, %v9024_v1 }
 0x2ad   :  { %2294 = vmatprep.mubr.bf16.mxu0 %v12992_v20  ;;  %2487 = vmatprep.mubr.bf16.mxu1 %v12992_v20 }
 0x2ae   :  { %v10006_v5 = vpop.f32.mrf.mxu0  ;;  %v10008_v59 = vpop.f32.mrf.mxu1 }
 0x2b0   :  { %v10011_v35 = vpop.f32.mrf.mxu0  ;;  %v10013_v60 = vpop.f32.mrf.mxu1 }
 0x2b2   :  { %v10015_v34 = vpop.f32.mrf.mxu0  ;;  %v10017_v39 = vpop.f32.mrf.mxu1 }
 0x2b4   :  { %v10019_v15 = vpop.f32.mrf.mxu0  ;;  %v10021_v44 = vpop.f32.mrf.mxu1  ;;  %7394 = vmatmul.mubr.msk.bf16.gmra.mxu0 %vm175_vm1, %v9045_v42  ;;  %7411 = vmatmul.mubr.msk.bf16.gmra.mxu1 %vm175_vm1, %v9045_v42 }
 0x2b5   :  { %2304 = vmatprep.mubr.bf16.mxu0 %v12992_v20  ;;  %2497 = vmatprep.mubr.bf16.mxu1 %v12992_v20 }
 0x2b6   :  { %v10029_v1 = vpop.f32.mrf.mxu0  ;;  %v10031_v6 = vpop.f32.mrf.mxu1 }
 0x2b8   :  { %v10033_v32 = vpop.f32.mrf.mxu0  ;;  %v10035_v27 = vpop.f32.mrf.mxu1 }
 0x2ba   :  { %v10037_v25 = vpop.f32.mrf.mxu0  ;;  %v10039_v17 = vpop.f32.mrf.mxu1 }
 0x2bc   :  { %v10041_v54 = vpop.f32.mrf.mxu0  ;;  %v10043_v31 = vpop.f32.mrf.mxu1  ;;  %7395 = vmatmul.mubr.msk.bf16.gmra.mxu0 %vm175_vm1, %v9039_v33  ;;  %7412 = vmatmul.mubr.msk.bf16.gmra.mxu1 %vm175_vm1, %v9039_v33 }
 0x2bd   :  { %13191 = vst [vmem:[#allocation239_spill] sm:$0xff] %v10041_v54  ;;  %13192 = vst [vmem:[#allocation240_spill] sm:$0xff] %v10043_v31  ;;  %2314 = vmatprep.mubr.bf16.mxu0 %v12992_v20  ;;  %2507 = vmatprep.mubr.bf16.mxu1 %v12992_v20 }
 0x2be   :  { %v10051_v42 = vpop.f32.mrf.mxu0  ;;  %v10053_v62 = vpop.f32.mrf.mxu1 }
 0x2bf   :  { %13193 = vst [vmem:[#allocation241_spill] sm:$0xff] %v10051_v42  ;;  %13194 = vst [vmem:[#allocation242_spill] sm:$0xff] %v10053_v62 }
 0x2c0   :  { %v10055_v19 = vpop.f32.mrf.mxu0  ;;  %v10057_v38 = vpop.f32.mrf.mxu1 }
 0x2c1   :  { %13195 = vst [vmem:[#allocation243_spill] sm:$0xff] %v10055_v19  ;;  %13196 = vst [vmem:[#allocation244_spill] sm:$0xff] %v10057_v38  ;;  %v12823_v19 = vlaneseq }
 0x2c2   :  { %v10059_v8 = vpop.f32.mrf.mxu0  ;;  %v10061_v31 = vpop.f32.mrf.mxu1 }
 0x2c3   :  { %13197 = vst [vmem:[#allocation245_spill] sm:$0xff] %v10061_v31  ;;  %v10086_v31 = vshrl.u32 %v12823_v19, 7 }
 0x2c4   :  { %v10063_v54 = vpop.f32.mrf.mxu0  ;;  %v10065_v4 = vpop.f32.mrf.mxu1  ;;  %7396 = vmatmul.mubr.msk.bf16.gmra.mxu0 %vm175_vm1, %v9062_v12  ;;  %7413 = vmatmul.mubr.msk.bf16.gmra.mxu1 %vm175_vm1, %v9062_v12 }
 0x2c5   :  { %13198 = vst [vmem:[#allocation246_spill] sm:$0xff] %v10063_v54  ;;  %13199 = vst [vmem:[#allocation247_spill] sm:$0xff] %v10065_v4  ;;  %2324 = vmatprep.mubr.bf16.mxu0 %v12992_v20  ;;  %2517 = vmatprep.mubr.bf16.mxu1 %v12992_v20 }
 0x2c6   :  { %v10073_v33 = vpop.f32.mrf.mxu0  ;;  %v10075_v38 = vpop.f32.mrf.mxu1  ;;  %13206 = vst [vmem:[#allocation254_spill] sm:$0xff] %v10086_v31 }
 0x2c7   :  { %13200 = vst [vmem:[#allocation248_spill] sm:$0xff] %v10073_v33  ;;  %13201 = vst [vmem:[#allocation249_spill] sm:$0xff] %v10075_v38 }
 0x2c8   :  { %v10077_v62 = vpop.f32.mrf.mxu0  ;;  %v10079_v54 = vpop.f32.mrf.mxu1 }
 0x2c9   :  { %13202 = vst [vmem:[#allocation250_spill] sm:$0xff] %v10077_v62  ;;  %13203 = vst [vmem:[#allocation251_spill] sm:$0xff] %v10079_v54  ;;  %v1813_v54 = vadd.f32 %v9989_v45, %v9242_v56 }
 0x2ca   :  { %v10081_v4 = vpop.f32.mrf.mxu0  ;;  %v10083_v42 = vpop.f32.mrf.mxu1 }
 0x2cb   :  { %13204 = vst [vmem:[#allocation252_spill] sm:$0xff] %v10081_v4  ;;  %13205 = vst [vmem:[#allocation253_spill] sm:$0xff] %v10083_v42  ;;  %v13213_v42 = vsub.s32 1, %v10086_v31 }
 0x2cc   :  { %v10088_v12 = vpop.f32.mrf.mxu0  ;;  %v10090_v28 = vpop.f32.mrf.mxu1  ;;  %7397 = vmatmul.mubr.msk.bf16.gmra.mxu0 %vm175_vm1, %v9057_v2  ;;  %7414 = vmatmul.mubr.msk.bf16.gmra.mxu1 %vm175_vm1, %v9057_v2  ;;  %v2548_v2 = vld [vmem:[%s12815_s8] sm:$0xff] }
 0x2cd   :  { %13207 = vst [vmem:[#allocation255_spill] sm:$0xff] %v10088_v12  ;;  %13208 = vst [vmem:[#allocation256_spill] sm:$0xff] %v10090_v28  ;;  %2334 = vmatprep.mubr.bf16.mxu0 %v12992_v20  ;;  %2527 = vmatprep.mubr.bf16.mxu1 %v12992_v20  ;;  %v1817_v28 = vadd.f32 %v1816_v16, %v9250_v22  ;;  %v2010_v12 = vadd.f32 %v2009_v29, %v9252_v49  ;;  %v13214_v49 = vsub.s32 3, %v10086_v31 }
 0x2ce   :  { %v10100_v19 = vpop.f32.mrf.mxu0  ;;  %v10102_v38 = vpop.f32.mrf.mxu1  ;;  %v2006_v22 = vadd.f32 %v9991_v52, %v9244_v7  ;;  %v12824_v29 = vsub.s32 0, %v10086_v31 }
 0x2cf   :  { %13209 = vst [vmem:[#allocation257_spill] sm:$0xff] %v10100_v19  ;;  %13210 = vst [vmem:[#allocation258_spill] sm:$0xff] %v10102_v38  ;;  %v10117_v19 = vrot.slane %v2548_v2, %v13213_v42  ;;  %v10123_v16 = vrot.slane %v2548_v2, %v13214_v49  ;;  %v1815_v49 = vadd.f32 %v9993_v63, %v9246_v30 }
 0x2d0   :  { %v10109_v33 = vpop.f32.mrf.mxu0  ;;  %v10111_v62 = vpop.f32.mrf.mxu1 }
 0x2d1   :  { %13211 = vst [vmem:[#allocation259_spill] sm:$0xff] %v10109_v33  ;;  %13212 = vst [vmem:[#allocation260_spill] sm:$0xff] %v10111_v62  ;;  %v12825_v33 = vsub.s32 2, %v10086_v31  ;;  %v2599_v56 = vadd.f32 %v10117_v19, %v1817_v28  ;;  %v2601_v45 = vadd.f32 %v10123_v16, %v2010_v12  ;;  %v2591_v7 = vadd.f32 %v10117_v19, %v1813_v54 }
 0x2d2   :  { %v10127_v38 = vpop.f32.mrf.mxu0  ;;  %v10129_v62 = vpop.f32.mrf.mxu1  ;;  %v2593_v52 = vadd.f32 %v10123_v16, %v2006_v22  ;;  %v1811_v28 = vadd.f32 %v9979_v24, %v9232_v13  ;;  %v10151_v12 = vrot.slane %v2548_v2, %v12824_v29  ;;  %v2008_v54 = vadd.f32 %v9995_v21, %v9248_v46 }
 0x2d3   :  { %v2855_v63 = vmax.f32 %v2599_v56, 0.0  ;;  %v2857_v13 = vmax.f32 %v2601_v45, 0.0  ;;  %v1827_v24 = vadd.f32 %v10015_v34, %v9272_v53  ;;  %v2020_v29 = vadd.f32 %v10017_v39, %v9274_v55 }
 0x2d4   :  { %v10133_v42 = vpop.f32.mrf.mxu0  ;;  %v10135_v4 = vpop.f32.mrf.mxu1  ;;  %7398 = vmatmul.mubr.msk.bf16.gmra.mxu0 %vm175_vm1, %v9080_v43  ;;  %7415 = vmatmul.mubr.msk.bf16.gmra.mxu1 %vm175_vm1, %v9080_v43  ;;  %v10155_v43 = vrot.slane %v2548_v2, %v12825_v33  ;;  %v2847_v46 = vmax.f32 %v2591_v7, 0.0  ;;  %v2849_v21 = vmax.f32 %v2593_v52, 0.0  ;;  %v2598_v31 = vadd.f32 %v10151_v12, %v1815_v49 }
 0x2d5   :  { %13215 = vst [vmem:[#allocation261_spill] sm:$0xff] %v10135_v4  ;;  %2344 = vmatprep.mubr.bf16.mxu0 %v12992_v20  ;;  %2537 = vmatprep.mubr.bf16.mxu1 %v12992_v20  ;;  %v2004_v20 = vadd.f32 %v9981_v26, %v9234_v37  ;;  %v1823_v4 = vadd.f32 %v10006_v5, %v9264_v10 }
 0x2d6   :  { %v10159_v22 = vpop.f32.mrf.mxu0  ;;  %v10161_v30 = vpop.f32.mrf.mxu1  ;;  %v2590_v37 = vadd.f32 %v10151_v12, %v1811_v28  ;;  %v2600_v26 = vadd.f32 %v10155_v43, %v2008_v54  ;;  %v2016_v53 = vadd.f32 %v10008_v59, %v9266_v47  ;;  %v2615_v56 = vadd.f32 %v10117_v19, %v1827_v24 }
 0x2d7   :  { %v2592_v39 = vadd.f32 %v10155_v43, %v2004_v20  ;;  %v10186_v45 = vpack.c.bf16 %v2855_v63, %v2847_v46  ;;  %v10188_v7 = vpack.c.bf16 %v2857_v13, %v2849_v21  ;;  %v1821_v10 = vadd.f32 %v9997_v18, %v9254_v41 }
 0x2d8   :  { %v10169_v2 = vpop.f32.mrf.mxu0  ;;  %v10171_v33 = vpop.f32.mrf.mxu1  ;;  %v2014_v5 = vadd.f32 %v9999_v36, %v9256_v57  ;;  %v2617_v47 = vadd.f32 %v10123_v16, %v2020_v29  ;;  %v2854_v49 = vmax.f32 %v2598_v31, 0.0  ;;  %v2607_v28 = vadd.f32 %v10117_v19, %v1823_v4 }
 0x2d9   :  { %13216 = vst [vmem:[#allocation262_spill] sm:$0xff] %v10186_v45  ;;  %13217 = vst [vmem:[#allocation263_spill] sm:$0xff] %v10188_v7  ;;  %v2856_v41 = vmax.f32 %v2600_v26, 0.0  ;;  %v2609_v57 = vadd.f32 %v10123_v16, %v2016_v53  ;;  %v1825_v36 = vadd.f32 %v10011_v35, %v9268_v50  ;;  %v2018_v18 = vadd.f32 %v10013_v60, %v9270_v51 }
 0x2da   :  { %v10180_v34 = vpop.f32.mrf.mxu0  ;;  %v10182_v55 = vpop.f32.mrf.mxu1  ;;  %v2871_v31 = vmax.f32 %v2615_v56, 0.0  ;;  %v1837_v4 = vadd.f32 %v10037_v25, %v9294_v11  ;;  %v2030_v20 = vadd.f32 %v10039_v17, %v9296_v14  ;;  %v2848_v63 = vmax.f32 %v2592_v39, 0.0  ;;  %v8162_v25 = vld [vmem:[#allocation2 + $0x4e0] ss:$16 sps:$4 sm:$0xff]  }
 0x2db   :  { %v10220_v13 = vadd.f32 %v10151_v12, %v1821_v10  ;;  %v10223_v50 = vadd.f32 %v10155_v43, %v2014_v5  ;;  %v2873_v51 = vmax.f32 %v2617_v47, 0.0  ;;  %v2863_v46 = vmax.f32 %v2607_v28, 0.0  ;;  %v8165_v56 = vld [vmem:[#allocation2 + $0x6e0] ss:$16 sps:$4 sm:$0xff]   ;;  %v8173_v5 = vld [vmem:[#allocation2 + $0x6c4] ss:$16 sps:$4 sm:$0xff]  }
 0x2dc   :  { %v10195_v59 = vpop.f32.mrf.mxu0  ;;  %v10197_v52 = vpop.f32.mrf.mxu1  ;;  %7399 = vmatmul.mubr.msk.bf16.gmra.mxu0 %vm175_vm1, %v9076_v40  ;;  %7416 = vmatmul.mubr.msk.bf16.gmra.mxu1 %vm175_vm1, %v9076_v40  ;;  %v2846_v40 = vmax.f32 %v2590_v37, 0.0  ;;  %v1833_v11 = vadd.f32 %v10029_v1, %v9286_v48  ;;  %v2026_v14 = vadd.f32 %v10031_v6, %v9288_v3  ;;  %v10235_v17 = vpack.c.bf16 %v2856_v41, %v2848_v63  ;;  %v8170_v1 = vld [vmem:[#allocation2 + $0x4c4] ss:$16 sps:$4 sm:$0xff]  }
 0x2dd   :  { %4820 = vmatprep.mubr.bf16.mxu0 %v10186_v45  ;;  %5013 = vmatprep.mubr.bf16.mxu1 %v10188_v7  ;;  %v2865_v21 = vmax.f32 %v2609_v57, 0.0  ;;  %v2614_v37 = vadd.f32 %v10151_v12, %v1825_v36  ;;  %v2616_v26 = vadd.f32 %v10155_v43, %v2018_v18  ;;  %v1831_v10 = vadd.f32 %v10019_v15, %v9276_v58 }
 0x2de   :  { %v10211_v29 = vpop.f32.mrf.mxu0  ;;  %v10213_v54 = vpop.f32.mrf.mxu1  ;;  %v10229_v24 = vpack.c.bf16 %v2854_v49, %v2846_v40  ;;  %13219 = vst [vmem:[#allocation265_spill] sm:$0xff] %v10235_v17  ;;  %v2631_v48 = vadd.f32 %v10117_v19, %v1837_v4  ;;  %v2633_v3 = vadd.f32 %v10123_v16, %v2030_v20  ;;  %v10247_v6 = vpack.c.bf16 %v2871_v31, %v2863_v46  ;;  %v8176_v4 = vld [vmem:[#allocation2 + $0x4a4] ss:$16 sps:$4 sm:$0xff]  }
 0x2df   :  { %v1835_v47 = vadd.f32 %v10033_v32, %v9290_v61  ;;  %v2028_v49 = vadd.f32 %v10035_v27, %v9292_v9  ;;  %v10259_v58 = vpack.c.bf16 %v2873_v51, %v2865_v21  ;;  %v2623_v15 = vadd.f32 %v10117_v19, %v1833_v11  ;;  %v8168_v61 = vld [vmem:[#allocation2 + $0x4c0] ss:$16 sps:$4 sm:$0xff]  }
 0x2e0   :  { %v10225_v60 = vpop.f32.mrf.mxu0  ;;  %v10227_v35 = vpop.f32.mrf.mxu1  ;;  %13218 = vst [vmem:[#allocation264_spill] sm:$0xff] %v10229_v24  ;;  %13220 = vst [vmem:[#allocation266_spill] sm:$0xff] %v10247_v6  ;;  %v2625_v57 = vadd.f32 %v10123_v16, %v2026_v14  ;;  %v8171_v32 = vld [vmem:[#allocation2 + $0x6c0] ss:$16 sps:$4 sm:$0xff]   ;;  %v2862_v9 = vmax.f32 %v10220_v13, 0.0  ;;  %v2870_v27 = vmax.f32 %v2614_v37, 0.0  ;;  %v2024_v18 = vadd.f32 %v10021_v44, %v9278_v0 }
 0x2e1   :  { %13221 = vst [vmem:[#allocation267_spill] sm:$0xff] %v10259_v58  ;;  %v2872_v36 = vmax.f32 %v2616_v26, 0.0  ;;  %v2887_v20 = vmax.f32 %v2631_v48, 0.0  ;;  %v2889_v63 = vmax.f32 %v2633_v3, 0.0  ;;  %v1847_v51 = vadd.f32 %v10059_v8, %v9316_v23  ;;  %v13222_v46 = vld [vmem:[#allocation14_spill] sm:$0xff]  ;;  %v13223_v13 = vld [vmem:[#allocation245_spill] sm:$0xff] }
 0x2e2   :  { %v10239_v53 = vpop.f32.mrf.mxu0  ;;  %v10241_v39 = vpop.f32.mrf.mxu1  ;;  %v2040_v11 = vadd.f32 %v13223_v13, %v13222_v46  ;;  %v8179_v14 = vld [vmem:[#allocation2 + $0x6a4] ss:$16 sps:$4 sm:$0xff]   ;;  %v2864_v0 = vmax.f32 %v10223_v50, 0.0  ;;  %v2622_v44 = vadd.f32 %v10151_v12, %v1831_v10  ;;  %v2632_v21 = vadd.f32 %v10155_v43, %v2028_v49  ;;  %v13225_v48 = vld [vmem:[#allocation241_spill] sm:$0xff] }
 0x2e3   :  { %v2881_v23 = vmax.f32 %v2625_v57, 0.0  ;;  %v13224_v8 = vld [vmem:[#allocation10_spill] sm:$0xff]  ;;  %v10288_v50 = vpack.c.bf16 %v2870_v27, %v2862_v9 }
 0x2e4   :  { %v10253_v28 = vpop.f32.mrf.mxu0  ;;  %v10255_v41 = vpop.f32.mrf.mxu1  ;;  %4821 = vmatmul.mubr.bf16.vlgmr.msra.gmra.mxu0 %v10229_v24  ;;  %5014 = vmatmul.mubr.bf16.vlgmr.msra.gmra.mxu1 %v10235_v17  ;;  %v1843_v3 = vadd.f32 %v13225_v48, %v13224_v8  ;;  %v10290_v10 = vpack.c.bf16 %v2872_v36, %v2864_v0  ;;  %v8177_v57 = vld [vmem:[#allocation2 + $0x6a0] ss:$16 sps:$4 sm:$0xff]   ;;  %v2647_v8 = vadd.f32 %v10117_v19, %v1847_v51  ;;  %v8182_v9 = vld [vmem:[#allocation2 + $0x484] ss:$16 sps:$4 sm:$0xff]  }
 0x2e5   :  { %5175 = vmatpush1.bf16.msra.mxu0 %v8162_v25  ;;  %4830 = vmatprep.mubr.bf16.mxu0 %v10247_v6  ;;  %v2630_v25 = vadd.f32 %v10151_v12, %v1835_v47  ;;  %13228 = vst [vmem:[#allocation14_spill] sm:$0xff] %v10288_v50  ;;  %v2624_v47 = vadd.f32 %v10155_v43, %v2024_v18  ;;  %v8185_v27 = vld [vmem:[#allocation2 + $0x684] ss:$16 sps:$4 sm:$0xff]   ;;  %v2888_v18 = vmax.f32 %v2632_v21, 0.0  ;;  %v13237_v21 = vld [vmem:[#allocation243_spill] sm:$0xff] }
 0x2e6   :  { %5023 = vmatprep.mubr.bf16.mxu1 %v10259_v58  ;;  %v10268_v40 = vpop.f32.mrf.mxu0  ;;  %v10270_v31 = vpop.f32.mrf.mxu1  ;;  %5368 = vmatpush1.bf16.msra.mxu1 %v8165_v56  ;;  %v2879_v56 = vmax.f32 %v2623_v15, 0.0  ;;  %13229 = vst [vmem:[#allocation245_spill] sm:$0xff] %v10290_v10  ;;  %v8174_v15 = vld [vmem:[#allocation2 + $0x4a0] ss:$16 sps:$4 sm:$0xff]   ;;  %v2649_v48 = vadd.f32 %v10123_v16, %v2040_v11 }
 0x2e7   :  { %5176 = vmatprep.subr.bf16.mxu0 %v8170_v1  ;;  %5369 = vmatprep.subr.bf16.mxu1 %v8173_v5  ;;  %v13226_v1 = vld [vmem:[#allocation11_spill] sm:$0xff]  ;;  %v13227_v5 = vld [vmem:[#allocation242_spill] sm:$0xff]  ;;  %v2886_v36 = vmax.f32 %v2630_v25, 0.0  ;;  %v13234_v51 = vld [vmem:[#allocation8_spill] sm:$0xff] }
 0x2e8   :  { %v10280_v37 = vpop.f32.mrf.mxu0  ;;  %v10282_v26 = vpop.f32.mrf.mxu1  ;;  %v2036_v46 = vadd.f32 %v13227_v5, %v13226_v1  ;;  %v10299_v1 = vpack.c.bf16 %v2887_v20, %v2879_v56  ;;  %v13235_v11 = vld [vmem:[#allocation239_spill] sm:$0xff]  ;;  %v13236_v25 = vld [vmem:[#allocation12_spill] sm:$0xff] }
 0x2e9   :  { %5177 = vmatpush1.bf16.msra.mxu0 %v8168_v61  ;;  %v10301_v61 = vpack.c.bf16 %v2889_v63, %v2881_v23  ;;  %v2880_v63 = vmax.f32 %v2624_v47, 0.0  ;;  %v1845_v56 = vadd.f32 %v13237_v21, %v13236_v25  ;;  %v13238_v23 = vld [vmem:[#allocation13_spill] sm:$0xff]  ;;  %v13241_v6 = vld [vmem:[#allocation252_spill] sm:$0xff] }
 0x2ea   :  { %v10293_v49 = vpop.f32.mrf.mxu0  ;;  %v10295_v13 = vpop.f32.mrf.mxu1  ;;  %5370 = vmatpush1.bf16.msra.mxu1 %v8171_v32  ;;  %5178 = vmatprep.subr.bf16.mxu0 %v8176_v4  ;;  %13230 = vst [vmem:[#allocation10_spill] sm:$0xff] %v10299_v1  ;;  %v2878_v32 = vmax.f32 %v2622_v44, 0.0  ;;  %v2639_v4 = vadd.f32 %v10117_v19, %v1843_v3  ;;  %v2641_v20 = vadd.f32 %v10123_v16, %v2036_v46  ;;  %v8180_v3 = vld [vmem:[#allocation2 + $0x480] ss:$16 sps:$4 sm:$0xff]   ;;  %v8188_v25 = vld [vmem:[#allocation2 + $0x464] ss:$16 sps:$4 sm:$0xff]  }
 0x2eb   :  { %13231 = vst [vmem:[#allocation241_spill] sm:$0xff] %v10301_v61  ;;  %5371 = vmatprep.subr.bf16.mxu1 %v8179_v14  ;;  %v1841_v14 = vadd.f32 %v13235_v11, %v13234_v51  ;;  %v8183_v46 = vld [vmem:[#allocation2 + $0x680] ss:$16 sps:$4 sm:$0xff]   ;;  %v10329_v21 = vpack.c.bf16 %v2888_v18, %v2880_v63  ;;  %v2646_v18 = vadd.f32 %v10151_v12, %v1845_v56  ;;  %v8194_v56 = vld [vmem:[#allocation2 + $0x444] ss:$16 sps:$4 sm:$0xff]  }
 0x2ec   :  { %v10303_v0 = vpop.f32.mrf.mxu0  ;;  %v10305_v5 = vpop.f32.mrf.mxu1  ;;  %4831 = vmatmul.mubr.bf16.gmra.mxu0 %v10288_v50  ;;  %5024 = vmatmul.mubr.bf16.gmra.mxu1 %v10290_v10  ;;  %v13239_v50 = vld [vmem:[#allocation244_spill] sm:$0xff]  ;;  %v13240_v47 = vld [vmem:[#allocation21_spill] sm:$0xff]  ;;  %v13242_v51 = vld [vmem:[#allocation22_spill] sm:$0xff]  ;;  %v2897_v45 = vmax.f32 %v2641_v20, 0.0 }
 0x2ed   :  { %13232 = vst [vmem:[#allocation11_spill] sm:$0xff] %v10303_v0  ;;  %13233 = vst [vmem:[#allocation242_spill] sm:$0xff] %v10305_v5  ;;  %4840 = vmatprep.mubr.bf16.mxu0 %v10299_v1  ;;  %5033 = vmatprep.mubr.bf16.mxu1 %v10301_v61  ;;  %v2038_v58 = vadd.f32 %v13239_v50, %v13238_v23  ;;  %v2903_v1 = vmax.f32 %v2647_v8, 0.0  ;;  %v2905_v61 = vmax.f32 %v2649_v48, 0.0  ;;  %v13243_v11 = vld [vmem:[#allocation253_spill] sm:$0xff]  ;;  %v2895_v48 = vmax.f32 %v2639_v4, 0.0 }
 0x2ee   :  { %v10319_v10 = vpop.f32.mrf.mxu0  ;;  %v10321_v44 = vpop.f32.mrf.mxu1  ;;  %5179 = vmatpush1.bf16.msra.mxu0 %v8174_v15  ;;  %5372 = vmatpush1.bf16.msra.mxu1 %v8177_v57  ;;  %v1857_v17 = vadd.f32 %v13241_v6, %v13240_v47  ;;  %v2050_v24 = vadd.f32 %v13243_v11, %v13242_v51  ;;  %v10327_v50 = vpack.c.bf16 %v2886_v36, %v2878_v32  ;;  %v13246_v23 = vld [vmem:[#allocation9_spill] sm:$0xff]  ;;  %v13247_v15 = vld [vmem:[#allocation240_spill] sm:$0xff]  ;;  %v13252_v51 = vld [vmem:[#allocation18_spill] sm:$0xff] }
 0x2ef   :  { %5180 = vmatprep.subr.bf16.mxu0 %v8182_v9  ;;  %5373 = vmatprep.subr.bf16.mxu1 %v8185_v27  ;;  %13245 = vst [vmem:[#allocation239_spill] sm:$0xff] %v10329_v21  ;;  %v2034_v57 = vadd.f32 %v13247_v15, %v13246_v23  ;;  %v13250_v6 = vld [vmem:[#allocation17_spill] sm:$0xff]  ;;  %v13251_v47 = vld [vmem:[#allocation248_spill] sm:$0xff]  ;;  %v2638_v36 = vadd.f32 %v10151_v12, %v1841_v14 }
 0x2f0   :  { %13244 = vst [vmem:[#allocation8_spill] sm:$0xff] %v10327_v50  ;;  %v10333_v7 = vpop.f32.mrf.mxu0  ;;  %v10335_v8 = vpop.f32.mrf.mxu1  ;;  %v1853_v5 = vadd.f32 %v13251_v47, %v13250_v6  ;;  %v13253_v9 = vld [vmem:[#allocation249_spill] sm:$0xff]  ;;  %v2648_v32 = vadd.f32 %v10155_v43, %v2038_v58  ;;  %v8191_v20 = vld [vmem:[#allocation2 + $0x664] ss:$16 sps:$4 sm:$0xff]   ;;  %v2663_v23 = vadd.f32 %v10117_v19, %v1857_v17  ;;  %v2665_v15 = vadd.f32 %v10123_v16, %v2050_v24 }
 0x2f1   :  { %13248 = vst [vmem:[#allocation12_spill] sm:$0xff] %v10333_v7  ;;  %13249 = vst [vmem:[#allocation243_spill] sm:$0xff] %v10335_v8  ;;  %v2046_v27 = vadd.f32 %v13253_v9, %v13252_v51  ;;  %v8186_v4 = vld [vmem:[#allocation2 + $0x460] ss:$16 sps:$4 sm:$0xff]   ;;  %v10350_v6 = vpack.c.bf16 %v2903_v1, %v2895_v48  ;;  %v10352_v47 = vpack.c.bf16 %v2905_v61, %v2897_v45  ;;  %v8197_v45 = vld [vmem:[#allocation2 + $0x644] ss:$16 sps:$4 sm:$0xff]  }
 0x2f2   :  { %v10344_v63 = vpop.f32.mrf.mxu0  ;;  %v10346_v11 = vpop.f32.mrf.mxu1  ;;  %5181 = vmatpush1.bf16.msra.mxu0 %v8180_v3  ;;  %5374 = vmatpush1.bf16.msra.mxu1 %v8183_v46  ;;  %v8189_v14 = vld [vmem:[#allocation2 + $0x660] ss:$16 sps:$4 sm:$0xff]   ;;  %v2640_v58 = vadd.f32 %v10155_v43, %v2034_v57  ;;  %v2655_v24 = vadd.f32 %v10117_v19, %v1853_v5  ;;  %v2894_v61 = vmax.f32 %v2638_v36, 0.0  ;;  %v2904_v57 = vmax.f32 %v2648_v32, 0.0 }
 0x2f3   :  { %13254 = vst [vmem:[#allocation13_spill] sm:$0xff] %v10350_v6  ;;  %13255 = vst [vmem:[#allocation244_spill] sm:$0xff] %v10352_v47  ;;  %5182 = vmatprep.subr.bf16.mxu0 %v8188_v25  ;;  %v13256_v51 = vld [vmem:[#allocation15_spill] sm:$0xff]  ;;  %v13257_v9 = vld [vmem:[#allocation246_spill] sm:$0xff]  ;;  %v2657_v1 = vadd.f32 %v10123_v16, %v2046_v27  ;;  %v2902_v25 = vmax.f32 %v2646_v18, 0.0  ;;  %5375 = vmatprep.subr.bf16.mxu1 %v8191_v20  ;;  %v2919_v5 = vmax.f32 %v2663_v23, 0.0 }
 0x2f4   :  { %v1851_v8 = vadd.f32 %v13257_v9, %v13256_v51  ;;  %v13258_v3 = vld [vmem:[#allocation19_spill] sm:$0xff]  ;;  %v13259_v46 = vld [vmem:[#allocation250_spill] sm:$0xff]  ;;  %v10359_v0 = vpop.f32.mrf.mxu0  ;;  %v10361_v17 = vpop.f32.mrf.mxu1  ;;  %4841 = vmatmul.mubr.bf16.gmra.mxu0 %v10327_v50  ;;  %5034 = vmatmul.mubr.bf16.gmra.mxu1 %v10329_v21  ;;  %v13262_v48 = vld [vmem:[#allocation20_spill] sm:$0xff]  ;;  %v2921_v50 = vmax.f32 %v2665_v15, 0.0  ;;  %v2896_v32 = vmax.f32 %v2640_v58, 0.0 }
 0x2f5   :  { %v1855_v7 = vadd.f32 %v13259_v46, %v13258_v3  ;;  %13260 = vst [vmem:[#allocation21_spill] sm:$0xff] %v10359_v0  ;;  %13261 = vst [vmem:[#allocation252_spill] sm:$0xff] %v10361_v17  ;;  %4850 = vmatprep.mubr.bf16.mxu0 %v10350_v6  ;;  %5043 = vmatprep.mubr.bf16.mxu1 %v10352_v47  ;;  %v13263_v51 = vld [vmem:[#allocation251_spill] sm:$0xff]  ;;  %v13265_v27 = vld [vmem:[#allocation29_spill] sm:$0xff]  ;;  %v2913_v15 = vmax.f32 %v2657_v1, 0.0 }
 0x2f6   :  { %v2048_v9 = vadd.f32 %v13263_v51, %v13262_v48  ;;  %v10371_v3 = vpop.f32.mrf.mxu0  ;;  %v10373_v46 = vpop.f32.mrf.mxu1  ;;  %5183 = vmatpush1.bf16.msra.mxu0 %v8186_v4  ;;  %v8192_v21 = vld [vmem:[#allocation2 + $0x440] ss:$16 sps:$4 sm:$0xff]   ;;  %v1867_v6 = vadd.f32 %v10127_v38, %v13265_v27  ;;  %5376 = vmatpush1.bf16.msra.mxu1 %v8189_v14  ;;  %v2654_v48 = vadd.f32 %v10151_v12, %v1851_v8  ;;  %v2911_v38 = vmax.f32 %v2655_v24, 0.0  ;;  %v8203_v24 = vld [vmem:[#allocation2 + $0x624] ss:$16 sps:$4 sm:$0xff]  }
 0x2f7   :  { %13264 = vst [vmem:[#allocation22_spill] sm:$0xff] %v10373_v46  ;;  %v13266_v17 = vld [vmem:[#allocation30_spill] sm:$0xff]  ;;  %5184 = vmatprep.subr.bf16.mxu0 %v8194_v56  ;;  %v13267_v51 = vld [vmem:[#allocation16_spill] sm:$0xff]  ;;  %v13268_v47 = vld [vmem:[#allocation247_spill] sm:$0xff]  ;;  %v2662_v4 = vadd.f32 %v10151_v12, %v1855_v7  ;;  %5377 = vmatprep.subr.bf16.mxu1 %v8197_v45  ;;  %v10391_v46 = vpack.c.bf16 %v2902_v25, %v2894_v61 }
 0x2f8   :  { %v2060_v36 = vadd.f32 %v10129_v62, %v13266_v17  ;;  %v8195_v18 = vld [vmem:[#allocation2 + $0x640] ss:$16 sps:$4 sm:$0xff]   ;;  %v2044_v0 = vadd.f32 %v13268_v47, %v13267_v51  ;;  %v10383_v20 = vpop.f32.mrf.mxu0  ;;  %v10385_v23 = vpop.f32.mrf.mxu1  ;;  %v10393_v8 = vpack.c.bf16 %v2904_v57, %v2896_v32  ;;  %v2664_v47 = vadd.f32 %v10155_v43, %v2048_v9  ;;  %v8200_v45 = vld [vmem:[#allocation2 + $0x424] ss:$16 sps:$4 sm:$0xff]  }
 0x2f9   :  { %13269 = vst [vmem:[#allocation253_spill] sm:$0xff] %v10383_v20  ;;  %13270 = vst [vmem:[#allocation9_spill] sm:$0xff] %v10385_v23  ;;  %v13271_v27 = vld [vmem:[#allocation25_spill] sm:$0xff]  ;;  %v13273_v56 = vld [vmem:[#allocation26_spill] sm:$0xff]  ;;  %v2679_v1 = vadd.f32 %v10117_v19, %v1867_v6  ;;  %v2918_v9 = vmax.f32 %v2662_v4, 0.0  ;;  %v2910_v6 = vmax.f32 %v2654_v48, 0.0 }
 0x2fa   :  { %v13272_v62 = vld [vmem:[#allocation257_spill] sm:$0xff]  ;;  %v13274_v17 = vld [vmem:[#allocation258_spill] sm:$0xff]  ;;  %13275 = vst [vmem:[#allocation240_spill] sm:$0xff] %v10391_v46  ;;  %13276 = vst [vmem:[#allocation17_spill] sm:$0xff] %v10393_v8  ;;  %v10396_v7 = vpop.f32.mrf.mxu0  ;;  %v10398_v51 = vpop.f32.mrf.mxu1  ;;  %5185 = vmatpush1.bf16.msra.mxu0 %v8192_v21  ;;  %5378 = vmatpush1.bf16.msra.mxu1 %v8195_v18  ;;  %v2656_v57 = vadd.f32 %v10155_v43, %v2044_v0 }
 0x2fb   :  { %v1863_v14 = vadd.f32 %v13272_v62, %v13271_v27  ;;  %v2056_v58 = vadd.f32 %v13274_v17, %v13273_v56  ;;  %v2681_v27 = vadd.f32 %v10123_v16, %v2060_v36  ;;  %v10402_v62 = vpack.c.bf16 %v2919_v5, %v2911_v38  ;;  %v8198_v61 = vld [vmem:[#allocation2 + $0x420] ss:$16 sps:$4 sm:$0xff]   ;;  %v8206_v21 = vld [vmem:[#allocation2 + $0x404] ss:$16 sps:$4 sm:$0xff]   ;;  %5186 = vmatprep.subr.bf16.mxu0 %v8200_v45 }
 0x2fc   :  { %v10404_v56 = vpack.c.bf16 %v2921_v50, %v2913_v15  ;;  %v8201_v25 = vld [vmem:[#allocation2 + $0x620] ss:$16 sps:$4 sm:$0xff]   ;;  %v10407_v32 = vpop.f32.mrf.mxu0  ;;  %v10409_v17 = vpop.f32.mrf.mxu1  ;;  %4851 = vmatmul.mubr.bf16.gmra.mxu0 %v10391_v46  ;;  %5044 = vmatmul.mubr.bf16.gmra.mxu1 %v10393_v8  ;;  %v8209_v0 = vld [vmem:[#allocation2 + $0x604] ss:$16 sps:$4 sm:$0xff]   ;;  %v2920_v36 = vmax.f32 %v2664_v47, 0.0 }
 0x2fd   :  { %13277 = vst [vmem:[#allocation248_spill] sm:$0xff] %v10402_v62  ;;  %13279 = vst [vmem:[#allocation249_spill] sm:$0xff] %v10407_v32  ;;  %v2671_v5 = vadd.f32 %v10117_v19, %v1863_v14  ;;  %v2673_v50 = vadd.f32 %v10123_v16, %v2056_v58  ;;  %4860 = vmatprep.mubr.bf16.mxu0 %v10402_v62  ;;  %v13281_v18 = vld [vmem:[#allocation23_spill] sm:$0xff]  ;;  %v13285_v32 = vld [vmem:[#allocation28_spill] sm:$0xff]  ;;  %5379 = vmatprep.subr.bf16.mxu1 %v8203_v24  ;;  %v2935_v58 = vmax.f32 %v2679_v1, 0.0 }
 0x2fe   :  { %13278 = vst [vmem:[#allocation18_spill] sm:$0xff] %v10404_v56  ;;  %13280 = vst [vmem:[#allocation15_spill] sm:$0xff] %v10409_v17  ;;  %5053 = vmatprep.mubr.bf16.mxu1 %v10404_v56  ;;  %v13282_v4 = vld [vmem:[#allocation255_spill] sm:$0xff]  ;;  %v13286_v8 = vld [vmem:[#allocation260_spill] sm:$0xff]  ;;  %v10423_v48 = vpop.f32.mrf.mxu0  ;;  %v10425_v14 = vpop.f32.mrf.mxu1  ;;  %v2937_v62 = vmax.f32 %v2681_v27, 0.0  ;;  %5187 = vmatpush1.bf16.msra.mxu0 %v8198_v61 }
 0x2ff   :  { %v1861_v38 = vadd.f32 %v13282_v4, %v13281_v18  ;;  %v13283_v15 = vld [vmem:[#allocation27_spill] sm:$0xff]  ;;  %v2058_v23 = vadd.f32 %v13286_v8, %v13285_v32  ;;  %13287 = vst [vmem:[#allocation246_spill] sm:$0xff] %v10423_v48  ;;  %13288 = vst [vmem:[#allocation19_spill] sm:$0xff] %v10425_v14  ;;  %v13289_v56 = vld [vmem:[#allocation37_spill] sm:$0xff]  ;;  %5380 = vmatpush1.bf16.msra.mxu1 %v8201_v25  ;;  %v2912_v4 = vmax.f32 %v2656_v57, 0.0  ;;  %5188 = vmatprep.subr.bf16.mxu0 %v8206_v21 }
 0x300   :  { %v13284_v17 = vld [vmem:[#allocation259_spill] sm:$0xff]  ;;  %v1877_v47 = vadd.f32 %v10180_v34, %v13289_v56  ;;  %v13290_v20 = vld [vmem:[#allocation38_spill] sm:$0xff]  ;;  %v13292_v8 = vld [vmem:[#allocation24_spill] sm:$0xff]  ;;  %v10435_v14 = vpop.f32.mrf.mxu0  ;;  %v10437_v45 = vpop.f32.mrf.mxu1  ;;  %v2927_v24 = vmax.f32 %v2671_v5, 0.0  ;;  %v2929_v1 = vmax.f32 %v2673_v50, 0.0  ;;  %5381 = vmatprep.subr.bf16.mxu1 %v8209_v0 }
 0x301   :  { %v1865_v46 = vadd.f32 %v13284_v17, %v13283_v15  ;;  %v2070_v18 = vadd.f32 %v10182_v55, %v13290_v20  ;;  %v8204_v17 = vld [vmem:[#allocation2 + $0x400] ss:$16 sps:$4 sm:$0xff]   ;;  %v10431_v15 = vpack.c.bf16 %v2918_v9, %v2910_v6  ;;  %v10443_v56 = vpack.c.bf16 %v2920_v36, %v2912_v4  ;;  %v8212_v5 = vld [vmem:[#allocation2 + $0x5e4] ss:$16 sps:$4 sm:$0xff]  }
 0x302   :  { %v13293_v32 = vld [vmem:[#allocation256_spill] sm:$0xff]  ;;  %v13294_v34 = vld [vmem:[#allocation33_spill] sm:$0xff]  ;;  %v13295_v55 = vld [vmem:[#allocation34_spill] sm:$0xff]  ;;  %v2670_v61 = vadd.f32 %v10151_v12, %v1861_v38  ;;  %v2680_v57 = vadd.f32 %v10155_v43, %v2058_v23  ;;  %v10448_v9 = vpop.f32.mrf.mxu0  ;;  %v10450_v21 = vpop.f32.mrf.mxu1  ;;  %v10456_v0 = vpack.c.bf16 %v2937_v62, %v2929_v1  ;;  %5189 = vmatpush1.bf16.msra.mxu0 %v8204_v17 }
 0x303   :  { %13291 = vst [vmem:[#allocation250_spill] sm:$0xff] %v10431_v15  ;;  %v2054_v48 = vadd.f32 %v13293_v32, %v13292_v8  ;;  %v1873_v27 = vadd.f32 %v10159_v22, %v13294_v34  ;;  %v2066_v20 = vadd.f32 %v10161_v30, %v13295_v55  ;;  %13296 = vst [vmem:[#allocation20_spill] sm:$0xff] %v10443_v56  ;;  %v8207_v6 = vld [vmem:[#allocation2 + $0x600] ss:$16 sps:$4 sm:$0xff]   ;;  %v8215_v38 = vld [vmem:[#allocation2 + $0x7e4] ss:$16 sps:$4 sm:$0xff]   ;;  %5190 = vmatprep.subr.bf16.mxu0 %v8212_v5 }
 0x304   :  { %v2678_v25 = vadd.f32 %v10151_v12, %v1865_v46  ;;  %v2695_v22 = vadd.f32 %v10117_v19, %v1877_v47  ;;  %v2697_v50 = vadd.f32 %v10123_v16, %v2070_v18  ;;  %v10454_v30 = vpack.c.bf16 %v2935_v58, %v2927_v24  ;;  %13298 = vst [vmem:[#allocation29_spill] sm:$0xff] %v10456_v0  ;;  %v8210_v36 = vld [vmem:[#allocation2 + $0x5e0] ss:$16 sps:$4 sm:$0xff]   ;;  %v10463_v34 = vpop.f32.mrf.mxu0  ;;  %v10465_v47 = vpop.f32.mrf.mxu1  ;;  %v8218_v62 = vld [vmem:[#allocation2 + $0x5c4] ss:$16 sps:$4 sm:$0xff]  }
 0x305   :  { %v2672_v46 = vadd.f32 %v10155_v43, %v2054_v48  ;;  %v13299_v23 = vld [vmem:[#allocation31_spill] sm:$0xff]  ;;  %4861 = vmatmul.mubr.bf16.gmra.mxu0 %v10431_v15  ;;  %5054 = vmatmul.mubr.bf16.gmra.mxu1 %v10443_v56  ;;  %v2687_v58 = vadd.f32 %v10117_v19, %v1873_v27  ;;  %v2689_v18 = vadd.f32 %v10123_v16, %v2066_v20  ;;  %v13301_v17 = vld [vmem:[#allocation36_spill] sm:$0xff]  ;;  %v13302_v20 = vld [vmem:[#allocation45_spill] sm:$0xff] }
 0x306   :  { %13297 = vst [vmem:[#allocation251_spill] sm:$0xff] %v10454_v30  ;;  %v1871_v4 = vadd.f32 %v10133_v42, %v13299_v23  ;;  %v13300_v8 = vld [vmem:[#allocation35_spill] sm:$0xff]  ;;  %4870 = vmatprep.mubr.bf16.mxu0 %v10454_v30  ;;  %5063 = vmatprep.mubr.bf16.mxu1 %v10456_v0  ;;  %v2926_v42 = vmax.f32 %v2670_v61, 0.0  ;;  %v2934_v48 = vmax.f32 %v2678_v25, 0.0  ;;  %v2068_v24 = vadd.f32 %v10171_v33, %v13301_v17  ;;  %v10475_v1 = vpop.f32.mrf.mxu0  ;;  %v10477_v55 = vpop.f32.mrf.mxu1  ;;  %v13303_v56 = vld [vmem:[#allocation46_spill] sm:$0xff]  ;;  %v13304_v17 = vld [vmem:[#allocation32_spill] sm:$0xff] }
 0x307   :  { %v1875_v32 = vadd.f32 %v10169_v2, %v13300_v8  ;;  %v2936_v2 = vmax.f32 %v2680_v57, 0.0  ;;  %5382 = vmatpush1.bf16.msra.mxu1 %v8207_v6  ;;  %v8213_v23 = vld [vmem:[#allocation2 + $0x7e0] ss:$16 sps:$4 sm:$0xff]   ;;  %v2951_v27 = vmax.f32 %v2695_v22, 0.0  ;;  %v2953_v8 = vmax.f32 %v2697_v50, 0.0  ;;  %5191 = vmatpush2.bf16.msra.mxu0 %v8210_v36 }
 0x308   :  { %v1887_v30 = vadd.f32 %v10239_v53, %v13302_v20  ;;  %v2080_v61 = vadd.f32 %v10241_v39, %v13303_v56  ;;  %5383 = vmatprep.subr.bf16.mxu1 %v8215_v38  ;;  %v8216_v25 = vld [vmem:[#allocation2 + $0x5c0] ss:$16 sps:$4 sm:$0xff]   ;;  %v2928_v57 = vmax.f32 %v2672_v46, 0.0  ;;  %v2686_v33 = vadd.f32 %v10151_v12, %v1871_v4  ;;  %v10487_v5 = vpop.f32.mrf.mxu0  ;;  %v10489_v22 = vpop.f32.mrf.mxu1  ;;  %5192 = vmatprep.subr.bf16.mxu0 %v8218_v62  ;;  %v8221_v62 = vld [vmem:[#allocation2 + $0x7c4] ss:$16 sps:$4 sm:$0xff]  }
 0x309   :  { %v13305_v0 = vld [vmem:[#allocation261_spill] sm:$0xff]  ;;  %v2694_v6 = vadd.f32 %v10151_v12, %v1875_v32  ;;  %v2943_v53 = vmax.f32 %v2687_v58, 0.0  ;;  %v2945_v50 = vmax.f32 %v2689_v18, 0.0  ;;  %v13307_v56 = vld [vmem:[#allocation42_spill] sm:$0xff]  ;;  %v10495_v38 = vpack.c.bf16 %v2934_v48, %v2926_v42 }
 0x30a   :  { %v2064_v15 = vadd.f32 %v13305_v0, %v13304_v17  ;;  %v13306_v20 = vld [vmem:[#allocation41_spill] sm:$0xff]  ;;  %v2076_v36 = vadd.f32 %v10213_v54, %v13307_v56  ;;  %v10497_v46 = vpack.c.bf16 %v2936_v2, %v2928_v57  ;;  %v2696_v0 = vadd.f32 %v10155_v43, %v2068_v24  ;;  %v10500_v4 = vpop.f32.mrf.mxu0  ;;  %v10502_v32 = vpop.f32.mrf.mxu1  ;;  %v8224_v58 = vld [vmem:[#allocation2 + $0x5a4] ss:$16 sps:$4 sm:$0xff]  }
 0x30b   :  { %v1883_v39 = vadd.f32 %v10211_v29, %v13306_v20  ;;  %13308 = vst [vmem:[#allocation30_spill] sm:$0xff] %v10495_v38  ;;  %5384 = vmatpush2.bf16.msra.mxu1 %v8213_v23  ;;  %v2711_v18 = vadd.f32 %v10117_v19, %v1887_v30  ;;  %v2713_v29 = vadd.f32 %v10123_v16, %v2080_v61  ;;  %v8219_v42 = vld [vmem:[#allocation2 + $0x7c0] ss:$16 sps:$4 sm:$0xff]   ;;  %v2950_v24 = vmax.f32 %v2694_v6, 0.0  ;;  %v8227_v30 = vld [vmem:[#allocation2 + $0x7a4] ss:$16 sps:$4 sm:$0xff]  }
 0x30c   :  { %13309 = vst [vmem:[#allocation16_spill] sm:$0xff] %v10497_v46  ;;  %v10506_v17 = vpack.c.bf16 %v2951_v27, %v2943_v53  ;;  %v10508_v54 = vpack.c.bf16 %v2953_v8, %v2945_v50  ;;  %5193 = vmatpush2.bf16.msra.mxu0 %v8216_v25  ;;  %v8222_v48 = vld [vmem:[#allocation2 + $0x5a0] ss:$16 sps:$4 sm:$0xff]   ;;  %v2688_v2 = vadd.f32 %v10155_v43, %v2064_v15  ;;  %v10511_v57 = vpop.f32.mrf.mxu0  ;;  %v10513_v20 = vpop.f32.mrf.mxu1  ;;  %v2942_v23 = vmax.f32 %v2686_v33, 0.0  ;;  %v8230_v15 = vld [vmem:[#allocation2 + $0x584] ss:$16 sps:$4 sm:$0xff]  }
 0x30d   :  { %13312 = vst [vmem:[#allocation257_spill] sm:$0xff] %v10513_v20  ;;  %4871 = vmatmul.mubr.bf16.gmra.mxu0 %v10495_v38  ;;  %5064 = vmatmul.mubr.bf16.gmra.mxu1 %v10497_v46  ;;  %v2703_v27 = vadd.f32 %v10117_v19, %v1883_v39  ;;  %v2705_v8 = vadd.f32 %v10123_v16, %v2076_v36  ;;  %v2952_v61 = vmax.f32 %v2696_v0, 0.0  ;;  %v13313_v25 = vld [vmem:[#allocation39_spill] sm:$0xff]  ;;  %v13315_v56 = vld [vmem:[#allocation44_spill] sm:$0xff]  ;;  %v2967_v36 = vmax.f32 %v2711_v18, 0.0  ;;  %v13317_v38 = vld [vmem:[#allocation54_spill] sm:$0xff] }
 0x30e   :  { %13310 = vst [vmem:[#allocation247_spill] sm:$0xff] %v10506_v17  ;;  %13311 = vst [vmem:[#allocation25_spill] sm:$0xff] %v10508_v54  ;;  %4880 = vmatprep.mubr.bf16.mxu0 %v10506_v17  ;;  %5073 = vmatprep.mubr.bf16.mxu1 %v10508_v54  ;;  %v1881_v6 = vadd.f32 %v10195_v59, %v13313_v25  ;;  %v13314_v53 = vld [vmem:[#allocation43_spill] sm:$0xff]  ;;  %v2078_v46 = vadd.f32 %v10227_v35, %v13315_v56  ;;  %v10527_v33 = vpop.f32.mrf.mxu0  ;;  %v10529_v39 = vpop.f32.mrf.mxu1  ;;  %v2969_v17 = vmax.f32 %v2713_v29, 0.0  ;;  %v13316_v54 = vld [vmem:[#allocation53_spill] sm:$0xff] }
 0x30f   :  { %v1885_v50 = vadd.f32 %v10225_v60, %v13314_v53  ;;  %5385 = vmatprep.subr.bf16.mxu1 %v8221_v62  ;;  %5194 = vmatprep.subr.bf16.mxu0 %v8224_v58  ;;  %v1897_v0 = vadd.f32 %v10293_v49, %v13316_v54  ;;  %v2090_v59 = vadd.f32 %v10295_v13, %v13317_v38  ;;  %v8225_v60 = vld [vmem:[#allocation2 + $0x7a0] ss:$16 sps:$4 sm:$0xff]   ;;  %v2944_v25 = vmax.f32 %v2688_v2, 0.0 }
 0x310   :  { %5386 = vmatpush2.bf16.msra.mxu1 %v8219_v42  ;;  %5195 = vmatpush2.bf16.msra.mxu0 %v8222_v48  ;;  %v10535_v53 = vpack.c.bf16 %v2950_v24, %v2942_v23  ;;  %v13319_v35 = vld [vmem:[#allocation40_spill] sm:$0xff]  ;;  %v10539_v20 = vpop.f32.mrf.mxu0  ;;  %v10541_v62 = vpop.f32.mrf.mxu1  ;;  %v2959_v58 = vmax.f32 %v2703_v27, 0.0  ;;  %v2961_v18 = vmax.f32 %v2705_v8, 0.0  ;;  %v13320_v49 = vld [vmem:[#allocation49_spill] sm:$0xff]  ;;  %v13321_v13 = vld [vmem:[#allocation50_spill] sm:$0xff]  ;;  %v2702_v42 = vadd.f32 %v10151_v12, %v1881_v6 }
 0x311   :  { %v2074_v56 = vadd.f32 %v10197_v52, %v13319_v35  ;;  %5387 = vmatprep.subr.bf16.mxu1 %v8227_v30  ;;  %v1893_v29 = vadd.f32 %v10268_v40, %v13320_v49  ;;  %v2086_v38 = vadd.f32 %v10270_v31, %v13321_v13  ;;  %5196 = vmatprep.subr.bf16.mxu0 %v8230_v15  ;;  %v8228_v30 = vld [vmem:[#allocation2 + $0x580] ss:$16 sps:$4 sm:$0xff]   ;;  %v8233_v23 = vld [vmem:[#allocation2 + $0x784] ss:$16 sps:$4 sm:$0xff]  }
 0x312   :  { %13318 = vst [vmem:[#allocation26_spill] sm:$0xff] %v10535_v53  ;;  %v10547_v54 = vpack.c.bf16 %v2952_v61, %v2944_v25  ;;  %v2710_v52 = vadd.f32 %v10151_v12, %v1885_v50  ;;  %v2712_v48 = vadd.f32 %v10155_v43, %v2078_v46  ;;  %v10552_v2 = vpop.f32.mrf.mxu0  ;;  %v10554_v24 = vpop.f32.mrf.mxu1  ;;  %v2727_v40 = vadd.f32 %v10117_v19, %v1897_v0  ;;  %v8231_v15 = vld [vmem:[#allocation2 + $0x780] ss:$16 sps:$4 sm:$0xff]   ;;  %v8236_v61 = vld [vmem:[#allocation2 + $0x564] ss:$16 sps:$4 sm:$0xff]  }
 0x313   :  { %v2729_v27 = vadd.f32 %v10123_v16, %v2090_v59  ;;  %v10558_v31 = vpack.c.bf16 %v2967_v36, %v2959_v58  ;;  %v10560_v8 = vpack.c.bf16 %v2969_v17, %v2961_v18  ;;  %v2704_v6 = vadd.f32 %v10155_v43, %v2074_v56  ;;  %v13325_v46 = vld [vmem:[#allocation47_spill] sm:$0xff]  ;;  %v8239_v17 = vld [vmem:[#allocation2 + $0x764] ss:$16 sps:$4 sm:$0xff]  }
 0x314   :  { %13322 = vst [vmem:[#allocation258_spill] sm:$0xff] %v10547_v54  ;;  %5388 = vmatpush2.bf16.msra.mxu1 %v8225_v60  ;;  %v1891_v50 = vadd.f32 %v10253_v28, %v13325_v46  ;;  %v13326_v25 = vld [vmem:[#allocation51_spill] sm:$0xff]  ;;  %v10567_v49 = vpop.f32.mrf.mxu0  ;;  %v10569_v0 = vpop.f32.mrf.mxu1  ;;  %v2719_v36 = vadd.f32 %v10117_v19, %v1893_v29  ;;  %v2721_v59 = vadd.f32 %v10123_v16, %v2086_v38  ;;  %v2958_v28 = vmax.f32 %v2702_v42, 0.0  ;;  %v13327_v56 = vld [vmem:[#allocation52_spill] sm:$0xff]  ;;  %v13328_v38 = vld [vmem:[#allocation61_spill] sm:$0xff] }
 0x315   :  { %13323 = vst [vmem:[#allocation23_spill] sm:$0xff] %v10558_v31  ;;  %13324 = vst [vmem:[#allocation255_spill] sm:$0xff] %v10560_v8  ;;  %v1895_v35 = vadd.f32 %v10280_v37, %v13326_v25  ;;  %4881 = vmatmul.mubr.bf16.gmra.mxu0 %v10535_v53  ;;  %5074 = vmatmul.mubr.bf16.gmra.mxu1 %v10547_v54  ;;  %v2966_v60 = vmax.f32 %v2710_v52, 0.0  ;;  %v2968_v37 = vmax.f32 %v2712_v48, 0.0  ;;  %v8234_v46 = vld [vmem:[#allocation2 + $0x560] ss:$16 sps:$4 sm:$0xff]  }
 0x316   :  { %4890 = vmatprep.mubr.bf16.mxu0 %v10558_v31  ;;  %5083 = vmatprep.mubr.bf16.mxu1 %v10560_v8  ;;  %v2088_v58 = vadd.f32 %v10282_v26, %v13327_v56  ;;  %v10579_v18 = vpop.f32.mrf.mxu0  ;;  %v10581_v13 = vpop.f32.mrf.mxu1  ;;  %v2983_v29 = vmax.f32 %v2727_v40, 0.0  ;;  %v2985_v25 = vmax.f32 %v2729_v27, 0.0  ;;  %v1907_v31 = vadd.f32 %v10344_v63, %v13328_v38  ;;  %v13329_v54 = vld [vmem:[#allocation62_spill] sm:$0xff]  ;;  %v13330_v56 = vld [vmem:[#allocation48_spill] sm:$0xff]  ;;  %v13331_v38 = vld [vmem:[#allocation57_spill] sm:$0xff] }
 0x317   :  { %5197 = vmatpush2.bf16.msra.mxu0 %v8228_v30  ;;  %5389 = vmatprep.subr.bf16.mxu1 %v8233_v23  ;;  %v2100_v42 = vadd.f32 %v10346_v11, %v13329_v54  ;;  %v8237_v52 = vld [vmem:[#allocation2 + $0x760] ss:$16 sps:$4 sm:$0xff]   ;;  %v2960_v48 = vmax.f32 %v2704_v6, 0.0  ;;  %v2718_v26 = vadd.f32 %v10151_v12, %v1891_v50  ;;  %v2084_v8 = vadd.f32 %v10255_v41, %v13330_v56 }
 0x318   :  { %5390 = vmatpush2.bf16.msra.mxu1 %v8231_v15  ;;  %5198 = vmatprep.subr.bf16.mxu0 %v8236_v61  ;;  %v2726_v30 = vadd.f32 %v10151_v12, %v1895_v35  ;;  %v10591_v23 = vpop.f32.mrf.mxu0  ;;  %v10593_v40 = vpop.f32.mrf.mxu1  ;;  %v2975_v63 = vmax.f32 %v2719_v36, 0.0  ;;  %v2977_v27 = vmax.f32 %v2721_v59, 0.0  ;;  %v1903_v11 = vadd.f32 %v10319_v10, %v13331_v38  ;;  %v13332_v54 = vld [vmem:[#allocation58_spill] sm:$0xff]  ;;  %v13343_v53 = vld [vmem:[#allocation60_spill] sm:$0xff] }
 0x319   :  { %5391 = vmatprep.subr.bf16.mxu1 %v8239_v17  ;;  %v2096_v15 = vadd.f32 %v10321_v44, %v13332_v54  ;;  %v10599_v61 = vpack.c.bf16 %v2966_v60, %v2958_v28  ;;  %v10601_v6 = vpack.c.bf16 %v2968_v37, %v2960_v48  ;;  %v2728_v41 = vadd.f32 %v10155_v43, %v2088_v58  ;;  %v8242_v17 = vld [vmem:[#allocation2 + $0x544] ss:$16 sps:$4 sm:$0xff]   ;;  %v8240_v28 = vld [vmem:[#allocation2 + $0x540] ss:$16 sps:$4 sm:$0xff]  }
 0x31a   :  { %v10604_v50 = vpop.f32.mrf.mxu0  ;;  %v10606_v35 = vpop.f32.mrf.mxu1  ;;  %v8245_v36 = vld [vmem:[#allocation2 + $0x744] ss:$16 sps:$4 sm:$0xff]   ;;  %v2743_v59 = vadd.f32 %v10117_v19, %v1907_v31  ;;  %v2745_v10 = vadd.f32 %v10123_v16, %v2100_v42  ;;  %v10610_v56 = vpack.c.bf16 %v2983_v29, %v2975_v63  ;;  %v10612_v44 = vpack.c.bf16 %v2985_v25, %v2977_v27  ;;  %v8243_v60 = vld [vmem:[#allocation2 + $0x740] ss:$16 sps:$4 sm:$0xff]  }
 0x31b   :  { %13333 = vst [vmem:[#allocation27_spill] sm:$0xff] %v10599_v61  ;;  %13334 = vst [vmem:[#allocation259_spill] sm:$0xff] %v10601_v6  ;;  %5199 = vmatpush2.bf16.msra.mxu0 %v8234_v46  ;;  %v2720_v37 = vadd.f32 %v10155_v43, %v2084_v8  ;;  %v2982_v58 = vmax.f32 %v2726_v30, 0.0  ;;  %v8248_v31 = vld [vmem:[#allocation2 + $0x524] ss:$16 sps:$4 sm:$0xff]   ;;  %v2974_v46 = vmax.f32 %v2718_v26, 0.0  ;;  %v2735_v29 = vadd.f32 %v10117_v19, %v1903_v11 }
 0x31c   :  { %13335 = vst [vmem:[#allocation28_spill] sm:$0xff] %v10610_v56  ;;  %13336 = vst [vmem:[#allocation260_spill] sm:$0xff] %v10612_v44  ;;  %5392 = vmatpush2.bf16.msra.mxu1 %v8237_v52  ;;  %v10615_v48 = vpop.f32.mrf.mxu0  ;;  %v10617_v38 = vpop.f32.mrf.mxu1  ;;  %v2737_v25 = vadd.f32 %v10123_v16, %v2096_v15  ;;  %v8251_v8 = vld [vmem:[#allocation2 + $0x724] ss:$16 sps:$4 sm:$0xff]   ;;  %v2984_v42 = vmax.f32 %v2728_v41, 0.0  ;;  %v13339_v52 = vld [vmem:[#allocation55_spill] sm:$0xff]  ;;  %5200 = vmatprep.subr.bf16.mxu0 %v8242_v17 }
 0x31d   :  { %13337 = vst [vmem:[#allocation37_spill] sm:$0xff] %v10615_v48  ;;  %13338 = vst [vmem:[#allocation38_spill] sm:$0xff] %v10617_v38  ;;  %4891 = vmatmul.mubr.bf16.gmra.mxu0 %v10599_v61  ;;  %5084 = vmatmul.mubr.bf16.gmra.mxu1 %v10601_v6  ;;  %v13340_v30 = vld [vmem:[#allocation11_spill] sm:$0xff]  ;;  %v13342_v54 = vld [vmem:[#allocation12_spill] sm:$0xff]  ;;  %v2999_v15 = vmax.f32 %v2743_v59, 0.0 }
 0x31e   :  { %4900 = vmatprep.mubr.bf16.mxu0 %v10610_v56  ;;  %5093 = vmatprep.mubr.bf16.mxu1 %v10612_v44  ;;  %v1901_v63 = vadd.f32 %v13340_v30, %v13339_v52  ;;  %v13341_v27 = vld [vmem:[#allocation59_spill] sm:$0xff]  ;;  %v10631_v26 = vpop.f32.mrf.mxu0  ;;  %v10633_v11 = vpop.f32.mrf.mxu1  ;;  %v3001_v56 = vmax.f32 %v2745_v10, 0.0  ;;  %v13347_v44 = vld [vmem:[#allocation69_spill] sm:$0xff]  ;;  %v13348_v48 = vld [vmem:[#allocation70_spill] sm:$0xff]  ;;  %v2993_v59 = vmax.f32 %v2737_v25, 0.0 }
 0x31f   :  { %v1905_v61 = vadd.f32 %v13342_v54, %v13341_v27  ;;  %v13344_v6 = vld [vmem:[#allocation243_spill] sm:$0xff]  ;;  %13345 = vst [vmem:[#allocation24_spill] sm:$0xff] %v10631_v26  ;;  %13346 = vst [vmem:[#allocation256_spill] sm:$0xff] %v10633_v11  ;;  %5393 = vmatprep.subr.bf16.mxu1 %v8245_v36  ;;  %v1917_v41 = vadd.f32 %v10396_v7, %v13347_v44  ;;  %v2110_v52 = vadd.f32 %v10398_v51, %v13348_v48  ;;  %v13354_v7 = vld [vmem:[#allocation65_spill] sm:$0xff] }
 0x320   :  { %v2098_v38 = vadd.f32 %v13344_v6, %v13343_v53  ;;  %5201 = vmatpush2.bf16.msra.mxu0 %v8240_v28  ;;  %5394 = vmatpush2.bf16.msra.mxu1 %v8243_v60  ;;  %v8246_v30 = vld [vmem:[#allocation2 + $0x520] ss:$16 sps:$4 sm:$0xff]   ;;  %v2976_v27 = vmax.f32 %v2720_v37, 0.0  ;;  %v10639_v54 = vpack.c.bf16 %v2982_v58, %v2974_v46  ;;  %v10643_v11 = vpop.f32.mrf.mxu0  ;;  %v10645_v17 = vpop.f32.mrf.mxu1  ;;  %v2991_v36 = vmax.f32 %v2735_v29, 0.0  ;;  %v8254_v25 = vld [vmem:[#allocation2 + $0x504] ss:$16 sps:$4 sm:$0xff]  }
 0x321   :  { %v13350_v53 = vld [vmem:[#allocation56_spill] sm:$0xff]  ;;  %v13351_v6 = vld [vmem:[#allocation242_spill] sm:$0xff]  ;;  %13352 = vst [vmem:[#allocation34_spill] sm:$0xff] %v10643_v11  ;;  %13353 = vst [vmem:[#allocation31_spill] sm:$0xff] %v10645_v17  ;;  %5202 = vmatprep.subr.bf16.mxu0 %v8248_v31  ;;  %v1913_v10 = vadd.f32 %v10371_v3, %v13354_v7  ;;  %5395 = vmatprep.subr.bf16.mxu1 %v8251_v8  ;;  %v2734_v37 = vadd.f32 %v10151_v12, %v1901_v63 }
 0x322   :  { %13349 = vst [vmem:[#allocation33_spill] sm:$0xff] %v10639_v54  ;;  %v2094_v26 = vadd.f32 %v13351_v6, %v13350_v53  ;;  %v13355_v51 = vld [vmem:[#allocation66_spill] sm:$0xff]  ;;  %v10651_v60 = vpack.c.bf16 %v2984_v42, %v2976_v27  ;;  %v2742_v58 = vadd.f32 %v10151_v12, %v1905_v61  ;;  %v2744_v48 = vadd.f32 %v10155_v43, %v2098_v38  ;;  %v10656_v46 = vpop.f32.mrf.mxu0  ;;  %v10658_v31 = vpop.f32.mrf.mxu1  ;;  %v13360_v38 = vld [vmem:[#allocation63_spill] sm:$0xff]  ;;  %v13361_v27 = vld [vmem:[#allocation21_spill] sm:$0xff] }
 0x323   :  { %v13356_v44 = vld [vmem:[#allocation22_spill] sm:$0xff]  ;;  %v2759_v3 = vadd.f32 %v10117_v19, %v1917_v41  ;;  %v2761_v53 = vadd.f32 %v10123_v16, %v2110_v52  ;;  %v10662_v6 = vpack.c.bf16 %v2999_v15, %v2991_v36  ;;  %v10664_v8 = vpack.c.bf16 %v3001_v56, %v2993_v59  ;;  %v8260_v56 = vld [vmem:[#allocation2 + $0xec] ss:$16 sps:$4 sm:$0xff]   ;;  %v13366_v59 = vld [vmem:[#allocation68_spill] sm:$0xff] }
 0x324   :  { %v2106_v28 = vadd.f32 %v13356_v44, %v13355_v51  ;;  %13357 = vst [vmem:[#allocation35_spill] sm:$0xff] %v10651_v60  ;;  %v8249_v29 = vld [vmem:[#allocation2 + $0x720] ss:$16 sps:$4 sm:$0xff]   ;;  %5203 = vmatpush2.bf16.msra.mxu0 %v8246_v30  ;;  %v8257_v63 = vld [vmem:[#allocation2 + $0x704] ss:$16 sps:$4 sm:$0xff]   ;;  %v2736_v61 = vadd.f32 %v10155_v43, %v2094_v26  ;;  %v1911_v7 = vadd.f32 %v13361_v27, %v13360_v38  ;;  %v10671_v11 = vpop.f32.mrf.mxu0  ;;  %v10673_v41 = vpop.f32.mrf.mxu1  ;;  %v2990_v26 = vmax.f32 %v2734_v37, 0.0 }
 0x325   :  { %13358 = vst [vmem:[#allocation36_spill] sm:$0xff] %v10662_v6  ;;  %13359 = vst [vmem:[#allocation45_spill] sm:$0xff] %v10664_v8  ;;  %v8252_v42 = vld [vmem:[#allocation2 + $0x500] ss:$16 sps:$4 sm:$0xff]   ;;  %4901 = vmatmul.mubr.bf16.gmra.mxu0 %v10639_v54  ;;  %5094 = vmatmul.mubr.bf16.gmra.mxu1 %v10651_v60  ;;  %v2751_v15 = vadd.f32 %v10117_v19, %v1913_v10  ;;  %v2998_v30 = vmax.f32 %v2742_v58, 0.0  ;;  %v3000_v36 = vmax.f32 %v2744_v48, 0.0 }
 0x326   :  { %v13362_v51 = vld [vmem:[#allocation67_spill] sm:$0xff]  ;;  %v13363_v44 = vld [vmem:[#allocation253_spill] sm:$0xff]  ;;  %13364 = vst [vmem:[#allocation46_spill] sm:$0xff] %v10671_v11  ;;  %13365 = vst [vmem:[#allocation32_spill] sm:$0xff] %v10673_v41  ;;  %v2753_v52 = vadd.f32 %v10123_v16, %v2106_v28  ;;  %4910 = vmatprep.mubr.bf16.mxu0 %v10662_v6  ;;  %5103 = vmatprep.mubr.bf16.mxu1 %v10664_v8  ;;  %v3015_v10 = vmax.f32 %v2759_v3, 0.0  ;;  %v3017_v54 = vmax.f32 %v2761_v53, 0.0 }
 0x327   :  { %v1915_v17 = vadd.f32 %v13363_v44, %v13362_v51  ;;  %v13367_v38 = vld [vmem:[#allocation9_spill] sm:$0xff]  ;;  %v10683_v51 = vpop.f32.mrf.mxu0  ;;  %v10685_v44 = vpop.f32.mrf.mxu1  ;;  %5396 = vmatpush2.bf16.msra.mxu1 %v8249_v29  ;;  %5204 = vmatprep.subr.bf16.mxu0 %v8254_v25  ;;  %v13370_v41 = vld [vmem:[#allocation78_spill] sm:$0xff]  ;;  %v2992_v48 = vmax.f32 %v2736_v61, 0.0  ;;  %v13372_v8 = vld [vmem:[#allocation252_spill] sm:$0xff] }
 0x328   :  { %v2108_v27 = vadd.f32 %v13367_v38, %v13366_v59  ;;  %13368 = vst [vmem:[#allocation261_spill] sm:$0xff] %v10685_v44  ;;  %v8255_v60 = vld [vmem:[#allocation2 + $0x700] ss:$16 sps:$4 sm:$0xff]   ;;  %v2120_v37 = vadd.f32 %v10450_v21, %v13370_v41  ;;  %5205 = vmatpush2.bf16.msra.mxu0 %v8252_v42  ;;  %5397 = vmatprep.subr.bf16.mxu1 %v8257_v63  ;;  %v8263_v58 = vld [vmem:[#allocation2 + $0x2ec] ss:$16 sps:$4 sm:$0xff]   ;;  %v3009_v53 = vmax.f32 %v2753_v52, 0.0 }
 0x329   :  { %v13369_v28 = vld [vmem:[#allocation77_spill] sm:$0xff]  ;;  %v2750_v59 = vadd.f32 %v10151_v12, %v1911_v7  ;;  %v13371_v38 = vld [vmem:[#allocation64_spill] sm:$0xff]  ;;  %v2758_v29 = vadd.f32 %v10151_v12, %v1915_v17  ;;  %v10695_v25 = vpop.f32.mrf.mxu0  ;;  %v10697_v3 = vpop.f32.mrf.mxu1  ;;  %5560 = vmatprep.subr.bf16.mxu0 %v8260_v56  ;;  %v13374_v21 = vld [vmem:[#allocation246_spill] sm:$0xff]  ;;  %v10703_v44 = vpack.c.bf16 %v2998_v30, %v2990_v26  ;;  %v10705_v7 = vpack.c.bf16 %v3000_v36, %v2992_v48 }
 0x32a   :  { %v1927_v6 = vadd.f32 %v10448_v9, %v13369_v28  ;;  %v2104_v11 = vadd.f32 %v13372_v8, %v13371_v38  ;;  %v3007_v9 = vmax.f32 %v2751_v15, 0.0  ;;  %v13373_v28 = vld [vmem:[#allocation73_spill] sm:$0xff]  ;;  %v13375_v63 = vld [vmem:[#allocation74_spill] sm:$0xff]  ;;  %v13376_v41 = vld [vmem:[#allocation19_spill] sm:$0xff]  ;;  %v2760_v8 = vadd.f32 %v10155_v43, %v2108_v27 }
 0x32b   :  { %v1923_v42 = vadd.f32 %v13374_v21, %v13373_v28  ;;  %v2116_v61 = vadd.f32 %v13376_v41, %v13375_v63  ;;  %13377 = vst [vmem:[#allocation41_spill] sm:$0xff] %v10703_v44  ;;  %13378 = vst [vmem:[#allocation42_spill] sm:$0xff] %v10705_v7  ;;  %v10708_v17 = vpop.f32.mrf.mxu0  ;;  %v10710_v38 = vpop.f32.mrf.mxu1  ;;  %5398 = vmatpush2.bf16.msra.mxu1 %v8255_v60  ;;  %v2777_v15 = vadd.f32 %v10123_v16, %v2120_v37  ;;  %v13383_v37 = vld [vmem:[#allocation249_spill] sm:$0xff]  ;;  %v13384_v48 = vld [vmem:[#allocation75_spill] sm:$0xff] }
 0x32c   :  { %v2775_v56 = vadd.f32 %v10117_v19, %v1927_v6  ;;  %v10714_v52 = vpack.c.bf16 %v3015_v10, %v3007_v9  ;;  %v10716_v28 = vpack.c.bf16 %v3017_v54, %v3009_v53  ;;  %5753 = vmatprep.subr.bf16.mxu1 %v8263_v58  ;;  %v2752_v26 = vadd.f32 %v10155_v43, %v2104_v11  ;;  %v13382_v11 = vld [vmem:[#allocation71_spill] sm:$0xff]  ;;  %v13385_v9 = vld [vmem:[#allocation76_spill] sm:$0xff]  ;;  %v13386_v41 = vld [vmem:[#allocation85_spill] sm:$0xff] }
 0x32d   :  { %v3014_v30 = vmax.f32 %v2758_v29, 0.0  ;;  %v10719_v36 = vpop.f32.mrf.mxu0  ;;  %v10721_v27 = vpop.f32.mrf.mxu1  ;;  %4911 = vmatmul.mubr.bf16.gmra.mxu0 %v10703_v44  ;;  %5104 = vmatmul.mubr.bf16.gmra.mxu1 %v10705_v7  ;;  %v3006_v60 = vmax.f32 %v2750_v59, 0.0  ;;  %v2767_v6 = vadd.f32 %v10117_v19, %v1923_v42  ;;  %v2769_v10 = vadd.f32 %v10123_v16, %v2116_v61 }
 0x32e   :  { %13379 = vst [vmem:[#allocation39_spill] sm:$0xff] %v10714_v52  ;;  %13380 = vst [vmem:[#allocation43_spill] sm:$0xff] %v10716_v28  ;;  %4920 = vmatprep.mubr.bf16.mxu0 %v10714_v52  ;;  %5113 = vmatprep.mubr.bf16.mxu1 %v10716_v28  ;;  %v3016_v54 = vmax.f32 %v2760_v8, 0.0  ;;  %v1921_v58 = vadd.f32 %v13383_v37, %v13382_v11  ;;  %v1925_v29 = vadd.f32 %v10435_v14, %v13384_v48  ;;  %v13387_v28 = vld [vmem:[#allocation86_spill] sm:$0xff]  ;;  %v13389_v37 = vld [vmem:[#allocation72_spill] sm:$0xff] }
 0x32f   :  { %13381 = vst [vmem:[#allocation44_spill] sm:$0xff] %v10721_v27  ;;  %v2118_v53 = vadd.f32 %v10437_v45, %v13385_v9  ;;  %v10735_v21 = vpop.f32.mrf.mxu0  ;;  %v10737_v59 = vpop.f32.mrf.mxu1  ;;  %v3031_v42 = vmax.f32 %v2775_v56, 0.0  ;;  %v3033_v63 = vmax.f32 %v2777_v15, 0.0  ;;  %v1937_v61 = vadd.f32 %v10500_v4, %v13386_v41  ;;  %v13390_v14 = vld [vmem:[#allocation15_spill] sm:$0xff]  ;;  %v13391_v56 = vld [vmem:[#allocation81_spill] sm:$0xff]  ;;  %v13392_v27 = vld [vmem:[#allocation82_spill] sm:$0xff] }
 0x330   :  { %v2130_v8 = vadd.f32 %v10502_v32, %v13387_v28  ;;  %v3008_v52 = vmax.f32 %v2752_v26, 0.0  ;;  %v10743_v11 = vpack.c.bf16 %v3014_v30, %v3006_v60  ;;  %v2114_v48 = vadd.f32 %v13390_v14, %v13389_v37 }
 0x331   :  { %v10747_v7 = vpop.f32.mrf.mxu0  ;;  %v10749_v45 = vpop.f32.mrf.mxu1  ;;  %v3023_v9 = vmax.f32 %v2767_v6, 0.0  ;;  %v3025_v44 = vmax.f32 %v2769_v10, 0.0  ;;  %v1933_v15 = vadd.f32 %v10475_v1, %v13391_v56  ;;  %v2126_v4 = vadd.f32 %v10477_v55, %v13392_v27 }
 0x332   :  { %13388 = vst [vmem:[#allocation53_spill] sm:$0xff] %v10743_v11  ;;  %v10755_v41 = vpack.c.bf16 %v3016_v54, %v3008_v52  ;;  %v2766_v32 = vadd.f32 %v10151_v12, %v1921_v58  ;;  %v2774_v28 = vadd.f32 %v10151_v12, %v1925_v29  ;;  %v2776_v26 = vadd.f32 %v10155_v43, %v2118_v53  ;;  %v13396_v52 = vld [vmem:[#allocation79_spill] sm:$0xff] }
 0x333   :  { %v10760_v30 = vpop.f32.mrf.mxu0  ;;  %v10762_v60 = vpop.f32.mrf.mxu1  ;;  %v2791_v6 = vadd.f32 %v10117_v19, %v1937_v61  ;;  %v2793_v10 = vadd.f32 %v10123_v16, %v2130_v8  ;;  %v10766_v1 = vpack.c.bf16 %v3031_v42, %v3023_v9  ;;  %v10768_v37 = vpack.c.bf16 %v3033_v63, %v3025_v44  ;;  %v13397_v54 = vld [vmem:[#allocation83_spill] sm:$0xff] }
 0x334   :  { %13393 = vst [vmem:[#allocation54_spill] sm:$0xff] %v10755_v41  ;;  %v2768_v55 = vadd.f32 %v10155_v43, %v2114_v48  ;;  %v1931_v27 = vadd.f32 %v10463_v34, %v13396_v52  ;;  %v1935_v58 = vadd.f32 %v10487_v5, %v13397_v54  ;;  %v2783_v42 = vadd.f32 %v10117_v19, %v1933_v15  ;;  %v13398_v5 = vld [vmem:[#allocation84_spill] sm:$0xff]  ;;  %v13399_v52 = vld [vmem:[#allocation93_spill] sm:$0xff] }
 0x335   :  { %13394 = vst [vmem:[#allocation40_spill] sm:$0xff] %v10766_v1  ;;  %13395 = vst [vmem:[#allocation49_spill] sm:$0xff] %v10768_v37  ;;  %v10775_v29 = vpop.f32.mrf.mxu0  ;;  %v10777_v53 = vpop.f32.mrf.mxu1  ;;  %4921 = vmatmul.mubr.bf16.gmra.mxu0 %v10743_v11  ;;  %5114 = vmatmul.mubr.bf16.gmra.mxu1 %v10755_v41  ;;  %v2785_v44 = vadd.f32 %v10123_v16, %v2126_v4  ;;  %v3022_v34 = vmax.f32 %v2766_v32, 0.0  ;;  %v3030_v63 = vmax.f32 %v2774_v28, 0.0  ;;  %v3032_v61 = vmax.f32 %v2776_v26, 0.0  ;;  %v13400_v4 = vld [vmem:[#allocation94_spill] sm:$0xff] }
 0x336   :  { %4930 = vmatprep.mubr.bf16.mxu0 %v10766_v1  ;;  %5123 = vmatprep.mubr.bf16.mxu1 %v10768_v37  ;;  %v2128_v8 = vadd.f32 %v10489_v22, %v13398_v5  ;;  %v3047_v9 = vmax.f32 %v2791_v6, 0.0  ;;  %v3049_v56 = vmax.f32 %v2793_v10, 0.0  ;;  %v1947_v15 = vadd.f32 %v10552_v2, %v13399_v52  ;;  %v13401_v28 = vld [vmem:[#allocation80_spill] sm:$0xff]  ;;  %v13402_v41 = vld [vmem:[#allocation89_spill] sm:$0xff]  ;;  %v13403_v52 = vld [vmem:[#allocation90_spill] sm:$0xff] }
 0x337   :  { %v10787_v14 = vpop.f32.mrf.mxu0  ;;  %v10789_v48 = vpop.f32.mrf.mxu1  ;;  %v2140_v54 = vadd.f32 %v10554_v24, %v13400_v4  ;;  %v3024_v1 = vmax.f32 %v2768_v55, 0.0  ;;  %v2782_v32 = vadd.f32 %v10151_v12, %v1931_v27  ;;  %v2124_v26 = vadd.f32 %v10465_v47, %v13401_v28 }
 0x338   :  { %v2790_v22 = vadd.f32 %v10151_v12, %v1935_v58  ;;  %v3039_v6 = vmax.f32 %v2783_v42, 0.0  ;;  %v3041_v10 = vmax.f32 %v2785_v44, 0.0  ;;  %v1943_v2 = vadd.f32 %v10527_v33, %v13402_v41 }
 0x339   :  { %v10799_v5 = vpop.f32.mrf.mxu0  ;;  %v10801_v37 = vpop.f32.mrf.mxu1  ;;  %v2136_v24 = vadd.f32 %v10529_v39, %v13403_v52  ;;  %v10807_v55 = vpack.c.bf16 %v3030_v63, %v3022_v34  ;;  %v10809_v27 = vpack.c.bf16 %v3032_v61, %v3024_v1  ;;  %v2792_v47 = vadd.f32 %v10155_v43, %v2128_v8 }
 0x33a   :  { %v2807_v28 = vadd.f32 %v10117_v19, %v1947_v15  ;;  %v2809_v42 = vadd.f32 %v10123_v16, %v2140_v54  ;;  %v10818_v44 = vpack.c.bf16 %v3047_v9, %v3039_v6  ;;  %v10820_v33 = vpack.c.bf16 %v3049_v56, %v3041_v10  ;;  %v13409_v56 = vld [vmem:[#allocation87_spill] sm:$0xff] }
 0x33b   :  { %13404 = vst [vmem:[#allocation50_spill] sm:$0xff] %v10807_v55  ;;  %13405 = vst [vmem:[#allocation47_spill] sm:$0xff] %v10809_v27  ;;  %v10812_v4 = vpop.f32.mrf.mxu0  ;;  %v10814_v58 = vpop.f32.mrf.mxu1  ;;  %v2784_v39 = vadd.f32 %v10155_v43, %v2124_v26  ;;  %v3046_v41 = vmax.f32 %v2790_v22, 0.0  ;;  %v3038_v63 = vmax.f32 %v2782_v32, 0.0  ;;  %v2799_v61 = vadd.f32 %v10117_v19, %v1943_v2  ;;  %v13410_v54 = vld [vmem:[#allocation91_spill] sm:$0xff]  ;;  %v13411_v22 = vld [vmem:[#allocation92_spill] sm:$0xff] }
 0x33c   :  { %13406 = vst [vmem:[#allocation51_spill] sm:$0xff] %v10818_v44  ;;  %13407 = vst [vmem:[#allocation52_spill] sm:$0xff] %v10820_v33  ;;  %v2801_v8 = vadd.f32 %v10123_v16, %v2136_v24  ;;  %v3048_v9 = vmax.f32 %v2792_v47, 0.0  ;;  %v1941_v15 = vadd.f32 %v10511_v57, %v13409_v56  ;;  %v1945_v26 = vadd.f32 %v10539_v20, %v13410_v54  ;;  %v13412_v24 = vld [vmem:[#allocation101_spill] sm:$0xff]  ;;  %v13415_v56 = vld [vmem:[#allocation88_spill] sm:$0xff] }
 0x33d   :  { %v10823_v34 = vpop.f32.mrf.mxu0  ;;  %v10825_v1 = vpop.f32.mrf.mxu1  ;;  %4931 = vmatmul.mubr.bf16.gmra.mxu0 %v10807_v55  ;;  %5124 = vmatmul.mubr.bf16.gmra.mxu1 %v10809_v27  ;;  %v2138_v6 = vadd.f32 %v10541_v62, %v13411_v22  ;;  %v3063_v2 = vmax.f32 %v2807_v28, 0.0  ;;  %v3065_v52 = vmax.f32 %v2809_v42, 0.0  ;;  %v3040_v27 = vmax.f32 %v2784_v39, 0.0  ;;  %v13416_v20 = vld [vmem:[#allocation257_spill] sm:$0xff] }
 0x33e   :  { %13408 = vst [vmem:[#allocation61_spill] sm:$0xff] %v10825_v1  ;;  %4940 = vmatprep.mubr.bf16.mxu0 %v10818_v44  ;;  %5133 = vmatprep.mubr.bf16.mxu1 %v10820_v33  ;;  %v1957_v44 = vadd.f32 %v10604_v50, %v13412_v24  ;;  %v13413_v33 = vld [vmem:[#allocation102_spill] sm:$0xff]  ;;  %v10847_v57 = vpack.c.bf16 %v3046_v41, %v3038_v63  ;;  %v3055_v22 = vmax.f32 %v2799_v61, 0.0  ;;  %v3057_v11 = vmax.f32 %v2801_v8, 0.0  ;;  %v13417_v28 = vld [vmem:[#allocation97_spill] sm:$0xff] }
 0x33f   :  { %v10839_v10 = vpop.f32.mrf.mxu0  ;;  %v10841_v32 = vpop.f32.mrf.mxu1  ;;  %v2150_v47 = vadd.f32 %v10606_v35, %v13413_v33  ;;  %v2134_v54 = vadd.f32 %v13416_v20, %v13415_v56  ;;  %v1953_v42 = vadd.f32 %v10579_v18, %v13417_v28  ;;  %v13418_v1 = vld [vmem:[#allocation98_spill] sm:$0xff]  ;;  %v10859_v24 = vpack.c.bf16 %v3048_v9, %v3040_v27  ;;  %v13422_v27 = vld [vmem:[#allocation95_spill] sm:$0xff]  ;;  %v13427_v20 = vld [vmem:[#allocation100_spill] sm:$0xff] }
 0x340   :  { %13414 = vst [vmem:[#allocation62_spill] sm:$0xff] %v10847_v57  ;;  %v2146_v50 = vadd.f32 %v10581_v13, %v13418_v1  ;;  %v2798_v35 = vadd.f32 %v10151_v12, %v1941_v15  ;;  %v2806_v33 = vadd.f32 %v10151_v12, %v1945_v26  ;;  %v2808_v39 = vadd.f32 %v10155_v43, %v2138_v6  ;;  %v13423_v9 = vld [vmem:[#allocation99_spill] sm:$0xff] }
 0x341   :  { %v10851_v55 = vpop.f32.mrf.mxu0  ;;  %v10853_v62 = vpop.f32.mrf.mxu1  ;;  %13419 = vst [vmem:[#allocation48_spill] sm:$0xff] %v10859_v24  ;;  %v2823_v61 = vadd.f32 %v10117_v19, %v1957_v44  ;;  %v2825_v8 = vadd.f32 %v10123_v16, %v2150_v47  ;;  %v10870_v18 = vpack.c.bf16 %v3063_v2, %v3055_v22  ;;  %v10872_v56 = vpack.c.bf16 %v3065_v52, %v3057_v11  ;;  %v13426_v2 = vld [vmem:[#allocation254_spill] sm:$0xff] }
 0x342   :  { %v2800_v13 = vadd.f32 %v10155_v43, %v2134_v54  ;;  %v1951_v1 = vadd.f32 %v10567_v49, %v13422_v27  ;;  %v1955_v15 = vadd.f32 %v10591_v23, %v13423_v9  ;;  %v2815_v44 = vadd.f32 %v10117_v19, %v1953_v42  ;;  %v13429_v9 = vld [vmem:[#allocation109_spill] sm:$0xff] }
 0x343   :  { %v10864_v41 = vpop.f32.mrf.mxu0  ;;  %v10866_v63 = vpop.f32.mrf.mxu1  ;;  %13420 = vst [vmem:[#allocation57_spill] sm:$0xff] %v10870_v18  ;;  %13421 = vst [vmem:[#allocation58_spill] sm:$0xff] %v10872_v56  ;;  %v2817_v11 = vadd.f32 %v10123_v16, %v2146_v50  ;;  %v2572_v52 = vsub.s32 5, %v13426_v2  ;;  %v3054_v49 = vmax.f32 %v2798_v35, 0.0  ;;  %v3062_v23 = vmax.f32 %v2806_v33, 0.0  ;;  %v13431_v33 = vld [vmem:[#allocation96_spill] sm:$0xff] }
 0x344   :  { %v3064_v47 = vmax.f32 %v2808_v39, 0.0  ;;  %v2148_v54 = vadd.f32 %v10593_v40, %v13427_v20  ;;  %v3079_v27 = vmax.f32 %v2823_v61, 0.0  ;;  %v3081_v42 = vmax.f32 %v2825_v8, 0.0 }
 0x345   :  { %v10879_v26 = vpop.f32.mrf.mxu0  ;;  %v10881_v6 = vpop.f32.mrf.mxu1  ;;  %4941 = vmatmul.mubr.bf16.gmra.mxu0 %v10847_v57  ;;  %5134 = vmatmul.mubr.bf16.gmra.mxu1 %v10859_v24  ;;  %v1967_v50 = vadd.f32 %v10656_v46, %v13429_v9  ;;  %v13430_v24 = vld [vmem:[#allocation110_spill] sm:$0xff]  ;;  %v3056_v57 = vmax.f32 %v2800_v13, 0.0  ;;  %v2814_v35 = vadd.f32 %v10151_v12, %v1951_v1  ;;  %v2144_v39 = vadd.f32 %v10569_v0, %v13431_v33 }
 0x346   :  { %13424 = vst [vmem:[#allocation55_spill] sm:$0xff] %v10879_v26  ;;  %13425 = vst [vmem:[#allocation11_spill] sm:$0xff] %v10881_v6  ;;  %4950 = vmatprep.mubr.bf16.mxu0 %v10870_v18  ;;  %5143 = vmatprep.mubr.bf16.mxu1 %v10872_v56  ;;  %v2160_v18 = vadd.f32 %v10658_v31, %v13430_v24  ;;  %v2822_v40 = vadd.f32 %v10151_v12, %v1955_v15  ;;  %v3071_v61 = vmax.f32 %v2815_v44, 0.0  ;;  %v13434_v6 = vld [vmem:[#allocation105_spill] sm:$0xff]  ;;  %v13435_v26 = vld [vmem:[#allocation24_spill] sm:$0xff] }
 0x347   :  { %v10892_v22 = vpop.f32.mrf.mxu0  ;;  %v10894_v28 = vpop.f32.mrf.mxu1  ;;  %v3073_v8 = vmax.f32 %v2817_v11, 0.0  ;;  %v1963_v46 = vadd.f32 %v13435_v26, %v13434_v6  ;;  %v13436_v9 = vld [vmem:[#allocation106_spill] sm:$0xff]  ;;  %v10912_v24 = vpack.c.bf16 %v3062_v23, %v3054_v49  ;;  %v10914_v13 = vpack.c.bf16 %v3064_v47, %v3056_v57 }
 0x348   :  { %13428 = vst [vmem:[#allocation59_spill] sm:$0xff] %v10894_v28  ;;  %v13437_v28 = vld [vmem:[#allocation256_spill] sm:$0xff]  ;;  %v2824_v0 = vadd.f32 %v10155_v43, %v2148_v54  ;;  %v2568_v1 = vsub.s32 4, %v13426_v2  ;;  %v2839_v44 = vadd.f32 %v10117_v19, %v1967_v50  ;;  %v2841_v11 = vadd.f32 %v10123_v16, %v2160_v18 }
 0x349   :  { %v10904_v20 = vpop.f32.mrf.mxu0  ;;  %v10906_v56 = vpop.f32.mrf.mxu1  ;;  %v2156_v31 = vadd.f32 %v13437_v28, %v13436_v9  ;;  %13438 = vst [vmem:[#allocation243_spill] sm:$0xff] %v10912_v24  ;;  %13439 = vst [vmem:[#allocation69_spill] sm:$0xff] %v10914_v13  ;;  %v10924_v26 = vpack.c.bf16 %v3079_v27, %v3071_v61  ;;  %v10926_v6 = vpack.c.bf16 %v3081_v42, %v3073_v8  ;;  %v3078_v57 = vmax.f32 %v2822_v40, 0.0  ;;  %v8483_v50 = vld [vmem:[%s12815_s8] sm:$0xff]  ;;  %v13445_v8 = vld [vmem:[#allocation37_spill] sm:$0xff] }
 0x34a   :  { %13432 = vst [vmem:[#allocation12_spill] sm:$0xff] %v10904_v20  ;;  %13433 = vst [vmem:[#allocation60_spill] sm:$0xff] %v10906_v56  ;;  %v2816_v49 = vadd.f32 %v10155_v43, %v2144_v39  ;;  %v2576_v23 = vsub.s32 6, %v13426_v2  ;;  %v2580_v47 = vsub.s32 7, %v13426_v2  ;;  %v3070_v18 = vmax.f32 %v2814_v35, 0.0  ;;  %v13444_v61 = vld [vmem:[#allocation103_spill] sm:$0xff] }
 0x34b   :  { %v10918_v15 = vpop.f32.mrf.mxu0  ;;  %v10920_v33 = vpop.f32.mrf.mxu1  ;;  %13440 = vst [vmem:[#allocation70_spill] sm:$0xff] %v10924_v26  ;;  %13441 = vst [vmem:[#allocation56_spill] sm:$0xff] %v10926_v6  ;;  %v2831_v27 = vadd.f32 %v10117_v19, %v1963_v46  ;;  %v2833_v42 = vadd.f32 %v10123_v16, %v2156_v31  ;;  %v10942_v39 = vrot.slane %v8483_v50, %v2572_v52  ;;  %v3080_v40 = vmax.f32 %v2824_v0, 0.0  ;;  %v13447_v35 = vld [vmem:[#allocation34_spill] sm:$0xff]  ;;  %v13448_v19 = vld [vmem:[#allocation108_spill] sm:$0xff] }
 0x34c   :  { %v1961_v9 = vadd.f32 %v13445_v8, %v13444_v61  ;;  %v13449_v46 = vld [vmem:[#allocation31_spill] sm:$0xff]  ;;  %v3095_v52 = vmax.f32 %v2839_v44, 0.0  ;;  %v3072_v56 = vmax.f32 %v2816_v49, 0.0  ;;  %v10960_v61 = vpack.c.bf16 %v3078_v57, %v3070_v18  ;;  %v13455_v8 = vld [vmem:[#allocation104_spill] sm:$0xff] }
 0x34d   :  { %v10931_v54 = vpop.f32.mrf.mxu0  ;;  %v10933_v28 = vpop.f32.mrf.mxu1  ;;  %4951 = vmatmul.mubr.bf16.gmra.mxu0 %v10912_v24  ;;  %5144 = vmatmul.mubr.bf16.gmra.mxu1 %v10914_v13  ;;  %v13446_v13 = vld [vmem:[#allocation107_spill] sm:$0xff]  ;;  %v2158_v16 = vadd.f32 %v13449_v46, %v13448_v19  ;;  %v10964_v20 = vrot.slane %v8483_v50, %v2580_v47  ;;  %v3087_v44 = vmax.f32 %v2831_v27, 0.0 }
 0x34e   :  { %13442 = vst [vmem:[#allocation242_spill] sm:$0xff] %v10931_v54  ;;  %13443 = vst [vmem:[#allocation65_spill] sm:$0xff] %v10933_v28  ;;  %4960 = vmatprep.mubr.bf16.mxu0 %v10924_v26  ;;  %5153 = vmatprep.mubr.bf16.mxu1 %v10926_v6  ;;  %v1965_v24 = vadd.f32 %v13447_v35, %v13446_v13  ;;  %v3097_v28 = vmax.f32 %v2841_v11, 0.0  ;;  %v13452_v54 = vld [vmem:[#allocation117_spill] sm:$0xff]  ;;  %v13453_v6 = vld [vmem:[#allocation118_spill] sm:$0xff]  ;;  %v3089_v11 = vmax.f32 %v2833_v42, 0.0 }
 0x34f   :  { %v10952_v31 = vpop.f32.mrf.mxu0  ;;  %v10954_v2 = vpop.f32.mrf.mxu1  ;;  %v2203_v26 = vadd.f32 %v10708_v17, %v13452_v54  ;;  %v2396_v0 = vadd.f32 %v10710_v38, %v13453_v6  ;;  %13454 = vst [vmem:[#allocation63_spill] sm:$0xff] %v10960_v61  ;;  %v13456_v13 = vld [vmem:[#allocation38_spill] sm:$0xff]  ;;  %v10974_v6 = vpack.c.bf16 %v3080_v40, %v3072_v56  ;;  %v2830_v49 = vadd.f32 %v10151_v12, %v1961_v9  ;;  %v13463_v40 = vld [vmem:[#allocation111_spill] sm:$0xff] }
 0x350   :  { %13450 = vst [vmem:[#allocation66_spill] sm:$0xff] %v10952_v31  ;;  %13451 = vst [vmem:[#allocation22_spill] sm:$0xff] %v10954_v2  ;;  %v2154_v35 = vadd.f32 %v13456_v13, %v13455_v8  ;;  %v13457_v2 = vld [vmem:[#allocation113_spill] sm:$0xff]  ;;  %v13458_v54 = vld [vmem:[#allocation114_spill] sm:$0xff]  ;;  %v2838_v57 = vadd.f32 %v10151_v12, %v1965_v24  ;;  %v2840_v47 = vadd.f32 %v10155_v43, %v2158_v16 }
 0x351   :  { %v10966_v19 = vpop.f32.mrf.mxu0  ;;  %v10968_v46 = vpop.f32.mrf.mxu1  ;;  %v2199_v17 = vadd.f32 %v10683_v51, %v13457_v2  ;;  %v13459_v31 = vld [vmem:[#allocation261_spill] sm:$0xff]  ;;  %13460 = vst [vmem:[#allocation21_spill] sm:$0xff] %v10974_v6  ;;  %v2603_v27 = vadd.f32 %v10942_v39, %v2203_v26  ;;  %v2605_v42 = vadd.f32 %v10964_v20, %v2396_v0  ;;  %v10985_v51 = vpack.c.bf16 %v3095_v52, %v3087_v44  ;;  %v13464_v9 = vld [vmem:[#allocation46_spill] sm:$0xff]  ;;  %v13465_v52 = vld [vmem:[#allocation115_spill] sm:$0xff] }
 0x352   :  { %v2392_v38 = vadd.f32 %v13459_v31, %v13458_v54  ;;  %v10987_v2 = vpack.c.bf16 %v3097_v28, %v3089_v11  ;;  %v2832_v56 = vadd.f32 %v10155_v43, %v2154_v35  ;;  %v2197_v31 = vadd.f32 %v13464_v9, %v13463_v40  ;;  %v13466_v35 = vld [vmem:[#allocation116_spill] sm:$0xff]  ;;  %v13467_v9 = vld [vmem:[#allocation125_spill] sm:$0xff] }
 0x353   :  { %v10979_v18 = vpop.f32.mrf.mxu0  ;;  %v10981_v8 = vpop.f32.mrf.mxu1  ;;  %13461 = vst [vmem:[#allocation67_spill] sm:$0xff] %v10985_v51  ;;  %v10992_v12 = vrot.slane %v8483_v50, %v2568_v1  ;;  %v2595_v26 = vadd.f32 %v10942_v39, %v2199_v17  ;;  %v2201_v43 = vadd.f32 %v10695_v25, %v13465_v52  ;;  %v3094_v1 = vmax.f32 %v2838_v57, 0.0  ;;  %v13468_v57 = vld [vmem:[#allocation112_spill] sm:$0xff] }
 0x354   :  { %13462 = vst [vmem:[#allocation253_spill] sm:$0xff] %v10987_v2  ;;  %v2597_v28 = vadd.f32 %v10964_v20, %v2392_v38  ;;  %v3096_v0 = vmax.f32 %v2840_v47, 0.0  ;;  %v11006_v13 = vrot.slane %v8483_v50, %v2576_v23  ;;  %v2394_v44 = vadd.f32 %v10697_v3, %v13466_v35  ;;  %v13469_v47 = vld [vmem:[#allocation32_spill] sm:$0xff]  ;;  %v13470_v50 = vld [vmem:[#allocation126_spill] sm:$0xff] }
 0x355   :  { %v10994_v24 = vpop.f32.mrf.mxu0  ;;  %v10996_v16 = vpop.f32.mrf.mxu1  ;;  %4961 = vmatmul.mubr.bf16.gmra.mxu0 %v10960_v61  ;;  %5154 = vmatmul.mubr.bf16.gmra.mxu1 %v10974_v6  ;;  %v3086_v17 = vmax.f32 %v2830_v49, 0.0  ;;  %v2859_v38 = vmax.f32 %v2603_v27, 0.0  ;;  %v2861_v40 = vmax.f32 %v2605_v42, 0.0  ;;  %v2213_v25 = vadd.f32 %v10760_v30, %v13467_v9  ;;  %v13471_v42 = vld [vmem:[#allocation121_spill] sm:$0xff] }
 0x356   :  { %4970 = vmatprep.mubr.bf16.mxu0 %v10985_v51  ;;  %5163 = vmatprep.mubr.bf16.mxu1 %v10987_v2  ;;  %v3088_v52 = vmax.f32 %v2832_v56, 0.0  ;;  %v2594_v2 = vadd.f32 %v10992_v12, %v2197_v31  ;;  %v2390_v23 = vadd.f32 %v13469_v47, %v13468_v57  ;;  %v2406_v51 = vadd.f32 %v10762_v60, %v13470_v50  ;;  %v13474_v57 = vld [vmem:[#allocation122_spill] sm:$0xff] }
 0x357   :  { %v11010_v11 = vpop.f32.mrf.mxu0  ;;  %v11012_v54 = vpop.f32.mrf.mxu1  ;;  %v2851_v6 = vmax.f32 %v2595_v26, 0.0  ;;  %v2853_v49 = vmax.f32 %v2597_v28, 0.0  ;;  %v2602_v27 = vadd.f32 %v10992_v12, %v2201_v43  ;;  %v2209_v30 = vadd.f32 %v10735_v21, %v13471_v42 }
 0x358   :  { %v11028_v56 = vpack.c.bf16 %v3094_v1, %v3086_v17  ;;  %v11030_v31 = vpack.c.bf16 %v3096_v0, %v3088_v52  ;;  %v2604_v9 = vadd.f32 %v11006_v13, %v2394_v44  ;;  %v2402_v60 = vadd.f32 %v10737_v59, %v13474_v57  ;;  %v13477_v1 = vld [vmem:[#allocation123_spill] sm:$0xff] }
 0x359   :  { %v11021_v3 = vpop.f32.mrf.mxu0  ;;  %v11023_v35 = vpop.f32.mrf.mxu1  ;;  %v2619_v26 = vadd.f32 %v10942_v39, %v2213_v25  ;;  %v11040_v28 = vpack.c.bf16 %v2859_v38, %v2851_v6  ;;  %v11042_v43 = vpack.c.bf16 %v2861_v40, %v2853_v49  ;;  %v2596_v21 = vadd.f32 %v11006_v13, %v2390_v23  ;;  %v13480_v23 = vld [vmem:[#allocation124_spill] sm:$0xff] }
 0x35a   :  { %13472 = vst [vmem:[#allocation68_spill] sm:$0xff] %v11028_v56  ;;  %13473 = vst [vmem:[#allocation9_spill] sm:$0xff] %v11030_v31  ;;  %v2211_v0 = vadd.f32 %v10747_v7, %v13477_v1  ;;  %v2621_v44 = vadd.f32 %v10964_v20, %v2406_v51  ;;  %v2850_v25 = vmax.f32 %v2594_v2, 0.0  ;;  %v2858_v6 = vmax.f32 %v2602_v27, 0.0  ;;  %v13479_v7 = vld [vmem:[#allocation119_spill] sm:$0xff]  ;;  %v13482_v2 = vld [vmem:[#allocation120_spill] sm:$0xff] }
 0x35b   :  { %v11035_v47 = vpop.f32.mrf.mxu0  ;;  %v11037_v50 = vpop.f32.mrf.mxu1  ;;  %13475 = vst [vmem:[#allocation77_spill] sm:$0xff] %v11040_v28  ;;  %13476 = vst [vmem:[#allocation78_spill] sm:$0xff] %v11042_v43  ;;  %v2611_v38 = vadd.f32 %v10942_v39, %v2209_v30  ;;  %v2860_v40 = vmax.f32 %v2604_v9, 0.0  ;;  %v2207_v51 = vadd.f32 %v10719_v36, %v13479_v7  ;;  %v2613_v52 = vadd.f32 %v10964_v20, %v2402_v60  ;;  %v13483_v27 = vld [vmem:[#allocation44_spill] sm:$0xff]  ;;  %v13485_v9 = vld [vmem:[#allocation134_spill] sm:$0xff] }
 0x35c   :  { %v2404_v49 = vadd.f32 %v10749_v45, %v13480_v23  ;;  %v2400_v30 = vadd.f32 %v13483_v27, %v13482_v2  ;;  %v2875_v1 = vmax.f32 %v2619_v26, 0.0  ;;  %v2852_v36 = vmax.f32 %v2596_v21, 0.0  ;;  %v13489_v2 = vld [vmem:[#allocation130_spill] sm:$0xff] }
 0x35d   :  { %v11048_v17 = vpop.f32.mrf.mxu0  ;;  %v11050_v59 = vpop.f32.mrf.mxu1  ;;  %4971 = vmatmul.mubr.bf16.gmra.mxu0 %v11028_v56  ;;  %5164 = vmatmul.mubr.bf16.gmra.mxu1 %v11030_v31  ;;  %v2416_v31 = vadd.f32 %v10814_v58, %v13485_v9  ;;  %v2618_v60 = vadd.f32 %v10992_v12, %v2211_v0  ;;  %v2877_v7 = vmax.f32 %v2621_v44, 0.0  ;;  %v11077_v23 = vpack.c.bf16 %v2858_v6, %v2850_v25  ;;  %v8261_v25 = vld [vmem:[#allocation2 + $0x2e8] ss:$16 sps:$4 sm:$0xff]  }
 0x35e   :  { %13478 = vst [vmem:[#allocation64_spill] sm:$0xff] %v11050_v59  ;;  %5206 = vmatprep.mubr.bf16.mxu0 %v11040_v28  ;;  %5399 = vmatprep.mubr.bf16.mxu1 %v11042_v43  ;;  %v13484_v28 = vld [vmem:[#allocation133_spill] sm:$0xff]  ;;  %v2867_v61 = vmax.f32 %v2611_v38, 0.0  ;;  %v11083_v27 = vpack.c.bf16 %v2860_v40, %v2852_v36  ;;  %v2610_v58 = vadd.f32 %v10992_v12, %v2207_v51  ;;  %v2869_v21 = vmax.f32 %v2613_v52, 0.0  ;;  %v13492_v51 = vld [vmem:[#allocation131_spill] sm:$0xff] }
 0x35f   :  { %v11062_v42 = vpop.f32.mrf.mxu0  ;;  %v11064_v57 = vpop.f32.mrf.mxu1  ;;  %v2223_v43 = vadd.f32 %v10812_v4, %v13484_v28  ;;  %13487 = vst [vmem:[#allocation246_spill] sm:$0xff] %v11077_v23  ;;  %v13488_v59 = vld [vmem:[#allocation129_spill] sm:$0xff]  ;;  %v2412_v4 = vadd.f32 %v10789_v48, %v13489_v2  ;;  %v2620_v0 = vadd.f32 %v11006_v13, %v2404_v49  ;;  %v2612_v6 = vadd.f32 %v11006_v13, %v2400_v30  ;;  %v13493_v49 = vld [vmem:[#allocation132_spill] sm:$0xff] }
 0x360   :  { %13481 = vst [vmem:[#allocation252_spill] sm:$0xff] %v11064_v57  ;;  %v2219_v26 = vadd.f32 %v10787_v14, %v13488_v59  ;;  %v8258_v28 = vld [vmem:[#allocation2 + $0xe8] ss:$16 sps:$4 sm:$0xff]   ;;  %13490 = vst [vmem:[#allocation74_spill] sm:$0xff] %v11083_v27  ;;  %v2637_v59 = vadd.f32 %v10964_v20, %v2416_v31  ;;  %v11094_v48 = vpack.c.bf16 %v2875_v1, %v2867_v61  ;;  %v8266_v38 = vld [vmem:[#allocation2 + $0xcc] ss:$16 sps:$4 sm:$0xff]  }
 0x361   :  { %v11073_v56 = vpop.f32.mrf.mxu0  ;;  %v11075_v45 = vpop.f32.mrf.mxu1  ;;  %v2635_v14 = vadd.f32 %v10942_v39, %v2223_v43  ;;  %v8269_v40 = vld [vmem:[#allocation2 + $0x2cc] ss:$16 sps:$4 sm:$0xff]   ;;  %v2874_v36 = vmax.f32 %v2618_v60, 0.0  ;;  %v2221_v52 = vadd.f32 %v10799_v5, %v13492_v51  ;;  %v2414_v2 = vadd.f32 %v10801_v37, %v13493_v49  ;;  %v8264_v5 = vld [vmem:[#allocation2 + $0xc8] ss:$16 sps:$4 sm:$0xff]  }
 0x362   :  { %13486 = vst [vmem:[#allocation73_spill] sm:$0xff] %v11075_v45  ;;  %13491 = vst [vmem:[#allocation19_spill] sm:$0xff] %v11094_v48  ;;  %v11106_v31 = vpack.c.bf16 %v2877_v7, %v2869_v21  ;;  %v2627_v61 = vadd.f32 %v10942_v39, %v2219_v26  ;;  %v2629_v43 = vadd.f32 %v10964_v20, %v2412_v4  ;;  %v2866_v30 = vmax.f32 %v2610_v58, 0.0  ;;  %v13495_v1 = vld [vmem:[#allocation127_spill] sm:$0xff]  ;;  %v13496_v51 = vld [vmem:[#allocation128_spill] sm:$0xff] }
 0x363   :  { %v11087_v44 = vpop.f32.mrf.mxu0  ;;  %v11089_v9 = vpop.f32.mrf.mxu1  ;;  %v2876_v37 = vmax.f32 %v2620_v0, 0.0  ;;  %v2217_v60 = vadd.f32 %v10775_v29, %v13495_v1  ;;  %v2410_v49 = vadd.f32 %v10777_v53, %v13496_v51  ;;  %v8267_v26 = vld [vmem:[#allocation2 + $0x2c8] ss:$16 sps:$4 sm:$0xff]   ;;  %v8272_v4 = vld [vmem:[#allocation2 + $0xac] ss:$16 sps:$4 sm:$0xff]   ;;  %v2868_v1 = vmax.f32 %v2612_v6, 0.0 }
 0x364   :  { %13494 = vst [vmem:[#allocation71_spill] sm:$0xff] %v11106_v31  ;;  %v13499_v0 = vld [vmem:[#allocation142_spill] sm:$0xff]  ;;  %v8275_v53 = vld [vmem:[#allocation2 + $0x2ac] ss:$16 sps:$4 sm:$0xff]   ;;  %v11124_v51 = vpack.c.bf16 %v2874_v36, %v2866_v30 }
 0x365   :  { %v11100_v57 = vpop.f32.mrf.mxu0  ;;  %v11102_v45 = vpop.f32.mrf.mxu1  ;;  %5207 = vmatmul.mubr.bf16.vlgmr.msra.gmra.mxu0 %v11077_v23  ;;  %5400 = vmatmul.mubr.bf16.vlgmr.msra.gmra.mxu1 %v11083_v27  ;;  %v13498_v27 = vld [vmem:[#allocation141_spill] sm:$0xff]  ;;  %v2426_v29 = vadd.f32 %v10866_v63, %v13499_v0  ;;  %v13502_v63 = vld [vmem:[#allocation138_spill] sm:$0xff]  ;;  %v11136_v6 = vpack.c.bf16 %v2876_v37, %v2868_v1  ;;  %v2628_v36 = vadd.f32 %v11006_v13, %v2410_v49  ;;  %v13506_v1 = vld [vmem:[#allocation139_spill] sm:$0xff] }
 0x366   :  { %5561 = vmatpush1.bf16.msra.mxu0 %v8258_v28  ;;  %5216 = vmatprep.mubr.bf16.mxu0 %v11094_v48  ;;  %v2891_v28 = vmax.f32 %v2635_v14, 0.0  ;;  %v2893_v48 = vmax.f32 %v2637_v59, 0.0  ;;  %v2233_v58 = vadd.f32 %v10864_v41, %v13498_v27  ;;  %13500 = vst [vmem:[#allocation75_spill] sm:$0xff] %v11124_v51  ;;  %v2883_v59 = vmax.f32 %v2627_v61, 0.0  ;;  %v13501_v41 = vld [vmem:[#allocation137_spill] sm:$0xff] }
 0x367   :  { %5409 = vmatprep.mubr.bf16.mxu1 %v11106_v31  ;;  %v11116_v7 = vpop.f32.mrf.mxu0  ;;  %v11118_v21 = vpop.f32.mrf.mxu1  ;;  %5754 = vmatpush1.bf16.msra.mxu1 %v8261_v25  ;;  %v2634_v31 = vadd.f32 %v10992_v12, %v2221_v52  ;;  %v2636_v25 = vadd.f32 %v11006_v13, %v2414_v2  ;;  %v2229_v27 = vadd.f32 %v10839_v10, %v13501_v41  ;;  %v8270_v61 = vld [vmem:[#allocation2 + $0xa8] ss:$16 sps:$4 sm:$0xff]   ;;  %v8278_v37 = vld [vmem:[#allocation2 + $0x8c] ss:$16 sps:$4 sm:$0xff]  }
 0x368   :  { %13497 = vst [vmem:[#allocation249_spill] sm:$0xff] %v11118_v21  ;;  %5562 = vmatprep.subr.bf16.mxu0 %v8266_v38  ;;  %5755 = vmatprep.subr.bf16.mxu1 %v8269_v40  ;;  %v2885_v21 = vmax.f32 %v2629_v43, 0.0  ;;  %v2422_v38 = vadd.f32 %v10841_v32, %v13502_v63  ;;  %13503 = vst [vmem:[#allocation76_spill] sm:$0xff] %v11136_v6  ;;  %v2626_v40 = vadd.f32 %v10992_v12, %v2217_v60  ;;  %v8273_v43 = vld [vmem:[#allocation2 + $0x2a8] ss:$16 sps:$4 sm:$0xff]  }
 0x369   :  { %v11128_v23 = vpop.f32.mrf.mxu0  ;;  %v11130_v14 = vpop.f32.mrf.mxu1  ;;  %v2651_v10 = vadd.f32 %v10942_v39, %v2233_v58  ;;  %v2653_v30 = vadd.f32 %v10964_v20, %v2426_v29  ;;  %v11146_v32 = vpack.c.bf16 %v2891_v28, %v2883_v59  ;;  %v8281_v60 = vld [vmem:[#allocation2 + $0x28c] ss:$16 sps:$4 sm:$0xff]   ;;  %v2890_v49 = vmax.f32 %v2634_v31, 0.0  ;;  %v13508_v29 = vld [vmem:[#allocation136_spill] sm:$0xff] }
 0x36a   :  { %5563 = vmatpush1.bf16.msra.mxu0 %v8264_v5  ;;  %v11148_v5 = vpack.c.bf16 %v2893_v48, %v2885_v21  ;;  %v2892_v0 = vmax.f32 %v2636_v25, 0.0  ;;  %v2231_v41 = vadd.f32 %v10851_v55, %v13506_v1  ;;  %v13507_v28 = vld [vmem:[#allocation135_spill] sm:$0xff]  ;;  %v2643_v21 = vadd.f32 %v10942_v39, %v2229_v27  ;;  %v13510_v59 = vld [vmem:[#allocation140_spill] sm:$0xff] }
 0x36b   :  { %v11140_v52 = vpop.f32.mrf.mxu0  ;;  %v11142_v2 = vpop.f32.mrf.mxu1  ;;  %5756 = vmatpush1.bf16.msra.mxu1 %v8267_v26  ;;  %5564 = vmatprep.subr.bf16.mxu0 %v8272_v4  ;;  %13504 = vst [vmem:[#allocation85_spill] sm:$0xff] %v11146_v32  ;;  %v2227_v48 = vadd.f32 %v10823_v34, %v13507_v28  ;;  %v2645_v58 = vadd.f32 %v10964_v20, %v2422_v38  ;;  %v2882_v55 = vmax.f32 %v2626_v40, 0.0  ;;  %v2884_v31 = vmax.f32 %v2628_v36, 0.0  ;;  %v8276_v34 = vld [vmem:[#allocation2 + $0x88] ss:$16 sps:$4 sm:$0xff]  }
 0x36c   :  { %13505 = vst [vmem:[#allocation86_spill] sm:$0xff] %v11148_v5  ;;  %5757 = vmatprep.subr.bf16.mxu1 %v8275_v53  ;;  %v13509_v53 = vld [vmem:[#allocation61_spill] sm:$0xff]  ;;  %v2424_v63 = vadd.f32 %v10853_v62, %v13510_v59  ;;  %v2907_v38 = vmax.f32 %v2651_v10, 0.0  ;;  %v2909_v28 = vmax.f32 %v2653_v30, 0.0  ;;  %v13514_v36 = vld [vmem:[#allocation150_spill] sm:$0xff] }
 0x36d   :  { %v11152_v26 = vpop.f32.mrf.mxu0  ;;  %v11154_v4 = vpop.f32.mrf.mxu1  ;;  %5217 = vmatmul.mubr.bf16.gmra.mxu0 %v11124_v51  ;;  %5410 = vmatmul.mubr.bf16.gmra.mxu1 %v11136_v6  ;;  %v2420_v25 = vadd.f32 %v13509_v53, %v13508_v29  ;;  %v8279_v27 = vld [vmem:[#allocation2 + $0x288] ss:$16 sps:$4 sm:$0xff]   ;;  %v8284_v29 = vld [vmem:[#allocation2 + $0x6c] ss:$16 sps:$4 sm:$0xff]   ;;  %v11176_v62 = vpack.c.bf16 %v2890_v49, %v2882_v55  ;;  %v11178_v53 = vpack.c.bf16 %v2892_v0, %v2884_v31 }
 0x36e   :  { %5226 = vmatprep.mubr.bf16.mxu0 %v11146_v32  ;;  %5419 = vmatprep.mubr.bf16.mxu1 %v11148_v5  ;;  %v13513_v32 = vld [vmem:[#allocation149_spill] sm:$0xff]  ;;  %v2436_v5 = vadd.f32 %v10920_v33, %v13514_v36  ;;  %v2901_v33 = vmax.f32 %v2645_v58, 0.0  ;;  %v2652_v0 = vadd.f32 %v11006_v13, %v2424_v63  ;;  %v13521_v55 = vld [vmem:[#allocation147_spill] sm:$0xff] }
 0x36f   :  { %v11168_v1 = vpop.f32.mrf.mxu0  ;;  %v11170_v6 = vpop.f32.mrf.mxu1  ;;  %5565 = vmatpush1.bf16.msra.mxu0 %v8270_v61  ;;  %5758 = vmatpush1.bf16.msra.mxu1 %v8273_v43  ;;  %v2243_v40 = vadd.f32 %v10918_v15, %v13513_v32  ;;  %13515 = vst [vmem:[#allocation81_spill] sm:$0xff] %v11176_v62  ;;  %13516 = vst [vmem:[#allocation82_spill] sm:$0xff] %v11178_v53  ;;  %v2650_v61 = vadd.f32 %v10992_v12, %v2231_v41  ;;  %v13517_v43 = vld [vmem:[#allocation145_spill] sm:$0xff]  ;;  %v2899_v32 = vmax.f32 %v2643_v21, 0.0  ;;  %v13522_v41 = vld [vmem:[#allocation12_spill] sm:$0xff] }
 0x370   :  { %13511 = vst [vmem:[#allocation72_spill] sm:$0xff] %v11168_v1  ;;  %13512 = vst [vmem:[#allocation15_spill] sm:$0xff] %v11170_v6  ;;  %5566 = vmatprep.subr.bf16.mxu0 %v8278_v37  ;;  %5759 = vmatprep.subr.bf16.mxu1 %v8281_v60  ;;  %v2239_v59 = vadd.f32 %v10892_v22, %v13517_v43  ;;  %v2642_v15 = vadd.f32 %v10992_v12, %v2227_v48  ;;  %v13519_v37 = vld [vmem:[#allocation146_spill] sm:$0xff]  ;;  %v13520_v60 = vld [vmem:[#allocation59_spill] sm:$0xff] }
 0x371   :  { %v11183_v10 = vpop.f32.mrf.mxu0  ;;  %v11185_v30 = vpop.f32.mrf.mxu1  ;;  %v2432_v36 = vadd.f32 %v13520_v60, %v13519_v37  ;;  %v2644_v49 = vadd.f32 %v11006_v13, %v2420_v25  ;;  %v2241_v31 = vadd.f32 %v13522_v41, %v13521_v55  ;;  %v8282_v43 = vld [vmem:[#allocation2 + $0x68] ss:$16 sps:$4 sm:$0xff]   ;;  %v8287_v48 = vld [vmem:[#allocation2 + $0x26c] ss:$16 sps:$4 sm:$0xff]   ;;  %v2667_v21 = vadd.f32 %v10942_v39, %v2243_v40 }
 0x372   :  { %13518 = vst [vmem:[#allocation79_spill] sm:$0xff] %v11185_v30  ;;  %v2669_v58 = vadd.f32 %v10964_v20, %v2436_v5  ;;  %v11200_v37 = vpack.c.bf16 %v2907_v38, %v2899_v32  ;;  %v11202_v25 = vpack.c.bf16 %v2909_v28, %v2901_v33  ;;  %v8285_v63 = vld [vmem:[#allocation2 + $0x268] ss:$16 sps:$4 sm:$0xff]   ;;  %v8290_v60 = vld [vmem:[#allocation2 + $0x4c] ss:$16 sps:$4 sm:$0xff]   ;;  %v2906_v55 = vmax.f32 %v2650_v61, 0.0 }
 0x373   :  { %v11194_v51 = vpop.f32.mrf.mxu0  ;;  %v11196_v22 = vpop.f32.mrf.mxu1  ;;  %5567 = vmatpush1.bf16.msra.mxu0 %v8276_v34  ;;  %5760 = vmatpush1.bf16.msra.mxu1 %v8279_v27  ;;  %v13527_v41 = vld [vmem:[#allocation143_spill] sm:$0xff]  ;;  %v2659_v1 = vadd.f32 %v10942_v39, %v2239_v59  ;;  %v2898_v38 = vmax.f32 %v2642_v15, 0.0  ;;  %v2661_v28 = vadd.f32 %v10964_v20, %v2432_v36  ;;  %v2666_v61 = vadd.f32 %v10992_v12, %v2241_v31  ;;  %v13532_v59 = vld [vmem:[#allocation148_spill] sm:$0xff] }
 0x374   :  { %13523 = vst [vmem:[#allocation83_spill] sm:$0xff] %v11194_v51  ;;  %13524 = vst [vmem:[#allocation84_spill] sm:$0xff] %v11196_v22  ;;  %5568 = vmatprep.subr.bf16.mxu0 %v8284_v29  ;;  %v13528_v6 = vld [vmem:[#allocation55_spill] sm:$0xff]  ;;  %v13529_v22 = vld [vmem:[#allocation144_spill] sm:$0xff]  ;;  %v2908_v29 = vmax.f32 %v2652_v0, 0.0  ;;  %5761 = vmatprep.subr.bf16.mxu1 %v8287_v48  ;;  %v2925_v36 = vmax.f32 %v2669_v58, 0.0 }
 0x375   :  { %13525 = vst [vmem:[#allocation93_spill] sm:$0xff] %v11200_v37  ;;  %13526 = vst [vmem:[#allocation94_spill] sm:$0xff] %v11202_v25  ;;  %v2237_v51 = vadd.f32 %v13528_v6, %v13527_v41  ;;  %v13530_v34 = vld [vmem:[#allocation11_spill] sm:$0xff]  ;;  %v11209_v30 = vpop.f32.mrf.mxu0  ;;  %v11211_v40 = vpop.f32.mrf.mxu1  ;;  %5227 = vmatmul.mubr.bf16.gmra.mxu0 %v11176_v62  ;;  %5420 = vmatmul.mubr.bf16.gmra.mxu1 %v11178_v53  ;;  %v2900_v6 = vmax.f32 %v2644_v49, 0.0  ;;  %v13533_v32 = vld [vmem:[#allocation60_spill] sm:$0xff]  ;;  %v11229_v31 = vpack.c.bf16 %v2906_v55, %v2898_v38 }
 0x376   :  { %v2430_v27 = vadd.f32 %v13530_v34, %v13529_v22  ;;  %13531 = vst [vmem:[#allocation80_spill] sm:$0xff] %v11211_v40  ;;  %v8293_v5 = vld [vmem:[#allocation2 + $0x24c] ss:$16 sps:$4 sm:$0xff]   ;;  %5236 = vmatprep.mubr.bf16.mxu0 %v11200_v37  ;;  %5429 = vmatprep.mubr.bf16.mxu1 %v11202_v25  ;;  %v2434_v33 = vadd.f32 %v13533_v32, %v13532_v59  ;;  %v8288_v15 = vld [vmem:[#allocation2 + $0x48] ss:$16 sps:$4 sm:$0xff]   ;;  %v2923_v34 = vmax.f32 %v2667_v21, 0.0 }
 0x377   :  { %v11221_v22 = vpop.f32.mrf.mxu0  ;;  %v11223_v41 = vpop.f32.mrf.mxu1  ;;  %5569 = vmatpush1.bf16.msra.mxu0 %v8282_v43  ;;  %v13536_v53 = vld [vmem:[#allocation157_spill] sm:$0xff]  ;;  %v13537_v25 = vld [vmem:[#allocation158_spill] sm:$0xff]  ;;  %5762 = vmatpush1.bf16.msra.mxu1 %v8285_v63  ;;  %13538 = vst [vmem:[#allocation87_spill] sm:$0xff] %v11229_v31  ;;  %v2658_v59 = vadd.f32 %v10992_v12, %v2237_v51  ;;  %v2915_v43 = vmax.f32 %v2659_v1, 0.0  ;;  %v13544_v55 = vld [vmem:[#allocation155_spill] sm:$0xff]  ;;  %v11250_v1 = vpack.c.bf16 %v2908_v29, %v2900_v6 }
 0x378   :  { %13534 = vst [vmem:[#allocation89_spill] sm:$0xff] %v11221_v22  ;;  %13535 = vst [vmem:[#allocation90_spill] sm:$0xff] %v11223_v41  ;;  %v2253_v37 = vadd.f32 %v10979_v18, %v13536_v53  ;;  %v2446_v49 = vadd.f32 %v10981_v8, %v13537_v25  ;;  %5570 = vmatprep.subr.bf16.mxu0 %v8290_v60  ;;  %v8291_v0 = vld [vmem:[#allocation2 + $0x248] ss:$16 sps:$4 sm:$0xff]   ;;  %v11233_v32 = vadd.f32 %v11006_v13, %v2430_v27  ;;  %v11248_v51 = vld [vmem:[%s12817_s10] sm:$0xf] }
 0x379   :  { %v11235_v48 = vpop.f32.mrf.mxu0  ;;  %v11237_v21 = vpop.f32.mrf.mxu1  ;;  %5763 = vmatprep.subr.bf16.mxu1 %v8293_v5  ;;  %v2917_v18 = vmax.f32 %v2661_v28, 0.0  ;;  %v13540_v53 = vld [vmem:[#allocation153_spill] sm:$0xff]  ;;  %v13541_v58 = vld [vmem:[#allocation66_spill] sm:$0xff]  ;;  %v2251_v38 = vadd.f32 %v10966_v19, %v13544_v55  ;;  %13545 = vst [vmem:[#allocation92_spill] sm:$0xff] %v11250_v1  ;;  %v2922_v27 = vmax.f32 %v2666_v61, 0.0  ;;  %v2668_v5 = vadd.f32 %v11006_v13, %v2434_v33  ;;  %v13546_v28 = vld [vmem:[#allocation151_spill] sm:$0xff] }
 0x37a   :  { %13539 = vst [vmem:[#allocation91_spill] sm:$0xff] %v11237_v21  ;;  %v2249_v8 = vadd.f32 %v13541_v58, %v13540_v53  ;;  %v13542_v25 = vld [vmem:[#allocation154_spill] sm:$0xff]  ;;  %v8299_v19 = vld [vmem:[#allocation2 + $0x22c] ss:$16 sps:$4 sm:$0xff]   ;;  %v2685_v55 = vadd.f32 %v10964_v20, %v2446_v49  ;;  %v11261_v21 = vpack.c.bf16 %v2923_v34, %v2915_v43  ;;  %v2914_v33 = vmax.f32 %v2658_v59, 0.0  ;;  %v13554_v22 = vld [vmem:[#allocation156_spill] sm:$0xff] }
 0x37b   :  { %v13543_v63 = vld [vmem:[#allocation22_spill] sm:$0xff]  ;;  %v11255_v53 = vpop.f32.mrf.mxu0  ;;  %v11257_v58 = vpop.f32.mrf.mxu1  ;;  %5571 = vmatpush1.bf16.msra.mxu0 %v8288_v15  ;;  %v11263_v6 = vpack.c.bf16 %v2925_v36, %v2917_v18  ;;  %5764 = vmatpush1.bf16.msra.mxu1 %v8291_v0  ;;  %v2444_v15 = vadd.f32 %v10968_v46, %v13554_v22  ;;  %v2916_v0 = vmax.f32 %v11233_v32, 0.0  ;;  %v2682_v22 = vadd.f32 %v10992_v12, %v2251_v38  ;;  %v8305_v43 = vld [vmem:[#allocation2 + $0x20c] ss:$16 sps:$4 sm:$0xff]  }
 0x37c   :  { %v2442_v60 = vadd.f32 %v13543_v63, %v13542_v25  ;;  %v13547_v62 = vld [vmem:[#allocation242_spill] sm:$0xff]  ;;  %13548 = vst [vmem:[#allocation101_spill] sm:$0xff] %v11255_v53  ;;  %13549 = vst [vmem:[#allocation102_spill] sm:$0xff] %v11257_v58  ;;  %v8296_v25 = vld [vmem:[#allocation2 + $0x2c] ss:$16 sps:$4 sm:$0xff]   ;;  %v2683_v63 = vadd.f32 %v10942_v39, %v2253_v37  ;;  %v2675_v59 = vadd.f32 %v10942_v39, %v2249_v8  ;;  %5765 = vmatprep.subr.bf16.mxu1 %v8299_v19 }
 0x37d   :  { %v2247_v41 = vadd.f32 %v13547_v62, %v13546_v28  ;;  %13550 = vst [vmem:[#allocation88_spill] sm:$0xff] %v11261_v21  ;;  %13551 = vst [vmem:[#allocation257_spill] sm:$0xff] %v11263_v6  ;;  %v8294_v29 = vld [vmem:[#allocation2 + $0x28] ss:$16 sps:$4 sm:$0xff]   ;;  %v11269_v58 = vpop.f32.mrf.mxu0  ;;  %v11271_v40 = vpop.f32.mrf.mxu1  ;;  %5237 = vmatmul.mubr.bf16.gmra.mxu0 %v11229_v31  ;;  %5430 = vmatmul.mubr.bf16.gmra.mxu1 %v11250_v1  ;;  %v8302_v37 = vld [vmem:[#allocation2 + $0xc] ss:$16 sps:$4 sm:$0xff]   ;;  %v11286_v18 = vpack.c.bf16 %v2922_v27, %v2914_v33 }
 0x37e   :  { %v8297_v61 = vld [vmem:[#allocation2 + $0x228] ss:$16 sps:$4 sm:$0xff]   ;;  %v2677_v46 = vadd.f32 %v10964_v20, %v2442_v60  ;;  %5246 = vmatprep.mubr.bf16.mxu0 %v11261_v21  ;;  %5439 = vmatprep.mubr.bf16.mxu1 %v11263_v6  ;;  %v2939_v38 = vmax.f32 %v2683_v63, 0.0  ;;  %v2941_v6 = vmax.f32 %v2685_v55, 0.0 }
 0x37f   :  { %v13552_v62 = vld [vmem:[#allocation152_spill] sm:$0xff]  ;;  %v13553_v28 = vld [vmem:[#allocation65_spill] sm:$0xff]  ;;  %v13555_v34 = vld [vmem:[#allocation254_spill] sm:$0xff]  ;;  %13557 = vst [vmem:[#allocation97_spill] sm:$0xff] %v11286_v18  ;;  %v11292_v31 = vpop.f32.mrf.mxu0  ;;  %v11294_v8 = vpop.f32.mrf.mxu1  ;;  %5572 = vmatprep.subr.bf16.mxu0 %v8296_v25  ;;  %v2674_v60 = vadd.f32 %v10992_v12, %v2247_v41  ;;  %5766 = vmatpush1.bf16.msra.mxu1 %v8297_v61 }
 0x380   :  { %v2440_v53 = vadd.f32 %v13553_v28, %v13552_v62  ;;  %v13556_v36 = vsub.s32 0, %v13555_v34  ;;  %v2924_v62 = vmax.f32 %v2668_v5, 0.0  ;;  %v13558_v28 = vld [vmem:[#allocation163_spill] sm:$0xff]  ;;  %v13559_v1 = vld [vmem:[#allocation165_spill] sm:$0xff]  ;;  %v13560_v21 = vld [vmem:[#allocation166_spill] sm:$0xff]  ;;  %5573 = vmatpush1.bf16.msra.mxu0 %v8294_v29  ;;  %v2938_v29 = vmax.f32 %v2682_v22, 0.0  ;;  %5767 = vmatprep.subr.bf16.mxu1 %v8305_v43 }
 0x381   :  { %v2263_v32 = vadd.f32 %v11035_v47, %v13559_v1  ;;  %v2456_v27 = vadd.f32 %v11037_v50, %v13560_v21  ;;  %v8300_v5 = vld [vmem:[#allocation2 + $0x8] ss:$16 sps:$4 sm:$0xff]   ;;  %v11303_v47 = vadd.f32 %v11006_v13, %v2444_v15  ;;  %v11309_v63 = vpop.f32.mrf.mxu0  ;;  %v11311_v55 = vpop.f32.mrf.mxu1  ;;  %5574 = vmatprep.subr.bf16.mxu0 %v8302_v37  ;;  %v2931_v50 = vmax.f32 %v2675_v59, 0.0  ;;  %v8308_v59 = vld [vmem:[#allocation2 + $0x1ec] ss:$16 sps:$4 sm:$0xff]  }
 0x382   :  { %v11278_v49 = vrot.slane %v11248_v51, %v13556_v36  ;;  %v2261_v36 = vadd.f32 %v11021_v3, %v13558_v28  ;;  %v11300_v3 = vadd.f32 %v11006_v13, %v2440_v53  ;;  %v13561_v1 = vld [vmem:[#allocation159_spill] sm:$0xff]  ;;  %v13562_v19 = vld [vmem:[#allocation161_spill] sm:$0xff]  ;;  %v2933_v21 = vmax.f32 %v2677_v46, 0.0  ;;  %v13563_v61 = vld [vmem:[#allocation162_spill] sm:$0xff] }
 0x383   :  { %v2257_v25 = vadd.f32 %v10994_v24, %v13561_v1  ;;  %v2259_v41 = vadd.f32 %v11010_v11, %v13562_v19  ;;  %v2452_v53 = vadd.f32 %v11012_v54, %v13563_v61  ;;  %v11315_v33 = vpack.c.bf16 %v2924_v62, %v2916_v0  ;;  %v13565_v15 = vld [vmem:[#allocation160_spill] sm:$0xff]  ;;  %v11321_v1 = vpop.f32.mrf.mxu0  ;;  %v11323_v19 = vpop.f32.mrf.mxu1 }
 0x384   :  { %v2450_v24 = vadd.f32 %v10996_v16, %v13565_v15  ;;  %v2698_v28 = vadd.f32 %v10992_v12, %v2261_v36  ;;  %v2699_v11 = vadd.f32 %v10942_v39, %v2263_v32  ;;  %v8303_v37 = vld [vmem:[#allocation2 + $0x208] ss:$16 sps:$4 sm:$0xff]   ;;  %v2930_v46 = vmax.f32 %v2674_v60, 0.0  ;;  %5575 = vmatpush1.bf16.msra.mxu0 %v8300_v5  ;;  %v8311_v16 = vld [vmem:[#allocation2 + $0x3ec] ss:$16 sps:$4 sm:$0xff]  }
 0x385   :  { %13564 = vst [vmem:[#allocation98_spill] sm:$0xff] %v11315_v33  ;;  %v2701_v22 = vadd.f32 %v10964_v20, %v2456_v27  ;;  %v11326_v54 = vpack.c.bf16 %v2939_v38, %v2931_v50  ;;  %v11328_v0 = vpack.c.bf16 %v2941_v6, %v2933_v21  ;;  %v8306_v43 = vld [vmem:[#allocation2 + $0x1e8] ss:$16 sps:$4 sm:$0xff]   ;;  %v2932_v62 = vmax.f32 %v11300_v3, 0.0  ;;  %v11333_v61 = vpop.f32.mrf.mxu0  ;;  %v11335_v15 = vpop.f32.mrf.mxu1  ;;  %5247 = vmatmul.mubr.bf16.gmra.mxu0 %v11286_v18  ;;  %v8314_v38 = vld [vmem:[#allocation2 + $0x1cc] ss:$16 sps:$4 sm:$0xff]  }
 0x386   :  { %v2690_v36 = vadd.f32 %v10992_v12, %v2257_v25  ;;  %v2691_v32 = vadd.f32 %v10942_v39, %v2259_v41  ;;  %5440 = vmatmul.mubr.bf16.gmra.mxu1 %v11315_v33  ;;  %v13568_v6 = vsub.s32 1, %v13555_v34  ;;  %v11344_v27 = vpack.c.bf16 %v2938_v29, %v2930_v46  ;;  %v13570_v25 = vld [vmem:[#allocation164_spill] sm:$0xff]  ;;  %5576 = vmatprep.subr.bf16.mxu0 %v8308_v59  ;;  %v13576_v33 = vld [vmem:[#allocation169_spill] sm:$0xff] }
 0x387   :  { %13566 = vst [vmem:[#allocation95_spill] sm:$0xff] %v11326_v54  ;;  %13567 = vst [vmem:[#allocation99_spill] sm:$0xff] %v11328_v0  ;;  %v2940_v5 = vmax.f32 %v11303_v47, 0.0  ;;  %v2693_v3 = vadd.f32 %v10964_v20, %v2452_v53  ;;  %v2454_v41 = vadd.f32 %v11023_v35, %v13570_v25  ;;  %5256 = vmatprep.mubr.bf16.mxu0 %v11326_v54  ;;  %5449 = vmatprep.mubr.bf16.mxu1 %v11328_v0  ;;  %v11357_v46 = vpop.f32.mrf.mxu0  ;;  %v11359_v47 = vpop.f32.mrf.mxu1  ;;  %v8309_v53 = vld [vmem:[#allocation2 + $0x3e8] ss:$16 sps:$4 sm:$0xff]  }
 0x388   :  { %v11342_v60 = vrot.slane %v11248_v51, %v13568_v6  ;;  %13569 = vst [vmem:[#allocation100_spill] sm:$0xff] %v11344_v27  ;;  %v11353_v50 = vadd.f32 %v11006_v13, %v2450_v24  ;;  %v2954_v21 = vmax.f32 %v2698_v28, 0.0  ;;  %v2955_v51 = vmax.f32 %v2699_v11, 0.0  ;;  %v13571_v6 = vld [vmem:[#allocation167_spill] sm:$0xff]  ;;  %13572 = vst [vmem:[#allocation109_spill] sm:$0xff] %v11359_v47  ;;  %5768 = vmatpush1.bf16.msra.mxu1 %v8303_v37  ;;  %v13574_v0 = vld [vmem:[#allocation173_spill] sm:$0xff] }
 0x389   :  { %v2267_v29 = vadd.f32 %v11048_v17, %v13571_v6  ;;  %v2957_v35 = vmax.f32 %v2701_v22, 0.0  ;;  %v13573_v25 = vld [vmem:[#allocation171_spill] sm:$0xff]  ;;  %v2273_v24 = vadd.f32 %v11087_v44, %v13574_v0  ;;  %v13575_v54 = vld [vmem:[#allocation174_spill] sm:$0xff]  ;;  %5577 = vmatpush2.bf16.msra.mxu0 %v8306_v43  ;;  %5769 = vmatprep.subr.bf16.mxu1 %v8311_v16  ;;  %v2946_v11 = vmax.f32 %v2690_v36, 0.0  ;;  %v13577_v59 = vld [vmem:[#allocation172_spill] sm:$0xff]  ;;  %v11371_v47 = vpop.f32.mrf.mxu0 }
 0x38a   :  { %v2271_v34 = vadd.f32 %v11073_v56, %v13573_v25  ;;  %v2466_v28 = vadd.f32 %v11089_v9, %v13575_v54  ;;  %v8312_v17 = vld [vmem:[#allocation2 + $0x1c8] ss:$16 sps:$4 sm:$0xff]   ;;  %v2947_v6 = vmax.f32 %v2691_v32, 0.0  ;;  %v2269_v37 = vadd.f32 %v11062_v42, %v13576_v33  ;;  %v11373_v56 = vpop.f32.mrf.mxu1  ;;  %5578 = vmatprep.subr.bf16.mxu0 %v8314_v38  ;;  %v8317_v38 = vld [vmem:[#allocation2 + $0x3cc] ss:$16 sps:$4 sm:$0xff]  }
 0x38b   :  { %v13578_v18 = vld [vmem:[#allocation73_spill] sm:$0xff]  ;;  %v11375_v44 = vpack.c.bf16 %v2940_v5, %v2932_v62  ;;  %v2949_v0 = vmax.f32 %v2693_v3, 0.0  ;;  %v2700_v9 = vadd.f32 %v11006_v13, %v2454_v41  ;;  %v13580_v54 = vld [vmem:[#allocation170_spill] sm:$0xff]  ;;  %v13581_v43 = vld [vmem:[#allocation252_spill] sm:$0xff]  ;;  %v11380_v36 = vpack.c.bf16 %v2954_v21, %v2946_v11  ;;  %v11387_v25 = vpop.f32.mrf.mxu0 }
 0x38c   :  { %v2464_v22 = vadd.f32 %v13578_v18, %v13577_v59  ;;  %v2462_v16 = vadd.f32 %v13581_v43, %v13580_v54  ;;  %v11383_v42 = vadd.f32 %v10992_v12, %v2267_v29  ;;  %v13583_v33 = vld [vmem:[#allocation168_spill] sm:$0xff]  ;;  %v11389_v59 = vpop.f32.mrf.mxu1  ;;  %v11391_v62 = vpack.c.bf16 %v2955_v51, %v2947_v6  ;;  %5770 = vmatpush2.bf16.msra.mxu1 %v8309_v53  ;;  %v8320_v5 = vld [vmem:[#allocation2 + $0x1ac] ss:$16 sps:$4 sm:$0xff]  }
 0x38d   :  { %13579 = vst [vmem:[#allocation110_spill] sm:$0xff] %v11375_v44  ;;  %13582 = vst [vmem:[#allocation96_spill] sm:$0xff] %v11380_v36  ;;  %v13584_v18 = vld [vmem:[#allocation64_spill] sm:$0xff]  ;;  %v2714_v3 = vadd.f32 %v10992_v12, %v2271_v34  ;;  %v2715_v41 = vadd.f32 %v10942_v39, %v2273_v24  ;;  %v2717_v21 = vadd.f32 %v10964_v20, %v2466_v28  ;;  %5579 = vmatpush2.bf16.msra.mxu0 %v8312_v17  ;;  %v13587_v53 = vld [vmem:[#allocation179_spill] sm:$0xff] }
 0x38e   :  { %v2460_v32 = vadd.f32 %v13584_v18, %v13583_v33  ;;  %13585 = vst [vmem:[#allocation105_spill] sm:$0xff] %v11391_v62  ;;  %v11396_v29 = vpack.c.bf16 %v2957_v35, %v2949_v0  ;;  %v8315_v11 = vld [vmem:[#allocation2 + $0x3c8] ss:$16 sps:$4 sm:$0xff]   ;;  %v2948_v43 = vmax.f32 %v11353_v50, 0.0  ;;  %v2707_v33 = vadd.f32 %v10942_v39, %v2269_v37  ;;  %v11403_v18 = vpop.f32.mrf.mxu0  ;;  %v11405_v34 = vpop.f32.mrf.mxu1  ;;  %5257 = vmatmul.mubr.bf16.gmra.mxu0 %v11344_v27  ;;  %v8323_v35 = vld [vmem:[#allocation2 + $0x3ac] ss:$16 sps:$4 sm:$0xff]  }
 0x38f   :  { %v8318_v54 = vld [vmem:[#allocation2 + $0x1a8] ss:$16 sps:$4 sm:$0xff]   ;;  %v2716_v51 = vadd.f32 %v11006_v13, %v2464_v22  ;;  %v2281_v6 = vadd.f32 %v11128_v23, %v13587_v53  ;;  %13588 = vst [vmem:[#allocation106_spill] sm:$0xff] %v11405_v34  ;;  %5450 = vmatmul.mubr.bf16.gmra.mxu1 %v11375_v44  ;;  %v2956_v24 = vmax.f32 %v2700_v9, 0.0  ;;  %v2709_v28 = vadd.f32 %v10964_v20, %v2462_v16  ;;  %v8326_v23 = vld [vmem:[#allocation2 + $0x18c] ss:$16 sps:$4 sm:$0xff]  }
 0x390   :  { %13586 = vst [vmem:[#allocation24_spill] sm:$0xff] %v11396_v29  ;;  %v13589_v50 = vld [vmem:[#allocation175_spill] sm:$0xff]  ;;  %v13590_v37 = vld [vmem:[#allocation180_spill] sm:$0xff]  ;;  %5266 = vmatprep.mubr.bf16.mxu0 %v11391_v62  ;;  %5459 = vmatprep.mubr.bf16.mxu1 %v11396_v29  ;;  %v2962_v0 = vmax.f32 %v11383_v42, 0.0  ;;  %v2708_v53 = vadd.f32 %v11006_v13, %v2460_v32  ;;  %v13591_v44 = vld [vmem:[#allocation181_spill] sm:$0xff]  ;;  %v11422_v34 = vpop.f32.mrf.mxu0 }
 0x391   :  { %v2277_v17 = vadd.f32 %v11100_v57, %v13589_v50  ;;  %v2474_v22 = vadd.f32 %v11130_v14, %v13590_v37  ;;  %v2283_v9 = vadd.f32 %v11140_v52, %v13591_v44  ;;  %v13592_v27 = vld [vmem:[#allocation182_spill] sm:$0xff]  ;;  %13593 = vst [vmem:[#allocation256_spill] sm:$0xff] %v11422_v34  ;;  %v11424_v57 = vpop.f32.mrf.mxu1  ;;  %5771 = vmatprep.subr.bf16.mxu1 %v8317_v38  ;;  %v2970_v14 = vmax.f32 %v2714_v3, 0.0  ;;  %v13595_v29 = vld [vmem:[#allocation176_spill] sm:$0xff]  ;;  %v13596_v52 = vld [vmem:[#allocation177_spill] sm:$0xff] }
 0x392   :  { %v2476_v16 = vadd.f32 %v11142_v2, %v13592_v27  ;;  %13594 = vst [vmem:[#allocation103_spill] sm:$0xff] %v11424_v57  ;;  %5580 = vmatprep.subr.bf16.mxu0 %v8320_v5  ;;  %v2971_v50 = vmax.f32 %v2715_v41, 0.0  ;;  %v2973_v37 = vmax.f32 %v2717_v21, 0.0  ;;  %v2470_v42 = vadd.f32 %v11102_v45, %v13595_v29  ;;  %5772 = vmatpush2.bf16.msra.mxu1 %v8315_v11  ;;  %v8321_v32 = vld [vmem:[#allocation2 + $0x3a8] ss:$16 sps:$4 sm:$0xff]   ;;  %v11433_v38 = vpop.f32.mrf.mxu0 }
 0x393   :  { %5581 = vmatpush2.bf16.msra.mxu0 %v8318_v54  ;;  %v2972_v62 = vmax.f32 %v2716_v51, 0.0  ;;  %v2279_v44 = vadd.f32 %v11116_v7, %v13596_v52  ;;  %v13597_v2 = vld [vmem:[#allocation178_spill] sm:$0xff]  ;;  %v13598_v27 = vld [vmem:[#allocation249_spill] sm:$0xff]  ;;  %v2730_v57 = vadd.f32 %v10992_v12, %v2281_v6  ;;  %v11435_v5 = vpop.f32.mrf.mxu1  ;;  %5773 = vmatprep.subr.bf16.mxu1 %v8323_v35  ;;  %v2963_v3 = vmax.f32 %v2707_v33, 0.0 }
 0x394   :  { %v2472_v34 = vadd.f32 %v13598_v27, %v13597_v2  ;;  %v2965_v41 = vmax.f32 %v2709_v28, 0.0  ;;  %v2722_v45 = vadd.f32 %v10992_v12, %v2277_v17  ;;  %v2732_v21 = vadd.f32 %v11006_v13, %v2474_v22  ;;  %5582 = vmatprep.subr.bf16.mxu0 %v8326_v23  ;;  %v11443_v51 = vpop.f32.mrf.mxu0  ;;  %v8324_v52 = vld [vmem:[#allocation2 + $0x188] ss:$16 sps:$4 sm:$0xff]   ;;  %v8329_v35 = vld [vmem:[#allocation2 + $0x38c] ss:$16 sps:$4 sm:$0xff]  }
 0x395   :  { %v11439_v29 = vpack.c.bf16 %v2956_v24, %v2948_v43  ;;  %v2964_v7 = vmax.f32 %v2708_v53, 0.0  ;;  %v2731_v11 = vadd.f32 %v10942_v39, %v2283_v9  ;;  %v2733_v54 = vadd.f32 %v10964_v20, %v2476_v16  ;;  %v11445_v6 = vpop.f32.mrf.mxu1  ;;  %v8327_v43 = vld [vmem:[#allocation2 + $0x388] ss:$16 sps:$4 sm:$0xff]   ;;  %v8332_v24 = vld [vmem:[#allocation2 + $0x16c] ss:$16 sps:$4 sm:$0xff]  }
 0x396   :  { %v11447_v33 = vpack.c.bf16 %v2970_v14, %v2962_v0  ;;  %v2724_v28 = vadd.f32 %v11006_v13, %v2470_v42  ;;  %v11450_v17 = vpack.c.bf16 %v2971_v50, %v2963_v3  ;;  %v11452_v22 = vpack.c.bf16 %v2973_v37, %v2965_v41  ;;  %5774 = vmatpush2.bf16.msra.mxu1 %v8321_v32  ;;  %v11458_v2 = vpop.f32.mrf.mxu0  ;;  %v8335_v14 = vld [vmem:[#allocation2 + $0x36c] ss:$16 sps:$4 sm:$0xff]   ;;  %v13608_v27 = vld [vmem:[#allocation184_spill] sm:$0xff] }
 0x397   :  { %13599 = vst [vmem:[#allocation37_spill] sm:$0xff] %v11439_v29  ;;  %v11454_v23 = vpack.c.bf16 %v2972_v62, %v2964_v7  ;;  %v2723_v53 = vadd.f32 %v10942_v39, %v2279_v44  ;;  %v2725_v9 = vadd.f32 %v10964_v20, %v2472_v34  ;;  %v2986_v16 = vmax.f32 %v2730_v57, 0.0  ;;  %13604 = vst [vmem:[#allocation117_spill] sm:$0xff] %v11458_v2  ;;  %v11460_v0 = vpop.f32.mrf.mxu1  ;;  %v13606_v42 = vld [vmem:[#allocation183_spill] sm:$0xff]  ;;  %v13609_v41 = vld [vmem:[#allocation188_spill] sm:$0xff] }
 0x398   :  { %13600 = vst [vmem:[#allocation107_spill] sm:$0xff] %v11447_v33  ;;  %13601 = vst [vmem:[#allocation34_spill] sm:$0xff] %v11450_v17  ;;  %5267 = vmatmul.mubr.bf16.gmra.mxu0 %v11380_v36  ;;  %5460 = vmatmul.mubr.bf16.gmra.mxu1 %v11439_v29  ;;  %v2978_v50 = vmax.f32 %v2722_v45, 0.0  ;;  %v2988_v37 = vmax.f32 %v2732_v21, 0.0  ;;  %v2287_v62 = vadd.f32 %v11152_v26, %v13606_v42  ;;  %v13607_v32 = vld [vmem:[#allocation187_spill] sm:$0xff]  ;;  %v2987_v34 = vmax.f32 %v2731_v11, 0.0  ;;  %v11474_v45 = vpop.f32.mrf.mxu0 }
 0x399   :  { %13602 = vst [vmem:[#allocation108_spill] sm:$0xff] %v11452_v22  ;;  %13603 = vst [vmem:[#allocation31_spill] sm:$0xff] %v11454_v23  ;;  %v2291_v44 = vadd.f32 %v11183_v10, %v13607_v32  ;;  %5276 = vmatprep.mubr.bf16.mxu0 %v11450_v17  ;;  %5469 = vmatprep.mubr.bf16.mxu1 %v11452_v22  ;;  %v2989_v57 = vmax.f32 %v2733_v54, 0.0  ;;  %v2480_v3 = vadd.f32 %v11154_v4, %v13608_v27  ;;  %v13610_v7 = vld [vmem:[#allocation79_spill] sm:$0xff]  ;;  %v11476_v21 = vpop.f32.mrf.mxu1  ;;  %v13613_v42 = vld [vmem:[#allocation185_spill] sm:$0xff] }
 0x39a   :  { %13605 = vst [vmem:[#allocation118_spill] sm:$0xff] %v11460_v0  ;;  %v2484_v29 = vadd.f32 %v13610_v7, %v13609_v41  ;;  %13611 = vst [vmem:[#allocation104_spill] sm:$0xff] %v11474_v45  ;;  %5583 = vmatpush2.bf16.msra.mxu0 %v8324_v52  ;;  %5775 = vmatprep.subr.bf16.mxu1 %v8329_v35  ;;  %v8330_v26 = vld [vmem:[#allocation2 + $0x168] ss:$16 sps:$4 sm:$0xff]   ;;  %v2980_v10 = vmax.f32 %v2724_v28, 0.0  ;;  %v2979_v41 = vmax.f32 %v2723_v53, 0.0  ;;  %v11488_v28 = vpop.f32.mrf.mxu0 }
 0x39b   :  { %13612 = vst [vmem:[#allocation38_spill] sm:$0xff] %v11476_v21  ;;  %v13614_v32 = vld [vmem:[#allocation72_spill] sm:$0xff]  ;;  %v13615_v22 = vld [vmem:[#allocation189_spill] sm:$0xff]  ;;  %v13616_v11 = vld [vmem:[#allocation83_spill] sm:$0xff]  ;;  %5776 = vmatpush2.bf16.msra.mxu1 %v8327_v43  ;;  %5584 = vmatprep.subr.bf16.mxu0 %v8332_v24  ;;  %v2981_v7 = vmax.f32 %v2725_v9, 0.0  ;;  %v11484_v2 = vpack.c.bf16 %v2986_v16, %v2978_v50  ;;  %v11490_v45 = vpop.f32.mrf.mxu1  ;;  %v2740_v53 = vadd.f32 %v11006_v13, %v2480_v3 }
 0x39c   :  { %v2289_v17 = vadd.f32 %v13614_v32, %v13613_v42  ;;  %v2293_v54 = vadd.f32 %v13616_v11, %v13615_v22  ;;  %v13617_v36 = vld [vmem:[#allocation190_spill] sm:$0xff]  ;;  %v13618_v0 = vld [vmem:[#allocation84_spill] sm:$0xff]  ;;  %v13621_v35 = vld [vmem:[#allocation15_spill] sm:$0xff]  ;;  %13622 = vst [vmem:[#allocation114_spill] sm:$0xff] %v11488_v28  ;;  %5777 = vmatprep.subr.bf16.mxu1 %v8335_v14  ;;  %v11492_v42 = vpack.c.bf16 %v2988_v37, %v2980_v10  ;;  %v11500_v16 = vpop.f32.mrf.mxu0 }
 0x39d   :  { %v2486_v4 = vadd.f32 %v13618_v0, %v13617_v36  ;;  %v8333_v27 = vld [vmem:[#allocation2 + $0x368] ss:$16 sps:$4 sm:$0xff]   ;;  %13619 = vst [vmem:[#allocation113_spill] sm:$0xff] %v11484_v2  ;;  %13623 = vst [vmem:[#allocation261_spill] sm:$0xff] %v11490_v45  ;;  %v2738_v22 = vadd.f32 %v10992_v12, %v2287_v62  ;;  %v2746_v36 = vadd.f32 %v10992_v12, %v2291_v44  ;;  %v11502_v0 = vpop.f32.mrf.mxu1  ;;  %v8338_v37 = vld [vmem:[#allocation2 + $0x14c] ss:$16 sps:$4 sm:$0xff]  }
 0x39e   :  { %v13620_v52 = vld [vmem:[#allocation186_spill] sm:$0xff]  ;;  %13624 = vst [vmem:[#allocation111_spill] sm:$0xff] %v11492_v42  ;;  %v13625_v43 = vld [vmem:[#allocation195_spill] sm:$0xff]  ;;  %v2748_v9 = vadd.f32 %v11006_v13, %v2484_v29  ;;  %v11504_v50 = vpack.c.bf16 %v2987_v34, %v2979_v41  ;;  %v11506_v14 = vpack.c.bf16 %v2989_v57, %v2981_v7  ;;  %5585 = vmatpush2.bf16.msra.mxu0 %v8330_v26  ;;  %v13629_v41 = vld [vmem:[#allocation192_spill] sm:$0xff] }
 0x39f   :  { %v2482_v21 = vadd.f32 %v13621_v35, %v13620_v52  ;;  %v2301_v24 = vadd.f32 %v11235_v48, %v13625_v43  ;;  %v8341_v62 = vld [vmem:[#allocation2 + $0x34c] ss:$16 sps:$4 sm:$0xff]   ;;  %v2739_v44 = vadd.f32 %v10942_v39, %v2289_v17  ;;  %v2747_v10 = vadd.f32 %v10942_v39, %v2293_v54  ;;  %5778 = vmatpush2.bf16.msra.mxu1 %v8333_v27  ;;  %v8336_v32 = vld [vmem:[#allocation2 + $0x148] ss:$16 sps:$4 sm:$0xff]   ;;  %v11518_v43 = vpop.f32.mrf.mxu0  ;;  %v11520_v17 = vpop.f32.mrf.mxu1 }
 0x3a0   :  { %13626 = vst [vmem:[#allocation46_spill] sm:$0xff] %v11504_v50  ;;  %13627 = vst [vmem:[#allocation115_spill] sm:$0xff] %v11506_v14  ;;  %v2749_v48 = vadd.f32 %v10964_v20, %v2486_v4  ;;  %v13628_v3 = vld [vmem:[#allocation191_spill] sm:$0xff]  ;;  %v13630_v57 = vld [vmem:[#allocation80_spill] sm:$0xff]  ;;  %5277 = vmatmul.mubr.bf16.gmra.mxu0 %v11447_v33  ;;  %5470 = vmatmul.mubr.bf16.gmra.mxu1 %v11454_v23  ;;  %v3002_v54 = vmax.f32 %v2746_v36, 0.0  ;;  %v3004_v33 = vmax.f32 %v2748_v9, 0.0 }
 0x3a1   :  { %v2297_v29 = vadd.f32 %v11209_v30, %v13628_v3  ;;  %v8339_v11 = vld [vmem:[#allocation2 + $0x348] ss:$16 sps:$4 sm:$0xff]   ;;  %v2741_v34 = vadd.f32 %v10964_v20, %v2482_v21  ;;  %v2490_v7 = vadd.f32 %v13630_v57, %v13629_v41  ;;  %13633 = vst [vmem:[#allocation116_spill] sm:$0xff] %v11518_v43  ;;  %13634 = vst [vmem:[#allocation125_spill] sm:$0xff] %v11520_v17  ;;  %v8344_v30 = vld [vmem:[#allocation2 + $0x12c] ss:$16 sps:$4 sm:$0xff]   ;;  %5286 = vmatprep.mubr.bf16.mxu0 %v11504_v50  ;;  %v11533_v36 = vpop.f32.mrf.mxu0 }
 0x3a2   :  { %v13631_v26 = vld [vmem:[#allocation193_spill] sm:$0xff]  ;;  %v2762_v4 = vadd.f32 %v10992_v12, %v2301_v24  ;;  %v13635_v27 = vld [vmem:[#allocation196_spill] sm:$0xff]  ;;  %v13636_v21 = vld [vmem:[#allocation91_spill] sm:$0xff]  ;;  %5479 = vmatprep.mubr.bf16.mxu1 %v11506_v14  ;;  %v2996_v17 = vmax.f32 %v2740_v53, 0.0  ;;  %v11535_v24 = vpop.f32.mrf.mxu1  ;;  %5586 = vmatprep.subr.bf16.mxu0 %v8338_v37  ;;  %v2995_v53 = vmax.f32 %v2739_v44, 0.0 }
 0x3a3   :  { %v13632_v52 = vld [vmem:[#allocation89_spill] sm:$0xff]  ;;  %v2494_v3 = vadd.f32 %v13636_v21, %v13635_v27  ;;  %v13639_v43 = vld [vmem:[#allocation198_spill] sm:$0xff]  ;;  %5779 = vmatprep.subr.bf16.mxu1 %v8341_v62  ;;  %v3003_v27 = vmax.f32 %v2747_v10, 0.0  ;;  %v3005_v21 = vmax.f32 %v2749_v48, 0.0  ;;  %5587 = vmatpush2.bf16.msra.mxu0 %v8336_v32  ;;  %v2997_v9 = vmax.f32 %v2741_v34, 0.0  ;;  %v11546_v37 = vpop.f32.mrf.mxu0 }
 0x3a4   :  { %v2299_v35 = vadd.f32 %v13632_v52, %v13631_v26  ;;  %v13637_v45 = vld [vmem:[#allocation197_spill] sm:$0xff]  ;;  %v2994_v52 = vmax.f32 %v2738_v22, 0.0  ;;  %v13640_v23 = vld [vmem:[#allocation102_spill] sm:$0xff]  ;;  %5780 = vmatpush2.bf16.msra.mxu1 %v8339_v11  ;;  %13643 = vst [vmem:[#allocation112_spill] sm:$0xff] %v11546_v37  ;;  %v11548_v62 = vpop.f32.mrf.mxu1  ;;  %5588 = vmatprep.subr.bf16.mxu0 %v8344_v30  ;;  %v3018_v48 = vmax.f32 %v2762_v4, 0.0  ;;  %v11554_v44 = vpack.c.bf16 %v3004_v33, %v2996_v17  ;;  %v13647_v11 = vld [vmem:[#allocation199_spill] sm:$0xff] }
 0x3a5   :  { %v13638_v41 = vld [vmem:[#allocation101_spill] sm:$0xff]  ;;  %v2496_v28 = vadd.f32 %v13640_v23, %v13639_v43  ;;  %v13642_v50 = vld [vmem:[#allocation90_spill] sm:$0xff]  ;;  %v11541_v23 = vadd.f32 %v11006_v13, %v2490_v7  ;;  %13644 = vst [vmem:[#allocation32_spill] sm:$0xff] %v11548_v62  ;;  %v2307_v34 = vadd.f32 %v11269_v58, %v13647_v11  ;;  %v13648_v7 = vld [vmem:[#allocation200_spill] sm:$0xff]  ;;  %v11568_v33 = vpack.c.bf16 %v3005_v21, %v2997_v9 }
 0x3a6   :  { %v2303_v57 = vadd.f32 %v13638_v41, %v13637_v45  ;;  %v8347_v26 = vld [vmem:[#allocation2 + $0x32c] ss:$16 sps:$4 sm:$0xff]   ;;  %v2754_v45 = vadd.f32 %v10992_v12, %v2297_v29  ;;  %v13641_v41 = vld [vmem:[#allocation194_spill] sm:$0xff]  ;;  %v11544_v43 = vadd.f32 %v10942_v39, %v2299_v35  ;;  %v11550_v10 = vpack.c.bf16 %v3002_v54, %v2994_v52  ;;  %13646 = vst [vmem:[#allocation121_spill] sm:$0xff] %v11554_v44  ;;  %v11563_v30 = vpop.f32.mrf.mxu1 }
 0x3a7   :  { %v2492_v14 = vadd.f32 %v13642_v50, %v13641_v41  ;;  %v8342_v22 = vld [vmem:[#allocation2 + $0x128] ss:$16 sps:$4 sm:$0xff]   ;;  %v2764_v50 = vadd.f32 %v11006_v13, %v2494_v3  ;;  %5781 = vmatprep.subr.bf16.mxu1 %v8347_v26  ;;  %v2765_v32 = vadd.f32 %v10964_v20, %v2496_v28  ;;  %v2500_v35 = vadd.f32 %v11271_v40, %v13648_v7  ;;  %v11561_v41 = vpop.f32.mrf.mxu0  ;;  %v8350_v4 = vld [vmem:[#allocation2 + $0x10c] ss:$16 sps:$4 sm:$0xff]  }
 0x3a8   :  { %13645 = vst [vmem:[#allocation126_spill] sm:$0xff] %v11550_v10  ;;  %v2763_v29 = vadd.f32 %v10942_v39, %v2303_v57  ;;  %v8345_v54 = vld [vmem:[#allocation2 + $0x328] ss:$16 sps:$4 sm:$0xff]   ;;  %v3010_v3 = vmax.f32 %v2754_v45, 0.0  ;;  %v11566_v26 = vpack.c.bf16 %v3003_v27, %v2995_v53  ;;  %13650 = vst [vmem:[#allocation123_spill] sm:$0xff] %v11568_v33  ;;  %5589 = vmatpush2.bf16.msra.mxu0 %v8342_v22  ;;  %v3012_v58 = vmax.f32 %v11541_v23, 0.0  ;;  %v5015_v37 = vpop.f32.mrf.mxu1 }
 0x3a9   :  { %v2757_v57 = vadd.f32 %v10964_v20, %v2492_v14  ;;  %v8348_v28 = vld [vmem:[#allocation2 + $0x108] ss:$16 sps:$4 sm:$0xff]   ;;  %v8353_v17 = vld [vmem:[#allocation2 + $0x30c] ss:$16 sps:$4 sm:$0xff]   ;;  %v3011_v40 = vmax.f32 %v11544_v43, 0.0  ;;  %v4822_v45 = vpop.f32.mrf.mxu0  ;;  %5287 = vmatmul.mubr.bf16.gmra.mxu0 %v11484_v2  ;;  %5480 = vmatmul.mubr.bf16.gmra.mxu1 %v11492_v42  ;;  %v3020_v21 = vmax.f32 %v2764_v50, 0.0  ;;  %v11588_v23 = vadd.f32 %v11006_v13, %v2500_v35 }
 0x3aa   :  { %13649 = vst [vmem:[#allocation122_spill] sm:$0xff] %v11566_v26  ;;  %v13651_v52 = vld [vmem:[#allocation201_spill] sm:$0xff]  ;;  %v13652_v7 = vld [vmem:[#allocation203_spill] sm:$0xff]  ;;  %v11578_v27 = vpack.c.bf16 %v3018_v48, %v3010_v3  ;;  %v3019_v22 = vmax.f32 %v2763_v29, 0.0  ;;  %v13654_v53 = vld [vmem:[#allocation202_spill] sm:$0xff]  ;;  %5296 = vmatprep.mubr.bf16.mxu0 %v11566_v26  ;;  %5489 = vmatprep.mubr.bf16.mxu1 %v11568_v33  ;;  %v4823_v43 = vadd.f32 %v4822_v45, %v11278_v49  ;;  %v5017_v3 = vpop.f32.mrf.mxu1 }
 0x3ab   :  { %v2309_v11 = vadd.f32 %v11292_v31, %v13651_v52  ;;  %v2311_v62 = vadd.f32 %v11309_v63, %v13652_v7  ;;  %v8356_v14 = vld [vmem:[#allocation2 + $0x4ec] ss:$16 sps:$4 sm:$0xff]   ;;  %v2502_v9 = vadd.f32 %v11294_v8, %v13654_v53  ;;  %v3021_v31 = vmax.f32 %v2765_v32, 0.0  ;;  %v4824_v48 = vpop.f32.mrf.mxu0  ;;  %5782 = vmatpush2.bf16.msra.mxu1 %v8345_v54  ;;  %5590 = vmatprep.subr.bf16.mxu0 %v8350_v4  ;;  %v8351_v50 = vld [vmem:[#allocation2 + $0x308] ss:$16 sps:$4 sm:$0xff]  }
 0x3ac   :  { %13653 = vst [vmem:[#allocation119_spill] sm:$0xff] %v11578_v27  ;;  %v11585_v63 = vadd.f32 %v10992_v12, %v2307_v34  ;;  %v3013_v29 = vmax.f32 %v2757_v57, 0.0  ;;  %v13655_v8 = vld [vmem:[#allocation204_spill] sm:$0xff]  ;;  %v13656_v7 = vld [vmem:[#allocation205_spill] sm:$0xff]  ;;  %v13657_v53 = vld [vmem:[#allocation206_spill] sm:$0xff]  ;;  %5591 = vmatpush2.bf16.msra.mxu0 %v8348_v28  ;;  %5783 = vmatprep.subr.bf16.mxu1 %v8353_v17  ;;  %v11601_v4 = vadd.f32 %v5015_v37, %v4823_v43 }
 0x3ad   :  { %v2504_v52 = vadd.f32 %v11311_v55, %v13655_v8  ;;  %v2313_v32 = vadd.f32 %v11321_v1, %v13656_v7  ;;  %v2506_v34 = vadd.f32 %v11323_v19, %v13657_v53  ;;  %v8359_v35 = vld [vmem:[#allocation2 + $0x6ec] ss:$16 sps:$4 sm:$0xff]   ;;  %v11598_v45 = vadd.f32 %v10942_v39, %v2309_v11  ;;  %v4826_v33 = vpop.f32.mrf.mxu0  ;;  %v5019_v55 = vpop.f32.mrf.mxu1  ;;  %5946 = vmatprep.subr.bf16.mxu0 %v8356_v14 }
 0x3ae   :  { %v2778_v54 = vadd.f32 %v10992_v12, %v2311_v62  ;;  %v4825_v57 = vadd.f32 %v4824_v48, %v11342_v60  ;;  %v11604_v8 = vpack.c.bf16 %v3020_v21, %v3012_v58  ;;  %v2773_v1 = vadd.f32 %v10964_v20, %v2502_v9 }
 0x3af   :  { %v4827_v19 = vadd.f32 %v4826_v33, %v11278_v49  ;;  %v11608_v28 = vpack.c.bf16 %v3019_v22, %v3011_v40  ;;  %v3026_v17 = vmax.f32 %v11585_v63, 0.0  ;;  %v3028_v11 = vmax.f32 %v11588_v23, 0.0  ;;  %v4828_v37 = vpop.f32.mrf.mxu0  ;;  %v5021_v43 = vpop.f32.mrf.mxu1  ;;  %5784 = vmatpush2.bf16.msra.mxu1 %v8351_v50  ;;  %v13661_v63 = vld [vmem:[#allocation207_spill] sm:$0xff] }
 0x3b0   :  { %13658 = vst [vmem:[#allocation124_spill] sm:$0xff] %v11604_v8  ;;  %v11612_v62 = vadd.f32 %v5017_v3, %v4825_v57  ;;  %v11614_v48 = vpack.c.bf16 %v3021_v31, %v3013_v29  ;;  %v2779_v58 = vadd.f32 %v10942_v39, %v2313_v32  ;;  %v2781_v14 = vadd.f32 %v10964_v20, %v2506_v34  ;;  %v13662_v29 = vld [vmem:[#allocation208_spill] sm:$0xff]  ;;  %v13666_v57 = vld [vmem:[#allocation214_spill] sm:$0xff] }
 0x3b1   :  { %13659 = vst [vmem:[#allocation120_spill] sm:$0xff] %v11608_v28  ;;  %v11618_v21 = vadd.f32 %v5019_v55, %v4827_v19  ;;  %v4829_v33 = vadd.f32 %v4828_v37, %v11342_v60  ;;  %6139 = vmatprep.subr.bf16.mxu1 %v8359_v35  ;;  %v3027_v40 = vmax.f32 %v11598_v45, 0.0  ;;  %v3034_v22 = vmax.f32 %v2778_v54, 0.0  ;;  %v4832_v31 = vpop.f32.mrf.mxu0  ;;  %v5025_v3 = vpop.f32.mrf.mxu1  ;;  %5297 = vmatmul.mubr.bf16.gmra.mxu0 %v11550_v10  ;;  %v13664_v34 = vld [vmem:[#allocation212_spill] sm:$0xff]  ;;  %v13665_v45 = vld [vmem:[#allocation213_spill] sm:$0xff] }
 0x3b2   :  { %13660 = vst [vmem:[#allocation44_spill] sm:$0xff] %v11614_v48  ;;  %v2780_v9 = vadd.f32 %v11006_v13, %v2504_v52  ;;  %v2317_v23 = vadd.f32 %v11333_v61, %v13661_v63  ;;  %5490 = vmatmul.mubr.bf16.gmra.mxu1 %v11554_v44  ;;  %v3029_v50 = vmax.f32 %v2773_v1, 0.0  ;;  %v2510_v7 = vadd.f32 %v11335_v15, %v13662_v29  ;;  %v13663_v52 = vld [vmem:[#allocation211_spill] sm:$0xff]  ;;  %v13669_v29 = vld [vmem:[#allocation210_spill] sm:$0xff] }
 0x3b3   :  { %v11629_v32 = vadd.f32 %v5021_v43, %v4829_v33  ;;  %v4833_v53 = vadd.f32 %v4832_v31, %v11278_v49  ;;  %5306 = vmatprep.mubr.bf16.mxu0 %v11608_v28  ;;  %5499 = vmatprep.mubr.bf16.mxu1 %v11614_v48  ;;  %v2321_v61 = vadd.f32 %v11371_v47, %v13663_v52  ;;  %v4834_v55 = vpop.f32.mrf.mxu0  ;;  %v5027_v1 = vpop.f32.mrf.mxu1  ;;  %v3035_v19 = vmax.f32 %v2779_v58, 0.0  ;;  %v13668_v31 = vld [vmem:[#allocation209_spill] sm:$0xff] }
 0x3b4   :  { %v2514_v35 = vadd.f32 %v11373_v56, %v13664_v34  ;;  %v2323_v54 = vadd.f32 %v11387_v25, %v13665_v45  ;;  %v2516_v15 = vadd.f32 %v11389_v59, %v13666_v57  ;;  %v3037_v37 = vmax.f32 %v2781_v14, 0.0  ;;  %v13670_v52 = vld [vmem:[#allocation109_spill] sm:$0xff] }
 0x3b5   :  { %v11642_v43 = vadd.f32 %v5025_v3, %v4833_v53  ;;  %v4835_v33 = vadd.f32 %v4834_v55, %v11342_v60  ;;  %v11645_v63 = vpack.c.bf16 %v3034_v22, %v3026_v17  ;;  %v3036_v47 = vmax.f32 %v2780_v9, 0.0  ;;  %v4836_v34 = vpop.f32.mrf.mxu0  ;;  %v5029_v45 = vpop.f32.mrf.mxu1 }
 0x3b6   :  { %v2319_v56 = vadd.f32 %v11357_v46, %v13668_v31  ;;  %v2512_v25 = vadd.f32 %v13670_v52, %v13669_v29  ;;  %v2786_v59 = vadd.f32 %v10992_v12, %v2317_v23  ;;  %v2788_v58 = vadd.f32 %v11006_v13, %v2510_v7 }
 0x3b7   :  { %13667 = vst [vmem:[#allocation133_spill] sm:$0xff] %v11645_v63  ;;  %v11653_v14 = vadd.f32 %v5027_v1, %v4835_v33  ;;  %v4837_v3 = vadd.f32 %v4836_v34, %v11278_v49  ;;  %v2794_v17 = vadd.f32 %v10992_v12, %v2321_v61  ;;  %v2796_v22 = vadd.f32 %v11006_v13, %v2514_v35  ;;  %v4838_v53 = vpop.f32.mrf.mxu0  ;;  %v5031_v57 = vpop.f32.mrf.mxu1 }
 0x3b8   :  { %v2795_v9 = vadd.f32 %v10942_v39, %v2323_v54  ;;  %v2797_v46 = vadd.f32 %v10964_v20, %v2516_v15  ;;  %v4839_v23 = vadd.f32 %v4838_v53, %v11342_v60  ;;  %v11663_v31 = vpack.c.bf16 %v3035_v19, %v3027_v40 }
 0x3b9   :  { %v11660_v55 = vadd.f32 %v5029_v45, %v4837_v3  ;;  %v11665_v7 = vpack.c.bf16 %v3037_v37, %v3029_v50  ;;  %v11667_v1 = vpack.c.bf16 %v3036_v47, %v3028_v11  ;;  %v2787_v61 = vadd.f32 %v10942_v39, %v2319_v56  ;;  %v4842_v33 = vpop.f32.mrf.mxu0  ;;  %v5035_v54 = vpop.f32.mrf.mxu1  ;;  %5307 = vmatmul.mubr.bf16.gmra.mxu0 %v11578_v27  ;;  %v13675_v45 = vld [vmem:[#allocation222_spill] sm:$0xff]  ;;  %v13682_v27 = vld [vmem:[#allocation103_spill] sm:$0xff] }
 0x3ba   :  { %13671 = vst [vmem:[#allocation134_spill] sm:$0xff] %v11663_v31  ;;  %v2789_v35 = vadd.f32 %v10964_v20, %v2512_v25  ;;  %5500 = vmatmul.mubr.bf16.gmra.mxu1 %v11604_v8  ;;  %v3042_v15 = vmax.f32 %v2786_v59, 0.0  ;;  %v3044_v29 = vmax.f32 %v2788_v58, 0.0  ;;  %v11673_v52 = vadd.f32 %v5031_v57, %v4839_v23  ;;  %5316 = vmatprep.mubr.bf16.mxu0 %v11663_v31  ;;  %v13674_v25 = vld [vmem:[#allocation221_spill] sm:$0xff]  ;;  %v13676_v23 = vld [vmem:[#allocation215_spill] sm:$0xff]  ;;  %v13679_v31 = vld [vmem:[#allocation216_spill] sm:$0xff] }
 0x3bb   :  { %13672 = vst [vmem:[#allocation129_spill] sm:$0xff] %v11665_v7  ;;  %13673 = vst [vmem:[#allocation130_spill] sm:$0xff] %v11667_v1  ;;  %v4843_v40 = vadd.f32 %v4842_v33, %v11278_v49  ;;  %5509 = vmatprep.mubr.bf16.mxu1 %v11665_v7  ;;  %v3050_v11 = vmax.f32 %v2794_v17, 0.0  ;;  %v3052_v50 = vmax.f32 %v2796_v22, 0.0  ;;  %v3051_v19 = vmax.f32 %v2795_v9, 0.0  ;;  %v4844_v47 = vpop.f32.mrf.mxu0  ;;  %v5037_v56 = vpop.f32.mrf.mxu1  ;;  %v13677_v22 = vld [vmem:[#allocation217_spill] sm:$0xff] }
 0x3bc   :  { %v3053_v37 = vmax.f32 %v2797_v46, 0.0  ;;  %v2333_v34 = vadd.f32 %v11443_v51, %v13674_v25  ;;  %v2526_v59 = vadd.f32 %v11445_v6, %v13675_v45  ;;  %v4845_v3 = vadd.f32 %v4844_v47, %v11342_v60  ;;  %v13678_v9 = vld [vmem:[#allocation256_spill] sm:$0xff]  ;;  %v13680_v8 = vld [vmem:[#allocation106_spill] sm:$0xff] }
 0x3bd   :  { %v11682_v58 = vadd.f32 %v5035_v54, %v4843_v40  ;;  %v3043_v53 = vmax.f32 %v2787_v61, 0.0  ;;  %v3045_v57 = vmax.f32 %v2789_v35, 0.0  ;;  %v2327_v17 = vadd.f32 %v11403_v18, %v13676_v23  ;;  %v4846_v33 = vpop.f32.mrf.mxu0  ;;  %v5039_v7 = vpop.f32.mrf.mxu1  ;;  %v13681_v25 = vld [vmem:[#allocation218_spill] sm:$0xff] }
 0x3be   :  { %v2329_v46 = vadd.f32 %v13678_v9, %v13677_v22  ;;  %v2520_v51 = vadd.f32 %v13680_v8, %v13679_v31  ;;  %v2522_v6 = vadd.f32 %v13682_v27, %v13681_v25  ;;  %v11693_v54 = vadd.f32 %v5037_v56, %v4845_v3 }
 0x3bf   :  { %v4847_v40 = vadd.f32 %v4846_v33, %v11278_v49  ;;  %v11696_v61 = vpack.c.bf16 %v3050_v11, %v3042_v15  ;;  %v11698_v35 = vpack.c.bf16 %v3052_v50, %v3044_v29  ;;  %v4848_v18 = vpop.f32.mrf.mxu0  ;;  %v5041_v47 = vpop.f32.mrf.mxu1  ;;  %v11700_v45 = vpack.c.bf16 %v3051_v19, %v3043_v53  ;;  %v13687_v15 = vld [vmem:[#allocation219_spill] sm:$0xff]  ;;  %v13688_v11 = vld [vmem:[#allocation220_spill] sm:$0xff] }
 0x3c0   :  { %v11702_v23 = vpack.c.bf16 %v3053_v37, %v3045_v57  ;;  %v2811_v22 = vadd.f32 %v10942_v39, %v2333_v34  ;;  %v2813_v8 = vadd.f32 %v10964_v20, %v2526_v59  ;;  %v4849_v27 = vadd.f32 %v4848_v18, %v11342_v60  ;;  %v13689_v59 = vld [vmem:[#allocation229_spill] sm:$0xff]  ;;  %v13690_v57 = vld [vmem:[#allocation230_spill] sm:$0xff] }
 0x3c1   :  { %13683 = vst [vmem:[#allocation131_spill] sm:$0xff] %v11696_v61  ;;  %13684 = vst [vmem:[#allocation132_spill] sm:$0xff] %v11698_v35  ;;  %v11706_v31 = vadd.f32 %v5039_v7, %v4847_v40  ;;  %v2803_v56 = vadd.f32 %v10942_v39, %v2329_v46  ;;  %v2331_v29 = vadd.f32 %v11433_v38, %v13687_v15  ;;  %v4852_v19 = vpop.f32.mrf.mxu0  ;;  %v5045_v3 = vpop.f32.mrf.mxu1  ;;  %5317 = vmatmul.mubr.bf16.gmra.mxu0 %v11645_v63  ;;  %v13710_v63 = vld [vmem:[#allocation234_spill] sm:$0xff] }
 0x3c2   :  { %13685 = vst [vmem:[#allocation127_spill] sm:$0xff] %v11700_v45  ;;  %13686 = vst [vmem:[#allocation128_spill] sm:$0xff] %v11702_v23  ;;  %v2524_v50 = vadd.f32 %v11435_v5, %v13688_v11  ;;  %5510 = vmatmul.mubr.bf16.gmra.mxu1 %v11667_v1  ;;  %v2805_v37 = vadd.f32 %v10964_v20, %v2522_v6  ;;  %v11717_v7 = vadd.f32 %v5041_v47, %v4849_v27  ;;  %v13691_v27 = vld [vmem:[#allocation225_spill] sm:$0xff]  ;;  %v13693_v11 = vld [vmem:[#allocation226_spill] sm:$0xff] }
 0x3c3   :  { %v4853_v34 = vadd.f32 %v4852_v19, %v11278_v49  ;;  %5326 = vmatprep.mubr.bf16.mxu0 %v11700_v45  ;;  %5519 = vmatprep.mubr.bf16.mxu1 %v11702_v23  ;;  %v2802_v38 = vadd.f32 %v10992_v12, %v2327_v17  ;;  %v2804_v5 = vadd.f32 %v11006_v13, %v2520_v51  ;;  %v4854_v46 = vpop.f32.mrf.mxu0  ;;  %v5047_v33 = vpop.f32.mrf.mxu1  ;;  %v3067_v25 = vmax.f32 %v2811_v22, 0.0  ;;  %v13692_v51 = vld [vmem:[#allocation104_spill] sm:$0xff]  ;;  %v13705_v1 = vld [vmem:[#allocation237_spill] sm:$0xff] }
 0x3c4   :  { %v2343_v53 = vadd.f32 %v11500_v16, %v13689_v59  ;;  %v2536_v9 = vadd.f32 %v11502_v0, %v13690_v57  ;;  %v3069_v6 = vmax.f32 %v2813_v8, 0.0  ;;  %v4855_v18 = vadd.f32 %v4854_v46, %v11342_v60  ;;  %v13694_v16 = vld [vmem:[#allocation38_spill] sm:$0xff] }
 0x3c5   :  { %v11728_v40 = vadd.f32 %v5045_v3, %v4853_v34  ;;  %v2810_v47 = vadd.f32 %v10992_v12, %v2331_v29  ;;  %v2812_v17 = vadd.f32 %v11006_v13, %v2524_v50  ;;  %v2339_v15 = vadd.f32 %v13692_v51, %v13691_v27  ;;  %v4856_v59 = vpop.f32.mrf.mxu0  ;;  %v5049_v0 = vpop.f32.mrf.mxu1 }
 0x3c6   :  { %v2532_v19 = vadd.f32 %v13694_v16, %v13693_v11  ;;  %v3059_v57 = vmax.f32 %v2803_v56, 0.0  ;;  %v3061_v23 = vmax.f32 %v2805_v37, 0.0  ;;  %v11737_v22 = vadd.f32 %v5047_v33, %v4855_v18  ;;  %v13697_v33 = vld [vmem:[#allocation223_spill] sm:$0xff]  ;;  %v13698_v18 = vld [vmem:[#allocation117_spill] sm:$0xff] }
 0x3c7   :  { %v4857_v8 = vadd.f32 %v4856_v59, %v11278_v49  ;;  %v3058_v3 = vmax.f32 %v2802_v38, 0.0  ;;  %v3060_v34 = vmax.f32 %v2804_v5, 0.0  ;;  %v2827_v29 = vadd.f32 %v10942_v39, %v2343_v53  ;;  %v4858_v46 = vpop.f32.mrf.mxu0  ;;  %v5051_v45 = vpop.f32.mrf.mxu1 }
 0x3c8   :  { %v2829_v50 = vadd.f32 %v10964_v20, %v2536_v9  ;;  %v4859_v51 = vadd.f32 %v4858_v46, %v11342_v60  ;;  %v11745_v11 = vpack.c.bf16 %v3067_v25, %v3059_v57  ;;  %v11747_v56 = vpack.c.bf16 %v3069_v6, %v3061_v23  ;;  %v13700_v25 = vld [vmem:[#allocation118_spill] sm:$0xff]  ;;  %v13704_v46 = vld [vmem:[#allocation261_spill] sm:$0xff] }
 0x3c9   :  { %v11742_v27 = vadd.f32 %v5049_v0, %v4857_v8  ;;  %v3066_v37 = vmax.f32 %v2810_v47, 0.0  ;;  %v2337_v16 = vadd.f32 %v13698_v18, %v13697_v33  ;;  %v2819_v38 = vadd.f32 %v10942_v39, %v2339_v15  ;;  %v4862_v53 = vpop.f32.mrf.mxu0  ;;  %v5055_v9 = vpop.f32.mrf.mxu1  ;;  %5327 = vmatmul.mubr.bf16.gmra.mxu0 %v11696_v61  ;;  %v13699_v0 = vld [vmem:[#allocation224_spill] sm:$0xff]  ;;  %v13701_v47 = vld [vmem:[#allocation227_spill] sm:$0xff]  ;;  %v13702_v15 = vld [vmem:[#allocation114_spill] sm:$0xff] }
 0x3ca   :  { %13695 = vst [vmem:[#allocation141_spill] sm:$0xff] %v11745_v11  ;;  %13696 = vst [vmem:[#allocation142_spill] sm:$0xff] %v11747_v56  ;;  %v2821_v5 = vadd.f32 %v10964_v20, %v2532_v19  ;;  %5520 = vmatmul.mubr.bf16.gmra.mxu1 %v11698_v35  ;;  %v3068_v59 = vmax.f32 %v2812_v17, 0.0  ;;  %v2530_v57 = vadd.f32 %v13700_v25, %v13699_v0  ;;  %5336 = vmatprep.mubr.bf16.mxu0 %v11745_v11  ;;  %v13703_v8 = vld [vmem:[#allocation228_spill] sm:$0xff]  ;;  %v13708_v11 = vld [vmem:[#allocation233_spill] sm:$0xff] }
 0x3cb   :  { %v11757_v23 = vadd.f32 %v5051_v45, %v4859_v51  ;;  %v4863_v6 = vadd.f32 %v4862_v53, %v11278_v49  ;;  %5529 = vmatprep.mubr.bf16.mxu1 %v11747_v56  ;;  %v2341_v19 = vadd.f32 %v13702_v15, %v13701_v47  ;;  %v2534_v33 = vadd.f32 %v13704_v46, %v13703_v8  ;;  %v4864_v17 = vpop.f32.mrf.mxu0  ;;  %v5057_v61 = vpop.f32.mrf.mxu1  ;;  %v13706_v51 = vld [vmem:[#allocation238_spill] sm:$0xff] }
 0x3cc   :  { %v3083_v18 = vmax.f32 %v2827_v29, 0.0  ;;  %v3085_v35 = vmax.f32 %v2829_v50, 0.0  ;;  %v2353_v45 = vadd.f32 %v11561_v41, %v13705_v1  ;;  %v2546_v53 = vadd.f32 %v11563_v30, %v13706_v51 }
 0x3cd   :  { %v11770_v0 = vadd.f32 %v5055_v9, %v4863_v6  ;;  %v4865_v25 = vadd.f32 %v4864_v17, %v11342_v60  ;;  %v11773_v56 = vpack.c.bf16 %v3066_v37, %v3058_v3  ;;  %v3075_v47 = vmax.f32 %v2819_v38, 0.0  ;;  %v4866_v50 = vpop.f32.mrf.mxu0  ;;  %v5059_v8 = vpop.f32.mrf.mxu1 }
 0x3ce   :  { %v3077_v15 = vmax.f32 %v2821_v5, 0.0  ;;  %v2349_v29 = vadd.f32 %v11533_v36, %v13708_v11  ;;  %v11777_v46 = vpack.c.bf16 %v3068_v59, %v3060_v34  ;;  %v2542_v41 = vadd.f32 %v11535_v24, %v13710_v63 }
 0x3cf   :  { %13707 = vst [vmem:[#allocation137_spill] sm:$0xff] %v11773_v56  ;;  %v11781_v1 = vadd.f32 %v5057_v61, %v4865_v25  ;;  %v4867_v30 = vadd.f32 %v4866_v50, %v11278_v49  ;;  %v2826_v9 = vadd.f32 %v10992_v12, %v2341_v19  ;;  %v2828_v3 = vadd.f32 %v11006_v13, %v2534_v33  ;;  %v4868_v37 = vpop.f32.mrf.mxu0  ;;  %v5061_v38 = vpop.f32.mrf.mxu1  ;;  %v13716_v25 = vld [vmem:[#allocation32_spill] sm:$0xff] }
 0x3d0   :  { %13709 = vst [vmem:[#allocation138_spill] sm:$0xff] %v11777_v46  ;;  %v11786_v5 = vpack.c.bf16 %v3083_v18, %v3075_v47  ;;  %v11788_v36 = vpack.c.bf16 %v3085_v35, %v3077_v15  ;;  %v2843_v34 = vadd.f32 %v10942_v39, %v2353_v45  ;;  %v2845_v11 = vadd.f32 %v10964_v20, %v2546_v53  ;;  %v13713_v45 = vld [vmem:[#allocation235_spill] sm:$0xff]  ;;  %v13715_v53 = vld [vmem:[#allocation236_spill] sm:$0xff] }
 0x3d1   :  { %v11792_v59 = vadd.f32 %v5059_v8, %v4867_v30  ;;  %v4869_v24 = vadd.f32 %v4868_v37, %v11342_v60  ;;  %v2818_v63 = vadd.f32 %v10992_v12, %v2337_v16  ;;  %v2820_v61 = vadd.f32 %v11006_v13, %v2530_v57  ;;  %v4872_v19 = vpop.f32.mrf.mxu0  ;;  %v5065_v33 = vpop.f32.mrf.mxu1  ;;  %5337 = vmatmul.mubr.bf16.gmra.mxu0 %v11773_v56 }
 0x3d2   :  { %13711 = vst [vmem:[#allocation139_spill] sm:$0xff] %v11786_v5  ;;  %13712 = vst [vmem:[#allocation135_spill] sm:$0xff] %v11788_v36  ;;  %v2835_v6 = vadd.f32 %v10942_v39, %v2349_v29  ;;  %5530 = vmatmul.mubr.bf16.gmra.mxu1 %v11777_v46  ;;  %v2837_v35 = vadd.f32 %v10964_v20, %v2542_v41  ;;  %v4873_v17 = vadd.f32 %v4872_v19, %v11278_v49  ;;  %v13714_v39 = vld [vmem:[#allocation112_spill] sm:$0xff]  ;;  %v13720_v19 = vld [vmem:[#allocation125_spill] sm:$0xff] }
 0x3d3   :  { %v11801_v18 = vadd.f32 %v5061_v38, %v4869_v24  ;;  %5346 = vmatprep.mubr.bf16.mxu0 %v11786_v5  ;;  %5539 = vmatprep.mubr.bf16.mxu1 %v11788_v36  ;;  %v3082_v16 = vmax.f32 %v2826_v9, 0.0  ;;  %v3084_v57 = vmax.f32 %v2828_v3, 0.0  ;;  %v2351_v51 = vadd.f32 %v13714_v39, %v13713_v45  ;;  %v4874_v15 = vpop.f32.mrf.mxu0  ;;  %v5067_v29 = vpop.f32.mrf.mxu1  ;;  %v13717_v38 = vld [vmem:[#allocation231_spill] sm:$0xff]  ;;  %v13718_v24 = vld [vmem:[#allocation116_spill] sm:$0xff] }
 0x3d4   :  { %v2544_v47 = vadd.f32 %v13716_v25, %v13715_v53  ;;  %v3099_v50 = vmax.f32 %v2843_v34, 0.0  ;;  %v3101_v20 = vmax.f32 %v2845_v11, 0.0  ;;  %v11810_v8 = vadd.f32 %v5065_v33, %v4873_v17  ;;  %v13719_v3 = vld [vmem:[#allocation232_spill] sm:$0xff] }
 0x3d5   :  { %v4875_v41 = vadd.f32 %v4874_v15, %v11342_v60  ;;  %v3074_v30 = vmax.f32 %v2818_v63, 0.0  ;;  %v3076_v37 = vmax.f32 %v2820_v61, 0.0  ;;  %v2347_v9 = vadd.f32 %v13718_v24, %v13717_v38  ;;  %v4876_v45 = vpop.f32.mrf.mxu0  ;;  %v5069_v39 = vpop.f32.mrf.mxu1 }
 0x3d6   :  { %v2540_v36 = vadd.f32 %v13720_v19, %v13719_v3  ;;  %v3091_v5 = vmax.f32 %v2835_v6, 0.0  ;;  %v3093_v53 = vmax.f32 %v2837_v35, 0.0  ;;  %v4877_v34 = vadd.f32 %v4876_v45, %v11278_v49 }
 0x3d7   :  { %v11817_v25 = vadd.f32 %v5067_v29, %v4875_v41  ;;  %v11820_v11 = vpack.c.bf16 %v3082_v16, %v3074_v30  ;;  %v11822_v33 = vpack.c.bf16 %v3084_v57, %v3076_v37  ;;  %v2842_v63 = vadd.f32 %v10992_v12, %v2351_v51  ;;  %v4878_v17 = vpop.f32.mrf.mxu0  ;;  %v5071_v15 = vpop.f32.mrf.mxu1 }
 0x3d8   :  { %v2844_v61 = vadd.f32 %v11006_v13, %v2544_v47  ;;  %v11826_v38 = vadd.f32 %v5069_v39, %v4877_v34  ;;  %v4879_v24 = vadd.f32 %v4878_v17, %v11342_v60  ;;  %v11829_v6 = vpack.c.bf16 %v3099_v50, %v3091_v5 }
 0x3d9   :  { %13721 = vst [vmem:[#allocation136_spill] sm:$0xff] %v11820_v11  ;;  %13722 = vst [vmem:[#allocation61_spill] sm:$0xff] %v11822_v33  ;;  %v11831_v35 = vpack.c.bf16 %v3101_v20, %v3093_v53  ;;  %v2834_v29 = vadd.f32 %v10992_v12, %v2347_v9  ;;  %v2836_v16 = vadd.f32 %v11006_v13, %v2540_v36  ;;  %v4882_v57 = vpop.f32.mrf.mxu0  ;;  %v5075_v41 = vpop.f32.mrf.mxu1  ;;  %5347 = vmatmul.mubr.bf16.gmra.mxu0 %v11820_v11 }
 0x3da   :  { %13723 = vst [vmem:[#allocation140_spill] sm:$0xff] %v11829_v6  ;;  %5540 = vmatmul.mubr.bf16.gmra.mxu1 %v11822_v33  ;;  %v11837_v51 = vadd.f32 %v5071_v15, %v4879_v24  ;;  %v4883_v47 = vadd.f32 %v4882_v57, %v11278_v49  ;;  %5356 = vmatprep.mubr.bf16.mxu0 %v11829_v6  ;;  %v3098_v5 = vmax.f32 %v2842_v63, 0.0  ;;  %v3100_v50 = vmax.f32 %v2844_v61, 0.0  ;;  %v13727_v57 = vld [vmem:[#allocation262_spill] sm:$0xff] }
 0x3db   :  { %13724 = vst [vmem:[#allocation149_spill] sm:$0xff] %v11831_v35  ;;  %5549 = vmatprep.mubr.bf16.mxu1 %v11831_v35  ;;  %v4884_v20 = vpop.f32.mrf.mxu0  ;;  %v5077_v12 = vpop.f32.mrf.mxu1  ;;  %v3090_v36 = vmax.f32 %v2834_v29, 0.0  ;;  %v3092_v37 = vmax.f32 %v2836_v16, 0.0  ;;  %v8368_v35 = vld [vmem:[#allocation2 + $0x4ac] ss:$16 sps:$4 sm:$0xff]  }
 0x3dc   :  { %v11842_v30 = vadd.f32 %v5075_v41, %v4883_v47  ;;  %v4885_v13 = vadd.f32 %v4884_v20, %v11342_v60  ;;  %v13728_v41 = vld [vmem:[#allocation263_spill] sm:$0xff] }
 0x3dd   :  { %v4886_v9 = vpop.f32.mrf.mxu0  ;;  %v5079_v3 = vpop.f32.mrf.mxu1  ;;  %v11848_v39 = vpack.c.bf16 %v3098_v5, %v3090_v36  ;;  %v11850_v53 = vpack.c.bf16 %v3100_v50, %v3092_v37  ;;  %v8369_v33 = vld [vmem:[#allocation2 + $0x6a8] ss:$16 sps:$4 sm:$0xff]  }
 0x3de   :  { %v11845_v19 = vadd.f32 %v5077_v12, %v4885_v13  ;;  %v4887_v45 = vadd.f32 %v4886_v9, %v11278_v49  ;;  %v8354_v9 = vld [vmem:[#allocation2 + $0x4e8] ss:$16 sps:$4 sm:$0xff]  }
 0x3df   :  { %13725 = vst [vmem:[#allocation150_spill] sm:$0xff] %v11848_v39  ;;  %13726 = vst [vmem:[#allocation145_spill] sm:$0xff] %v11850_v53  ;;  %v4888_v34 = vpop.f32.mrf.mxu0  ;;  %v5081_v63 = vpop.f32.mrf.mxu1 }
 0x3e0   :  { %v11852_v61 = vadd.f32 %v5079_v3, %v4887_v45  ;;  %v4889_v17 = vadd.f32 %v4888_v34, %v11342_v60  ;;  %v8357_v34 = vld [vmem:[#allocation2 + $0x6e8] ss:$16 sps:$4 sm:$0xff]  }
 0x3e1   :  { %v4892_v15 = vpop.f32.mrf.mxu0  ;;  %v5085_v24 = vpop.f32.mrf.mxu1  ;;  %5357 = vmatmul.mubr.bf16.gmra.mxu0 %v11848_v39  ;;  %v8363_v39 = vld [vmem:[#allocation2 + $0x6c8] ss:$16 sps:$4 sm:$0xff]  }
 0x3e2   :  { %5550 = vmatmul.mubr.bf16.gmra.mxu1 %v11850_v53  ;;  %v11857_v29 = vadd.f32 %v5081_v63, %v4889_v17  ;;  %v4893_v16 = vadd.f32 %v4892_v15, %v11278_v49  ;;  %5592 = vmatprep.mubr.bf16.mxu0 %v13727_v57  ;;  %v8362_v15 = vld [vmem:[#allocation2 + $0x4cc] ss:$16 sps:$4 sm:$0xff]   ;;  %v8360_v53 = vld [vmem:[#allocation2 + $0x4c8] ss:$16 sps:$4 sm:$0xff]  }
 0x3e3   :  { %5785 = vmatprep.mubr.bf16.mxu1 %v13728_v41  ;;  %v4894_v47 = vpop.f32.mrf.mxu0  ;;  %v5087_v5 = vpop.f32.mrf.mxu1  ;;  %v8365_v57 = vld [vmem:[#allocation2 + $0x6cc] ss:$16 sps:$4 sm:$0xff]   ;;  %v13729_v41 = vld [vmem:[#allocation264_spill] sm:$0xff] }
 0x3e4   :  { %v11862_v50 = vadd.f32 %v5085_v24, %v4893_v16  ;;  %v4895_v20 = vadd.f32 %v4894_v47, %v11342_v60  ;;  %v13730_v47 = vld [vmem:[#allocation265_spill] sm:$0xff] }
 0x3e5   :  { %v4896_v12 = vpop.f32.mrf.mxu0  ;;  %v5089_v13 = vpop.f32.mrf.mxu1 }
 0x3e6   :  { %v11865_v36 = vadd.f32 %v5087_v5, %v4895_v20  ;;  %v4897_v37 = vadd.f32 %v4896_v12, %v11278_v49  ;;  %v13731_v12 = vld [vmem:[#allocation266_spill] sm:$0xff] }
 0x3e7   :  { %v4898_v3 = vpop.f32.mrf.mxu0  ;;  %v5091_v45 = vpop.f32.mrf.mxu1 }
 0x3e8   :  { %v11868_v63 = vadd.f32 %v5089_v13, %v4897_v37  ;;  %v4899_v17 = vadd.f32 %v4898_v3, %v11342_v60  ;;  %v13732_v13 = vld [vmem:[#allocation267_spill] sm:$0xff] }
 0x3e9   :  { %v4902_v24 = vpop.f32.mrf.mxu0  ;;  %v5095_v16 = vpop.f32.mrf.mxu1  ;;  %5593 = vmatmul.mubr.bf16.vlgmr.msra.gmra.mxu0 %v13729_v41 }
 0x3ea   :  { %5786 = vmatmul.mubr.bf16.vlgmr.msra.gmra.mxu1 %v13730_v47  ;;  %v11873_v5 = vadd.f32 %v5091_v45, %v4899_v17  ;;  %v4903_v20 = vadd.f32 %v4902_v24, %v11278_v49  ;;  %5947 = vmatpush1.bf16.msra.mxu0 %v8354_v9  ;;  %v8371_v45 = vld [vmem:[#allocation2 + $0x6ac] ss:$16 sps:$4 sm:$0xff]  }
 0x3eb   :  { %5602 = vmatprep.mubr.bf16.mxu0 %v13731_v12  ;;  %5795 = vmatprep.mubr.bf16.mxu1 %v13732_v13  ;;  %v4904_v37 = vpop.f32.mrf.mxu0  ;;  %v5097_v3 = vpop.f32.mrf.mxu1 }
 0x3ec   :  { %6140 = vmatpush1.bf16.msra.mxu1 %v8357_v34  ;;  %v11878_v6 = vadd.f32 %v5095_v16, %v4903_v20  ;;  %v4905_v41 = vadd.f32 %v4904_v37, %v11342_v60  ;;  %5948 = vmatprep.subr.bf16.mxu0 %v8362_v15  ;;  %v8366_v34 = vld [vmem:[#allocation2 + $0x4a8] ss:$16 sps:$4 sm:$0xff]   ;;  %v8374_v15 = vld [vmem:[#allocation2 + $0x48c] ss:$16 sps:$4 sm:$0xff]  }
 0x3ed   :  { %6141 = vmatprep.subr.bf16.mxu1 %v8365_v57  ;;  %v4906_v17 = vpop.f32.mrf.mxu0  ;;  %v5099_v24 = vpop.f32.mrf.mxu1  ;;  %v8377_v57 = vld [vmem:[#allocation2 + $0x68c] ss:$16 sps:$4 sm:$0xff]  }
 0x3ee   :  { %v11881_v9 = vadd.f32 %v5097_v3, %v4905_v41  ;;  %v4907_v47 = vadd.f32 %v4906_v17, %v11278_v49  ;;  %5949 = vmatpush1.bf16.msra.mxu0 %v8360_v53  ;;  %v13733_v3 = vld [vmem:[#allocation14_spill] sm:$0xff]  ;;  %v13734_v41 = vld [vmem:[#allocation245_spill] sm:$0xff] }
 0x3ef   :  { %v4908_v12 = vpop.f32.mrf.mxu0  ;;  %v5101_v13 = vpop.f32.mrf.mxu1  ;;  %5950 = vmatprep.subr.bf16.mxu0 %v8368_v35  ;;  %v13735_v17 = vld [vmem:[#allocation10_spill] sm:$0xff]  ;;  %v13736_v35 = vld [vmem:[#allocation241_spill] sm:$0xff] }
 0x3f0   :  { %6142 = vmatpush1.bf16.msra.mxu1 %v8363_v39  ;;  %v11884_v16 = vadd.f32 %v5099_v24, %v4907_v47  ;;  %v4909_v20 = vadd.f32 %v4908_v12, %v11342_v60  ;;  %v8375_v12 = vld [vmem:[#allocation2 + $0x688] ss:$16 sps:$4 sm:$0xff]  }
 0x3f1   :  { %6143 = vmatprep.subr.bf16.mxu1 %v8371_v45  ;;  %v4912_v37 = vpop.f32.mrf.mxu0  ;;  %v5105_v11 = vpop.f32.mrf.mxu1  ;;  %5603 = vmatmul.mubr.bf16.gmra.mxu0 %v13733_v3  ;;  %v8372_v45 = vld [vmem:[#allocation2 + $0x488] ss:$16 sps:$4 sm:$0xff]  }
 0x3f2   :  { %5796 = vmatmul.mubr.bf16.gmra.mxu1 %v13734_v41  ;;  %v11889_v53 = vadd.f32 %v5101_v13, %v4909_v20  ;;  %v4913_v39 = vadd.f32 %v4912_v37, %v11278_v49  ;;  %5612 = vmatprep.mubr.bf16.mxu0 %v13735_v17  ;;  %v8380_v13 = vld [vmem:[#allocation2 + $0x46c] ss:$16 sps:$4 sm:$0xff]  }
 0x3f3   :  { %5805 = vmatprep.mubr.bf16.mxu1 %v13736_v35  ;;  %v4914_v24 = vpop.f32.mrf.mxu0  ;;  %v5107_v47 = vpop.f32.mrf.mxu1  ;;  %5951 = vmatpush1.bf16.msra.mxu0 %v8366_v34  ;;  %v8383_v20 = vld [vmem:[#allocation2 + $0x66c] ss:$16 sps:$4 sm:$0xff]   ;;  %v8381_v34 = vld [vmem:[#allocation2 + $0x668] ss:$16 sps:$4 sm:$0xff]  }
 0x3f4   :  { %6144 = vmatpush1.bf16.msra.mxu1 %v8369_v33  ;;  %v11894_v46 = vadd.f32 %v5105_v11, %v4913_v39  ;;  %v4915_v3 = vadd.f32 %v4914_v24, %v11342_v60  ;;  %5952 = vmatprep.subr.bf16.mxu0 %v8374_v15  ;;  %v8378_v33 = vld [vmem:[#allocation2 + $0x468] ss:$16 sps:$4 sm:$0xff]   ;;  %v8386_v15 = vld [vmem:[#allocation2 + $0x44c] ss:$16 sps:$4 sm:$0xff]  }
 0x3f5   :  { %6145 = vmatprep.subr.bf16.mxu1 %v8377_v57  ;;  %v4916_v41 = vpop.f32.mrf.mxu0  ;;  %v5109_v37 = vpop.f32.mrf.mxu1  ;;  %v8389_v57 = vld [vmem:[#allocation2 + $0x64c] ss:$16 sps:$4 sm:$0xff]  }
 0x3f6   :  { %v11897_v56 = vadd.f32 %v5107_v47, %v4915_v3  ;;  %v4917_v17 = vadd.f32 %v4916_v41, %v11278_v49  ;;  %v13737_v47 = vld [vmem:[#allocation8_spill] sm:$0xff]  ;;  %v13738_v3 = vld [vmem:[#allocation239_spill] sm:$0xff] }
 0x3f7   :  { %v4918_v35 = vpop.f32.mrf.mxu0  ;;  %v5111_v48 = vpop.f32.mrf.mxu1  ;;  %5953 = vmatpush1.bf16.msra.mxu0 %v8372_v45 }
 0x3f8   :  { %6146 = vmatpush1.bf16.msra.mxu1 %v8375_v12  ;;  %v11900_v11 = vadd.f32 %v5109_v37, %v4917_v17  ;;  %v4919_v39 = vadd.f32 %v4918_v35, %v11342_v60  ;;  %5954 = vmatprep.subr.bf16.mxu0 %v8380_v13  ;;  %v13739_v12 = vld [vmem:[#allocation13_spill] sm:$0xff]  ;;  %v13740_v37 = vld [vmem:[#allocation244_spill] sm:$0xff] }
 0x3f9   :  { %6147 = vmatprep.subr.bf16.mxu1 %v8383_v20  ;;  %v4922_v24 = vpop.f32.mrf.mxu0  ;;  %v5115_v28 = vpop.f32.mrf.mxu1  ;;  %5613 = vmatmul.mubr.bf16.gmra.mxu0 %v13737_v47  ;;  %v8384_v13 = vld [vmem:[#allocation2 + $0x448] ss:$16 sps:$4 sm:$0xff]  }
 0x3fa   :  { %5806 = vmatmul.mubr.bf16.gmra.mxu1 %v13738_v3  ;;  %v11905_v41 = vadd.f32 %v5111_v48, %v4919_v39  ;;  %v4923_v45 = vadd.f32 %v4922_v24, %v11278_v49  ;;  %5622 = vmatprep.mubr.bf16.mxu0 %v13739_v12  ;;  %v8387_v20 = vld [vmem:[#allocation2 + $0x648] ss:$16 sps:$4 sm:$0xff]   ;;  %v8392_v48 = vld [vmem:[#allocation2 + $0x42c] ss:$16 sps:$4 sm:$0xff]  }
 0x3fb   :  { %5815 = vmatprep.mubr.bf16.mxu1 %v13740_v37  ;;  %v4924_v17 = vpop.f32.mrf.mxu0  ;;  %v5117_v35 = vpop.f32.mrf.mxu1  ;;  %5955 = vmatpush1.bf16.msra.mxu0 %v8378_v33  ;;  %v8395_v39 = vld [vmem:[#allocation2 + $0x62c] ss:$16 sps:$4 sm:$0xff]   ;;  %v8390_v33 = vld [vmem:[#allocation2 + $0x428] ss:$16 sps:$4 sm:$0xff]  }
 0x3fc   :  { %6148 = vmatpush1.bf16.msra.mxu1 %v8381_v34  ;;  %v11910_v44 = vadd.f32 %v5115_v28, %v4923_v45  ;;  %v4925_v47 = vadd.f32 %v4924_v17, %v11342_v60  ;;  %5956 = vmatprep.subr.bf16.mxu0 %v8386_v15  ;;  %v8393_v34 = vld [vmem:[#allocation2 + $0x628] ss:$16 sps:$4 sm:$0xff]   ;;  %v8398_v15 = vld [vmem:[#allocation2 + $0x40c] ss:$16 sps:$4 sm:$0xff]  }
 0x3fd   :  { %6149 = vmatprep.subr.bf16.mxu1 %v8389_v57  ;;  %v4926_v3 = vpop.f32.mrf.mxu0  ;;  %v5119_v24 = vpop.f32.mrf.mxu1  ;;  %v8401_v57 = vld [vmem:[#allocation2 + $0x60c] ss:$16 sps:$4 sm:$0xff]  }
 0x3fe   :  { %v11913_v10 = vadd.f32 %v5117_v35, %v4925_v47  ;;  %v4927_v12 = vadd.f32 %v4926_v3, %v11278_v49  ;;  %v13742_v35 = vld [vmem:[#allocation240_spill] sm:$0xff]  ;;  %v13743_v47 = vld [vmem:[#allocation17_spill] sm:$0xff] }
 0x3ff   :  { %v4928_v37 = vpop.f32.mrf.mxu0  ;;  %v5121_v26 = vpop.f32.mrf.mxu1  ;;  %5957 = vmatpush1.bf16.msra.mxu0 %v8384_v13 }
 0x400   :  { %6150 = vmatpush1.bf16.msra.mxu1 %v8387_v20  ;;  %v11916_v28 = vadd.f32 %v5119_v24, %v4927_v12  ;;  %v4929_v45 = vadd.f32 %v4928_v37, %v11342_v60  ;;  %5958 = vmatprep.subr.bf16.mxu0 %v8392_v48  ;;  %v13745_v20 = vld [vmem:[#allocation248_spill] sm:$0xff]  ;;  %v13746_v24 = vld [vmem:[#allocation18_spill] sm:$0xff] }
 0x401   :  { %6151 = vmatprep.subr.bf16.mxu1 %v8395_v39  ;;  %v4932_v17 = vpop.f32.mrf.mxu0  ;;  %v5125_v42 = vpop.f32.mrf.mxu1  ;;  %5623 = vmatmul.mubr.bf16.gmra.mxu0 %v13742_v35  ;;  %v8396_v48 = vld [vmem:[#allocation2 + $0x408] ss:$16 sps:$4 sm:$0xff]  }
 0x402   :  { %13741 = vst [vmem:[#allocation146_spill] sm:$0xff] %v11916_v28  ;;  %5816 = vmatmul.mubr.bf16.gmra.mxu1 %v13743_v47  ;;  %v11921_v3 = vadd.f32 %v5121_v26, %v4929_v45  ;;  %v4933_v13 = vadd.f32 %v4932_v17, %v11278_v49  ;;  %5632 = vmatprep.mubr.bf16.mxu0 %v13745_v20  ;;  %v8399_v39 = vld [vmem:[#allocation2 + $0x608] ss:$16 sps:$4 sm:$0xff]   ;;  %v8404_v26 = vld [vmem:[#allocation2 + $0x5ec] ss:$16 sps:$4 sm:$0xff]  }
 0x403   :  { %5825 = vmatprep.mubr.bf16.mxu1 %v13746_v24  ;;  %v4934_v12 = vpop.f32.mrf.mxu0  ;;  %v5127_v37 = vpop.f32.mrf.mxu1  ;;  %5959 = vmatpush1.bf16.msra.mxu0 %v8390_v33  ;;  %v8407_v45 = vld [vmem:[#allocation2 + $0x7ec] ss:$16 sps:$4 sm:$0xff]   ;;  %v8402_v33 = vld [vmem:[#allocation2 + $0x5e8] ss:$16 sps:$4 sm:$0xff]  }
 0x404   :  { %13744 = vst [vmem:[#allocation59_spill] sm:$0xff] %v11921_v3  ;;  %6152 = vmatpush1.bf16.msra.mxu1 %v8393_v34  ;;  %v11926_v2 = vadd.f32 %v5125_v42, %v4933_v13  ;;  %v4935_v35 = vadd.f32 %v4934_v12, %v11342_v60  ;;  %5960 = vmatprep.subr.bf16.mxu0 %v8398_v15  ;;  %v8405_v34 = vld [vmem:[#allocation2 + $0x7e8] ss:$16 sps:$4 sm:$0xff]   ;;  %v8410_v15 = vld [vmem:[#allocation2 + $0x5cc] ss:$16 sps:$4 sm:$0xff]  }
 0x405   :  { %6153 = vmatprep.subr.bf16.mxu1 %v8401_v57  ;;  %v4936_v47 = vpop.f32.mrf.mxu0  ;;  %v5129_v17 = vpop.f32.mrf.mxu1  ;;  %v8413_v57 = vld [vmem:[#allocation2 + $0x7cc] ss:$16 sps:$4 sm:$0xff]  }
 0x406   :  { %13747 = vst [vmem:[#allocation147_spill] sm:$0xff] %v11926_v2  ;;  %v11929_v3 = vadd.f32 %v5127_v37, %v4935_v35  ;;  %v4937_v20 = vadd.f32 %v4936_v47, %v11278_v49  ;;  %v13750_v37 = vld [vmem:[#allocation250_spill] sm:$0xff]  ;;  %v13751_v35 = vld [vmem:[#allocation20_spill] sm:$0xff] }
 0x407   :  { %v4938_v24 = vpop.f32.mrf.mxu0  ;;  %v5131_v28 = vpop.f32.mrf.mxu1  ;;  %5961 = vmatpush1.bf16.msra.mxu0 %v8396_v48 }
 0x408   :  { %13748 = vst [vmem:[#allocation12_spill] sm:$0xff] %v11929_v3  ;;  %6154 = vmatpush1.bf16.msra.mxu1 %v8399_v39  ;;  %v11932_v42 = vadd.f32 %v5129_v17, %v4937_v20  ;;  %v4939_v13 = vadd.f32 %v4938_v24, %v11342_v60  ;;  %5962 = vmatprep.subr.bf16.mxu0 %v8404_v26  ;;  %v13753_v39 = vld [vmem:[#allocation251_spill] sm:$0xff]  ;;  %v13754_v17 = vld [vmem:[#allocation29_spill] sm:$0xff] }
 0x409   :  { %6155 = vmatprep.subr.bf16.mxu1 %v8407_v45  ;;  %v4942_v12 = vpop.f32.mrf.mxu0  ;;  %v5135_v2 = vpop.f32.mrf.mxu1  ;;  %5633 = vmatmul.mubr.bf16.gmra.mxu0 %v13750_v37  ;;  %v8408_v26 = vld [vmem:[#allocation2 + $0x5c8] ss:$16 sps:$4 sm:$0xff]  }
 0x40a   :  { %13749 = vst [vmem:[#allocation143_spill] sm:$0xff] %v11932_v42  ;;  %5826 = vmatmul.mubr.bf16.gmra.mxu1 %v13751_v35  ;;  %v11937_v47 = vadd.f32 %v5131_v28, %v4939_v13  ;;  %v4943_v48 = vadd.f32 %v4942_v12, %v11278_v49  ;;  %5642 = vmatprep.mubr.bf16.mxu0 %v13753_v39  ;;  %v8411_v45 = vld [vmem:[#allocation2 + $0x7c8] ss:$16 sps:$4 sm:$0xff]   ;;  %v8416_v28 = vld [vmem:[#allocation2 + $0x5ac] ss:$16 sps:$4 sm:$0xff]  }
 0x40b   :  { %5835 = vmatprep.mubr.bf16.mxu1 %v13754_v17  ;;  %v4944_v20 = vpop.f32.mrf.mxu0  ;;  %v5137_v24 = vpop.f32.mrf.mxu1  ;;  %5963 = vmatpush2.bf16.msra.mxu0 %v8402_v33  ;;  %v8419_v13 = vld [vmem:[#allocation2 + $0x7ac] ss:$16 sps:$4 sm:$0xff]   ;;  %v8414_v33 = vld [vmem:[#allocation2 + $0x5a8] ss:$16 sps:$4 sm:$0xff]  }
 0x40c   :  { %13752 = vst [vmem:[#allocation55_spill] sm:$0xff] %v11937_v47  ;;  %6156 = vmatpush2.bf16.msra.mxu1 %v8405_v34  ;;  %v11942_v42 = vadd.f32 %v5135_v2, %v4943_v48  ;;  %v4945_v37 = vadd.f32 %v4944_v20, %v11342_v60  ;;  %5964 = vmatprep.subr.bf16.mxu0 %v8410_v15  ;;  %v8417_v34 = vld [vmem:[#allocation2 + $0x7a8] ss:$16 sps:$4 sm:$0xff]   ;;  %v8422_v15 = vld [vmem:[#allocation2 + $0x58c] ss:$16 sps:$4 sm:$0xff]  }
 0x40d   :  { %6157 = vmatprep.subr.bf16.mxu1 %v8413_v57  ;;  %v4946_v35 = vpop.f32.mrf.mxu0  ;;  %v5139_v12 = vpop.f32.mrf.mxu1  ;;  %v8425_v57 = vld [vmem:[#allocation2 + $0x78c] ss:$16 sps:$4 sm:$0xff]  }
 0x40e   :  { %13755 = vst [vmem:[#allocation144_spill] sm:$0xff] %v11942_v42  ;;  %v11945_v47 = vadd.f32 %v5137_v24, %v4945_v37  ;;  %v4947_v39 = vadd.f32 %v4946_v35, %v11278_v49  ;;  %v13758_v24 = vld [vmem:[#allocation30_spill] sm:$0xff]  ;;  %v13759_v37 = vld [vmem:[#allocation16_spill] sm:$0xff] }
 0x40f   :  { %v4948_v17 = vpop.f32.mrf.mxu0  ;;  %v5141_v3 = vpop.f32.mrf.mxu1  ;;  %5965 = vmatpush2.bf16.msra.mxu0 %v8408_v26 }
 0x410   :  { %13756 = vst [vmem:[#allocation11_spill] sm:$0xff] %v11945_v47  ;;  %6158 = vmatpush2.bf16.msra.mxu1 %v8411_v45  ;;  %v11948_v2 = vadd.f32 %v5139_v12, %v4947_v39  ;;  %v4949_v48 = vadd.f32 %v4948_v17, %v11342_v60  ;;  %5966 = vmatprep.subr.bf16.mxu0 %v8416_v28  ;;  %v13761_v45 = vld [vmem:[#allocation247_spill] sm:$0xff]  ;;  %v13762_v12 = vld [vmem:[#allocation25_spill] sm:$0xff] }
 0x411   :  { %6159 = vmatprep.subr.bf16.mxu1 %v8419_v13  ;;  %v4952_v20 = vpop.f32.mrf.mxu0  ;;  %v5145_v42 = vpop.f32.mrf.mxu1  ;;  %5643 = vmatmul.mubr.bf16.gmra.mxu0 %v13758_v24  ;;  %v8420_v28 = vld [vmem:[#allocation2 + $0x588] ss:$16 sps:$4 sm:$0xff]  }
 0x412   :  { %13757 = vst [vmem:[#allocation148_spill] sm:$0xff] %v11948_v2  ;;  %5836 = vmatmul.mubr.bf16.gmra.mxu1 %v13759_v37  ;;  %v11953_v35 = vadd.f32 %v5141_v3, %v4949_v48  ;;  %v4953_v26 = vadd.f32 %v4952_v20, %v11278_v49  ;;  %5652 = vmatprep.mubr.bf16.mxu0 %v13761_v45  ;;  %v8423_v13 = vld [vmem:[#allocation2 + $0x788] ss:$16 sps:$4 sm:$0xff]   ;;  %v8428_v3 = vld [vmem:[#allocation2 + $0x56c] ss:$16 sps:$4 sm:$0xff]  }
 0x413   :  { %5845 = vmatprep.mubr.bf16.mxu1 %v13762_v12  ;;  %v4954_v39 = vpop.f32.mrf.mxu0  ;;  %v5147_v17 = vpop.f32.mrf.mxu1  ;;  %5967 = vmatpush2.bf16.msra.mxu0 %v8414_v33  ;;  %v8431_v48 = vld [vmem:[#allocation2 + $0x76c] ss:$16 sps:$4 sm:$0xff]   ;;  %v8426_v33 = vld [vmem:[#allocation2 + $0x568] ss:$16 sps:$4 sm:$0xff]  }
 0x414   :  { %13760 = vst [vmem:[#allocation60_spill] sm:$0xff] %v11953_v35  ;;  %6160 = vmatpush2.bf16.msra.mxu1 %v8417_v34  ;;  %v11958_v2 = vadd.f32 %v5145_v42, %v4953_v26  ;;  %v4955_v24 = vadd.f32 %v4954_v39, %v11342_v60  ;;  %5968 = vmatprep.subr.bf16.mxu0 %v8422_v15  ;;  %v8429_v34 = vld [vmem:[#allocation2 + $0x768] ss:$16 sps:$4 sm:$0xff]   ;;  %v8434_v15 = vld [vmem:[#allocation2 + $0x54c] ss:$16 sps:$4 sm:$0xff]  }
 0x415   :  { %6161 = vmatprep.subr.bf16.mxu1 %v8425_v57  ;;  %v4956_v37 = vpop.f32.mrf.mxu0  ;;  %v5149_v20 = vpop.f32.mrf.mxu1  ;;  %v8437_v57 = vld [vmem:[#allocation2 + $0x74c] ss:$16 sps:$4 sm:$0xff]  }
 0x416   :  { %13763 = vst [vmem:[#allocation157_spill] sm:$0xff] %v11958_v2  ;;  %v11961_v35 = vadd.f32 %v5147_v17, %v4955_v24  ;;  %v4957_v45 = vadd.f32 %v4956_v37, %v11278_v49  ;;  %v13766_v17 = vld [vmem:[#allocation26_spill] sm:$0xff] }
 0x417   :  { %v4958_v12 = vpop.f32.mrf.mxu0  ;;  %v5151_v47 = vpop.f32.mrf.mxu1  ;;  %5969 = vmatpush2.bf16.msra.mxu0 %v8420_v28  ;;  %v13767_v24 = vld [vmem:[#allocation258_spill] sm:$0xff] }
 0x418   :  { %13764 = vst [vmem:[#allocation158_spill] sm:$0xff] %v11961_v35  ;;  %6162 = vmatpush2.bf16.msra.mxu1 %v8423_v13  ;;  %v11964_v42 = vadd.f32 %v5149_v20, %v4957_v45  ;;  %v4959_v26 = vadd.f32 %v4958_v12, %v11342_v60  ;;  %5970 = vmatprep.subr.bf16.mxu0 %v8428_v3  ;;  %v13769_v13 = vld [vmem:[#allocation23_spill] sm:$0xff] }
 0x419   :  { %6163 = vmatprep.subr.bf16.mxu1 %v8431_v48  ;;  %v4962_v39 = vpop.f32.mrf.mxu0  ;;  %v5155_v2 = vpop.f32.mrf.mxu1  ;;  %5653 = vmatmul.mubr.bf16.gmra.mxu0 %v13766_v17  ;;  %v13770_v20 = vld [vmem:[#allocation255_spill] sm:$0xff] }
 0x41a   :  { %13765 = vst [vmem:[#allocation153_spill] sm:$0xff] %v11964_v42  ;;  %5846 = vmatmul.mubr.bf16.gmra.mxu1 %v13767_v24  ;;  %v11969_v37 = vadd.f32 %v5151_v47, %v4959_v26  ;;  %v4963_v28 = vadd.f32 %v4962_v39, %v11278_v49  ;;  %5662 = vmatprep.mubr.bf16.mxu0 %v13769_v13  ;;  %v8432_v3 = vld [vmem:[#allocation2 + $0x548] ss:$16 sps:$4 sm:$0xff]   ;;  %v8440_v47 = vld [vmem:[#allocation2 + $0x52c] ss:$16 sps:$4 sm:$0xff]  }
 0x41b   :  { %5855 = vmatprep.mubr.bf16.mxu1 %v13770_v20  ;;  %v4964_v45 = vpop.f32.mrf.mxu0  ;;  %v5157_v12 = vpop.f32.mrf.mxu1  ;;  %5971 = vmatpush2.bf16.msra.mxu0 %v8426_v33  ;;  %v8435_v48 = vld [vmem:[#allocation2 + $0x748] ss:$16 sps:$4 sm:$0xff]   ;;  %v8443_v26 = vld [vmem:[#allocation2 + $0x72c] ss:$16 sps:$4 sm:$0xff]  }
 0x41c   :  { %13768 = vst [vmem:[#allocation66_spill] sm:$0xff] %v11969_v37  ;;  %6164 = vmatpush2.bf16.msra.mxu1 %v8429_v34  ;;  %v11974_v42 = vadd.f32 %v5155_v2, %v4963_v28  ;;  %v4965_v17 = vadd.f32 %v4964_v45, %v11342_v60  ;;  %5972 = vmatprep.subr.bf16.mxu0 %v8434_v15  ;;  %v8438_v33 = vld [vmem:[#allocation2 + $0x528] ss:$16 sps:$4 sm:$0xff]   ;;  %v8446_v15 = vld [vmem:[#allocation2 + $0x50c] ss:$16 sps:$4 sm:$0xff]  }
 0x41d   :  { %6165 = vmatprep.subr.bf16.mxu1 %v8437_v57  ;;  %v4966_v24 = vpop.f32.mrf.mxu0  ;;  %v5159_v39 = vpop.f32.mrf.mxu1  ;;  %v8441_v34 = vld [vmem:[#allocation2 + $0x728] ss:$16 sps:$4 sm:$0xff]   ;;  %v8449_v57 = vld [vmem:[#allocation2 + $0x70c] ss:$16 sps:$4 sm:$0xff]  }
 0x41e   :  { %13771 = vst [vmem:[#allocation154_spill] sm:$0xff] %v11974_v42  ;;  %v11977_v37 = vadd.f32 %v5157_v12, %v4965_v17  ;;  %v4967_v13 = vadd.f32 %v4966_v24, %v11278_v49  ;;  %v13773_v12 = vld [vmem:[#allocation27_spill] sm:$0xff] }
 0x41f   :  { %v4968_v20 = vpop.f32.mrf.mxu0  ;;  %v5161_v35 = vpop.f32.mrf.mxu1  ;;  %5973 = vmatpush2.bf16.msra.mxu0 %v8432_v3  ;;  %v13774_v17 = vld [vmem:[#allocation259_spill] sm:$0xff] }
 0x420   :  { %6166 = vmatpush2.bf16.msra.mxu1 %v8435_v48  ;;  %v11980_v2 = vadd.f32 %v5159_v39, %v4967_v13  ;;  %v4969_v28 = vadd.f32 %v4968_v20, %v11342_v60  ;;  %5974 = vmatprep.subr.bf16.mxu0 %v8440_v47  ;;  %v13775_v48 = vld [vmem:[#allocation28_spill] sm:$0xff] }
 0x421   :  { %6167 = vmatprep.subr.bf16.mxu1 %v8443_v26  ;;  %v4972_v45 = vpop.f32.mrf.mxu0  ;;  %v5165_v42 = vpop.f32.mrf.mxu1  ;;  %5663 = vmatmul.mubr.bf16.gmra.mxu0 %v13773_v12  ;;  %v13776_v39 = vld [vmem:[#allocation260_spill] sm:$0xff] }
 0x422   :  { %13772 = vst [vmem:[#allocation22_spill] sm:$0xff] %v11980_v2  ;;  %5856 = vmatmul.mubr.bf16.gmra.mxu1 %v13774_v17  ;;  %v11985_v24 = vadd.f32 %v5161_v35, %v4969_v28  ;;  %v4973_v3 = vadd.f32 %v4972_v45, %v11278_v49  ;;  %5672 = vmatprep.mubr.bf16.mxu0 %v13775_v48  ;;  %v8444_v47 = vld [vmem:[#allocation2 + $0x508] ss:$16 sps:$4 sm:$0xff]  }
 0x423   :  { %5865 = vmatprep.mubr.bf16.mxu1 %v13776_v39  ;;  %v4974_v13 = vpop.f32.mrf.mxu0  ;;  %v5167_v20 = vpop.f32.mrf.mxu1  ;;  %5975 = vmatpush2.bf16.msra.mxu0 %v8438_v33  ;;  %v8447_v26 = vld [vmem:[#allocation2 + $0x708] ss:$16 sps:$4 sm:$0xff]  }
 0x424   :  { %6168 = vmatpush2.bf16.msra.mxu1 %v8441_v34  ;;  %v11990_v2 = vadd.f32 %v5165_v42, %v4973_v3  ;;  %v4975_v12 = vadd.f32 %v4974_v13, %v11342_v60  ;;  %5976 = vmatprep.subr.bf16.mxu0 %v8446_v15  ;;  %v13779_v15 = vld [vmem:[#allocation35_spill] sm:$0xff] }
 0x425   :  { %6169 = vmatprep.subr.bf16.mxu1 %v8449_v57  ;;  %v4976_v35 = vpop.f32.mrf.mxu0  ;;  %v5169_v28 = vpop.f32.mrf.mxu1 }
 0x426   :  { %13777 = vst [vmem:[#allocation155_spill] sm:$0xff] %v11990_v2  ;;  %v11993_v17 = vadd.f32 %v5167_v20, %v4975_v12  ;;  %v4977_v45 = vadd.f32 %v4976_v35, %v11278_v49  ;;  %v13778_v2 = vld [vmem:[#allocation33_spill] sm:$0xff]  ;;  %v13781_v20 = vld [vmem:[#allocation36_spill] sm:$0xff] }
 0x427   :  { %v4978_v48 = vpop.f32.mrf.mxu0  ;;  %v5171_v39 = vpop.f32.mrf.mxu1  ;;  %5977 = vmatpush2.bf16.msra.mxu0 %v8444_v47  ;;  %v13782_v49 = vld [vmem:[#allocation45_spill] sm:$0xff] }
 0x428   :  { %6170 = vmatpush2.bf16.msra.mxu1 %v8447_v26  ;;  %v11996_v33 = vadd.f32 %v5169_v28, %v4977_v45  ;;  %v4979_v34 = vadd.f32 %v4978_v48, %v11342_v60 }
 0x429   :  { %v5208_v42 = vpop.f32.mrf.mxu0  ;;  %v5401_v3 = vpop.f32.mrf.mxu1  ;;  %5673 = vmatmul.mubr.bf16.gmra.mxu0 %v13778_v2 }
 0x42a   :  { %5866 = vmatmul.mubr.bf16.gmra.mxu1 %v13779_v15  ;;  %v12001_v57 = vadd.f32 %v5171_v39, %v4979_v34  ;;  %v5209_v13 = vadd.f32 %v5208_v42, %v11601_v4  ;;  %5682 = vmatprep.mubr.bf16.mxu0 %v13781_v20  ;;  %v13783_v20 = vld [vmem:[#allocation41_spill] sm:$0xff] }
 0x42b   :  { %5875 = vmatprep.mubr.bf16.mxu1 %v13782_v49  ;;  %v5210_v47 = vpop.f32.mrf.mxu0  ;;  %v5403_v26 = vpop.f32.mrf.mxu1  ;;  %v13784_v49 = vld [vmem:[#allocation42_spill] sm:$0xff] }
 0x42c   :  { %13780 = vst [vmem:[#allocation151_spill] sm:$0xff] %v12001_v57  ;;  %v5402_v12 = vadd.f32 %v5401_v3, %v5209_v13  ;;  %v5211_v35 = vadd.f32 %v5210_v47, %v11612_v62  ;;  %v13785_v47 = vld [vmem:[#allocation39_spill] sm:$0xff] }
 0x42d   :  { %v5212_v60 = vpop.f32.mrf.mxu0  ;;  %v5405_v28 = vpop.f32.mrf.mxu1 }
 0x42e   :  { %v5404_v45 = vadd.f32 %v5403_v26, %v5211_v35  ;;  %v5213_v2 = vadd.f32 %v5212_v60, %v11618_v21  ;;  %v6332_v57 = vmax.f32 %v5402_v12, 0.0  ;;  %v13786_v26 = vld [vmem:[#allocation43_spill] sm:$0xff] }
 0x42f   :  { %v5214_v48 = vpop.f32.mrf.mxu0  ;;  %v5407_v15 = vpop.f32.mrf.mxu1 }
 0x430   :  { %v5406_v39 = vadd.f32 %v5405_v28, %v5213_v2  ;;  %v5215_v34 = vadd.f32 %v5214_v48, %v11629_v32  ;;  %v6333_v21 = vmax.f32 %v5404_v45, 0.0 }
 0x431   :  { %v5218_v4 = vpop.f32.mrf.mxu0  ;;  %v5411_v42 = vpop.f32.mrf.mxu1  ;;  %5683 = vmatmul.mubr.bf16.gmra.mxu0 %v13783_v20 }
 0x432   :  { %5876 = vmatmul.mubr.bf16.gmra.mxu1 %v13784_v49  ;;  %v6336_v3 = vmax.f32 %v5406_v39, 0.0  ;;  %v5408_v13 = vadd.f32 %v5407_v15, %v5215_v34  ;;  %v5219_v62 = vadd.f32 %v5218_v4, %v11642_v43  ;;  %5692 = vmatprep.mubr.bf16.mxu0 %v13785_v47 }
 0x433   :  { %5885 = vmatprep.mubr.bf16.mxu1 %v13786_v26  ;;  %v5220_v35 = vpop.f32.mrf.mxu0  ;;  %v5413_v60 = vpop.f32.mrf.mxu1 }
 0x434   :  { %v12014_v28 = vpack.c.bf16 %v6336_v3, %v6332_v57  ;;  %v6337_v32 = vmax.f32 %v5408_v13, 0.0  ;;  %v5412_v2 = vadd.f32 %v5411_v42, %v5219_v62  ;;  %v5221_v48 = vadd.f32 %v5220_v35, %v11653_v14  ;;  %v8450_v57 = vld [vmem:[%s12818_s11 + $0x78] sm:$0xff]   ;;  %v13787_v13 = vld [vmem:[#allocation53_spill] sm:$0xff] }
 0x435   :  { %v5222_v20 = vpop.f32.mrf.mxu0  ;;  %v5415_v49 = vpop.f32.mrf.mxu1  ;;  %v13788_v14 = vld [vmem:[#allocation54_spill] sm:$0xff]  ;;  %v13790_v35 = vld [vmem:[#allocation49_spill] sm:$0xff]  ;;  %7742 = vmatprep.subr.bf16.mxu0 %v8450_v57 }
 0x436   :  { %v5414_v12 = vadd.f32 %v5413_v60, %v5221_v48  ;;  %v5223_v15 = vadd.f32 %v5222_v20, %v11660_v55  ;;  %v12018_v39 = vpack.c.bf16 %v6337_v32, %v6333_v21  ;;  %v6340_v62 = vmax.f32 %v5412_v2, 0.0  ;;  %v13789_v21 = vld [vmem:[#allocation40_spill] sm:$0xff] }
 0x437   :  { %v5224_v43 = vpop.f32.mrf.mxu0  ;;  %v5417_v34 = vpop.f32.mrf.mxu1 }
 0x438   :  { %v5416_v4 = vadd.f32 %v5415_v49, %v5223_v15  ;;  %v5225_v45 = vadd.f32 %v5224_v43, %v11673_v52  ;;  %v8452_v52 = vld [vmem:[%s12818_s11 + $0xf8] sm:$0xff]   ;;  %v6341_v60 = vmax.f32 %v5414_v12, 0.0 }
 0x439   :  { %v5228_v3 = vpop.f32.mrf.mxu0  ;;  %v5421_v42 = vpop.f32.mrf.mxu1  ;;  %5693 = vmatmul.mubr.bf16.gmra.mxu0 %v13787_v13  ;;  %7854 = vmatprep.subr.bf16.mxu1 %v8452_v52 }
 0x43a   :  { %5886 = vmatmul.mubr.bf16.gmra.mxu1 %v13788_v14  ;;  %v6344_v47 = vmax.f32 %v5416_v4, 0.0  ;;  %v5418_v55 = vadd.f32 %v5417_v34, %v5225_v45  ;;  %v5229_v26 = vadd.f32 %v5228_v3, %v11682_v58  ;;  %5702 = vmatprep.mubr.bf16.mxu0 %v13789_v21 }
 0x43b   :  { %5895 = vmatprep.mubr.bf16.mxu1 %v13790_v35  ;;  %v5230_v32 = vpop.f32.mrf.mxu0  ;;  %v5423_v48 = vpop.f32.mrf.mxu1  ;;  %v13793_v35 = vld [vmem:[#allocation51_spill] sm:$0xff] }
 0x43c   :  { %v12032_v20 = vpack.c.bf16 %v6344_v47, %v6340_v62  ;;  %v6345_v49 = vmax.f32 %v5418_v55, 0.0  ;;  %v5422_v2 = vadd.f32 %v5421_v42, %v5229_v26  ;;  %v5231_v15 = vadd.f32 %v5230_v32, %v11693_v54  ;;  %v13791_v47 = vld [vmem:[#allocation50_spill] sm:$0xff]  ;;  %v13792_v42 = vld [vmem:[#allocation47_spill] sm:$0xff] }
 0x43d   :  { %v5232_v58 = vpop.f32.mrf.mxu0  ;;  %v5425_v43 = vpop.f32.mrf.mxu1 }
 0x43e   :  { %v5424_v34 = vadd.f32 %v5423_v48, %v5231_v15  ;;  %v5233_v4 = vadd.f32 %v5232_v58, %v11706_v31  ;;  %v12036_v45 = vpack.c.bf16 %v6345_v49, %v6341_v60  ;;  %v6348_v54 = vmax.f32 %v5422_v2, 0.0  ;;  %v13794_v31 = vld [vmem:[#allocation52_spill] sm:$0xff] }
 0x43f   :  { %v5234_v3 = vpop.f32.mrf.mxu0  ;;  %v5427_v13 = vpop.f32.mrf.mxu1 }
 0x440   :  { %v5426_v12 = vadd.f32 %v5425_v43, %v5233_v4  ;;  %v5235_v14 = vadd.f32 %v5234_v3, %v11717_v7  ;;  %v6349_v52 = vmax.f32 %v5424_v34, 0.0 }
 0x441   :  { %v5238_v57 = vpop.f32.mrf.mxu0  ;;  %v5431_v62 = vpop.f32.mrf.mxu1  ;;  %5703 = vmatmul.mubr.bf16.gmra.mxu0 %v13791_v47  ;;  %v13795_v47 = vld [vmem:[#allocation62_spill] sm:$0xff] }
 0x442   :  { %5896 = vmatmul.mubr.bf16.gmra.mxu1 %v13792_v42  ;;  %v6352_v55 = vmax.f32 %v5426_v12, 0.0  ;;  %v5428_v26 = vadd.f32 %v5427_v13, %v5235_v14  ;;  %v5239_v21 = vadd.f32 %v5238_v57, %v11728_v40  ;;  %5712 = vmatprep.mubr.bf16.mxu0 %v13793_v35  ;;  %v13796_v42 = vld [vmem:[#allocation48_spill] sm:$0xff] }
 0x443   :  { %5905 = vmatprep.mubr.bf16.mxu1 %v13794_v31  ;;  %v5240_v60 = vpop.f32.mrf.mxu0  ;;  %v5433_v32 = vpop.f32.mrf.mxu1 }
 0x444   :  { %v12044_v48 = vpack.c.bf16 %v6352_v55, %v6348_v54  ;;  %v6353_v7 = vmax.f32 %v5428_v26, 0.0  ;;  %v5432_v49 = vadd.f32 %v5431_v62, %v5239_v21  ;;  %v5241_v15 = vadd.f32 %v5240_v60, %v11737_v22  ;;  %v13797_v26 = vld [vmem:[#allocation57_spill] sm:$0xff] }
 0x445   :  { %v5242_v58 = vpop.f32.mrf.mxu0  ;;  %v5435_v43 = vpop.f32.mrf.mxu1 }
 0x446   :  { %v5434_v2 = vadd.f32 %v5433_v32, %v5241_v15  ;;  %v5243_v4 = vadd.f32 %v5242_v58, %v11742_v27  ;;  %v12048_v3 = vpack.c.bf16 %v6353_v7, %v6349_v52  ;;  %v6356_v62 = vmax.f32 %v5432_v49, 0.0  ;;  %v13798_v27 = vld [vmem:[#allocation58_spill] sm:$0xff] }
 0x447   :  { %v5244_v40 = vpop.f32.mrf.mxu0  ;;  %v5437_v13 = vpop.f32.mrf.mxu1 }
 0x448   :  { %v5436_v12 = vadd.f32 %v5435_v43, %v5243_v4  ;;  %v5245_v34 = vadd.f32 %v5244_v40, %v11757_v23  ;;  %v6357_v21 = vmax.f32 %v5434_v2, 0.0 }
 0x449   :  { %v5248_v14 = vpop.f32.mrf.mxu0  ;;  %v5441_v57 = vpop.f32.mrf.mxu1  ;;  %5713 = vmatmul.mubr.bf16.gmra.mxu0 %v13795_v47 }
 0x44a   :  { %5906 = vmatmul.mubr.bf16.gmra.mxu1 %v13796_v42  ;;  %v6360_v22 = vmax.f32 %v5436_v12, 0.0  ;;  %v5438_v54 = vadd.f32 %v5437_v13, %v5245_v34  ;;  %v5249_v55 = vadd.f32 %v5248_v14, %v11770_v0  ;;  %5722 = vmatprep.mubr.bf16.mxu0 %v13797_v26  ;;  %v13799_v34 = vld [vmem:[#allocation243_spill] sm:$0xff]  ;;  %v13800_v14 = vld [vmem:[#allocation69_spill] sm:$0xff] }
 0x44b   :  { %5915 = vmatprep.mubr.bf16.mxu1 %v13798_v27  ;;  %v5250_v35 = vpop.f32.mrf.mxu0  ;;  %v5443_v31 = vpop.f32.mrf.mxu1 }
 0x44c   :  { %v12056_v52 = vpack.c.bf16 %v6360_v22, %v6356_v62  ;;  %v6361_v23 = vmax.f32 %v5438_v54, 0.0  ;;  %v5442_v60 = vadd.f32 %v5441_v57, %v5249_v55  ;;  %v5251_v32 = vadd.f32 %v5250_v35, %v11781_v1  ;;  %v13801_v62 = vld [vmem:[#allocation70_spill] sm:$0xff] }
 0x44d   :  { %v5252_v7 = vpop.f32.mrf.mxu0  ;;  %v5445_v15 = vpop.f32.mrf.mxu1 }
 0x44e   :  { %v5444_v49 = vadd.f32 %v5443_v31, %v5251_v32  ;;  %v5253_v58 = vadd.f32 %v5252_v7, %v11792_v59  ;;  %v12060_v43 = vpack.c.bf16 %v6361_v23, %v6357_v21  ;;  %v6364_v57 = vmax.f32 %v5442_v60, 0.0  ;;  %v13802_v59 = vld [vmem:[#allocation56_spill] sm:$0xff] }
 0x44f   :  { %v5254_v0 = vpop.f32.mrf.mxu0  ;;  %v5447_v4 = vpop.f32.mrf.mxu1 }
 0x450   :  { %v5446_v40 = vadd.f32 %v5445_v15, %v5253_v58  ;;  %v5255_v2 = vadd.f32 %v5254_v0, %v11801_v18  ;;  %v6365_v22 = vmax.f32 %v5444_v49, 0.0 }
 0x451   :  { %v5258_v13 = vpop.f32.mrf.mxu0  ;;  %v5451_v12 = vpop.f32.mrf.mxu1  ;;  %5723 = vmatmul.mubr.bf16.gmra.mxu0 %v13799_v34  ;;  %v13805_v34 = vld [vmem:[#allocation67_spill] sm:$0xff] }
 0x452   :  { %5916 = vmatmul.mubr.bf16.gmra.mxu1 %v13800_v14  ;;  %v6368_v1 = vmax.f32 %v5446_v40, 0.0  ;;  %v5448_v47 = vadd.f32 %v5447_v4, %v5255_v2  ;;  %v5259_v42 = vadd.f32 %v5258_v13, %v11810_v8  ;;  %5732 = vmatprep.mubr.bf16.mxu0 %v13801_v62  ;;  %v13803_v4 = vld [vmem:[#allocation63_spill] sm:$0xff]  ;;  %v13804_v40 = vld [vmem:[#allocation21_spill] sm:$0xff] }
 0x453   :  { %5925 = vmatprep.mubr.bf16.mxu1 %v13802_v59  ;;  %v5260_v54 = vpop.f32.mrf.mxu0  ;;  %v5453_v55 = vpop.f32.mrf.mxu1 }
 0x454   :  { %v12068_v26 = vpack.c.bf16 %v6368_v1, %v6364_v57  ;;  %v6369_v18 = vmax.f32 %v5448_v47, 0.0  ;;  %v5452_v27 = vadd.f32 %v5451_v12, %v5259_v42  ;;  %v5261_v21 = vadd.f32 %v5260_v54, %v11817_v25 }
 0x455   :  { %v5262_v35 = vpop.f32.mrf.mxu0  ;;  %v5455_v31 = vpop.f32.mrf.mxu1 }
 0x456   :  { %v5454_v23 = vadd.f32 %v5453_v55, %v5261_v21  ;;  %v5263_v60 = vadd.f32 %v5262_v35, %v11826_v38  ;;  %v12072_v32 = vpack.c.bf16 %v6369_v18, %v6365_v22  ;;  %v6372_v2 = vmax.f32 %v5452_v27, 0.0  ;;  %v13806_v38 = vld [vmem:[#allocation253_spill] sm:$0xff] }
 0x457   :  { %v5264_v8 = vpop.f32.mrf.mxu0  ;;  %v5457_v7 = vpop.f32.mrf.mxu1 }
 0x458   :  { %v5456_v15 = vadd.f32 %v5455_v31, %v5263_v60  ;;  %v5265_v49 = vadd.f32 %v5264_v8, %v11837_v51  ;;  %v6373_v14 = vmax.f32 %v5454_v23, 0.0  ;;  %v13807_v60 = vld [vmem:[#allocation68_spill] sm:$0xff]  ;;  %v13808_v8 = vld [vmem:[#allocation9_spill] sm:$0xff] }
 0x459   :  { %v5268_v58 = vpop.f32.mrf.mxu0  ;;  %v5461_v0 = vpop.f32.mrf.mxu1  ;;  %5733 = vmatmul.mubr.bf16.gmra.mxu0 %v13803_v4 }
 0x45a   :  { %5926 = vmatmul.mubr.bf16.gmra.mxu1 %v13804_v40  ;;  %v6376_v25 = vmax.f32 %v5456_v15, 0.0  ;;  %v5458_v13 = vadd.f32 %v5457_v7, %v5265_v49  ;;  %v5269_v12 = vadd.f32 %v5268_v58, %v11842_v30  ;;  %5742 = vmatprep.mubr.bf16.mxu0 %v13805_v34  ;;  %v13809_v58 = vld [vmem:[#allocation77_spill] sm:$0xff] }
 0x45b   :  { %5935 = vmatprep.mubr.bf16.mxu1 %v13806_v38  ;;  %v5270_v57 = vpop.f32.mrf.mxu0  ;;  %v5463_v1 = vpop.f32.mrf.mxu1 }
 0x45c   :  { %v12080_v47 = vpack.c.bf16 %v6376_v25, %v6372_v2  ;;  %v6377_v51 = vmax.f32 %v5458_v13, 0.0  ;;  %v5462_v42 = vadd.f32 %v5461_v0, %v5269_v12  ;;  %v5271_v62 = vadd.f32 %v5270_v57, %v11845_v19 }
 0x45d   :  { %v5272_v59 = vpop.f32.mrf.mxu0  ;;  %v5465_v22 = vpop.f32.mrf.mxu1 }
 0x45e   :  { %v5464_v54 = vadd.f32 %v5463_v1, %v5271_v62  ;;  %v5273_v55 = vadd.f32 %v5272_v59, %v11852_v61  ;;  %v12084_v18 = vpack.c.bf16 %v6377_v51, %v6373_v14  ;;  %v6380_v7 = vmax.f32 %v5462_v42, 0.0  ;;  %v13810_v61 = vld [vmem:[#allocation78_spill] sm:$0xff] }
 0x45f   :  { %v5274_v30 = vpop.f32.mrf.mxu0  ;;  %v5467_v27 = vpop.f32.mrf.mxu1  ;;  %v8451_v51 = vld [vmem:[%s12818_s11 + $0x38] sm:$0xff]   ;;  %v8454_v59 = vld [vmem:[%s12818_s11 + $0x70] sm:$0xff]  }
 0x460   :  { %v5466_v21 = vadd.f32 %v5465_v22, %v5273_v55  ;;  %v5275_v35 = vadd.f32 %v5274_v30, %v11857_v29  ;;  %v6381_v0 = vmax.f32 %v5464_v54, 0.0  ;;  %v8453_v42 = vld [vmem:[%s12818_s11 + $0xb8] sm:$0xff]  }
 0x461   :  { %v5278_v31 = vpop.f32.mrf.mxu0  ;;  %v5471_v23 = vpop.f32.mrf.mxu1  ;;  %5743 = vmatmul.mubr.bf16.gmra.mxu0 %v13807_v60  ;;  %v13811_v55 = vld [vmem:[#allocation246_spill] sm:$0xff] }
 0x462   :  { %5936 = vmatmul.mubr.bf16.gmra.mxu1 %v13808_v8  ;;  %v6384_v19 = vmax.f32 %v5466_v21, 0.0  ;;  %v5468_v15 = vadd.f32 %v5467_v27, %v5275_v35  ;;  %v5279_v49 = vadd.f32 %v5278_v31, %v11862_v50  ;;  %5978 = vmatprep.mubr.bf16.mxu0 %v13809_v58  ;;  %v13812_v30 = vld [vmem:[#allocation74_spill] sm:$0xff] }
 0x463   :  { %6171 = vmatprep.mubr.bf16.mxu1 %v13810_v61  ;;  %v5280_v4 = vpop.f32.mrf.mxu0  ;;  %v5473_v40 = vpop.f32.mrf.mxu1 }
 0x464   :  { %v12092_v2 = vpack.c.bf16 %v6384_v19, %v6380_v7  ;;  %v6385_v29 = vmax.f32 %v5468_v15, 0.0  ;;  %v5472_v25 = vadd.f32 %v5471_v23, %v5279_v49  ;;  %v5281_v13 = vadd.f32 %v5280_v4, %v11865_v36  ;;  %v13814_v23 = vld [vmem:[#allocation71_spill] sm:$0xff]  ;;  %v8455_v19 = vld [vmem:[%s12818_s11 + $0x30] sm:$0xff]   ;;  %v8462_v4 = vld [vmem:[%s12818_s11 + $0xe8] sm:$0xff]  }
 0x465   :  { %v5282_v12 = vpop.f32.mrf.mxu0  ;;  %v5475_v34 = vpop.f32.mrf.mxu1  ;;  %v8457_v15 = vld [vmem:[%s12818_s11 + $0xb0] sm:$0xff]  }
 0x466   :  { %v5474_v38 = vadd.f32 %v5473_v40, %v5281_v13  ;;  %v5283_v14 = vadd.f32 %v5282_v12, %v11868_v63  ;;  %v12096_v57 = vpack.c.bf16 %v6385_v29, %v6381_v0  ;;  %v8456_v63 = vld [vmem:[%s12818_s11 + $0xf0] sm:$0xff]   ;;  %v6388_v27 = vmax.f32 %v5472_v25, 0.0  ;;  %v8458_v0 = vld [vmem:[%s12818_s11 + $0x68] sm:$0xff]  }
 0x467   :  { %v5284_v50 = vpop.f32.mrf.mxu0  ;;  %v5477_v1 = vpop.f32.mrf.mxu1 }
 0x468   :  { %v5476_v62 = vadd.f32 %v5475_v34, %v5283_v14  ;;  %v5285_v36 = vadd.f32 %v5284_v50, %v11873_v5  ;;  %v13813_v5 = vld [vmem:[#allocation19_spill] sm:$0xff]  ;;  %v6389_v60 = vmax.f32 %v5474_v38, 0.0  ;;  %v8464_v14 = vld [vmem:[%s12818_s11 + $0xa8] sm:$0xff]  }
 0x469   :  { %v5288_v22 = vpop.f32.mrf.mxu0  ;;  %v5481_v54 = vpop.f32.mrf.mxu1  ;;  %5979 = vmatmul.mubr.bf16.vlgmr.msra.gmra.mxu0 %v13811_v55  ;;  %v13817_v55 = vld [vmem:[#allocation85_spill] sm:$0xff] }
 0x46a   :  { %6172 = vmatmul.mubr.bf16.vlgmr.msra.gmra.mxu1 %v13812_v30  ;;  %v6392_v21 = vmax.f32 %v5476_v62, 0.0  ;;  %v5478_v35 = vadd.f32 %v5477_v1, %v5285_v36  ;;  %v5289_v31 = vadd.f32 %v5288_v22, %v11878_v6  ;;  %5988 = vmatprep.mubr.bf16.mxu0 %v13813_v5  ;;  %v13815_v36 = vld [vmem:[#allocation75_spill] sm:$0xff]  ;;  %v13818_v30 = vld [vmem:[#allocation86_spill] sm:$0xff] }
 0x46b   :  { %6181 = vmatprep.mubr.bf16.mxu1 %v13814_v23  ;;  %v5290_v8 = vpop.f32.mrf.mxu0  ;;  %v5483_v7 = vpop.f32.mrf.mxu1  ;;  %7743 = vmatpush3.bf16.msra.mxu0 %v8451_v51  ;;  %v8472_v51 = vld [vmem:[%s12818_s11 + $0xe0] sm:$0xff]  }
 0x46c   :  { %7855 = vmatpush3.bf16.msra.mxu1 %v8453_v42  ;;  %v12122_v49 = vpack.c.bf16 %v6392_v21, %v6388_v27  ;;  %v6393_v6 = vmax.f32 %v5478_v35, 0.0  ;;  %v5482_v58 = vadd.f32 %v5481_v54, %v5289_v31  ;;  %v5291_v61 = vadd.f32 %v5290_v8, %v11881_v9  ;;  %7744 = vmatprep.subr.bf16.mxu0 %v8454_v59  ;;  %v8459_v9 = vld [vmem:[%s12818_s11 + $0x28] sm:$0xff]   ;;  %v8461_v31 = vld [vmem:[%s12818_s11 + $0x20] sm:$0xff]  }
 0x46d   :  { %7856 = vmatprep.subr.bf16.mxu1 %v8456_v63  ;;  %v5292_v40 = vpop.f32.mrf.mxu0  ;;  %v5485_v29 = vpop.f32.mrf.mxu1  ;;  %v13816_v59 = vld [vmem:[#allocation76_spill] sm:$0xff] }
 0x46e   :  { %v5484_v25 = vadd.f32 %v5483_v7, %v5291_v61  ;;  %v5293_v13 = vadd.f32 %v5292_v40, %v11884_v16  ;;  %v12132_v12 = vpack.c.bf16 %v6393_v6, %v6389_v60  ;;  %v8460_v16 = vld [vmem:[%s12818_s11 + $0x60] sm:$0xff]   ;;  %v6396_v63 = vmax.f32 %v5482_v58, 0.0  ;;  %v8463_v7 = vld [vmem:[%s12818_s11 + $0x58] sm:$0xff]  }
 0x46f   :  { %v5294_v34 = vpop.f32.mrf.mxu0  ;;  %v5487_v38 = vpop.f32.mrf.mxu1  ;;  %7745 = vmatpush3.bf16.msra.mxu0 %v8455_v19  ;;  %v8473_v5 = vld [vmem:[%s12818_s11 + $0xa0] sm:$0xff]  }
 0x470   :  { %7857 = vmatpush3.bf16.msra.mxu1 %v8457_v15  ;;  %v5486_v50 = vadd.f32 %v5485_v29, %v5293_v13  ;;  %v5295_v1 = vadd.f32 %v5294_v34, %v11889_v53  ;;  %7746 = vmatprep.subr.bf16.mxu0 %v8458_v0  ;;  %v6397_v27 = vmax.f32 %v5484_v25, 0.0  ;;  %v8466_v25 = vld [vmem:[%s12818_s11 + $0x50] sm:$0xff]  }
 0x471   :  { %7858 = vmatprep.subr.bf16.mxu1 %v8462_v4  ;;  %v5298_v42 = vpop.f32.mrf.mxu0  ;;  %5989 = vmatmul.mubr.bf16.gmra.mxu0 %v13815_v36  ;;  %v13819_v34 = vld [vmem:[#allocation81_spill] sm:$0xff] }
 0x472   :  { %v5491_v62 = vpop.f32.mrf.mxu1  ;;  %6182 = vmatmul.mubr.bf16.gmra.mxu1 %v13816_v59  ;;  %v6400_v22 = vmax.f32 %v5486_v50, 0.0  ;;  %v5488_v54 = vadd.f32 %v5487_v38, %v5295_v1  ;;  %v5299_v53 = vadd.f32 %v5298_v42, %v11894_v46  ;;  %5998 = vmatprep.mubr.bf16.mxu0 %v13817_v55  ;;  %v13820_v38 = vld [vmem:[#allocation82_spill] sm:$0xff] }
 0x473   :  { %6191 = vmatprep.mubr.bf16.mxu1 %v13818_v30  ;;  %v5300_v21 = vpop.f32.mrf.mxu0  ;;  %7747 = vmatpush3.bf16.msra.mxu0 %v8459_v9  ;;  %v8467_v59 = vld [vmem:[%s12818_s11 + $0x10] sm:$0xff]   ;;  %v8475_v55 = vld [vmem:[%s12818_s11 + $0x98] sm:$0xff]  }
 0x474   :  { %v5493_v35 = vpop.f32.mrf.mxu1  ;;  %7859 = vmatpush3.bf16.msra.mxu1 %v8464_v14  ;;  %v12158_v23 = vpack.c.bf16 %v6400_v22, %v6396_v63  ;;  %v6401_v46 = vmax.f32 %v5488_v54, 0.0  ;;  %v5492_v60 = vadd.f32 %v5491_v62, %v5299_v53  ;;  %v5301_v8 = vadd.f32 %v5300_v21, %v11897_v56  ;;  %7748 = vmatprep.subr.bf16.mxu0 %v8460_v16  ;;  %v8465_v56 = vld [vmem:[%s12818_s11 + $0x18] sm:$0xff]   ;;  %v13821_v16 = vld [vmem:[#allocation93_spill] sm:$0xff] }
 0x475   :  { %7860 = vmatprep.subr.bf16.mxu1 %v8472_v51  ;;  %v5302_v19 = vpop.f32.mrf.mxu0  ;;  %v13822_v51 = vld [vmem:[#allocation94_spill] sm:$0xff]  ;;  %v8468_v53 = vld [vmem:[%s12818_s11 + $0x48] sm:$0xff]  }
 0x476   :  { %v5495_v15 = vpop.f32.mrf.mxu1  ;;  %v5494_v6 = vadd.f32 %v5493_v35, %v5301_v8  ;;  %v5303_v58 = vadd.f32 %v5302_v19, %v11900_v11  ;;  %v12165_v61 = vpack.c.bf16 %v6401_v46, %v6397_v27  ;;  %v6404_v9 = vmax.f32 %v5492_v60, 0.0  ;;  %v13823_v35 = vld [vmem:[#allocation146_spill] sm:$0xff]  ;;  %v8469_v60 = vld [vmem:[%s12818_s11 + $0x8] sm:$0xff]  }
 0x477   :  { %v5304_v0 = vpop.f32.mrf.mxu0  ;;  %7749 = vmatpush3.bf16.msra.mxu0 %v8461_v31 }
 0x478   :  { %v5497_v4 = vpop.f32.mrf.mxu1  ;;  %7861 = vmatpush3.bf16.msra.mxu1 %v8473_v5  ;;  %v5496_v40 = vadd.f32 %v5495_v15, %v5303_v58  ;;  %v5305_v29 = vadd.f32 %v5304_v0, %v11905_v41  ;;  %7750 = vmatprep.subr.bf16.mxu0 %v8463_v7  ;;  %v8474_v41 = vld [vmem:[%s12818_s11 + $0xd8] sm:$0xff]   ;;  %v6405_v42 = vmax.f32 %v5494_v6, 0.0  ;;  %v8470_v15 = vld [vmem:[%s12818_s11 + $0x40] sm:$0xff]  }
 0x479   :  { %v5308_v13 = vpop.f32.mrf.mxu0  ;;  %5999 = vmatmul.mubr.bf16.gmra.mxu0 %v13819_v34  ;;  %7862 = vmatprep.subr.bf16.mxu1 %v8474_v41  ;;  %v13824_v7 = vld [vmem:[#allocation59_spill] sm:$0xff]  ;;  %v13829_v34 = vld [vmem:[#allocation257_spill] sm:$0xff]  ;;  %v13830_v41 = vld [vmem:[#allocation12_spill] sm:$0xff] }
 0x47a   :  { %v5501_v11 = vpop.f32.mrf.mxu1  ;;  %6192 = vmatmul.mubr.bf16.gmra.mxu1 %v13820_v38  ;;  %v6408_v14 = vmax.f32 %v5496_v40, 0.0  ;;  %v5498_v50 = vadd.f32 %v5497_v4, %v5305_v29  ;;  %v5309_v1 = vadd.f32 %v5308_v13, %v11910_v44  ;;  %6008 = vmatprep.mubr.bf16.mxu0 %v13821_v16  ;;  %v13825_v0 = vld [vmem:[#allocation87_spill] sm:$0xff]  ;;  %v13826_v4 = vld [vmem:[#allocation92_spill] sm:$0xff] }
 0x47b   :  { %6201 = vmatprep.mubr.bf16.mxu1 %v13822_v51  ;;  %v5310_v62 = vpop.f32.mrf.mxu0  ;;  %7751 = vmatpush3.bf16.msra.mxu0 %v8465_v56 }
 0x47c   :  { %v5503_v36 = vpop.f32.mrf.mxu1  ;;  %v12185_v63 = vpack.c.bf16 %v6408_v14, %v6404_v9  ;;  %v6409_v22 = vmax.f32 %v5498_v50, 0.0  ;;  %v5502_v44 = vadd.f32 %v5501_v11, %v5309_v1  ;;  %v5311_v54 = vadd.f32 %v5310_v62, %v11913_v10  ;;  %7752 = vmatprep.subr.bf16.mxu0 %v8466_v25  ;;  %7863 = vmatpush3.bf16.msra.mxu1 %v8475_v55  ;;  %v13827_v25 = vld [vmem:[#allocation147_spill] sm:$0xff]  ;;  %v13828_v11 = vld [vmem:[#allocation88_spill] sm:$0xff] }
 0x47d   :  { %v5312_v30 = vpop.f32.mrf.mxu0  ;;  %v8471_v50 = vld [vmem:[%s12818_s11] sm:$0xff]  }
 0x47e   :  { %v5505_v27 = vpop.f32.mrf.mxu1  ;;  %v5504_v21 = vadd.f32 %v5503_v36, %v5311_v54  ;;  %v5313_v31 = vadd.f32 %v5312_v30, %v13823_v35  ;;  %v12195_v5 = vpack.c.bf16 %v6409_v22, %v6405_v42  ;;  %v6412_v56 = vmax.f32 %v5502_v44, 0.0  ;;  %v13831_v22 = vld [vmem:[#allocation143_spill] sm:$0xff] }
 0x47f   :  { %v5314_v46 = vpop.f32.mrf.mxu0  ;;  %7753 = vmatpush3.bf16.msra.mxu0 %v8467_v59 }
 0x480   :  { %v5507_v10 = vpop.f32.mrf.mxu1  ;;  %v5506_v8 = vadd.f32 %v5505_v27, %v5313_v31  ;;  %v5315_v19 = vadd.f32 %v5314_v46, %v13824_v7  ;;  %7754 = vmatprep.subr.bf16.mxu0 %v8468_v53  ;;  %v6413_v38 = vmax.f32 %v5504_v21, 0.0  ;;  %v13832_v27 = vld [vmem:[#allocation55_spill] sm:$0xff]  ;;  %v13833_v46 = vld [vmem:[#allocation97_spill] sm:$0xff] }
 0x481   :  { %v5318_v6 = vpop.f32.mrf.mxu0  ;;  %6009 = vmatmul.mubr.bf16.gmra.mxu0 %v13825_v0  ;;  %v8476_v0 = vld [vmem:[%s12818_s11 + $0xd0] sm:$0xff]  }
 0x482   :  { %v5511_v58 = vpop.f32.mrf.mxu1  ;;  %6202 = vmatmul.mubr.bf16.gmra.mxu1 %v13826_v4  ;;  %v6416_v40 = vmax.f32 %v5506_v8, 0.0  ;;  %v5508_v29 = vadd.f32 %v5507_v10, %v5315_v19  ;;  %v5319_v13 = vadd.f32 %v5318_v6, %v13827_v25  ;;  %6018 = vmatprep.mubr.bf16.mxu0 %v13828_v11  ;;  %v13834_v10 = vld [vmem:[#allocation98_spill] sm:$0xff]  ;;  %v13835_v19 = vld [vmem:[#allocation144_spill] sm:$0xff]  ;;  %v13836_v6 = vld [vmem:[#allocation95_spill] sm:$0xff] }
 0x483   :  { %6211 = vmatprep.mubr.bf16.mxu1 %v13829_v34  ;;  %v5320_v9 = vpop.f32.mrf.mxu0  ;;  %7755 = vmatpush3.bf16.msra.mxu0 %v8469_v60  ;;  %v13838_v11 = vld [vmem:[#allocation11_spill] sm:$0xff] }
 0x484   :  { %v5513_v14 = vpop.f32.mrf.mxu1  ;;  %v12212_v1 = vpack.c.bf16 %v6416_v40, %v6412_v56  ;;  %v6417_v16 = vmax.f32 %v5508_v29, 0.0  ;;  %v5512_v51 = vadd.f32 %v5511_v58, %v5319_v13  ;;  %v5321_v42 = vadd.f32 %v5320_v9, %v13830_v41  ;;  %7756 = vmatprep.subr.bf16.mxu0 %v8470_v15  ;;  %v13837_v58 = vld [vmem:[#allocation99_spill] sm:$0xff]  ;;  %7864 = vmatprep.subr.bf16.mxu1 %v8476_v0  ;;  %v13846_v0 = vld [vmem:[#allocation158_spill] sm:$0xff] }
 0x485   :  { %v5322_v62 = vpop.f32.mrf.mxu0 }
 0x486   :  { %v5515_v36 = vpop.f32.mrf.mxu1  ;;  %v5514_v59 = vadd.f32 %v5513_v14, %v5321_v42  ;;  %v5323_v44 = vadd.f32 %v5322_v62, %v13831_v22  ;;  %v12216_v54 = vpack.c.bf16 %v6417_v16, %v6413_v38  ;;  %v6420_v60 = vmax.f32 %v5512_v51, 0.0  ;;  %v8477_v38 = vld [vmem:[%s12818_s11 + $0x90] sm:$0xff]   ;;  %v13839_v16 = vld [vmem:[#allocation148_spill] sm:$0xff] }
 0x487   :  { %v5324_v53 = vpop.f32.mrf.mxu0  ;;  %7757 = vmatpush3.bf16.msra.mxu0 %v8471_v50  ;;  %7865 = vmatpush3.bf16.msra.mxu1 %v8477_v38 }
 0x488   :  { %v5517_v55 = vpop.f32.mrf.mxu1  ;;  %v5516_v30 = vadd.f32 %v5515_v36, %v5323_v44  ;;  %v5325_v21 = vadd.f32 %v5324_v53, %v13832_v27  ;;  %v6421_v4 = vmax.f32 %v5514_v59, 0.0  ;;  %v13840_v59 = vld [vmem:[#allocation60_spill] sm:$0xff] }
 0x489   :  { %v5328_v35 = vpop.f32.mrf.mxu0  ;;  %6019 = vmatmul.mubr.bf16.gmra.mxu0 %v13833_v46 }
 0x48a   :  { %v5521_v31 = vpop.f32.mrf.mxu1  ;;  %6212 = vmatmul.mubr.bf16.gmra.mxu1 %v13834_v10  ;;  %v6424_v8 = vmax.f32 %v5516_v30, 0.0  ;;  %v5518_v7 = vadd.f32 %v5517_v55, %v5325_v21  ;;  %v5329_v15 = vadd.f32 %v5328_v35, %v13835_v19  ;;  %6028 = vmatprep.mubr.bf16.mxu0 %v13836_v6  ;;  %v13841_v55 = vld [vmem:[#allocation100_spill] sm:$0xff]  ;;  %v13842_v30 = vld [vmem:[#allocation110_spill] sm:$0xff]  ;;  %v13844_v10 = vld [vmem:[#allocation105_spill] sm:$0xff] }
 0x48b   :  { %6221 = vmatprep.mubr.bf16.mxu1 %v13837_v58  ;;  %v5330_v56 = vpop.f32.mrf.mxu0 }
 0x48c   :  { %v5523_v40 = vpop.f32.mrf.mxu1  ;;  %v12227_v29 = vpack.c.bf16 %v6424_v8, %v6420_v60  ;;  %v6425_v25 = vmax.f32 %v5518_v7, 0.0  ;;  %v5522_v13 = vadd.f32 %v5521_v31, %v5329_v15  ;;  %v5331_v34 = vadd.f32 %v5330_v56, %v13838_v11  ;;  %v13843_v31 = vld [vmem:[#allocation157_spill] sm:$0xff]  ;;  %v13845_v60 = vld [vmem:[#allocation24_spill] sm:$0xff] }
 0x48d   :  { %v5332_v9 = vpop.f32.mrf.mxu0 }
 0x48e   :  { %v5525_v14 = vpop.f32.mrf.mxu1  ;;  %v5524_v50 = vadd.f32 %v5523_v40, %v5331_v34  ;;  %v5333_v51 = vadd.f32 %v5332_v9, %v13839_v16  ;;  %v12234_v41 = vpack.c.bf16 %v6425_v25, %v6421_v4  ;;  %v6428_v27 = vmax.f32 %v5522_v13, 0.0  ;;  %v13847_v13 = vld [vmem:[#allocation153_spill] sm:$0xff]  ;;  %v13848_v16 = vld [vmem:[#allocation66_spill] sm:$0xff] }
 0x48f   :  { %v5334_v42 = vpop.f32.mrf.mxu0 }
 0x490   :  { %v5527_v62 = vpop.f32.mrf.mxu1  ;;  %v5526_v36 = vadd.f32 %v5525_v14, %v5333_v51  ;;  %v5335_v22 = vadd.f32 %v5334_v42, %v13840_v59  ;;  %v6429_v8 = vmax.f32 %v5524_v50, 0.0 }
 0x491   :  { %v5338_v44 = vpop.f32.mrf.mxu0  ;;  %6029 = vmatmul.mubr.bf16.gmra.mxu0 %v13841_v55 }
 0x492   :  { %v5531_v53 = vpop.f32.mrf.mxu1  ;;  %6222 = vmatmul.mubr.bf16.gmra.mxu1 %v13842_v30  ;;  %v6432_v21 = vmax.f32 %v5526_v36, 0.0  ;;  %v5528_v35 = vadd.f32 %v5527_v62, %v5335_v22  ;;  %v5339_v46 = vadd.f32 %v5338_v44, %v13843_v31  ;;  %6038 = vmatprep.mubr.bf16.mxu0 %v13844_v10  ;;  %v13849_v62 = vld [vmem:[#allocation96_spill] sm:$0xff]  ;;  %v13850_v36 = vld [vmem:[#allocation37_spill] sm:$0xff]  ;;  %v13852_v30 = vld [vmem:[#allocation34_spill] sm:$0xff] }
 0x493   :  { %6231 = vmatprep.mubr.bf16.mxu1 %v13845_v60  ;;  %v5340_v7 = vpop.f32.mrf.mxu0 }
 0x494   :  { %v5533_v19 = vpop.f32.mrf.mxu1  ;;  %v12242_v15 = vpack.c.bf16 %v6432_v21, %v6428_v27  ;;  %v6433_v6 = vmax.f32 %v5528_v35, 0.0  ;;  %v5532_v58 = vadd.f32 %v5531_v53, %v5339_v46  ;;  %v5341_v4 = vadd.f32 %v5340_v7, %v13846_v0  ;;  %v13851_v53 = vld [vmem:[#allocation154_spill] sm:$0xff]  ;;  %v13853_v27 = vld [vmem:[#allocation108_spill] sm:$0xff] }
 0x495   :  { %v5342_v56 = vpop.f32.mrf.mxu0  ;;  %v8478_v21 = vld [vmem:[%s12818_s11 + $0xc8] sm:$0xff]  }
 0x496   :  { %v5535_v40 = vpop.f32.mrf.mxu1  ;;  %v5534_v25 = vadd.f32 %v5533_v19, %v5341_v4  ;;  %v5343_v11 = vadd.f32 %v5342_v56, %v13847_v13  ;;  %v12246_v34 = vpack.c.bf16 %v6433_v6, %v6429_v8  ;;  %v6436_v59 = vmax.f32 %v5532_v58, 0.0  ;;  %7866 = vmatprep.subr.bf16.mxu1 %v8478_v21  ;;  %v8479_v19 = vld [vmem:[%s12818_s11 + $0x88] sm:$0xff]   ;;  %v13855_v4 = vld [vmem:[#allocation22_spill] sm:$0xff] }
 0x497   :  { %v5344_v38 = vpop.f32.mrf.mxu0  ;;  %7867 = vmatpush3.bf16.msra.mxu1 %v8479_v19 }
 0x498   :  { %v5537_v9 = vpop.f32.mrf.mxu1  ;;  %v5536_v14 = vadd.f32 %v5535_v40, %v5343_v11  ;;  %v5345_v50 = vadd.f32 %v5344_v38, %v13848_v16  ;;  %v6437_v35 = vmax.f32 %v5534_v25, 0.0  ;;  %v13857_v16 = vld [vmem:[#allocation31_spill] sm:$0xff] }
 0x499   :  { %v5348_v51 = vpop.f32.mrf.mxu0  ;;  %6039 = vmatmul.mubr.bf16.gmra.mxu0 %v13849_v62  ;;  %v13858_v62 = vld [vmem:[#allocation155_spill] sm:$0xff] }
 0x49a   :  { %v5541_v42 = vpop.f32.mrf.mxu1  ;;  %6232 = vmatmul.mubr.bf16.gmra.mxu1 %v13850_v36  ;;  %v6440_v22 = vmax.f32 %v5536_v14, 0.0  ;;  %v5538_v44 = vadd.f32 %v5537_v9, %v5345_v50  ;;  %v5349_v55 = vadd.f32 %v5348_v51, %v13851_v53  ;;  %6048 = vmatprep.mubr.bf16.mxu0 %v13852_v30  ;;  %v13856_v14 = vld [vmem:[#allocation107_spill] sm:$0xff] }
 0x49b   :  { %6241 = vmatprep.mubr.bf16.mxu1 %v13853_v27  ;;  %v5350_v31 = vpop.f32.mrf.mxu0 }
 0x49c   :  { %v5543_v46 = vpop.f32.mrf.mxu1  ;;  %v12257_v10 = vpack.c.bf16 %v6440_v22, %v6436_v59  ;;  %v6441_v60 = vmax.f32 %v5538_v44, 0.0  ;;  %v5542_v8 = vadd.f32 %v5541_v42, %v5349_v55  ;;  %v5351_v7 = vadd.f32 %v5350_v31, %v11977_v37  ;;  %v13859_v59 = vld [vmem:[#allocation46_spill] sm:$0xff]  ;;  %v13860_v22 = vld [vmem:[#allocation115_spill] sm:$0xff] }
 0x49d   :  { %v5352_v6 = vpop.f32.mrf.mxu0 }
 0x49e   :  { %13854 = vst [vmem:[#allocation242_spill] sm:$0xff] %v12257_v10  ;;  %v5545_v58 = vpop.f32.mrf.mxu1  ;;  %v5544_v0 = vadd.f32 %v5543_v46, %v5351_v7  ;;  %v5353_v56 = vadd.f32 %v5352_v6, %v13855_v4  ;;  %v12264_v40 = vpack.c.bf16 %v6441_v60, %v6437_v35  ;;  %v6444_v50 = vmax.f32 %v5542_v8, 0.0  ;;  %v8484_v8 = vld [vmem:[%s12817_s10] sm:$0xf]  ;;  %v13862_v7 = vld [vmem:[#allocation254_spill] sm:$0xff] }
 0x49f   :  { %v5354_v25 = vpop.f32.mrf.mxu0  ;;  %v13863_v19 = vsub.s32 2, %v13862_v7 }
 0x4a0   :  { %v5547_v13 = vpop.f32.mrf.mxu1  ;;  %v5546_v11 = vadd.f32 %v5545_v58, %v5353_v56  ;;  %v5355_v38 = vadd.f32 %v5354_v25, %v11985_v24  ;;  %v6445_v44 = vmax.f32 %v5544_v0, 0.0  ;;  %v13865_v25 = vld [vmem:[#allocation151_spill] sm:$0xff] }
 0x4a1   :  { %v5358_v9 = vpop.f32.mrf.mxu0  ;;  %6049 = vmatmul.mubr.bf16.gmra.mxu0 %v13856_v14  ;;  %v12281_v6 = vrot.slane %v8484_v8, %v13863_v19 }
 0x4a2   :  { %v5551_v37 = vpop.f32.mrf.mxu1  ;;  %6242 = vmatmul.mubr.bf16.gmra.mxu1 %v13857_v16  ;;  %v6448_v51 = vmax.f32 %v5546_v11, 0.0  ;;  %v5548_v42 = vadd.f32 %v5547_v13, %v5355_v38  ;;  %v5359_v36 = vadd.f32 %v5358_v9, %v13858_v62  ;;  %6058 = vmatprep.mubr.bf16.mxu0 %v13859_v59  ;;  %v13866_v13 = vsub.s32 3, %v13862_v7  ;;  %v13867_v9 = vld [vmem:[#allocation113_spill] sm:$0xff]  ;;  %v13870_v62 = vld [vmem:[#allocation123_spill] sm:$0xff] }
 0x4a3   :  { %6251 = vmatprep.mubr.bf16.mxu1 %v13860_v22  ;;  %v5360_v53 = vpop.f32.mrf.mxu0 }
 0x4a4   :  { %v5553_v55 = vpop.f32.mrf.mxu1  ;;  %v12272_v30 = vpack.c.bf16 %v6448_v51, %v6444_v50  ;;  %v6449_v24 = vmax.f32 %v5548_v42, 0.0  ;;  %v5552_v27 = vadd.f32 %v5551_v37, %v5359_v36  ;;  %v5361_v21 = vadd.f32 %v5360_v53, %v11993_v17  ;;  %v13868_v37 = vld [vmem:[#allocation111_spill] sm:$0xff]  ;;  %v13869_v42 = vld [vmem:[#allocation122_spill] sm:$0xff] }
 0x4a5   :  { %v5362_v35 = vpop.f32.mrf.mxu0  ;;  %v12288_v11 = vrot.slane %v8484_v8, %v13866_v13  ;;  %v8480_v36 = vld [vmem:[%s12818_s11 + $0xc0] sm:$0xff]   ;;  %v13873_v13 = vld [vmem:[#allocation126_spill] sm:$0xff] }
 0x4a6   :  { %13861 = vst [vmem:[#allocation152_spill] sm:$0xff] %v12272_v30  ;;  %v5555_v31 = vpop.f32.mrf.mxu1  ;;  %v5554_v46 = vadd.f32 %v5553_v55, %v5361_v21  ;;  %v5363_v60 = vadd.f32 %v5362_v35, %v11996_v33  ;;  %v12283_v58 = vpack.c.bf16 %v6449_v24, %v6445_v44  ;;  %v6452_v14 = vmax.f32 %v5552_v27, 0.0  ;;  %7868 = vmatprep.subr.bf16.mxu1 %v8480_v36 }
 0x4a7   :  { %v5364_v0 = vpop.f32.mrf.mxu0 }
 0x4a8   :  { %13864 = vst [vmem:[#allocation65_spill] sm:$0xff] %v12283_v58  ;;  %v5557_v4 = vpop.f32.mrf.mxu1  ;;  %v5556_v56 = vadd.f32 %v5555_v31, %v5363_v60  ;;  %v5365_v17 = vadd.f32 %v5364_v0, %v13865_v25  ;;  %v6453_v59 = vmax.f32 %v5554_v46, 0.0  ;;  %v8481_v46 = vld [vmem:[%s12818_s11 + $0x80] sm:$0xff]  }
 0x4a9   :  { %v5594_v33 = vpop.f32.mrf.mxu0  ;;  %6059 = vmatmul.mubr.bf16.gmra.mxu0 %v13867_v9  ;;  %7869 = vmatpush3.bf16.msra.mxu1 %v8481_v46  ;;  %v13877_v46 = vld [vmem:[#allocation119_spill] sm:$0xff] }
 0x4aa   :  { %v5787_v38 = vpop.f32.mrf.mxu1  ;;  %6252 = vmatmul.mubr.bf16.gmra.mxu1 %v13868_v37  ;;  %v6456_v16 = vmax.f32 %v5556_v56, 0.0  ;;  %v5558_v50 = vadd.f32 %v5557_v4, %v5365_v17  ;;  %v5595_v51 = vadd.f32 %v5594_v33, %v12281_v6  ;;  %6068 = vmatprep.mubr.bf16.mxu0 %v13869_v42  ;;  %v13874_v33 = vld [vmem:[#allocation121_spill] sm:$0xff]  ;;  %v13875_v37 = vld [vmem:[#allocation120_spill] sm:$0xff] }
 0x4ab   :  { %6261 = vmatprep.mubr.bf16.mxu1 %v13870_v62  ;;  %v5596_v22 = vpop.f32.mrf.mxu0 }
 0x4ac   :  { %v5789_v44 = vpop.f32.mrf.mxu1  ;;  %v12298_v53 = vpack.c.bf16 %v6456_v16, %v6452_v14  ;;  %v6457_v55 = vmax.f32 %v5558_v50, 0.0  ;;  %v12300_v24 = vadd.f32 %v5787_v38, %v5595_v51  ;;  %v5597_v27 = vadd.f32 %v5596_v22, %v12288_v11  ;;  %v13876_v14 = vld [vmem:[#allocation44_spill] sm:$0xff] }
 0x4ad   :  { %v5598_v21 = vpop.f32.mrf.mxu0 }
 0x4ae   :  { %13871 = vst [vmem:[#allocation156_spill] sm:$0xff] %v12298_v53  ;;  %v5791_v35 = vpop.f32.mrf.mxu1  ;;  %v12303_v31 = vadd.f32 %v5789_v44, %v5597_v27  ;;  %v5599_v60 = vadd.f32 %v5598_v21, %v12281_v6  ;;  %v12309_v8 = vpack.c.bf16 %v6457_v55, %v6453_v59 }
 0x4af   :  { %v5600_v19 = vpop.f32.mrf.mxu0 }
 0x4b0   :  { %13872 = vst [vmem:[#allocation163_spill] sm:$0xff] %v12309_v8  ;;  %v5793_v0 = vpop.f32.mrf.mxu1  ;;  %v12311_v4 = vadd.f32 %v5791_v35, %v5599_v60  ;;  %v5601_v56 = vadd.f32 %v5600_v19, %v12288_v11  ;;  %v13878_v19 = vld [vmem:[#allocation124_spill] sm:$0xff] }
 0x4b1   :  { %v5604_v25 = vpop.f32.mrf.mxu0  ;;  %6069 = vmatmul.mubr.bf16.gmra.mxu0 %v13873_v13 }
 0x4b2   :  { %v5797_v17 = vpop.f32.mrf.mxu1  ;;  %6262 = vmatmul.mubr.bf16.gmra.mxu1 %v13874_v33  ;;  %v12316_v38 = vadd.f32 %v5793_v0, %v5601_v56  ;;  %v5605_v9 = vadd.f32 %v5604_v25, %v12281_v6  ;;  %6078 = vmatprep.mubr.bf16.mxu0 %v13875_v37  ;;  %v13879_v25 = vld [vmem:[#allocation134_spill] sm:$0xff] }
 0x4b3   :  { %6271 = vmatprep.mubr.bf16.mxu1 %v13876_v14  ;;  %v5606_v16 = vpop.f32.mrf.mxu0 }
 0x4b4   :  { %v5799_v50 = vpop.f32.mrf.mxu1  ;;  %v12321_v51 = vadd.f32 %v5797_v17, %v5605_v9  ;;  %v5607_v42 = vadd.f32 %v5606_v16, %v12288_v11  ;;  %v13880_v17 = vld [vmem:[#allocation129_spill] sm:$0xff] }
 0x4b5   :  { %v5608_v62 = vpop.f32.mrf.mxu0 }
 0x4b6   :  { %v5801_v36 = vpop.f32.mrf.mxu1  ;;  %v12324_v59 = vadd.f32 %v5799_v50, %v5607_v42  ;;  %v5609_v22 = vadd.f32 %v5608_v62, %v12281_v6 }
 0x4b7   :  { %v5610_v44 = vpop.f32.mrf.mxu0 }
 0x4b8   :  { %v5803_v55 = vpop.f32.mrf.mxu1  ;;  %v12327_v27 = vadd.f32 %v5801_v36, %v5609_v22  ;;  %v5611_v21 = vadd.f32 %v5610_v44, %v12288_v11 }
 0x4b9   :  { %v5614_v35 = vpop.f32.mrf.mxu0  ;;  %6079 = vmatmul.mubr.bf16.gmra.mxu0 %v13877_v46 }
 0x4ba   :  { %v5807_v60 = vpop.f32.mrf.mxu1  ;;  %6272 = vmatmul.mubr.bf16.gmra.mxu1 %v13878_v19  ;;  %v12332_v0 = vadd.f32 %v5803_v55, %v5611_v21  ;;  %v5615_v56 = vadd.f32 %v5614_v35, %v12281_v6  ;;  %6088 = vmatprep.mubr.bf16.mxu0 %v13879_v25  ;;  %v13881_v35 = vld [vmem:[#allocation133_spill] sm:$0xff]  ;;  %v13884_v25 = vld [vmem:[#allocation128_spill] sm:$0xff] }
 0x4bb   :  { %6281 = vmatprep.mubr.bf16.mxu1 %v13880_v17  ;;  %v5616_v13 = vpop.f32.mrf.mxu0 }
 0x4bc   :  { %v5809_v33 = vpop.f32.mrf.mxu1  ;;  %v12337_v9 = vadd.f32 %v5807_v60, %v5615_v56  ;;  %v5617_v37 = vadd.f32 %v5616_v13, %v12288_v11  ;;  %v13882_v60 = vld [vmem:[#allocation130_spill] sm:$0xff]  ;;  %v13883_v56 = vld [vmem:[#allocation127_spill] sm:$0xff] }
 0x4bd   :  { %v5618_v14 = vpop.f32.mrf.mxu0 }
 0x4be   :  { %v5811_v16 = vpop.f32.mrf.mxu1  ;;  %v12340_v50 = vadd.f32 %v5809_v33, %v5617_v37  ;;  %v5619_v42 = vadd.f32 %v5618_v14, %v12281_v6 }
 0x4bf   :  { %v5620_v62 = vpop.f32.mrf.mxu0 }
 0x4c0   :  { %v5813_v36 = vpop.f32.mrf.mxu1  ;;  %v12343_v22 = vadd.f32 %v5811_v16, %v5619_v42  ;;  %v5621_v44 = vadd.f32 %v5620_v62, %v12288_v11 }
 0x4c1   :  { %v5624_v55 = vpop.f32.mrf.mxu0  ;;  %6089 = vmatmul.mubr.bf16.gmra.mxu0 %v13881_v35 }
 0x4c2   :  { %v5817_v21 = vpop.f32.mrf.mxu1  ;;  %6282 = vmatmul.mubr.bf16.gmra.mxu1 %v13882_v60  ;;  %v12348_v46 = vadd.f32 %v5813_v36, %v5621_v44  ;;  %v5625_v19 = vadd.f32 %v5624_v55, %v12281_v6  ;;  %6098 = vmatprep.mubr.bf16.mxu0 %v13883_v56 }
 0x4c3   :  { %6291 = vmatprep.mubr.bf16.mxu1 %v13884_v25  ;;  %v5626_v17 = vpop.f32.mrf.mxu0  ;;  %v13885_v25 = vld [vmem:[#allocation131_spill] sm:$0xff] }
 0x4c4   :  { %v5819_v13 = vpop.f32.mrf.mxu1  ;;  %v12353_v33 = vadd.f32 %v5817_v21, %v5625_v19  ;;  %v5627_v37 = vadd.f32 %v5626_v17, %v12288_v11  ;;  %v13886_v21 = vld [vmem:[#allocation132_spill] sm:$0xff] }
 0x4c5   :  { %v5628_v14 = vpop.f32.mrf.mxu0 }
 0x4c6   :  { %v5821_v16 = vpop.f32.mrf.mxu1  ;;  %v12356_v42 = vadd.f32 %v5819_v13, %v5627_v37  ;;  %v5629_v62 = vadd.f32 %v5628_v14, %v12281_v6  ;;  %v13887_v13 = vld [vmem:[#allocation141_spill] sm:$0xff]  ;;  %v13888_v37 = vld [vmem:[#allocation142_spill] sm:$0xff] }
 0x4c7   :  { %v5630_v36 = vpop.f32.mrf.mxu0 }
 0x4c8   :  { %v5823_v44 = vpop.f32.mrf.mxu1  ;;  %v12359_v35 = vadd.f32 %v5821_v16, %v5629_v62  ;;  %v5631_v55 = vadd.f32 %v5630_v36, %v12288_v11 }
 0x4c9   :  { %v5634_v60 = vpop.f32.mrf.mxu0  ;;  %6099 = vmatmul.mubr.bf16.gmra.mxu0 %v13885_v25 }
 0x4ca   :  { %v5827_v56 = vpop.f32.mrf.mxu1  ;;  %6292 = vmatmul.mubr.bf16.gmra.mxu1 %v13886_v21  ;;  %v12364_v19 = vadd.f32 %v5823_v44, %v5631_v55  ;;  %v5635_v17 = vadd.f32 %v5634_v60, %v12281_v6  ;;  %6108 = vmatprep.mubr.bf16.mxu0 %v13887_v13 }
 0x4cb   :  { %6301 = vmatprep.mubr.bf16.mxu1 %v13888_v37  ;;  %v5636_v14 = vpop.f32.mrf.mxu0  ;;  %v13891_v37 = vld [vmem:[#allocation137_spill] sm:$0xff] }
 0x4cc   :  { %v5829_v7 = vpop.f32.mrf.mxu1  ;;  %v12369_v16 = vadd.f32 %v5827_v56, %v5635_v17  ;;  %v5637_v62 = vadd.f32 %v5636_v14, %v12288_v11  ;;  %v13892_v56 = vld [vmem:[#allocation138_spill] sm:$0xff]  ;;  %v13893_v14 = vld [vmem:[#allocation139_spill] sm:$0xff] }
 0x4cd   :  { %v5638_v36 = vpop.f32.mrf.mxu0 }
 0x4ce   :  { %v5831_v53 = vpop.f32.mrf.mxu1  ;;  %v12372_v8 = vadd.f32 %v5829_v7, %v5637_v62  ;;  %v5639_v25 = vadd.f32 %v5638_v36, %v12281_v6  ;;  %v13894_v7 = vld [vmem:[#allocation135_spill] sm:$0xff] }
 0x4cf   :  { %v12375_v44 = vpop.f32.mrf.mxu0 }
 0x4d0   :  { %v12377_v55 = vpop.f32.mrf.mxu1  ;;  %v12379_v60 = vadd.f32 %v5831_v53, %v5639_v25 }
 0x4d1   :  { %13889 = vst [vmem:[#allocation165_spill] sm:$0xff] %v12377_v55  ;;  %v5644_v21 = vpop.f32.mrf.mxu0  ;;  %6109 = vmatmul.mubr.bf16.gmra.mxu0 %v13891_v37  ;;  %v13900_v55 = vld [vmem:[#allocation136_spill] sm:$0xff] }
 0x4d2   :  { %13890 = vst [vmem:[#allocation166_spill] sm:$0xff] %v12379_v60  ;;  %v5837_v13 = vpop.f32.mrf.mxu1  ;;  %6302 = vmatmul.mubr.bf16.gmra.mxu1 %v13892_v56  ;;  %v5645_v17 = vadd.f32 %v5644_v21, %v12281_v6  ;;  %6118 = vmatprep.mubr.bf16.mxu0 %v13893_v14 }
 0x4d3   :  { %6311 = vmatprep.mubr.bf16.mxu1 %v13894_v7  ;;  %v5646_v62 = vpop.f32.mrf.mxu0 }
 0x4d4   :  { %v5839_v36 = vpop.f32.mrf.mxu1  ;;  %v12386_v30 = vadd.f32 %v5837_v13, %v5645_v17  ;;  %v5647_v58 = vadd.f32 %v5646_v62, %v12288_v11  ;;  %v13901_v13 = vld [vmem:[#allocation61_spill] sm:$0xff]  ;;  %v13902_v62 = vld [vmem:[#allocation140_spill] sm:$0xff] }
 0x4d5   :  { %v5648_v53 = vpop.f32.mrf.mxu0 }
 0x4d6   :  { %13895 = vst [vmem:[#allocation159_spill] sm:$0xff] %v12386_v30  ;;  %v5841_v25 = vpop.f32.mrf.mxu1  ;;  %v12389_v10 = vadd.f32 %v5839_v36, %v5647_v58  ;;  %v5649_v37 = vadd.f32 %v5648_v53, %v12281_v6  ;;  %v13903_v58 = vld [vmem:[#allocation149_spill] sm:$0xff] }
 0x4d7   :  { %v12392_v60 = vpop.f32.mrf.mxu0 }
 0x4d8   :  { %13896 = vst [vmem:[#allocation161_spill] sm:$0xff] %v12389_v10  ;;  %13897 = vst [vmem:[#allocation162_spill] sm:$0xff] %v12392_v60  ;;  %v12394_v56 = vpop.f32.mrf.mxu1  ;;  %v12396_v21 = vadd.f32 %v5841_v25, %v5649_v37  ;;  %v13907_v60 = vld [vmem:[#allocation150_spill] sm:$0xff] }
 0x4d9   :  { %13898 = vst [vmem:[#allocation160_spill] sm:$0xff] %v12394_v56  ;;  %v5654_v14 = vpop.f32.mrf.mxu0  ;;  %6119 = vmatmul.mubr.bf16.gmra.mxu0 %v13900_v55 }
 0x4da   :  { %13899 = vst [vmem:[#allocation164_spill] sm:$0xff] %v12396_v21  ;;  %v5847_v7 = vpop.f32.mrf.mxu1  ;;  %6312 = vmatmul.mubr.bf16.gmra.mxu1 %v13901_v13  ;;  %v5655_v17 = vadd.f32 %v5654_v14, %v12281_v6  ;;  %6128 = vmatprep.mubr.bf16.mxu0 %v13902_v62 }
 0x4db   :  { %6321 = vmatprep.mubr.bf16.mxu1 %v13903_v58  ;;  %v5656_v36 = vpop.f32.mrf.mxu0 }
 0x4dc   :  { %v5849_v53 = vpop.f32.mrf.mxu1  ;;  %v12403_v10 = vadd.f32 %v5847_v7, %v5655_v17  ;;  %v5657_v56 = vadd.f32 %v5656_v36, %v12288_v11  ;;  %v13908_v7 = vld [vmem:[#allocation145_spill] sm:$0xff] }
 0x4dd   :  { %v5658_v25 = vpop.f32.mrf.mxu0 }
 0x4de   :  { %v5851_v37 = vpop.f32.mrf.mxu1  ;;  %v12406_v21 = vadd.f32 %v5849_v53, %v5657_v56  ;;  %v5659_v55 = vadd.f32 %v5658_v25, %v12281_v6 }
 0x4df   :  { %v12409_v30 = vpop.f32.mrf.mxu0 }
 0x4e0   :  { %13904 = vst [vmem:[#allocation167_spill] sm:$0xff] %v12406_v21  ;;  %v12411_v13 = vpop.f32.mrf.mxu1  ;;  %v12413_v14 = vadd.f32 %v5851_v37, %v5659_v55 }
 0x4e1   :  { %13905 = vst [vmem:[#allocation171_spill] sm:$0xff] %v12411_v13  ;;  %v5664_v62 = vpop.f32.mrf.mxu0  ;;  %6129 = vmatmul.mubr.bf16.gmra.mxu0 %v13907_v60 }
 0x4e2   :  { %13906 = vst [vmem:[#allocation173_spill] sm:$0xff] %v12413_v14  ;;  %v5857_v58 = vpop.f32.mrf.mxu1  ;;  %6322 = vmatmul.mubr.bf16.gmra.mxu1 %v13908_v7  ;;  %v5665_v17 = vadd.f32 %v5664_v62, %v12281_v6  ;;  %6819 = vmatprep.mubr.bf16.mxu0 %v12018_v39 }
 0x4e3   :  { %v5666_v56 = vpop.f32.mrf.mxu0 }
 0x4e4   :  { %v5859_v36 = vpop.f32.mrf.mxu1  ;;  %v12419_v53 = vadd.f32 %v5857_v58, %v5665_v17  ;;  %v5667_v25 = vadd.f32 %v5666_v56, %v12288_v11 }
 0x4e5   :  { %v5668_v21 = vpop.f32.mrf.mxu0 }
 0x4e6   :  { %13909 = vst [vmem:[#allocation174_spill] sm:$0xff] %v12419_v53  ;;  %v5861_v13 = vpop.f32.mrf.mxu1  ;;  %v12422_v37 = vadd.f32 %v5859_v36, %v5667_v25  ;;  %v5669_v55 = vadd.f32 %v5668_v21, %v12281_v6 }
 0x4e7   :  { %v12425_v14 = vpop.f32.mrf.mxu0 }
 0x4e8   :  { %13910 = vst [vmem:[#allocation169_spill] sm:$0xff] %v12422_v37  ;;  %v12427_v60 = vpop.f32.mrf.mxu1  ;;  %v12429_v7 = vadd.f32 %v5861_v13, %v5669_v55 }
 0x4e9   :  { %v5674_v62 = vpop.f32.mrf.mxu0  ;;  %6820 = vmatmul.mubr.bf16.vlgmr.msra.gmra.mxu0 %v12014_v28 }
 0x4ea   :  { %13911 = vst [vmem:[#allocation172_spill] sm:$0xff] %v12429_v7  ;;  %v5867_v39 = vpop.f32.mrf.mxu1  ;;  %v5675_v58 = vadd.f32 %v5674_v62, %v12281_v6  ;;  %6827 = vmatprep.mubr.bf16.mxu0 %v12036_v45 }
 0x4eb   :  { %v5676_v17 = vpop.f32.mrf.mxu0 }
 0x4ec   :  { %v5869_v56 = vpop.f32.mrf.mxu1  ;;  %v12434_v36 = vadd.f32 %v5867_v39, %v5675_v58  ;;  %v5677_v21 = vadd.f32 %v5676_v17, %v12288_v11 }
 0x4ed   :  { %v5678_v25 = vpop.f32.mrf.mxu0 }
 0x4ee   :  { %13912 = vst [vmem:[#allocation73_spill] sm:$0xff] %v12434_v36  ;;  %v5871_v37 = vpop.f32.mrf.mxu1  ;;  %v12437_v53 = vadd.f32 %v5869_v56, %v5677_v21  ;;  %v5679_v13 = vadd.f32 %v5678_v25, %v12281_v6 }
 0x4ef   :  { %v12440_v55 = vpop.f32.mrf.mxu0 }
 0x4f0   :  { %13913 = vst [vmem:[#allocation170_spill] sm:$0xff] %v12437_v53  ;;  %v12442_v7 = vpop.f32.mrf.mxu1  ;;  %v12444_v28 = vadd.f32 %v5871_v37, %v5679_v13 }
 0x4f1   :  { %v5684_v62 = vpop.f32.mrf.mxu0  ;;  %6828 = vmatmul.mubr.bf16.gmra.mxu0 %v12032_v20 }
 0x4f2   :  { %13914 = vst [vmem:[#allocation252_spill] sm:$0xff] %v12444_v28  ;;  %v5877_v45 = vpop.f32.mrf.mxu1  ;;  %v5685_v39 = vadd.f32 %v5684_v62, %v12281_v6  ;;  %6835 = vmatprep.mubr.bf16.mxu0 %v12048_v3 }
 0x4f3   :  { %v5686_v58 = vpop.f32.mrf.mxu0 }
 0x4f4   :  { %v5879_v17 = vpop.f32.mrf.mxu1  ;;  %v12449_v56 = vadd.f32 %v5877_v45, %v5685_v39  ;;  %v5687_v21 = vadd.f32 %v5686_v58, %v12288_v11 }
 0x4f5   :  { %v5688_v25 = vpop.f32.mrf.mxu0 }
 0x4f6   :  { %13915 = vst [vmem:[#allocation168_spill] sm:$0xff] %v12449_v56  ;;  %v5881_v53 = vpop.f32.mrf.mxu1  ;;  %v12452_v36 = vadd.f32 %v5879_v17, %v5687_v21  ;;  %v5689_v37 = vadd.f32 %v5688_v25, %v12281_v6 }
 0x4f7   :  { %v12455_v13 = vpop.f32.mrf.mxu0 }
 0x4f8   :  { %13916 = vst [vmem:[#allocation64_spill] sm:$0xff] %v12452_v36  ;;  %v12457_v28 = vpop.f32.mrf.mxu1  ;;  %v12459_v20 = vadd.f32 %v5881_v53, %v5689_v37 }
 0x4f9   :  { %v5694_v62 = vpop.f32.mrf.mxu0  ;;  %6836 = vmatmul.mubr.bf16.gmra.mxu0 %v12044_v48 }
 0x4fa   :  { %13917 = vst [vmem:[#allocation179_spill] sm:$0xff] %v12459_v20  ;;  %v5887_v3 = vpop.f32.mrf.mxu1  ;;  %v5695_v45 = vadd.f32 %v5694_v62, %v12281_v6  ;;  %6843 = vmatprep.mubr.bf16.mxu0 %v12060_v43 }
 0x4fb   :  { %v5696_v39 = vpop.f32.mrf.mxu0 }
 0x4fc   :  { %v5889_v58 = vpop.f32.mrf.mxu1  ;;  %v12464_v17 = vadd.f32 %v5887_v3, %v5695_v45  ;;  %v5697_v21 = vadd.f32 %v5696_v39, %v12288_v11 }
 0x4fd   :  { %v5698_v25 = vpop.f32.mrf.mxu0 }
 0x4fe   :  { %13918 = vst [vmem:[#allocation175_spill] sm:$0xff] %v12464_v17  ;;  %v5891_v36 = vpop.f32.mrf.mxu1  ;;  %v12467_v56 = vadd.f32 %v5889_v58, %v5697_v21  ;;  %v5699_v53 = vadd.f32 %v5698_v25, %v12281_v6 }
 0x4ff   :  { %v12470_v37 = vpop.f32.mrf.mxu0 }
 0x500   :  { %13919 = vst [vmem:[#allocation180_spill] sm:$0xff] %v12467_v56  ;;  %v12472_v20 = vpop.f32.mrf.mxu1  ;;  %v12474_v48 = vadd.f32 %v5891_v36, %v5699_v53 }
 0x501   :  { %v5704_v62 = vpop.f32.mrf.mxu0  ;;  %6844 = vmatmul.mubr.bf16.gmra.mxu0 %v12056_v52 }
 0x502   :  { %13920 = vst [vmem:[#allocation181_spill] sm:$0xff] %v12474_v48  ;;  %v5897_v43 = vpop.f32.mrf.mxu1  ;;  %v5705_v3 = vadd.f32 %v5704_v62, %v12281_v6  ;;  %6851 = vmatprep.mubr.bf16.mxu0 %v12072_v32 }
 0x503   :  { %v5706_v45 = vpop.f32.mrf.mxu0 }
 0x504   :  { %v5899_v39 = vpop.f32.mrf.mxu1  ;;  %v12479_v58 = vadd.f32 %v5897_v43, %v5705_v3  ;;  %v5707_v21 = vadd.f32 %v5706_v45, %v12288_v11 }
 0x505   :  { %v5708_v25 = vpop.f32.mrf.mxu0 }
 0x506   :  { %13921 = vst [vmem:[#allocation182_spill] sm:$0xff] %v12479_v58  ;;  %v5901_v56 = vpop.f32.mrf.mxu1  ;;  %v12482_v17 = vadd.f32 %v5899_v39, %v5707_v21  ;;  %v5709_v36 = vadd.f32 %v5708_v25, %v12281_v6 }
 0x507   :  { %v12485_v53 = vpop.f32.mrf.mxu0 }
 0x508   :  { %13922 = vst [vmem:[#allocation176_spill] sm:$0xff] %v12482_v17  ;;  %v12487_v48 = vpop.f32.mrf.mxu1  ;;  %v12489_v52 = vadd.f32 %v5901_v56, %v5709_v36 }
 0x509   :  { %v5714_v62 = vpop.f32.mrf.mxu0  ;;  %6852 = vmatmul.mubr.bf16.gmra.mxu0 %v12068_v26 }
 0x50a   :  { %13923 = vst [vmem:[#allocation177_spill] sm:$0xff] %v12489_v52  ;;  %v5907_v32 = vpop.f32.mrf.mxu1  ;;  %v5715_v43 = vadd.f32 %v5714_v62, %v12281_v6  ;;  %6859 = vmatprep.mubr.bf16.mxu0 %v12084_v18 }
 0x50b   :  { %v5716_v3 = vpop.f32.mrf.mxu0 }
 0x50c   :  { %v5909_v45 = vpop.f32.mrf.mxu1  ;;  %v12494_v39 = vadd.f32 %v5907_v32, %v5715_v43  ;;  %v5717_v21 = vadd.f32 %v5716_v3, %v12288_v11 }
 0x50d   :  { %v5718_v25 = vpop.f32.mrf.mxu0 }
 0x50e   :  { %13924 = vst [vmem:[#allocation178_spill] sm:$0xff] %v12494_v39  ;;  %v5911_v17 = vpop.f32.mrf.mxu1  ;;  %v12497_v58 = vadd.f32 %v5909_v45, %v5717_v21  ;;  %v5719_v56 = vadd.f32 %v5718_v25, %v12281_v6 }
 0x50f   :  { %v12500_v36 = vpop.f32.mrf.mxu0 }
 0x510   :  { %13925 = vst [vmem:[#allocation249_spill] sm:$0xff] %v12497_v58  ;;  %v12502_v52 = vpop.f32.mrf.mxu1  ;;  %v12504_v26 = vadd.f32 %v5911_v17, %v5719_v56 }
 0x511   :  { %v5724_v62 = vpop.f32.mrf.mxu0  ;;  %6860 = vmatmul.mubr.bf16.gmra.mxu0 %v12080_v47 }
 0x512   :  { %13926 = vst [vmem:[#allocation183_spill] sm:$0xff] %v12504_v26  ;;  %v5917_v18 = vpop.f32.mrf.mxu1  ;;  %v5725_v32 = vadd.f32 %v5724_v62, %v12281_v6  ;;  %6867 = vmatprep.mubr.bf16.mxu0 %v12096_v57 }
 0x513   :  { %v5726_v43 = vpop.f32.mrf.mxu0 }
 0x514   :  { %v5919_v3 = vpop.f32.mrf.mxu1  ;;  %v12509_v45 = vadd.f32 %v5917_v18, %v5725_v32  ;;  %v5727_v21 = vadd.f32 %v5726_v43, %v12288_v11 }
 0x515   :  { %v5728_v25 = vpop.f32.mrf.mxu0 }
 0x516   :  { %13927 = vst [vmem:[#allocation187_spill] sm:$0xff] %v12509_v45  ;;  %v5921_v58 = vpop.f32.mrf.mxu1  ;;  %v12512_v39 = vadd.f32 %v5919_v3, %v5727_v21  ;;  %v5729_v17 = vadd.f32 %v5728_v25, %v12281_v6 }
 0x517   :  { %v12515_v56 = vpop.f32.mrf.mxu0 }
 0x518   :  { %13928 = vst [vmem:[#allocation184_spill] sm:$0xff] %v12512_v39  ;;  %v12517_v26 = vpop.f32.mrf.mxu1  ;;  %v12519_v47 = vadd.f32 %v5921_v58, %v5729_v17 }
 0x519   :  { %v5734_v62 = vpop.f32.mrf.mxu0  ;;  %6868 = vmatmul.mubr.bf16.gmra.mxu0 %v12092_v2 }
 0x51a   :  { %13929 = vst [vmem:[#allocation188_spill] sm:$0xff] %v12519_v47  ;;  %v5927_v57 = vpop.f32.mrf.mxu1  ;;  %v5735_v18 = vadd.f32 %v5734_v62, %v12281_v6  ;;  %6875 = vmatprep.mubr.bf16.mxu0 %v12132_v12 }
 0x51b   :  { %v5736_v32 = vpop.f32.mrf.mxu0 }
 0x51c   :  { %v5929_v43 = vpop.f32.mrf.mxu1  ;;  %v12524_v3 = vadd.f32 %v5927_v57, %v5735_v18  ;;  %v5737_v21 = vadd.f32 %v5736_v32, %v12288_v11 }
 0x51d   :  { %v5738_v25 = vpop.f32.mrf.mxu0 }
 0x51e   :  { %13930 = vst [vmem:[#allocation79_spill] sm:$0xff] %v12524_v3  ;;  %v5931_v39 = vpop.f32.mrf.mxu1  ;;  %v12527_v45 = vadd.f32 %v5929_v43, %v5737_v21  ;;  %v5739_v58 = vadd.f32 %v5738_v25, %v12281_v6 }
 0x51f   :  { %v12530_v17 = vpop.f32.mrf.mxu0 }
 0x520   :  { %13931 = vst [vmem:[#allocation185_spill] sm:$0xff] %v12527_v45  ;;  %v12532_v47 = vpop.f32.mrf.mxu1  ;;  %v12534_v2 = vadd.f32 %v5931_v39, %v5739_v58 }
 0x521   :  { %v5744_v62 = vpop.f32.mrf.mxu0  ;;  %6876 = vmatmul.mubr.bf16.gmra.mxu0 %v12122_v49 }
 0x522   :  { %13932 = vst [vmem:[#allocation72_spill] sm:$0xff] %v12534_v2  ;;  %v5937_v12 = vpop.f32.mrf.mxu1  ;;  %v5745_v57 = vadd.f32 %v5744_v62, %v12281_v6  ;;  %6883 = vmatprep.mubr.bf16.mxu0 %v12165_v61 }
 0x523   :  { %v5746_v18 = vpop.f32.mrf.mxu0 }
 0x524   :  { %v5939_v32 = vpop.f32.mrf.mxu1  ;;  %v12539_v43 = vadd.f32 %v5937_v12, %v5745_v57  ;;  %v5747_v21 = vadd.f32 %v5746_v18, %v12288_v11 }
 0x525   :  { %v5748_v25 = vpop.f32.mrf.mxu0 }
 0x526   :  { %13933 = vst [vmem:[#allocation189_spill] sm:$0xff] %v12539_v43  ;;  %v5941_v45 = vpop.f32.mrf.mxu1  ;;  %v12542_v3 = vadd.f32 %v5939_v32, %v5747_v21  ;;  %v5749_v39 = vadd.f32 %v5748_v25, %v12281_v6 }
 0x527   :  { %v12545_v58 = vpop.f32.mrf.mxu0 }
 0x528   :  { %13934 = vst [vmem:[#allocation83_spill] sm:$0xff] %v12542_v3  ;;  %13935 = vst [vmem:[#allocation190_spill] sm:$0xff] %v12545_v58  ;;  %v12547_v2 = vpop.f32.mrf.mxu1  ;;  %v12549_v49 = vadd.f32 %v5941_v45, %v5749_v39 }
 0x529   :  { %13936 = vst [vmem:[#allocation84_spill] sm:$0xff] %v12547_v2  ;;  %v5980_v62 = vpop.f32.mrf.mxu0  ;;  %6884 = vmatmul.mubr.bf16.gmra.mxu0 %v12158_v23 }
 0x52a   :  { %13937 = vst [vmem:[#allocation186_spill] sm:$0xff] %v12549_v49  ;;  %v6173_v61 = vpop.f32.mrf.mxu1  ;;  %v5981_v12 = vadd.f32 %v5980_v62, %v12300_v24  ;;  %6891 = vmatprep.mubr.bf16.mxu0 %v12195_v5 }
 0x52b   :  { %v5982_v57 = vpop.f32.mrf.mxu0 }
 0x52c   :  { %v6175_v18 = vpop.f32.mrf.mxu1  ;;  %v5983_v32 = vadd.f32 %v5982_v57, %v12303_v31  ;;  %v6174_v25 = vadd.f32 %v6173_v61, %v5981_v12 }
 0x52d   :  { %v5984_v21 = vpop.f32.mrf.mxu0 }
 0x52e   :  { %v6177_v6 = vpop.f32.mrf.mxu1  ;;  %v5985_v3 = vadd.f32 %v5984_v21, %v12311_v4  ;;  %v6176_v39 = vadd.f32 %v6175_v18, %v5983_v32  ;;  %v6334_v5 = vmax.f32 %v6174_v25, 0.0 }
 0x52f   :  { %v5986_v2 = vpop.f32.mrf.mxu0 }
 0x530   :  { %v6179_v45 = vpop.f32.mrf.mxu1  ;;  %v6178_v49 = vadd.f32 %v6177_v6, %v5985_v3  ;;  %v5987_v43 = vadd.f32 %v5986_v2, %v12316_v38  ;;  %v6335_v4 = vmax.f32 %v6176_v39, 0.0 }
 0x531   :  { %v5990_v23 = vpop.f32.mrf.mxu0  ;;  %6892 = vmatmul.mubr.bf16.gmra.mxu0 %v12185_v63 }
 0x532   :  { %v6183_v58 = vpop.f32.mrf.mxu1  ;;  %v6338_v24 = vmax.f32 %v6178_v49, 0.0  ;;  %v6180_v62 = vadd.f32 %v6179_v45, %v5987_v43  ;;  %v5991_v31 = vadd.f32 %v5990_v23, %v12321_v51  ;;  %6899 = vmatprep.mubr.bf16.mxu0 %v12216_v54 }
 0x533   :  { %v5992_v61 = vpop.f32.mrf.mxu0 }
 0x534   :  { %v6185_v12 = vpop.f32.mrf.mxu1  ;;  %v6462_v57 = vpack.c.bf16 %v6338_v24, %v6334_v5  ;;  %v6339_v21 = vmax.f32 %v6180_v62, 0.0  ;;  %v5993_v3 = vadd.f32 %v5992_v61, %v12324_v59  ;;  %v6184_v2 = vadd.f32 %v6183_v58, %v5991_v31 }
 0x535   :  { %v5994_v18 = vpop.f32.mrf.mxu0 }
 0x536   :  { %v6187_v38 = vpop.f32.mrf.mxu1  ;;  %v5995_v32 = vadd.f32 %v5994_v18, %v12327_v27  ;;  %v6463_v63 = vpack.c.bf16 %v6339_v21, %v6335_v4  ;;  %v6186_v43 = vadd.f32 %v6185_v12, %v5993_v3  ;;  %v6342_v39 = vmax.f32 %v6184_v2, 0.0 }
 0x537   :  { %v5996_v6 = vpop.f32.mrf.mxu0 }
 0x538   :  { %v6189_v49 = vpop.f32.mrf.mxu1  ;;  %v6188_v25 = vadd.f32 %v6187_v38, %v5995_v32  ;;  %v5997_v51 = vadd.f32 %v5996_v6, %v12332_v0  ;;  %6980 = vmatprep.mubr.bf16.mxu1 %v6463_v63  ;;  %v6343_v24 = vmax.f32 %v6186_v43, 0.0 }
 0x539   :  { %v6000_v54 = vpop.f32.mrf.mxu0  ;;  %6900 = vmatmul.mubr.bf16.gmra.mxu0 %v12212_v1  ;;  %6981 = vmatmul.mubr.bf16.vlgmr.msra.gmra.mxu1 %v6462_v57 }
 0x53a   :  { %v6193_v45 = vpop.f32.mrf.mxu1  ;;  %v6346_v59 = vmax.f32 %v6188_v25, 0.0  ;;  %v6190_v23 = vadd.f32 %v6189_v49, %v5997_v51  ;;  %v6001_v58 = vadd.f32 %v6000_v54, %v12337_v9  ;;  %6907 = vmatprep.mubr.bf16.mxu0 %v12234_v41 }
 0x53b   :  { %v6002_v27 = vpop.f32.mrf.mxu0 }
 0x53c   :  { %v6195_v5 = vpop.f32.mrf.mxu1  ;;  %v6466_v62 = vpack.c.bf16 %v6346_v59, %v6342_v39  ;;  %v6347_v31 = vmax.f32 %v6190_v23, 0.0  ;;  %v6003_v0 = vadd.f32 %v6002_v27, %v12340_v50  ;;  %v6194_v4 = vadd.f32 %v6193_v45, %v6001_v58 }
 0x53d   :  { %v6004_v61 = vpop.f32.mrf.mxu0 }
 0x53e   :  { %v6197_v12 = vpop.f32.mrf.mxu1  ;;  %v6005_v1 = vadd.f32 %v6004_v61, %v12343_v22  ;;  %v6467_v57 = vpack.c.bf16 %v6347_v31, %v6343_v24  ;;  %v6196_v18 = vadd.f32 %v6195_v5, %v6003_v0  ;;  %v6350_v32 = vmax.f32 %v6194_v4, 0.0 }
 0x53f   :  { %v6006_v21 = vpop.f32.mrf.mxu0 }
 0x540   :  { %v6199_v3 = vpop.f32.mrf.mxu1  ;;  %v6198_v38 = vadd.f32 %v6197_v12, %v6005_v1  ;;  %v6007_v9 = vadd.f32 %v6006_v21, %v12348_v46  ;;  %6988 = vmatprep.mubr.bf16.mxu1 %v6467_v57  ;;  %v6351_v43 = vmax.f32 %v6196_v18, 0.0 }
 0x541   :  { %v6010_v41 = vpop.f32.mrf.mxu0  ;;  %6908 = vmatmul.mubr.bf16.gmra.mxu0 %v12227_v29  ;;  %6989 = vmatmul.mubr.bf16.gmra.mxu1 %v6466_v62 }
 0x542   :  { %v6203_v2 = vpop.f32.mrf.mxu1  ;;  %v6354_v50 = vmax.f32 %v6198_v38, 0.0  ;;  %v6200_v63 = vadd.f32 %v6199_v3, %v6007_v9  ;;  %v6011_v6 = vadd.f32 %v6010_v41, %v12353_v33  ;;  %6915 = vmatprep.mubr.bf16.mxu0 %v12246_v34  ;;  %v5641_v34 = vadd.f32 %v12375_v44, %v12288_v11  ;;  %v13938_v3 = vld [vmem:[#allocation165_spill] sm:$0xff]  ;;  %v13939_v38 = vld [vmem:[#allocation166_spill] sm:$0xff] }
 0x543   :  { %v6012_v22 = vpop.f32.mrf.mxu0 }
 0x544   :  { %v6205_v49 = vpop.f32.mrf.mxu1  ;;  %v6470_v25 = vpack.c.bf16 %v6354_v50, %v6350_v32  ;;  %v6355_v51 = vmax.f32 %v6200_v63, 0.0  ;;  %v6013_v46 = vadd.f32 %v6012_v22, %v12356_v42  ;;  %v6204_v39 = vadd.f32 %v6203_v2, %v6011_v6  ;;  %v13940_v63 = vld [vmem:[#allocation162_spill] sm:$0xff] }
 0x545   :  { %v6014_v54 = vpop.f32.mrf.mxu0  ;;  %v5834_v18 = vadd.f32 %v13938_v3, %v5641_v34  ;;  %v5651_v6 = vadd.f32 %v13940_v63, %v12288_v11  ;;  %v13947_v3 = vld [vmem:[#allocation152_spill] sm:$0xff]  ;;  %v13949_v63 = vld [vmem:[#allocation167_spill] sm:$0xff] }
 0x546   :  { %v6207_v45 = vpop.f32.mrf.mxu1  ;;  %v6015_v29 = vadd.f32 %v6014_v54, %v12359_v35  ;;  %v6471_v59 = vpack.c.bf16 %v6355_v51, %v6351_v43  ;;  %v6206_v27 = vadd.f32 %v6205_v49, %v6013_v46  ;;  %v6358_v42 = vmax.f32 %v6204_v39, 0.0  ;;  %v13942_v46 = vld [vmem:[#allocation159_spill] sm:$0xff] }
 0x547   :  { %v6016_v23 = vpop.f32.mrf.mxu0 }
 0x548   :  { %v6209_v58 = vpop.f32.mrf.mxu1  ;;  %v6208_v5 = vadd.f32 %v6207_v45, %v6015_v29  ;;  %v6017_v33 = vadd.f32 %v6016_v23, %v12364_v19  ;;  %6996 = vmatprep.mubr.bf16.mxu1 %v6471_v59  ;;  %v6359_v4 = vmax.f32 %v6206_v27, 0.0  ;;  %v13943_v45 = vld [vmem:[#allocation65_spill] sm:$0xff] }
 0x549   :  { %v6020_v24 = vpop.f32.mrf.mxu0  ;;  %6916 = vmatmul.mubr.bf16.gmra.mxu0 %v12242_v15  ;;  %6997 = vmatmul.mubr.bf16.gmra.mxu1 %v6470_v25  ;;  %v13944_v27 = vld [vmem:[#allocation161_spill] sm:$0xff] }
 0x54a   :  { %v6213_v62 = vpop.f32.mrf.mxu1  ;;  %v6362_v31 = vmax.f32 %v6208_v5, 0.0  ;;  %v6210_v0 = vadd.f32 %v6209_v58, %v6017_v33  ;;  %v6021_v35 = vadd.f32 %v6020_v24, %v12369_v16  ;;  %6923 = vmatprep.mubr.bf16.mxu0 %v12264_v40  ;;  %v13945_v24 = vld [vmem:[#allocation160_spill] sm:$0xff] }
 0x54b   :  { %v6022_v61 = vpop.f32.mrf.mxu0 }
 0x54c   :  { %v6215_v12 = vpop.f32.mrf.mxu1  ;;  %v6474_v19 = vpack.c.bf16 %v6362_v31, %v6358_v42  ;;  %v6363_v1 = vmax.f32 %v6210_v0, 0.0  ;;  %v6023_v57 = vadd.f32 %v6022_v61, %v12372_v8  ;;  %v6214_v15 = vadd.f32 %v6213_v62, %v6021_v35  ;;  %v13941_v8 = vld [vmem:[#allocation242_spill] sm:$0xff]  ;;  %v13946_v0 = vld [vmem:[#allocation164_spill] sm:$0xff] }
 0x54d   :  { %v6024_v44 = vpop.f32.mrf.mxu0  ;;  %v5844_v62 = vadd.f32 %v13945_v24, %v5651_v6  ;;  %v13953_v24 = vld [vmem:[#allocation174_spill] sm:$0xff] }
 0x54e   :  { %v6217_v21 = vpop.f32.mrf.mxu1  ;;  %v6025_v9 = vadd.f32 %v6024_v44, %v13939_v38  ;;  %v6475_v41 = vpack.c.bf16 %v6363_v1, %v6359_v4  ;;  %v6216_v16 = vadd.f32 %v6215_v12, %v6023_v57  ;;  %v6366_v43 = vmax.f32 %v6214_v15, 0.0 }
 0x54f   :  { %v6026_v2 = vpop.f32.mrf.mxu0  ;;  %v5661_v57 = vadd.f32 %v12409_v30, %v12288_v11 }
 0x550   :  { %v6219_v32 = vpop.f32.mrf.mxu1  ;;  %v6218_v50 = vadd.f32 %v6217_v21, %v6025_v9  ;;  %v6027_v40 = vadd.f32 %v6026_v2, %v5834_v18  ;;  %7004 = vmatprep.mubr.bf16.mxu1 %v6475_v41  ;;  %v6367_v59 = vmax.f32 %v6216_v16, 0.0  ;;  %v13948_v41 = vld [vmem:[#allocation163_spill] sm:$0xff] }
 0x551   :  { %v6030_v22 = vpop.f32.mrf.mxu0  ;;  %6924 = vmatmul.mubr.bf16.gmra.mxu0 %v13941_v8  ;;  %7005 = vmatmul.mubr.bf16.gmra.mxu1 %v6474_v19 }
 0x552   :  { %v6223_v49 = vpop.f32.mrf.mxu1  ;;  %v6370_v25 = vmax.f32 %v6218_v50, 0.0  ;;  %v6220_v51 = vadd.f32 %v6219_v32, %v6027_v40  ;;  %v6031_v54 = vadd.f32 %v6030_v22, %v13942_v46  ;;  %6931 = vmatprep.mubr.bf16.mxu0 %v13943_v45 }
 0x553   :  { %v6032_v39 = vpop.f32.mrf.mxu0 }
 0x554   :  { %v6225_v29 = vpop.f32.mrf.mxu1  ;;  %v6478_v23 = vpack.c.bf16 %v6370_v25, %v6366_v43  ;;  %v6371_v58 = vmax.f32 %v6220_v51, 0.0  ;;  %v6033_v5 = vadd.f32 %v6032_v39, %v13944_v27  ;;  %v6224_v31 = vadd.f32 %v6223_v49, %v6031_v54  ;;  %v13950_v49 = vld [vmem:[#allocation171_spill] sm:$0xff]  ;;  %v13951_v51 = vld [vmem:[#allocation173_spill] sm:$0xff]  ;;  %v13952_v27 = vld [vmem:[#allocation156_spill] sm:$0xff] }
 0x555   :  { %v6034_v33 = vpop.f32.mrf.mxu0  ;;  %v5854_v8 = vadd.f32 %v13950_v49, %v5661_v57 }
 0x556   :  { %v6227_v34 = vpop.f32.mrf.mxu1  ;;  %v6479_v42 = vpack.c.bf16 %v6371_v58, %v6367_v59  ;;  %v6035_v35 = vadd.f32 %v6034_v33, %v13946_v0  ;;  %v6226_v4 = vadd.f32 %v6225_v29, %v6033_v5  ;;  %v6374_v18 = vmax.f32 %v6224_v31, 0.0 }
 0x557   :  { %v6036_v61 = vpop.f32.mrf.mxu0  ;;  %v5671_v59 = vadd.f32 %v12425_v14, %v12288_v11 }
 0x558   :  { %v6229_v12 = vpop.f32.mrf.mxu1  ;;  %v6228_v19 = vadd.f32 %v6227_v34, %v6035_v35  ;;  %v6037_v1 = vadd.f32 %v6036_v61, %v5844_v62  ;;  %7012 = vmatprep.mubr.bf16.mxu1 %v6479_v42  ;;  %v6375_v16 = vmax.f32 %v6226_v4, 0.0 }
 0x559   :  { %v6040_v44 = vpop.f32.mrf.mxu0  ;;  %6932 = vmatmul.mubr.bf16.gmra.mxu0 %v13947_v3  ;;  %7013 = vmatmul.mubr.bf16.gmra.mxu1 %v6478_v23  ;;  %v5864_v14 = vadd.f32 %v12427_v60, %v5671_v59  ;;  %v13956_v60 = vld [vmem:[#allocation73_spill] sm:$0xff] }
 0x55a   :  { %v6233_v21 = vpop.f32.mrf.mxu1  ;;  %v6378_v15 = vmax.f32 %v6228_v19, 0.0  ;;  %v6230_v38 = vadd.f32 %v6229_v12, %v6037_v1  ;;  %v6041_v9 = vadd.f32 %v6040_v44, %v12403_v10  ;;  %6939 = vmatprep.mubr.bf16.mxu0 %v13948_v41  ;;  %v13954_v12 = vld [vmem:[#allocation169_spill] sm:$0xff] }
 0x55b   :  { %v6042_v2 = vpop.f32.mrf.mxu0 }
 0x55c   :  { %v6235_v32 = vpop.f32.mrf.mxu1  ;;  %v6482_v50 = vpack.c.bf16 %v6378_v15, %v6374_v18  ;;  %v6379_v40 = vmax.f32 %v6230_v38, 0.0  ;;  %v6043_v6 = vadd.f32 %v6042_v2, %v13949_v63  ;;  %v6234_v25 = vadd.f32 %v6233_v21, %v6041_v9  ;;  %v13955_v21 = vld [vmem:[#allocation172_spill] sm:$0xff] }
 0x55d   :  { %v6044_v30 = vpop.f32.mrf.mxu0  ;;  %v5681_v2 = vadd.f32 %v12440_v55, %v12288_v11 }
 0x55e   :  { %v6237_v22 = vpop.f32.mrf.mxu1  ;;  %v6483_v43 = vpack.c.bf16 %v6379_v40, %v6375_v16  ;;  %v6045_v46 = vadd.f32 %v6044_v30, %v13951_v51  ;;  %v6236_v10 = vadd.f32 %v6235_v32, %v6043_v6  ;;  %v6382_v5 = vmax.f32 %v6234_v25, 0.0  ;;  %v13957_v25 = vld [vmem:[#allocation170_spill] sm:$0xff] }
 0x55f   :  { %v6046_v54 = vpop.f32.mrf.mxu0 }
 0x560   :  { %v6239_v45 = vpop.f32.mrf.mxu1  ;;  %v6238_v39 = vadd.f32 %v6237_v22, %v6045_v46  ;;  %v6047_v29 = vadd.f32 %v6046_v54, %v5854_v8  ;;  %7020 = vmatprep.mubr.bf16.mxu1 %v6483_v43  ;;  %v6383_v0 = vmax.f32 %v6236_v10, 0.0 }
 0x561   :  { %v6050_v23 = vpop.f32.mrf.mxu0  ;;  %6940 = vmatmul.mubr.bf16.gmra.mxu0 %v13952_v27  ;;  %7021 = vmatmul.mubr.bf16.gmra.mxu1 %v6482_v50 }
 0x562   :  { %v6243_v58 = vpop.f32.mrf.mxu1  ;;  %v6386_v33 = vmax.f32 %v6238_v39, 0.0  ;;  %v6240_v34 = vadd.f32 %v6239_v45, %v6047_v29  ;;  %v6051_v62 = vadd.f32 %v6050_v23, %v13953_v24  ;;  %v5874_v45 = vadd.f32 %v12442_v7, %v5681_v2  ;;  %v13958_v39 = vld [vmem:[#allocation252_spill] sm:$0xff] }
 0x563   :  { %v6052_v42 = vpop.f32.mrf.mxu0  ;;  %v13959_v7 = vld [vmem:[#allocation168_spill] sm:$0xff] }
 0x564   :  { %v6245_v31 = vpop.f32.mrf.mxu1  ;;  %v6486_v35 = vpack.c.bf16 %v6386_v33, %v6382_v5  ;;  %v6387_v61 = vmax.f32 %v6240_v34, 0.0  ;;  %v6053_v4 = vadd.f32 %v6052_v42, %v13954_v12  ;;  %v6244_v44 = vadd.f32 %v6243_v58, %v6051_v62 }
 0x565   :  { %v6054_v19 = vpop.f32.mrf.mxu0  ;;  %v5691_v33 = vadd.f32 %v12455_v13, %v12288_v11 }
 0x566   :  { %v6247_v1 = vpop.f32.mrf.mxu1  ;;  %v6487_v57 = vpack.c.bf16 %v6387_v61, %v6383_v0  ;;  %v6055_v3 = vadd.f32 %v6054_v19, %v13955_v21  ;;  %v6246_v38 = vadd.f32 %v6245_v31, %v6053_v4  ;;  %v6390_v50 = vmax.f32 %v6244_v44, 0.0 }
 0x567   :  { %v6056_v18 = vpop.f32.mrf.mxu0  ;;  %v5884_v21 = vadd.f32 %v12457_v28, %v5691_v33  ;;  %v13962_v28 = vld [vmem:[#allocation175_spill] sm:$0xff]  ;;  %v5711_v33 = vadd.f32 %v12485_v53, %v12288_v11 }
 0x568   :  { %v6249_v15 = vpop.f32.mrf.mxu1  ;;  %v6248_v9 = vadd.f32 %v6247_v1, %v6055_v3  ;;  %v6057_v41 = vadd.f32 %v6056_v18, %v5864_v14  ;;  %7028 = vmatprep.mubr.bf16.mxu1 %v6487_v57  ;;  %v6391_v49 = vmax.f32 %v6246_v38, 0.0  ;;  %v13960_v1 = vld [vmem:[#allocation64_spill] sm:$0xff]  ;;  %v13961_v18 = vld [vmem:[#allocation179_spill] sm:$0xff] }
 0x569   :  { %v6060_v32 = vpop.f32.mrf.mxu0  ;;  %7029 = vmatmul.mubr.bf16.gmra.mxu1 %v6486_v35 }
 0x56a   :  { %v6253_v16 = vpop.f32.mrf.mxu1  ;;  %v6394_v40 = vmax.f32 %v6248_v9, 0.0  ;;  %v6250_v63 = vadd.f32 %v6249_v15, %v6057_v41  ;;  %v6061_v6 = vadd.f32 %v6060_v32, %v13956_v60 }
 0x56b   :  { %v6062_v30 = vpop.f32.mrf.mxu0 }
 0x56c   :  { %v6255_v22 = vpop.f32.mrf.mxu1  ;;  %v6490_v8 = vpack.c.bf16 %v6394_v40, %v6390_v50  ;;  %v6395_v43 = vmax.f32 %v6250_v63, 0.0  ;;  %v6063_v51 = vadd.f32 %v6062_v30, %v13957_v25  ;;  %v6254_v10 = vadd.f32 %v6253_v16, %v6061_v6 }
 0x56d   :  { %v6064_v46 = vpop.f32.mrf.mxu0  ;;  %v5701_v16 = vadd.f32 %v12470_v37, %v12288_v11 }
 0x56e   :  { %v6257_v54 = vpop.f32.mrf.mxu1  ;;  %v6491_v55 = vpack.c.bf16 %v6395_v43, %v6391_v49  ;;  %v6065_v29 = vadd.f32 %v6064_v46, %v13958_v39  ;;  %v6256_v58 = vadd.f32 %v6255_v22, %v6063_v51  ;;  %v6398_v62 = vmax.f32 %v6254_v10, 0.0  ;;  %v13963_v51 = vld [vmem:[#allocation180_spill] sm:$0xff]  ;;  %v13964_v39 = vld [vmem:[#allocation181_spill] sm:$0xff] }
 0x56f   :  { %v6066_v59 = vpop.f32.mrf.mxu0 }
 0x570   :  { %v6259_v23 = vpop.f32.mrf.mxu1  ;;  %v6258_v27 = vadd.f32 %v6257_v54, %v6065_v29  ;;  %v6067_v5 = vadd.f32 %v6066_v59, %v5874_v45  ;;  %7036 = vmatprep.mubr.bf16.mxu1 %v6491_v55  ;;  %v6399_v12 = vmax.f32 %v6256_v58, 0.0  ;;  %v5894_v55 = vadd.f32 %v12472_v20, %v5701_v16  ;;  %v13965_v20 = vld [vmem:[#allocation182_spill] sm:$0xff] }
 0x571   :  { %v6070_v34 = vpop.f32.mrf.mxu0  ;;  %7037 = vmatmul.mubr.bf16.gmra.mxu1 %v6490_v8 }
 0x572   :  { %v6263_v24 = vpop.f32.mrf.mxu1  ;;  %v6402_v42 = vmax.f32 %v6258_v27, 0.0  ;;  %v6260_v31 = vadd.f32 %v6259_v23, %v6067_v5  ;;  %v6071_v0 = vadd.f32 %v6070_v34, %v13959_v7 }
 0x573   :  { %v6072_v35 = vpop.f32.mrf.mxu0 }
 0x574   :  { %v6265_v61 = vpop.f32.mrf.mxu1  ;;  %v6494_v4 = vpack.c.bf16 %v6402_v42, %v6398_v62  ;;  %v6403_v19 = vmax.f32 %v6260_v31, 0.0  ;;  %v6073_v14 = vadd.f32 %v6072_v35, %v13960_v1  ;;  %v6264_v3 = vadd.f32 %v6263_v24, %v6071_v0 }
 0x575   :  { %v6074_v57 = vpop.f32.mrf.mxu0 }
 0x576   :  { %v6267_v44 = vpop.f32.mrf.mxu1  ;;  %v6495_v13 = vpack.c.bf16 %v6403_v19, %v6399_v12  ;;  %v6075_v15 = vadd.f32 %v6074_v57, %v13961_v18  ;;  %v6266_v41 = vadd.f32 %v6265_v61, %v6073_v14  ;;  %v6406_v63 = vmax.f32 %v6264_v3, 0.0  ;;  %v13966_v19 = vld [vmem:[#allocation176_spill] sm:$0xff] }
 0x577   :  { %v6076_v38 = vpop.f32.mrf.mxu0 }
 0x578   :  { %v6269_v9 = vpop.f32.mrf.mxu1  ;;  %v6268_v2 = vadd.f32 %v6267_v44, %v6075_v15  ;;  %v6077_v32 = vadd.f32 %v6076_v38, %v5884_v21  ;;  %7044 = vmatprep.mubr.bf16.mxu1 %v6495_v13  ;;  %v6407_v8 = vmax.f32 %v6266_v41, 0.0  ;;  %v5904_v44 = vadd.f32 %v12487_v48, %v5711_v33  ;;  %v13967_v13 = vld [vmem:[#allocation177_spill] sm:$0xff]  ;;  %v13968_v48 = vld [vmem:[#allocation178_spill] sm:$0xff] }
 0x579   :  { %v6080_v50 = vpop.f32.mrf.mxu0  ;;  %7045 = vmatmul.mubr.bf16.gmra.mxu1 %v6494_v4 }
 0x57a   :  { %v6273_v40 = vpop.f32.mrf.mxu1  ;;  %v6410_v60 = vmax.f32 %v6268_v2, 0.0  ;;  %v6270_v6 = vadd.f32 %v6269_v9, %v6077_v32  ;;  %v6081_v30 = vadd.f32 %v6080_v50, %v13962_v28  ;;  %v5721_v2 = vadd.f32 %v12500_v36, %v12288_v11 }
 0x57b   :  { %v6082_v22 = vpop.f32.mrf.mxu0 }
 0x57c   :  { %v6275_v49 = vpop.f32.mrf.mxu1  ;;  %v6498_v43 = vpack.c.bf16 %v6410_v60, %v6406_v63  ;;  %v6411_v25 = vmax.f32 %v6270_v6, 0.0  ;;  %v6083_v46 = vadd.f32 %v6082_v22, %v13963_v51  ;;  %v6274_v10 = vadd.f32 %v6273_v40, %v6081_v30 }
 0x57d   :  { %v6084_v54 = vpop.f32.mrf.mxu0 }
 0x57e   :  { %v6277_v45 = vpop.f32.mrf.mxu1  ;;  %v6499_v37 = vpack.c.bf16 %v6411_v25, %v6407_v8  ;;  %v6085_v29 = vadd.f32 %v6084_v54, %v13964_v39  ;;  %v6276_v58 = vadd.f32 %v6275_v49, %v6083_v46  ;;  %v6414_v62 = vmax.f32 %v6274_v10, 0.0  ;;  %v13969_v8 = vld [vmem:[#allocation249_spill] sm:$0xff] }
 0x57f   :  { %v6086_v59 = vpop.f32.mrf.mxu0  ;;  %v5914_v46 = vadd.f32 %v12502_v52, %v5721_v2  ;;  %v13971_v52 = vld [vmem:[#allocation187_spill] sm:$0xff] }
 0x580   :  { %v6279_v23 = vpop.f32.mrf.mxu1  ;;  %v6278_v27 = vadd.f32 %v6277_v45, %v6085_v29  ;;  %v6087_v5 = vadd.f32 %v6086_v59, %v5894_v55  ;;  %7052 = vmatprep.mubr.bf16.mxu1 %v6499_v37  ;;  %v6415_v61 = vmax.f32 %v6276_v58, 0.0  ;;  %v13970_v45 = vld [vmem:[#allocation183_spill] sm:$0xff] }
 0x581   :  { %v6090_v34 = vpop.f32.mrf.mxu0  ;;  %7053 = vmatmul.mubr.bf16.gmra.mxu1 %v6498_v43 }
 0x582   :  { %v6283_v24 = vpop.f32.mrf.mxu1  ;;  %v6418_v42 = vmax.f32 %v6278_v27, 0.0  ;;  %v6280_v31 = vadd.f32 %v6279_v23, %v6087_v5  ;;  %v6091_v7 = vadd.f32 %v6090_v34, %v13965_v20  ;;  %v5731_v23 = vadd.f32 %v12515_v56, %v12288_v11 }
 0x583   :  { %v6092_v0 = vpop.f32.mrf.mxu0 }
 0x584   :  { %v6285_v35 = vpop.f32.mrf.mxu1  ;;  %v6502_v12 = vpack.c.bf16 %v6418_v42, %v6414_v62  ;;  %v6419_v4 = vmax.f32 %v6280_v31, 0.0  ;;  %v6093_v1 = vadd.f32 %v6092_v0, %v13966_v19  ;;  %v6284_v21 = vadd.f32 %v6283_v24, %v6091_v7  ;;  %v13972_v0 = vld [vmem:[#allocation184_spill] sm:$0xff] }
 0x585   :  { %v6094_v14 = vpop.f32.mrf.mxu0 }
 0x586   :  { %v6287_v57 = vpop.f32.mrf.mxu1  ;;  %v6503_v53 = vpack.c.bf16 %v6419_v4, %v6415_v61  ;;  %v6095_v3 = vadd.f32 %v6094_v14, %v13967_v13  ;;  %v6286_v38 = vadd.f32 %v6285_v35, %v6093_v1  ;;  %v6422_v50 = vmax.f32 %v6284_v21, 0.0  ;;  %v13973_v1 = vld [vmem:[#allocation188_spill] sm:$0xff] }
 0x587   :  { %v6096_v18 = vpop.f32.mrf.mxu0  ;;  %v5924_v4 = vadd.f32 %v12517_v26, %v5731_v23  ;;  %v13974_v26 = vld [vmem:[#allocation79_spill] sm:$0xff] }
 0x588   :  { %v6289_v15 = vpop.f32.mrf.mxu1  ;;  %v6288_v9 = vadd.f32 %v6287_v57, %v6095_v3  ;;  %v6097_v41 = vadd.f32 %v6096_v18, %v5904_v44  ;;  %7060 = vmatprep.mubr.bf16.mxu1 %v6503_v53  ;;  %v6423_v30 = vmax.f32 %v6286_v38, 0.0  ;;  %v5741_v3 = vadd.f32 %v12530_v17, %v12288_v11 }
 0x589   :  { %v6100_v32 = vpop.f32.mrf.mxu0  ;;  %7061 = vmatmul.mubr.bf16.gmra.mxu1 %v6502_v12 }
 0x58a   :  { %v6293_v16 = vpop.f32.mrf.mxu1  ;;  %v6426_v40 = vmax.f32 %v6288_v9, 0.0  ;;  %v6290_v63 = vadd.f32 %v6289_v15, %v6097_v41  ;;  %v6101_v60 = vadd.f32 %v6100_v32, %v13968_v48  ;;  %v13975_v48 = vld [vmem:[#allocation185_spill] sm:$0xff] }
 0x58b   :  { %v6102_v6 = vpop.f32.mrf.mxu0 }
 0x58c   :  { %v6295_v28 = vpop.f32.mrf.mxu1  ;;  %v6506_v22 = vpack.c.bf16 %v6426_v40, %v6422_v50  ;;  %v6427_v49 = vmax.f32 %v6290_v63, 0.0  ;;  %v6103_v43 = vadd.f32 %v6102_v6, %v13969_v8  ;;  %v6294_v54 = vadd.f32 %v6293_v16, %v6101_v60 }
 0x58d   :  { %v6104_v25 = vpop.f32.mrf.mxu0 }
 0x58e   :  { %v6297_v51 = vpop.f32.mrf.mxu1  ;;  %v6507_v36 = vpack.c.bf16 %v6427_v49, %v6423_v30  ;;  %v6105_v55 = vadd.f32 %v6104_v25, %v13970_v45  ;;  %v6296_v39 = vadd.f32 %v6295_v28, %v6103_v43  ;;  %v6430_v5 = vmax.f32 %v6294_v54, 0.0  ;;  %v13976_v49 = vld [vmem:[#allocation72_spill] sm:$0xff]  ;;  %v13977_v54 = vld [vmem:[#allocation190_spill] sm:$0xff] }
 0x58f   :  { %v6106_v37 = vpop.f32.mrf.mxu0  ;;  %v5934_v30 = vadd.f32 %v12532_v47, %v5741_v3  ;;  %v5751_v45 = vadd.f32 %v13977_v54, %v12288_v11  ;;  %v13978_v47 = vld [vmem:[#allocation189_spill] sm:$0xff] }
 0x590   :  { %v6299_v10 = vpop.f32.mrf.mxu1  ;;  %v6298_v29 = vadd.f32 %v6297_v51, %v6105_v55  ;;  %v6107_v59 = vadd.f32 %v6106_v37, %v5914_v46  ;;  %7068 = vmatprep.mubr.bf16.mxu1 %v6507_v36  ;;  %v6431_v31 = vmax.f32 %v6296_v39, 0.0 }
 0x591   :  { %v6110_v58 = vpop.f32.mrf.mxu0  ;;  %7069 = vmatmul.mubr.bf16.gmra.mxu1 %v6506_v22 }
 0x592   :  { %v6303_v27 = vpop.f32.mrf.mxu1  ;;  %v6434_v33 = vmax.f32 %v6298_v29, 0.0  ;;  %v6300_v34 = vadd.f32 %v6299_v10, %v6107_v59  ;;  %v6111_v24 = vadd.f32 %v6110_v58, %v13971_v52 }
 0x593   :  { %v6112_v62 = vpop.f32.mrf.mxu0 }
 0x594   :  { %v6305_v42 = vpop.f32.mrf.mxu1  ;;  %v6510_v20 = vpack.c.bf16 %v6434_v33, %v6430_v5  ;;  %v6435_v7 = vmax.f32 %v6300_v34, 0.0  ;;  %v6113_v35 = vadd.f32 %v6112_v62, %v13972_v0  ;;  %v6304_v19 = vadd.f32 %v6303_v27, %v6111_v24  ;;  %v13979_v34 = vld [vmem:[#allocation83_spill] sm:$0xff] }
 0x595   :  { %v6114_v61 = vpop.f32.mrf.mxu0 }
 0x596   :  { %v6307_v12 = vpop.f32.mrf.mxu1  ;;  %v6511_v56 = vpack.c.bf16 %v6435_v7, %v6431_v31  ;;  %v6115_v14 = vadd.f32 %v6114_v61, %v13973_v1  ;;  %v6306_v53 = vadd.f32 %v6305_v42, %v6113_v35  ;;  %v6438_v38 = vmax.f32 %v6304_v19, 0.0  ;;  %v13980_v42 = vld [vmem:[#allocation84_spill] sm:$0xff]  ;;  %v13981_v7 = vld [vmem:[#allocation186_spill] sm:$0xff] }
 0x597   :  { %v6116_v57 = vpop.f32.mrf.mxu0  ;;  %v5944_v31 = vadd.f32 %v13980_v42, %v5751_v45 }
 0x598   :  { %v6309_v44 = vpop.f32.mrf.mxu1  ;;  %v6308_v21 = vadd.f32 %v6307_v12, %v6115_v14  ;;  %v6117_v13 = vadd.f32 %v6116_v57, %v5924_v4  ;;  %7076 = vmatprep.mubr.bf16.mxu1 %v6511_v56  ;;  %v6439_v50 = vmax.f32 %v6306_v53, 0.0 }
 0x599   :  { %v6120_v18 = vpop.f32.mrf.mxu0  ;;  %7077 = vmatmul.mubr.bf16.gmra.mxu1 %v6510_v20 }
 0x59a   :  { %v6313_v15 = vpop.f32.mrf.mxu1  ;;  %v6442_v9 = vmax.f32 %v6308_v21, 0.0  ;;  %v6310_v41 = vadd.f32 %v6309_v44, %v6117_v13  ;;  %v6121_v2 = vadd.f32 %v6120_v18, %v13974_v26 }
 0x59b   :  { %v6122_v32 = vpop.f32.mrf.mxu0 }
 0x59c   :  { %v6315_v16 = vpop.f32.mrf.mxu1  ;;  %v6514_v40 = vpack.c.bf16 %v6442_v9, %v6438_v38  ;;  %v6443_v63 = vmax.f32 %v6310_v41, 0.0  ;;  %v6123_v60 = vadd.f32 %v6122_v32, %v13975_v48  ;;  %v6314_v22 = vadd.f32 %v6313_v15, %v6121_v2 }
 0x59d   :  { %v6124_v6 = vpop.f32.mrf.mxu0 }
 0x59e   :  { %v6317_v28 = vpop.f32.mrf.mxu1  ;;  %v6515_v17 = vpack.c.bf16 %v6443_v63, %v6439_v50  ;;  %v6125_v8 = vadd.f32 %v6124_v6, %v13976_v49  ;;  %v6316_v51 = vadd.f32 %v6315_v16, %v6123_v60  ;;  %v6446_v10 = vmax.f32 %v6314_v22, 0.0 }
 0x59f   :  { %v6126_v43 = vpop.f32.mrf.mxu0 }
 0x5a0   :  { %v6319_v25 = vpop.f32.mrf.mxu1  ;;  %v6318_v46 = vadd.f32 %v6317_v28, %v6125_v8  ;;  %v6127_v36 = vadd.f32 %v6126_v43, %v5934_v30  ;;  %7084 = vmatprep.mubr.bf16.mxu1 %v6515_v17  ;;  %v6447_v27 = vmax.f32 %v6316_v51, 0.0 }
 0x5a1   :  { %v6130_v55 = vpop.f32.mrf.mxu0  ;;  %7085 = vmatmul.mubr.bf16.gmra.mxu1 %v6514_v40 }
 0x5a2   :  { %v6323_v37 = vpop.f32.mrf.mxu1  ;;  %v6450_v39 = vmax.f32 %v6318_v46, 0.0  ;;  %v6320_v29 = vadd.f32 %v6319_v25, %v6127_v36  ;;  %v6131_v59 = vadd.f32 %v6130_v55, %v13978_v47 }
 0x5a3   :  { %v6132_v23 = vpop.f32.mrf.mxu0 }
 0x5a4   :  { %v6325_v58 = vpop.f32.mrf.mxu1  ;;  %v6518_v5 = vpack.c.bf16 %v6450_v39, %v6446_v10  ;;  %v6451_v33 = vmax.f32 %v6320_v29, 0.0  ;;  %v6133_v52 = vadd.f32 %v6132_v23, %v13979_v34  ;;  %v6324_v20 = vadd.f32 %v6323_v37, %v6131_v59  ;;  %v12699_v29 = vld [vmem:[%s12819_s12] ss:$0 sm:$0xff]  ;;  %s8534_s12 = smov [#allocation5]  }
 0x5a5   :  { %v6134_v24 = vpop.f32.mrf.mxu0  ;;  %s7202_s28 = sshll.u32 %s8534_s12, 4  ;;  %s7203_s28 = int_to_ptr.vmem [resolvable:$true] %s7202_s28 }
 0x5a6   :  { %v6327_v62 = vpop.f32.mrf.mxu1  ;;  %v6519_v11 = vpack.c.bf16 %v6451_v33, %v6447_v27  ;;  %v6135_v0 = vadd.f32 %v6134_v24, %v13981_v7  ;;  %v6326_v61 = vadd.f32 %v6325_v58, %v6133_v52  ;;  %v6454_v1 = vmax.f32 %v6324_v20, 0.0  ;;  %s8505_s5 = scalar_lea.vmem %s7203_s28, 32  ;;  %p8510_p6 = scmp.lt.s32.totalorder %s7203_s28, %s7203_s28 }
 0x5a7   :  { %v6136_v35 = vpop.f32.mrf.mxu0  ;;  %p8506_p5 = scmp.ne.s32.totalorder %s7203_s28, %s8505_s5  ;;  %p8511_p7 = scmp.lt.s32.totalorder %s8505_s5, %s8505_s5 }
 0x5a8   :  { %v6328_v12 = vadd.f32 %v6327_v62, %v6135_v0  ;;  %v6137_v4 = vadd.f32 %v6136_v35, %v5944_v31  ;;  %7092 = vmatprep.mubr.bf16.mxu1 %v6519_v11  ;;  %v6329_v56 = vpop.f32.mrf.mxu1  ;;  %v6455_v53 = vmax.f32 %v6326_v61, 0.0 }
 0x5a9   :  { %v7758_v19 = vpop.f32.mrf.mxu0  ;;  %7093 = vmatmul.mubr.bf16.gmra.mxu1 %v6518_v5  ;;  %p8512_p8 = por %p8511_p7, %p8510_p6 }
 0x5aa   :  { %v6458_v14 = vmax.f32 %v6328_v12, 0.0  ;;  %v6330_v57 = vadd.f32 %v6329_v56, %v6137_v4 }
 0x5ab   :  { %v7759_v44 = vpop.f32.mrf.mxu0  ;;  %p8513_p9 = pnand %p8512_p8, %p8506_p5 }
 0x5ac   :  { %v6522_v21 = vpack.c.bf16 %v6458_v14, %v6454_v1  ;;  %v6459_v13 = vmax.f32 %v6330_v57, 0.0  ;;  %v7760_v39 = vadd.f32 %v7759_v44, %v7758_v19 }
 0x5ad   :  { %v7761_v3 = vpop.f32.mrf.mxu0 }
 0x5ae   :  { %v6523_v18 = vpack.c.bf16 %v6459_v13, %v6455_v53  ;;  %v6822_v5 = vadd.f32 %v7760_v39, %v12699_v29 }
 0x5af   :  { %v7762_v15 = vpop.f32.mrf.mxu0 }
 0x5b0   :  { %7100 = vmatprep.mubr.bf16.mxu1 %v6523_v18  ;;  %v7763_v58 = vadd.f32 %v7762_v15, %v7761_v3 }
 0x5b1   :  { %v7764_v38 = vpop.f32.mrf.mxu0  ;;  %7101 = vmatmul.mubr.bf16.gmra.mxu1 %v6522_v21 }
 0x5b2   :  { %v6825_v62 = vadd.f32 %v7763_v58, %v12699_v29 }
 0x5b3   :  { %v7765_v9 = vpop.f32.mrf.mxu0 }
 0x5b4   :  { %v7766_v42 = vadd.f32 %v7765_v9, %v7764_v38 }
 0x5b5   :  { %v7767_v41 = vpop.f32.mrf.mxu0 }
 0x5b6   :  { %v6830_v35 = vadd.f32 %v7766_v42, %v12699_v29 }
 0x5b7   :  { %v7768_v26 = vpop.f32.mrf.mxu0 }
 0x5b8   :  { %v7769_v61 = vadd.f32 %v7768_v26, %v7767_v41 }
 0x5b9   :  { %v7770_v2 = vpop.f32.mrf.mxu0 }
 0x5ba   :  { %v6833_v14 = vadd.f32 %v7769_v61, %v12699_v29 }
 0x5bb   :  { %v7771_v32 = vpop.f32.mrf.mxu0 }
 0x5bc   :  { %v7772_v57 = vadd.f32 %v7771_v32, %v7770_v2 }
 0x5bd   :  { %v7773_v16 = vpop.f32.mrf.mxu0 }
 0x5be   :  { %v6838_v18 = vadd.f32 %v7772_v57, %v12699_v29 }
 0x5bf   :  { %v7774_v50 = vpop.f32.mrf.mxu0 }
 0x5c0   :  { %v7775_v15 = vadd.f32 %v7774_v50, %v7773_v16 }
 0x5c1   :  { %v12654_v40 = vpop.f32.mrf.mxu0 }
 0x5c3   :  { %v12656_v63 = vpop.f32.mrf.mxu0 }
 0x5c4   :  { %v7778_v2 = vadd.f32 %v12656_v63, %v12654_v40 }
 0x5c5   :  { %v12658_v48 = vpop.f32.mrf.mxu0 }
 0x5c6   :  { %v6846_v16 = vadd.f32 %v7778_v2, %v12699_v29 }
 0x5c7   :  { %v12660_v60 = vpop.f32.mrf.mxu0 }
 0x5c8   :  { %v7781_v50 = vadd.f32 %v12660_v60, %v12658_v48 }
 0x5c9   :  { %v12662_v6 = vpop.f32.mrf.mxu0 }
 0x5ca   :  { %v6849_v40 = vadd.f32 %v7781_v50, %v12699_v29 }
 0x5cb   :  { %v12664_v28 = vpop.f32.mrf.mxu0 }
 0x5cc   :  { %v7784_v63 = vadd.f32 %v12664_v28, %v12662_v6 }
 0x5cd   :  { %v12666_v30 = vpop.f32.mrf.mxu0 }
 0x5ce   :  { %v6854_v48 = vadd.f32 %v7784_v63, %v12699_v29 }
 0x5cf   :  { %v12668_v17 = vpop.f32.mrf.mxu0 }
 0x5d0   :  { %v7787_v60 = vadd.f32 %v12668_v17, %v12666_v30 }
 0x5d1   :  { %v12670_v22 = vpop.f32.mrf.mxu0 }
 0x5d2   :  { %v6857_v6 = vadd.f32 %v7787_v60, %v12699_v29 }
 0x5d3   :  { %v12672_v49 = vpop.f32.mrf.mxu0 }
 0x5d4   :  { %v7790_v28 = vadd.f32 %v12672_v49, %v12670_v22 }
 0x5d5   :  { %v12674_v8 = vpop.f32.mrf.mxu0 }
 0x5d6   :  { %v6862_v30 = vadd.f32 %v7790_v28, %v12699_v29 }
 0x5d7   :  { %v12676_v43 = vpop.f32.mrf.mxu0 }
 0x5d8   :  { %v7793_v17 = vadd.f32 %v12676_v43, %v12674_v8 }
 0x5d9   :  { %v12678_v25 = vpop.f32.mrf.mxu0 }
 0x5da   :  { %v6865_v22 = vadd.f32 %v7793_v17, %v12699_v29 }
 0x5db   :  { %v12680_v51 = vpop.f32.mrf.mxu0 }
 0x5dc   :  { %v7796_v49 = vadd.f32 %v12680_v51, %v12678_v25 }
 0x5dd   :  { %v12682_v46 = vpop.f32.mrf.mxu0 }
 0x5de   :  { %v6870_v8 = vadd.f32 %v7796_v49, %v12699_v29 }
 0x5df   :  { %v12684_v36 = vpop.f32.mrf.mxu0 }
 0x5e0   :  { %v7799_v43 = vadd.f32 %v12684_v36, %v12682_v46 }
 0x5e1   :  { %v12686_v54 = vpop.f32.mrf.mxu0 }
 0x5e2   :  { %v6873_v25 = vadd.f32 %v7799_v43, %v12699_v29 }
 0x5e3   :  { %v12688_v45 = vpop.f32.mrf.mxu0 }
 0x5e4   :  { %v7802_v51 = vadd.f32 %v12688_v45, %v12686_v54 }
 0x5e5   :  { %v12690_v55 = vpop.f32.mrf.mxu0 }
 0x5e6   :  { %v6878_v46 = vadd.f32 %v7802_v51, %v12699_v29 }
 0x5e7   :  { %v12692_v37 = vpop.f32.mrf.mxu0 }
 0x5e8   :  { %v7805_v36 = vadd.f32 %v12692_v37, %v12690_v55 }
 0x5e9   :  { %v12694_v10 = vpop.f32.mrf.mxu0 }
 0x5ea   :  { %v6881_v54 = vadd.f32 %v7805_v36, %v12699_v29 }
 0x5eb   :  { %v12701_v47 = vpop.f32.mrf.mxu0 }
 0x5ec   :  { %v7808_v45 = vadd.f32 %v12701_v47, %v12694_v10 }
 0x5ed   :  { %v12704_v33 = vpop.f32.mrf.mxu0 }
 0x5ef   :  { %v12707_v11 = vpop.f32.mrf.mxu0 }
 0x5f0   :  { %v7811_v55 = vadd.f32 %v12707_v11, %v12704_v33 }
 0x5f1   :  { %v12710_v4 = vpop.f32.mrf.mxu0 }
 0x5f3   :  { %v12713_v53 = vpop.f32.mrf.mxu0 }
 0x5f4   :  { %v7814_v10 = vadd.f32 %v12713_v53, %v12710_v4 }
 0x5f5   :  { %v12716_v9 = vpop.f32.mrf.mxu0 }
 0x5f6   :  { %v6894_v33 = vadd.f32 %v7814_v10, %v12699_v29 }
 0x5f9   :  { %v7870_v59 = vpop.f32.mrf.mxu1 }
 0x5fb   :  { %v7871_v23 = vpop.f32.mrf.mxu1 }
 0x5fc   :  { %v7872_v27 = vadd.f32 %v7871_v23, %v7870_v59  ;;  %v6841_v59 = vadd.f32 %v7775_v15, %v12699_v29  ;;  %v12721_v23 = vpop.f32.mrf.mxu0 }
 0x5fd   :  { %v7873_v34 = vpop.f32.mrf.mxu1  ;;  %v7817_v11 = vadd.f32 %v12721_v23, %v12716_v9 }
 0x5fe   :  { %v6983_v52 = vadd.f32 %v7872_v27, %v6822_v5 }
 0x5ff   :  { %v7874_v24 = vpop.f32.mrf.mxu1 }
 0x600   :  { %v7875_v31 = vadd.f32 %v7874_v24, %v7873_v34  ;;  %7109 = vxpose.xlu0.b32.start [1/16] (narrow) %v6983_v52, 8  ;;  %v12726_v52 = vpop.f32.mrf.mxu0 }
 0x601   :  { %v7876_v20 = vpop.f32.mrf.mxu1 }
 0x602   :  { %v6986_v7 = vadd.f32 %v7875_v31, %v6825_v62 }
 0x603   :  { %v7877_v0 = vpop.f32.mrf.mxu1 }
 0x604   :  { %v7878_v12 = vadd.f32 %v7877_v0, %v7876_v20  ;;  %7110 = vxpose.xlu0.b32.cont [2/16] (narrow) %v6986_v7, 8  ;;  %v12731_v20 = vpop.f32.mrf.mxu0 }
 0x605   :  { %v7879_v56 = vpop.f32.mrf.mxu1  ;;  %v7820_v4 = vadd.f32 %v12731_v20, %v12726_v52 }
 0x606   :  { %v6991_v19 = vadd.f32 %v7878_v12, %v6830_v35  ;;  %v12736_v12 = vpop.f32.mrf.mxu0 }
 0x607   :  { %v7880_v1 = vpop.f32.mrf.mxu1  ;;  %v6902_v43 = vadd.f32 %v7820_v4, %v12699_v29 }
 0x608   :  { %v7881_v44 = vadd.f32 %v7880_v1, %v7879_v56  ;;  %7111 = vxpose.xlu0.b32.cont [3/16] (narrow) %v6991_v19, 8  ;;  %v12741_v57 = vpop.f32.mrf.mxu0 }
 0x609   :  { %v7882_v21 = vpop.f32.mrf.mxu1  ;;  %v7823_v9 = vadd.f32 %v12741_v57, %v12736_v12 }
 0x60a   :  { %v6994_v13 = vadd.f32 %v7881_v44, %v6833_v14 }
 0x60b   :  { %v7883_v3 = vpop.f32.mrf.mxu1 }
 0x60c   :  { %v7884_v38 = vadd.f32 %v7883_v3, %v7882_v21  ;;  %7112 = vxpose.xlu0.b32.cont [4/16] (narrow) %v6994_v13, 8 }
 0x60d   :  { %v7885_v41 = vpop.f32.mrf.mxu1 }
 0x60e   :  { %v6999_v26 = vadd.f32 %v7884_v38, %v6838_v18  ;;  %v12746_v18 = vpop.f32.mrf.mxu0 }
 0x60f   :  { %v7886_v39 = vpop.f32.mrf.mxu1 }
 0x610   :  { %v7887_v32 = vadd.f32 %v7886_v39, %v7885_v41  ;;  %7113 = vxpose.xlu0.b32.cont [5/16] (narrow) %v6999_v26, 8  ;;  %v12751_v39 = vpop.f32.mrf.mxu0 }
 0x611   :  { %v7888_v58 = vpop.f32.mrf.mxu1  ;;  %v7826_v52 = vadd.f32 %v12751_v39, %v12746_v18 }
 0x612   :  { %v7002_v27 = vadd.f32 %v7887_v32, %v6841_v59 }
 0x613   :  { %v7889_v5 = vpop.f32.mrf.mxu1 }
 0x614   :  { %v7890_v34 = vadd.f32 %v7889_v5, %v7888_v58  ;;  %7114 = vxpose.xlu0.b32.cont [6/16] (narrow) %v7002_v27, 8  ;;  %v12756_v27 = vpop.f32.mrf.mxu0 }
 0x615   :  { %v7891_v24 = vpop.f32.mrf.mxu1 }
 0x616   :  { %v7007_v62 = vadd.f32 %v7890_v34, %v6846_v16 }
 0x617   :  { %v7892_v42 = vpop.f32.mrf.mxu1 }
 0x618   :  { %v7893_v31 = vadd.f32 %v7892_v42, %v7891_v24  ;;  %7115 = vxpose.xlu0.b32.cont [7/16] (narrow) %v7007_v62, 8  ;;  %v12761_v24 = vpop.f32.mrf.mxu0 }
 0x619   :  { %v7894_v7 = vpop.f32.mrf.mxu1  ;;  %v7829_v12 = vadd.f32 %v12761_v24, %v12756_v27 }
 0x61a   :  { %v7010_v0 = vadd.f32 %v7893_v31, %v6849_v40  ;;  %v12766_v31 = vpop.f32.mrf.mxu0 }
 0x61b   :  { %v7895_v35 = vpop.f32.mrf.mxu1 }
 0x61c   :  { %v7896_v61 = vadd.f32 %v7895_v35, %v7894_v7  ;;  %7116 = vxpose.xlu0.b32.cont [8/16] (narrow) %v7010_v0, 8  ;;  %v7831_v60 = vpop.f32.mrf.mxu0 }
 0x61d   :  { %v7897_v56 = vpop.f32.mrf.mxu1  ;;  %v7832_v18 = vadd.f32 %v7831_v60, %v12766_v31 }
 0x61e   :  { %v7015_v19 = vadd.f32 %v7896_v61, %v6854_v48 }
 0x61f   :  { %v7898_v1 = vpop.f32.mrf.mxu1 }
 0x620   :  { %v7899_v14 = vadd.f32 %v7898_v1, %v7897_v56  ;;  %7117 = vxpose.xlu0.b32.cont [9/16] (narrow) %v7015_v19, 8  ;;  %v6886_v1 = vadd.f32 %v7808_v45, %v12699_v29 }
 0x621   :  { %v7900_v44 = vpop.f32.mrf.mxu1 }
 0x622   :  { %v7018_v21 = vadd.f32 %v7899_v14, %v6857_v6  ;;  %v7833_v6 = vpop.f32.mrf.mxu0 }
 0x623   :  { %v7901_v13 = vpop.f32.mrf.mxu1 }
 0x624   :  { %v7902_v3 = vadd.f32 %v7901_v13, %v7900_v44  ;;  %7118 = vxpose.xlu0.b32.cont [10/16] (narrow) %v7018_v21, 8  ;;  %v6889_v21 = vadd.f32 %v7811_v55, %v12699_v29  ;;  %v7834_v13 = vpop.f32.mrf.mxu0 }
 0x625   :  { %v7903_v15 = vpop.f32.mrf.mxu1 }
 0x626   :  { %v7023_v38 = vadd.f32 %v7902_v3, %v6862_v30 }
 0x627   :  { %v7904_v41 = vpop.f32.mrf.mxu1 }
 0x628   :  { %v7905_v26 = vadd.f32 %v7904_v41, %v7903_v15  ;;  %7119 = vxpose.xlu0.b32.cont [11/16] (narrow) %v7023_v38, 8  ;;  %v7836_v38 = vpop.f32.mrf.mxu0 }
 0x629   :  { %v7906_v59 = vpop.f32.mrf.mxu1 }
 0x62a   :  { %v7026_v2 = vadd.f32 %v7905_v26, %v6865_v22  ;;  %v6897_v26 = vadd.f32 %v7817_v11, %v12699_v29 }
 0x62b   :  { %v7907_v32 = vpop.f32.mrf.mxu1 }
 0x62c   :  { %v7908_v58 = vadd.f32 %v7907_v32, %v7906_v59  ;;  %7120 = vxpose.xlu0.b32.cont [12/16] (narrow) %v7026_v2, 8  ;;  %v7837_v59 = vpop.f32.mrf.mxu0 }
 0x62d   :  { %v7909_v5 = vpop.f32.mrf.mxu1 }
 0x62e   :  { %v7031_v16 = vadd.f32 %v7908_v58, %v6870_v8  ;;  %v7839_v58 = vpop.f32.mrf.mxu0 }
 0x62f   :  { %v7910_v50 = vpop.f32.mrf.mxu1 }
 0x630   :  { %v7911_v34 = vadd.f32 %v7910_v50, %v7909_v5  ;;  %7121 = vxpose.xlu0.b32.cont [13/16] (narrow) %v7031_v16, 8  ;;  %v7840_v51 = vpop.f32.mrf.mxu0 }
 0x631   :  { %v7912_v62 = vpop.f32.mrf.mxu1 }
 0x632   :  { %v7034_v42 = vadd.f32 %v7911_v34, %v6873_v25  ;;  %v6905_v25 = vadd.f32 %v7823_v9, %v12699_v29 }
 0x633   :  { %v7913_v40 = vpop.f32.mrf.mxu1 }
 0x634   :  { %v7914_v63 = vadd.f32 %v7913_v40, %v7912_v62  ;;  %7122 = vxpose.xlu0.b32.cont [14/16] (narrow) %v7034_v42, 8  ;;  %v6910_v40 = vadd.f32 %v7826_v52, %v12699_v29 }
 0x635   :  { %v7915_v7 = vpop.f32.mrf.mxu1 }
 0x636   :  { %v7039_v0 = vadd.f32 %v7914_v63, %v6878_v46  ;;  %v7842_v46 = vpop.f32.mrf.mxu0 }
 0x637   :  { %v7916_v35 = vpop.f32.mrf.mxu1 }
 0x638   :  { %v7917_v48 = vadd.f32 %v7916_v35, %v7915_v7  ;;  %7123 = vxpose.xlu0.b32.cont [15/16] (narrow) %v7039_v0, 8  ;;  %v6913_v0 = vadd.f32 %v7829_v12, %v12699_v29  ;;  %v7843_v35 = vpop.f32.mrf.mxu0 }
 0x639   :  { %v7918_v61 = vpop.f32.mrf.mxu1  ;;  %v7844_v11 = vadd.f32 %v7843_v35, %v7842_v46 }
 0x63a   :  { %v7042_v56 = vadd.f32 %v7917_v48, %v6881_v54  ;;  %v7845_v24 = vpop.f32.mrf.mxu0 }
 0x63b   :  { %v7919_v19 = vpop.f32.mrf.mxu1 }
 0x63c   :  { %v7920_v37 = vadd.f32 %v7919_v19, %v7918_v61  ;;  %7124 = vxpose.xlu0.b32.end [16/16] (narrow) %v7042_v56, 8  ;;  %v6918_v61 = vadd.f32 %v7832_v18, %v12699_v29  ;;  %v7835_v56 = vadd.f32 %v7834_v13, %v7833_v6  ;;  %v7846_v31 = vpop.f32.mrf.mxu0 }
 0x63d   :  { %v7921_v28 = vpop.f32.mrf.mxu1  ;;  %v7847_v4 = vadd.f32 %v7846_v31, %v7845_v24 }
 0x63e   :  { %v7047_v14 = vadd.f32 %v7920_v37, %v6886_v1  ;;  %v6921_v1 = vadd.f32 %v7835_v56, %v12699_v29  ;;  %v7848_v6 = vpop.f32.mrf.mxu0 }
 0x63f   :  { %v7922_v44 = vpop.f32.mrf.mxu1 }
 0x640   :  { %v7923_v47 = vadd.f32 %v7922_v44, %v7921_v28  ;;  %7141 = vxpose.xlu1.b32.start [1/16] (narrow) %v7047_v14, 8  ;;  %v7838_v28 = vadd.f32 %v7837_v59, %v7836_v38  ;;  %v7849_v38 = vpop.f32.mrf.mxu0 }
 0x641   :  { %v7924_v30 = vpop.f32.mrf.mxu1  ;;  %v7850_v9 = vadd.f32 %v7849_v38, %v7848_v6 }
 0x642   :  { %v7050_v17 = vadd.f32 %v7923_v47, %v6889_v21  ;;  %v6926_v10 = vadd.f32 %v7838_v28, %v12699_v29  ;;  %v7841_v47 = vadd.f32 %v7840_v51, %v7839_v58  ;;  %v7851_v59 = vpop.f32.mrf.mxu0 }
 0x643   :  { %v7925_v3 = vpop.f32.mrf.mxu1 }
 0x644   :  { %v7926_v15 = vadd.f32 %v7925_v3, %v7924_v30  ;;  %7142 = vxpose.xlu1.b32.cont [2/16] (narrow) %v7050_v17, 8  ;;  %v7852_v58 = vpop.f32.mrf.mxu0 }
 0x645   :  { %v7927_v41 = vpop.f32.mrf.mxu1  ;;  %v7853_v52 = vadd.f32 %v7852_v58, %v7851_v59 }
 0x646   :  { %v7055_v22 = vadd.f32 %v7926_v15, %v6894_v33  ;;  %v6929_v33 = vadd.f32 %v7841_v47, %v12699_v29 }
 0x647   :  { %v7928_v49 = vpop.f32.mrf.mxu1 }
 0x648   :  { %v7929_v53 = vadd.f32 %v7928_v49, %v7927_v41  ;;  %7143 = vxpose.xlu1.b32.cont [3/16] (narrow) %v7055_v22, 8 }
 0x649   :  { %v7930_v2 = vpop.f32.mrf.mxu1 }
 0x64a   :  { %v7058_v32 = vadd.f32 %v7929_v53, %v6897_v26  ;;  %v6934_v26 = vadd.f32 %v7844_v11, %v12699_v29 }
 0x64b   :  { %v7931_v8 = vpop.f32.mrf.mxu1 }
 0x64c   :  { %v7932_v23 = vadd.f32 %v7931_v8, %v7930_v2  ;;  %7144 = vxpose.xlu1.b32.cont [4/16] (narrow) %v7058_v32, 8 }
 0x64d   :  { %v7933_v5 = vpop.f32.mrf.mxu1 }
 0x64e   :  { %v7063_v16 = vadd.f32 %v7932_v23, %v6902_v43  ;;  %v6937_v43 = vadd.f32 %v7847_v4, %v12699_v29 }
 0x64f   :  { %v7934_v50 = vpop.f32.mrf.mxu1 }
 0x650   :  { %v7935_v20 = vadd.f32 %v7934_v50, %v7933_v5  ;;  %7145 = vxpose.xlu1.b32.cont [5/16] (narrow) %v7063_v16, 8 }
 0x651   :  { %v7936_v34 = vpop.f32.mrf.mxu1 }
 0x652   :  { %v7066_v62 = vadd.f32 %v7935_v20, %v6905_v25  ;;  %v6942_v25 = vadd.f32 %v7850_v9, %v12699_v29 }
 0x653   :  { %v7937_v42 = vpop.f32.mrf.mxu1 }
 0x654   :  { %v7938_v57 = vadd.f32 %v7937_v42, %v7936_v34  ;;  %7146 = vxpose.xlu1.b32.cont [6/16] (narrow) %v7066_v62, 8  ;;  %v6945_v42 = vadd.f32 %v7853_v52, %v12699_v29 }
 0x655   :  { %v7939_v36 = vpop.f32.mrf.mxu1 }
 0x656   :  { %v7071_v63 = vadd.f32 %v7938_v57, %v6910_v40  ;;  %v8533_v57 = vmov 1966171168  }
 0x657   :  { %v7940_v7 = vpop.f32.mrf.mxu1  ;;  %v7177_v46 = vunpack.c.l.s4 %v8533_v57 }
 0x658   :  { %v7941_v39 = vadd.f32 %v7940_v7, %v7939_v36  ;;  %7147 = vxpose.xlu1.b32.cont [7/16] (narrow) %v7071_v63, 8  ;;  %v13982_v7 = vld [vmem:[#allocation254_spill] sm:$0xff] }
 0x659   :  { %v7942_v54 = vpop.f32.mrf.mxu1  ;;  %v7178_v36 = vunpack.c.0.s8 %v7177_v46 }
 0x65a   :  { %v7074_v45 = vadd.f32 %v7941_v39, %v6913_v0 }
 0x65b   :  { %v7943_v48 = vpop.f32.mrf.mxu1  ;;  %v7181_v0 = vsub.s32 %v7178_v36, %v13982_v7 }
 0x65c   :  { %v7944_v27 = vadd.f32 %v7943_v48, %v7942_v54  ;;  %7148 = vxpose.xlu1.b32.cont [8/16] (narrow) %v7074_v45, 8  ;;  %v13983_v54 = vlaneseq }
 0x65d   :  { %v7945_v19 = vpop.f32.mrf.mxu1 }
 0x65e   :  { %v7079_v55 = vadd.f32 %v7944_v27, %v6918_v61  ;;  %vm7193_vm2 = vcmp.lt.s32.totalorder %v13983_v54, 256 }
 0x65f   :  { %v7946_v37 = vpop.f32.mrf.mxu1 }
 0x660   :  { %v7947_v14 = vadd.f32 %v7946_v37, %v7945_v19  ;;  %7149 = vxpose.xlu1.b32.cont [9/16] (narrow) %v7079_v55, 8 }
 0x661   :  { %v7948_v60 = vpop.f32.mrf.mxu1 }
 0x662   :  { %v7082_v44 = vadd.f32 %v7947_v14, %v6921_v1 }
 0x663   :  { %v7949_v21 = vpop.f32.mrf.mxu1 }
 0x664   :  { %v7950_v30 = vadd.f32 %v7949_v21, %v7948_v60  ;;  %7150 = vxpose.xlu1.b32.cont [10/16] (narrow) %v7082_v44, 8 }
 0x665   :  { %v7951_v13 = vpop.f32.mrf.mxu1 }
 0x666   :  { %v7087_v17 = vadd.f32 %v7950_v30, %v6926_v10 }
 0x667   :  { %v7952_v3 = vpop.f32.mrf.mxu1 }
 0x668   :  { %v7953_v15 = vadd.f32 %v7952_v3, %v7951_v13  ;;  %7151 = vxpose.xlu1.b32.cont [11/16] (narrow) %v7087_v17, 8 }
 0x669   :  { %v7954_v41 = vpop.f32.mrf.mxu1 }
 0x66a   :  { %v7090_v22 = vadd.f32 %v7953_v15, %v6929_v33 }
 0x66b   :  { %v7955_v49 = vpop.f32.mrf.mxu1 }
 0x66c   :  { %v7956_v53 = vadd.f32 %v7955_v49, %v7954_v41  ;;  %7152 = vxpose.xlu1.b32.cont [12/16] (narrow) %v7090_v22, 8 }
 0x66d   :  { %v7957_v2 = vpop.f32.mrf.mxu1 }
 0x66e   :  { %v7095_v32 = vadd.f32 %v7956_v53, %v6934_v26 }
 0x66f   :  { %v7958_v8 = vpop.f32.mrf.mxu1 }
 0x670   :  { %v7959_v23 = vadd.f32 %v7958_v8, %v7957_v2  ;;  %7153 = vxpose.xlu1.b32.cont [13/16] (narrow) %v7095_v32, 8 }
 0x671   :  { %v7960_v5 = vpop.f32.mrf.mxu1 }
 0x672   :  { %v7098_v16 = vadd.f32 %v7959_v23, %v6937_v43 }
 0x673   :  { %v7961_v50 = vpop.f32.mrf.mxu1 }
 0x674   :  { %v7962_v20 = vadd.f32 %v7961_v50, %v7960_v5  ;;  %7154 = vxpose.xlu1.b32.cont [14/16] (narrow) %v7098_v16, 8 }
 0x675   :  { %v7963_v51 = vpop.f32.mrf.mxu1 }
 0x676   :  { %v7103_v34 = vadd.f32 %v7962_v20, %v6942_v25 }
 0x677   :  { %v7964_v62 = vpop.f32.mrf.mxu1 }
 0x678   :  { %v7965_v40 = vadd.f32 %v7964_v62, %v7963_v51  ;;  %7155 = vxpose.xlu1.b32.cont [15/16] (narrow) %v7103_v34, 8 }
 0x67a   :  { %v7106_v12 = vadd.f32 %v7965_v40, %v6945_v42 }
 0x67c   :  { %7156 = vxpose.xlu1.b32.end [16/16] (narrow) %v7106_v12, 8  ;;  %v7125_v63 = vpop.trf.xlu0 }
 0x6bc   :  { %v7157_v18 = vpop.trf.xlu1 }
 0x6bd   :  { %v7175_v39 = vcombine.low %v7125_v63, %v7157_v18 }
 0x6bf   :  { %v7182_v35 = vrot.slane %v7175_v39, %v7181_v0 }
 0x6c1   :  { %v7189_v45 = vrot.slane %v7182_v35, %v7181_v0 }
 0x6c3   :  { %7195 = vst.msk [vmem:[#allocation5] sm:$0x3] %vm7193_vm2, %v7189_v45 }
 0x6c4   :  { %8516 = shalt.err (!%p8513_p9)
}
 0x6c5   :  { %7205 = dma.vmem_to_hbm [thread:$0]  %s7203_s28, 32, %s12820_s13, [#allocation4]  }
 0x6c6   :  { %8527 = dma.done.wait [#allocation4], 32  }
 0x6c7   :  { %8528 = vsyncadd [#allocation4], 4294967264 }
 0x6c8   :  { %7209 = vsyncpa [#allocation3], 1 }
 0x6c9   :  { %7210 = vsyncpa [#allocation4], 1 }

</bundles_post_ra>
